<compile_context>
chip_gen: v7x
topology: tpu7x:2x2x1
jax: 0.10.0
libtpu: 0.0.40
codegen_flags: <defaults>
</compile_context>

<pallas_src>
import numpy as np
import jax
import jax.numpy as jnp
from jax import lax
from jax.experimental import pallas as pl
from jax.experimental.pallas import tpu as pltpu

# ---------------------------- layout constants -----------------------------
H1, W1 = 32, 32        # conv1 input spatial size
ACC1_ROWS = 904        # conv1 accumulator rows (pool-1 reads up to 33+863=896)
X1_ROWS = 1032         # conv1 input rows incl. kh shifts: 4*32 + ACC1_ROWS
M1_ROWS = 864          # pool-1 candidate rows (g1 selects rows <= 858)
P1_ROWS = 240          # pooled-1 rows, pitch 16 (conv2 reads up to 68+167=235)
ACC2_ROWS = 168        # conv2 accumulator rows (pool-2 reads up to 17+143=160)
M2_ROWS = 144          # pool-2 candidate rows (g2 selects rows <= 136)
NFEAT = 512            # compact per-image feature vector (32 spatial x 16 ch)
LANES = 128


# ------------------------------ Pallas kernels ------------------------------

def _features_kernel(x_ref, w1_ref, b1_ref, g1_ref, w2_ref, b2_ref, g2_ref,
                     out_ref, acc1_ref, p1_ref, acc2_ref):
    """conv1+ReLU+pool+conv2+ReLU+pool for a block of `bt` images."""
    bt = out_ref.shape[0]

    @pl.loop(0, bt)
    def _(bi):
        # ---- conv1: 5 kh-shifted matmuls over the flattened 32x32 grid ----
        # (kw taps and cin are folded into the 16-wide channel dim of x.)
        for kh in range(5):
            slab = x_ref[bi, pl.ds(kh * W1, ACC1_ROWS), :]          # (904,16) bf16
            prod = jnp.dot(slab, w1_ref[kh], preferred_element_type=jnp.float32)
            if kh == 0:
                acc1_ref[...] = prod
            else:
                acc1_ref[...] += prod

        # ---- fused ReLU + 2x2/2 max-pool (28x28 -> 14x14) ----
        # max over the 4 window candidates, gather the stride-2 anchors with a
        # 0/1 selection matmul (pitch-16 output rows), then bias + ReLU.
        m1 = jnp.maximum(
            jnp.maximum(acc1_ref[pl.ds(0, M1_ROWS), :],
                        acc1_ref[pl.ds(1, M1_ROWS), :]),
            jnp.maximum(acc1_ref[pl.ds(W1, M1_ROWS), :],
                        acc1_ref[pl.ds(W1 + 1, M1_ROWS), :]))
        p1 = jnp.dot(g1_ref[...], m1.astype(jnp.bfloat16),
                     preferred_element_type=jnp.float32)             # (240,128)
        p1_ref[...] = jnp.maximum(p1 + b1_ref[...], 0.0).astype(jnp.bfloat16)

        # ---- conv2: 25 shifted matmuls over the pitch-16 pooled-1 grid ----
        for k in range(25):
            kh, kw = divmod(k, 5)
            slab = p1_ref[pl.ds(kh * 16 + kw, ACC2_ROWS), :]         # (168,128) bf16
            prod = jnp.dot(slab, w2_ref[k], preferred_element_type=jnp.float32)
            if k == 0:
                acc2_ref[...] = prod
            else:
                acc2_ref[...] += prod

        # ---- fused ReLU + 2x2/2 max-pool (10x10 -> 5x5) + compact pack ----
        m2 = jnp.maximum(
            jnp.maximum(acc2_ref[pl.ds(0, M2_ROWS), :],
                        acc2_ref[pl.ds(1, M2_ROWS), :]),
            jnp.maximum(acc2_ref[pl.ds(16, M2_ROWS), :],
                        acc2_ref[pl.ds(17, M2_ROWS), :]))
        p2 = jnp.dot(g2_ref[...], m2.astype(jnp.bfloat16),
                     preferred_element_type=jnp.float32)             # (32,128)
        p2 = jnp.maximum(p2 + b2_ref[...], 0.0)
        # zero the pad rows (q >= 25) so the compact feature slab is clean
        q_idx = jax.lax.broadcasted_iota(jnp.int32, p2.shape, 0)
        p2 = jnp.where(q_idx < 25, p2, 0.0)
        # compact interface: only the 16 valid channel lanes are written
        out_ref[bi] = p2[:, :16].astype(jnp.bfloat16)                # (32,16)


def _fc_kernel(x_ref, w1_ref, b1_ref, w2_ref, b2_ref, w3_ref, b3_ref, o_ref):
    """fc1 -> ReLU -> fc2 -> ReLU -> fc3 on a batch tile, weights resident."""
    h = jnp.dot(x_ref[...], w1_ref[...], preferred_element_type=jnp.float32)
    h = jnp.maximum(h + b1_ref[...], 0.0).astype(jnp.bfloat16)
    h = jnp.dot(h, w2_ref[...], preferred_element_type=jnp.float32)
    h = jnp.maximum(h + b2_ref[...], 0.0).astype(jnp.bfloat16)
    o_ref[...] = (jnp.dot(h, w3_ref[...], preferred_element_type=jnp.float32)
                  + b3_ref[...])


# ------------------------------ call wrappers -------------------------------

def _features(xp, fp, bt):
    Bf = xp.shape[0]  # multiple of bt
    return pl.pallas_call(
        _features_kernel,
        out_shape=jax.ShapeDtypeStruct((Bf, 32, 16), jnp.bfloat16),
        grid_spec=pltpu.PrefetchScalarGridSpec(
            num_scalar_prefetch=0,
            grid=(Bf // bt,),
            in_specs=[
                pl.BlockSpec((bt, X1_ROWS, 16), lambda g: (g, 0, 0)),
                pl.BlockSpec((5, 16, LANES), lambda g: (0, 0, 0)),
                pl.BlockSpec((1, LANES), lambda g: (0, 0)),
                pl.BlockSpec((P1_ROWS, M1_ROWS), lambda g: (0, 0)),
                pl.BlockSpec((25, LANES, LANES), lambda g: (0, 0, 0)),
                pl.BlockSpec((1, LANES), lambda g: (0, 0)),
                pl.BlockSpec((32, M2_ROWS), lambda g: (0, 0)),
            ],
            out_specs=pl.BlockSpec((bt, 32, 16), lambda g: (g, 0, 0)),
            scratch_shapes=[
                pltpu.VMEM((ACC1_ROWS, LANES), jnp.float32),
                pltpu.VMEM((P1_ROWS, LANES), jnp.bfloat16),
                pltpu.VMEM((ACC2_ROWS, LANES), jnp.float32),
            ],
        ),
        compiler_params=pltpu.CompilerParams(
            dimension_semantics=("parallel",),
        ),
    )(xp, fp["w1"], fp["b1"], fp["g1"], fp["w2"], fp["b2"], fp["g2"])


def _fc(xf, fp):
    Bp = xf.shape[0]  # multiple of 8
    if Bp <= 8:
        tm = Bp
    else:
        # cap the tile so the grid has >= 2 steps (both v7x TensorCores,
        # pipelined activation DMA on all generations).
        tm = next(t for t in (256, 128, 64, 32, 16, 8)
                  if Bp % t == 0 and Bp // t >= 2)
    return pl.pallas_call(
        _fc_kernel,
        out_shape=jax.ShapeDtypeStruct((Bp, LANES), jnp.float32),
        grid_spec=pltpu.PrefetchScalarGridSpec(
            num_scalar_prefetch=0,
            grid=(Bp // tm,),
            in_specs=[
                pl.BlockSpec((tm, NFEAT), lambda i: (i, 0)),
                pl.BlockSpec((NFEAT, LANES), lambda i: (0, 0)),
                pl.BlockSpec((1, LANES), lambda i: (0, 0)),
                pl.BlockSpec((LANES, LANES), lambda i: (0, 0)),
                pl.BlockSpec((1, LANES), lambda i: (0, 0)),
                pl.BlockSpec((LANES, LANES), lambda i: (0, 0)),
                pl.BlockSpec((1, LANES), lambda i: (0, 0)),
            ],
            out_specs=pl.BlockSpec((tm, LANES), lambda i: (i, 0)),
        ),
        compiler_params=pltpu.CompilerParams(
            dimension_semantics=("parallel",),
        ),
    )(xf, fp["fw1"], fp["fb1"], fp["fw2"], fp["fb2"], fp["fw3"], fp["fb3"])


# ----------------------- parameter init / preparation -----------------------

def init_params(key):
    """Deterministic PyTorch-style uniform(-1/sqrt(fan_in), 1/sqrt(fan_in))."""
    ks = jax.random.split(key, 10)

    def u(k, shape, fan_in):
        bound = 1.0 / float(np.sqrt(fan_in))
        return jax.random.uniform(k, shape, jnp.float32, -bound, bound)

    return {
        "conv1_w": u(ks[0], (36, 3, 5, 5), 3 * 5 * 5),
        "conv1_b": u(ks[1], (36,), 3 * 5 * 5),
        "conv2_w": u(ks[2], (16, 36, 5, 5), 36 * 5 * 5),
        "conv2_b": u(ks[3], (16,), 36 * 5 * 5),
        "fc1_w":   u(ks[4], (120, 16 * 5 * 5), 16 * 5 * 5),
        "fc1_b":   u(ks[5], (120,), 16 * 5 * 5),
        "fc2_w":   u(ks[6], (84, 120), 120),
        "fc2_b":   u(ks[7], (84,), 120),
        "fc3_w":   u(ks[8], (10, 84), 84),
        "fc3_b":   u(ks[9], (10,), 84),
    }


def prepare_params(params):
    """One-time repack: GEMM layouts, 128-lane padding, bf16 casts, pool gathers."""
    bf16, f32 = jnp.bfloat16, jnp.float32

    # conv1: (co,ci,kh,kw) -> [kh, kw*3+ci, co], pad to (5, 16, 128).
    w1 = jnp.transpose(params["conv1_w"], (2, 3, 1, 0)).reshape(5, 15, 36)
    w1 = jnp.pad(w1, ((0, 0), (0, 1), (0, 92)))
    b1 = jnp.pad(params["conv1_b"], (0, 92)).reshape(1, LANES)

    # conv2: (co,ci,kh,kw) -> [kh*5+kw, ci, co], pad to (25, 128, 128).
    w2 = jnp.transpose(params["conv2_w"], (2, 3, 1, 0)).reshape(25, 36, 16)
    w2 = jnp.pad(w2, ((0, 0), (0, 92), (0, 112)))
    b2 = jnp.pad(params["conv2_b"], (0, 112)).reshape(1, LANES)

    # fc1 on the compact 512-wide feature vector: feature index = 16*q + c
    # with q = h*5 + w (spatial-major, channel-minor); torch.flatten order is
    # c*25 + q, folded here.  Rows for q in 25..31 are zero.
    fw1 = params["fc1_w"].reshape(120, 16, 5, 5)
    fw1 = jnp.transpose(fw1, (2, 3, 1, 0)).reshape(25, 16, 120)   # [q, c, out]
    fw1 = jnp.pad(fw1, ((0, 7), (0, 0), (0, 8))).reshape(NFEAT, LANES)
    fb1 = jnp.pad(params["fc1_b"], (0, 8)).reshape(1, LANES)

    fw2 = jnp.pad(params["fc2_w"].T, ((0, 8), (0, 44)))       # (120,84)->(128,128)
    fb2 = jnp.pad(params["fc2_b"], (0, 44)).reshape(1, LANES)
    fw3 = jnp.pad(params["fc3_w"].T, ((0, 44), (0, 118)))     # (84,10)->(128,128)
    fb3 = jnp.pad(params["fc3_b"], (0, 118)).reshape(1, LANES)

    # 0/1 selection matrices gathering the stride-2 pool anchors.
    # pool-1: acc1 row 2*ph*32 + 2*pw  ->  pooled-1 row ph*16 + pw  (pitch 16)
    g1 = np.zeros((P1_ROWS, M1_ROWS), np.float32)
    for ph in range(14):
        for pw in range(14):
            g1[ph * 16 + pw, (2 * ph) * W1 + 2 * pw] = 1.0
    # pool-2: acc2 row 2*ph*16 + 2*pw  ->  feature row q = ph*5 + pw
    g2 = np.zeros((32, M2_ROWS), np.float32)
    for ph in range(5):
        for pw in range(5):
            g2[ph * 5 + pw, (2 * ph) * 16 + 2 * pw] = 1.0

    return {
        "w1": w1.astype(bf16), "b1": b1.astype(f32), "g1": jnp.asarray(g1, bf16),
        "w2": w2.astype(bf16), "b2": b2.astype(f32), "g2": jnp.asarray(g2, bf16),
        "fw1": fw1.astype(bf16), "fb1": fb1.astype(f32),
        "fw2": fw2.astype(bf16), "fb2": fb2.astype(f32),
        "fw3": fw3.astype(bf16), "fb3": fb3.astype(f32),
    }


# ------------------------------ forward pass --------------------------------

def net_forward(fp, x_nchw):
    B = x_nchw.shape[0]
    # Images per features grid step (review item 2); keep >=2 grid steps for
    # megacore when the batch allows it.
    bt = 8 if B >= 16 else (4 if B >= 4 else B)
    Bf = ((B + bt - 1) // bt) * bt

    # NCHW -> NHWC, pad W for the kw taps, fold the 5 kw taps into channels,
    # flatten the spatial grid, pad rows for the kh shifts.  (Tiny raw input:
    # a 5x expansion of ~12 KB/image, not a 25x im2col.)
    # TODO(synk): the kw-fold/bf16 cast could move inside the kernel to avoid
    # this HBM round trip entirely (review item 8); left in XLA for clarity.
    x = jnp.transpose(x_nchw, (0, 2, 3, 1)).astype(jnp.float32)        # (B,32,32,3)
    x = jnp.pad(x, ((0, 0), (0, 0), (0, 4), (0, 0)))                   # (B,32,36,3)
    x = jnp.concatenate([x[:, :, kw:kw + W1, :] for kw in range(5)], axis=-1)
    x = jnp.pad(x, ((0, 0), (0, 0), (0, 0), (0, 1)))                   # (B,32,32,16)
    x = x.reshape(B, H1 * W1, 16)
    x = jnp.pad(x, ((0, Bf - B), (0, X1_ROWS - H1 * W1), (0, 0)))
    x = x.astype(jnp.bfloat16)

    feats = _features(x, fp, bt)                                       # (Bf,32,16)
    xf = feats.reshape(Bf, NFEAT)                                      # compact K=512
    Bp = max(8, ((Bf + 7) // 8) * 8)
    if Bp != Bf:
        xf = jnp.pad(xf, ((0, Bp - Bf), (0, 0)))
    logits = _fc(xf, fp)                                               # (Bp,128)
    return logits[:B, :10]


# --------------------------- pure-JAX reference ------------------------------

def net_reference(params, x):
    dn = ("NCHW", "OIHW", "NCHW")
    y = lax.conv_general_dilated(x, params["conv1_w"], (1, 1), "VALID",
                                 dimension_numbers=dn)
    y = jax.nn.relu(y + params["conv1_b"][None, :, None, None])
    y = lax.reduce_window(y, -jnp.inf, lax.max, (1, 1, 2, 2), (1, 1, 2, 2), "VALID")
    y = lax.conv_general_dilated(y, params["conv2_w"], (1, 1), "VALID",
                                 dimension_numbers=dn)
    y = jax.nn.relu(y + params["conv2_b"][None, :, None, None])
    y = lax.reduce_window(y, -jnp.inf, lax.max, (1, 1, 2, 2), (1, 1, 2, 2), "VALID")
    y = y.reshape(y.shape[0], -1)
    y = jax.nn.relu(y @ params["fc1_w"].T + params["fc1_b"])
    y = jax.nn.relu(y @ params["fc2_w"].T + params["fc2_b"])
    return y @ params["fc3_w"].T + params["fc3_b"]


if __name__ == "__main__":
    key = jax.random.PRNGKey(0)
    pkey, xkey = jax.random.split(key)
    params = init_params(pkey)
    fp = prepare_params(params)          # one-time weight repack (not in hot path)

    # Input implied by the module: CIFAR-like 3x32x32 images; small batch of 2.
    x = jax.random.normal(xkey, (2, 3, 32, 32), dtype=jnp.float32)

    fwd = jax.jit(net_forward)
    out = jax.block_until_ready(fwd(fp, x))
    assert out.shape == (2, 10), out.shape
    assert bool(jnp.all(jnp.isfinite(out)))

    # Numerical check vs. a pure-JAX f32 reference (bf16 MXU operands -> loose tol).
    ref = net_reference(params, x)
    err = float(jnp.max(jnp.abs(out - ref)))
    assert err < 0.1, f"max abs error {err}"
    print("KERNEL_OK")
</pallas_src>

<mosaic_0001>
module attributes {stable_mosaic.version = 11 : i64} {
  func.func @_features_kernel(%arg0: i32, %arg1: memref<2x1032x16xbf16, #tpu.memory_space<vmem>>, %arg2: memref<5x16x128xbf16, #tpu.memory_space<vmem>>, %arg3: memref<1x128xf32, #tpu.memory_space<vmem>>, %arg4: memref<240x864xbf16, #tpu.memory_space<vmem>>, %arg5: memref<25x128x128xbf16, #tpu.memory_space<vmem>>, %arg6: memref<1x128xf32, #tpu.memory_space<vmem>>, %arg7: memref<32x144xbf16, #tpu.memory_space<vmem>>, %arg8: memref<2x32x16xbf16, #tpu.memory_space<vmem>>, %arg9: memref<904x128xf32, #tpu.memory_space<vmem>>, %arg10: memref<240x128xbf16, #tpu.memory_space<vmem>>, %arg11: memref<168x128xf32, #tpu.memory_space<vmem>>) attributes {dimension_semantics = [#tpu.dimension_semantics<parallel>], iteration_bounds = array<i64: 1>, scalar_prefetch = 0 : i64, scratch_operands = 3 : i64, tpu.core_type = #tpu.core_type<tc>, window_params = [{transform_indices = @transform_0, window_bounds = array<i64: 2, 1032, 16>}, {pipeline_mode = #tpu.pipeline_mode<synchronous>, transform_indices = @transform_1, window_bounds = array<i64: 5, 16, 128>}, {pipeline_mode = #tpu.pipeline_mode<synchronous>, transform_indices = @transform_2, window_bounds = array<i64: 1, 128>}, {pipeline_mode = #tpu.pipeline_mode<synchronous>, transform_indices = @transform_3, window_bounds = array<i64: 240, 864>}, {pipeline_mode = #tpu.pipeline_mode<synchronous>, transform_indices = @transform_4, window_bounds = array<i64: 25, 128, 128>}, {pipeline_mode = #tpu.pipeline_mode<synchronous>, transform_indices = @transform_5, window_bounds = array<i64: 1, 128>}, {pipeline_mode = #tpu.pipeline_mode<synchronous>, transform_indices = @transform_6, window_bounds = array<i64: 32, 144>}, {transform_indices = @transform_7, window_bounds = array<i64: 2, 32, 16>}]} {
    %c0_i32 = arith.constant 0 : i32
    %c2_i32 = arith.constant 2 : i32
    %0 = arith.addi %c0_i32, %c2_i32 : i32
    %c1_i32 = arith.constant 1 : i32
    scf.for %arg12 = %c0_i32 to %0 step %c1_i32  : i32 {
      %c1_i32_1 = arith.constant 1 : i32
      %1 = arith.muli %arg12, %c1_i32_1 : i32
      %c0_i32_2 = arith.constant 0 : i32
      %2 = arith.addi %c0_i32_2, %1 : i32
      %3 = arith.index_cast %2 : i32 to index
      %c0 = arith.constant 0 : index
      %c0_3 = arith.constant 0 : index
      %4 = vector.load %arg1[%3, %c0, %c0_3] : memref<2x1032x16xbf16, #tpu.memory_space<vmem>>, vector<1x904x16xbf16>
      %5 = vector.shape_cast %4 : vector<1x904x16xbf16> to vector<904x16xbf16>
      %c0_4 = arith.constant 0 : index
      %c0_5 = arith.constant 0 : index
      %c0_6 = arith.constant 0 : index
      %6 = vector.load %arg2[%c0_4, %c0_5, %c0_6] : memref<5x16x128xbf16, #tpu.memory_space<vmem>>, vector<1x16x128xbf16>
      %7 = vector.shape_cast %6 : vector<1x16x128xbf16> to vector<16x128xbf16>
      %cst = arith.constant dense<0.000000e+00> : vector<904x128xf32>
      %8 = tpu.matmul %5, %7, %cst {dimension_numbers = #tpu.dot_dimension_numbers<[1], [0], [0], [1], [0, 0, 1, 1], [], []>} : vector<904x16xbf16>, vector<16x128xbf16>, vector<904x128xf32> -> vector<904x128xf32>
      %c0_7 = arith.constant 0 : index
      %c0_8 = arith.constant 0 : index
      %9 = vector.load %arg9[%c0_7, %c0_8] : memref<904x128xf32, #tpu.memory_space<vmem>>, vector<904x128xf32>
      tpu.vector_store %arg9[%c0_7, %c0_8], %8 {strides = array<i32>} : memref<904x128xf32, #tpu.memory_space<vmem>>, vector<904x128xf32>,
      %10 = arith.index_cast %2 : i32 to index
      %c32 = arith.constant 32 : index
      %c0_9 = arith.constant 0 : index
      %11 = vector.load %arg1[%10, %c32, %c0_9] : memref<2x1032x16xbf16, #tpu.memory_space<vmem>>, vector<1x904x16xbf16>
      %12 = vector.shape_cast %11 : vector<1x904x16xbf16> to vector<904x16xbf16>
      %c1 = arith.constant 1 : index
      %c0_10 = arith.constant 0 : index
      %c0_11 = arith.constant 0 : index
      %13 = vector.load %arg2[%c1, %c0_10, %c0_11] : memref<5x16x128xbf16, #tpu.memory_space<vmem>>, vector<1x16x128xbf16>
      %14 = vector.shape_cast %13 : vector<1x16x128xbf16> to vector<16x128xbf16>
      %cst_12 = arith.constant dense<0.000000e+00> : vector<904x128xf32>
      %15 = tpu.matmul %12, %14, %cst_12 {dimension_numbers = #tpu.dot_dimension_numbers<[1], [0], [0], [1], [0, 0, 1, 1], [], []>} : vector<904x16xbf16>, vector<16x128xbf16>, vector<904x128xf32> -> vector<904x128xf32>
      %c0_13 = arith.constant 0 : index
      %c0_14 = arith.constant 0 : index
      %16 = vector.load %arg9[%c0_13, %c0_14] : memref<904x128xf32, #tpu.memory_space<vmem>>, vector<904x128xf32>
      %17 = arith.addf %16, %15 : vector<904x128xf32>
      %c0_15 = arith.constant 0 : index
      %c0_16 = arith.constant 0 : index
      %18 = vector.load %arg9[%c0_15, %c0_16] : memref<904x128xf32, #tpu.memory_space<vmem>>, vector<904x128xf32>
      tpu.vector_store %arg9[%c0_15, %c0_16], %17 {strides = array<i32>} : memref<904x128xf32, #tpu.memory_space<vmem>>, vector<904x128xf32>,
      %19 = arith.index_cast %2 : i32 to index
      %c64 = arith.constant 64 : index
      %c0_17 = arith.constant 0 : index
      %20 = vector.load %arg1[%19, %c64, %c0_17] : memref<2x1032x16xbf16, #tpu.memory_space<vmem>>, vector<1x904x16xbf16>
      %21 = vector.shape_cast %20 : vector<1x904x16xbf16> to vector<904x16xbf16>
      %c2 = arith.constant 2 : index
      %c0_18 = arith.constant 0 : index
      %c0_19 = arith.constant 0 : index
      %22 = vector.load %arg2[%c2, %c0_18, %c0_19] : memref<5x16x128xbf16, #tpu.memory_space<vmem>>, vector<1x16x128xbf16>
      %23 = vector.shape_cast %22 : vector<1x16x128xbf16> to vector<16x128xbf16>
      %cst_20 = arith.constant dense<0.000000e+00> : vector<904x128xf32>
      %24 = tpu.matmul %21, %23, %cst_20 {dimension_numbers = #tpu.dot_dimension_numbers<[1], [0], [0], [1], [0, 0, 1, 1], [], []>} : vector<904x16xbf16>, vector<16x128xbf16>, vector<904x128xf32> -> vector<904x128xf32>
      %c0_21 = arith.constant 0 : index
      %c0_22 = arith.constant 0 : index
      %25 = vector.load %arg9[%c0_21, %c0_22] : memref<904x128xf32, #tpu.memory_space<vmem>>, vector<904x128xf32>
      %26 = arith.addf %25, %24 : vector<904x128xf32>
      %c0_23 = arith.constant 0 : index
      %c0_24 = arith.constant 0 : index
      %27 = vector.load %arg9[%c0_23, %c0_24] : memref<904x128xf32, #tpu.memory_space<vmem>>, vector<904x128xf32>
      tpu.vector_store %arg9[%c0_23, %c0_24], %26 {strides = array<i32>} : memref<904x128xf32, #tpu.memory_space<vmem>>, vector<904x128xf32>,
      %28 = arith.index_cast %2 : i32 to index
      %c96 = arith.constant 96 : index
      %c0_25 = arith.constant 0 : index
      %29 = vector.load %arg1[%28, %c96, %c0_25] : memref<2x1032x16xbf16, #tpu.memory_space<vmem>>, vector<1x904x16xbf16>
      %30 = vector.shape_cast %29 : vector<1x904x16xbf16> to vector<904x16xbf16>
      %c3 = arith.constant 3 : index
      %c0_26 = arith.constant 0 : index
      %c0_27 = arith.constant 0 : index
      %31 = vector.load %arg2[%c3, %c0_26, %c0_27] : memref<5x16x128xbf16, #tpu.memory_space<vmem>>, vector<1x16x128xbf16>
      %32 = vector.shape_cast %31 : vector<1x16x128xbf16> to vector<16x128xbf16>
      %cst_28 = arith.constant dense<0.000000e+00> : vector<904x128xf32>
      %33 = tpu.matmul %30, %32, %cst_28 {dimension_numbers = #tpu.dot_dimension_numbers<[1], [0], [0], [1], [0, 0, 1, 1], [], []>} : vector<904x16xbf16>, vector<16x128xbf16>, vector<904x128xf32> -> vector<904x128xf32>
      %c0_29 = arith.constant 0 : index
      %c0_30 = arith.constant 0 : index
      %34 = vector.load %arg9[%c0_29, %c0_30] : memref<904x128xf32, #tpu.memory_space<vmem>>, vector<904x128xf32>
      %35 = arith.addf %34, %33 : vector<904x128xf32>
      %c0_31 = arith.constant 0 : index
      %c0_32 = arith.constant 0 : index
      %36 = vector.load %arg9[%c0_31, %c0_32] : memref<904x128xf32, #tpu.memory_space<vmem>>, vector<904x128xf32>
      tpu.vector_store %arg9[%c0_31, %c0_32], %35 {strides = array<i32>} : memref<904x128xf32, #tpu.memory_space<vmem>>, vector<904x128xf32>,
      %37 = arith.index_cast %2 : i32 to index
      %c128 = arith.constant 128 : index
      %c0_33 = arith.constant 0 : index
      %38 = vector.load %arg1[%37, %c128, %c0_33] : memref<2x1032x16xbf16, #tpu.memory_space<vmem>>, vector<1x904x16xbf16>
      %39 = vector.shape_cast %38 : vector<1x904x16xbf16> to vector<904x16xbf16>
      %c4 = arith.constant 4 : index
      %c0_34 = arith.constant 0 : index
      %c0_35 = arith.constant 0 : index
      %40 = vector.load %arg2[%c4, %c0_34, %c0_35] : memref<5x16x128xbf16, #tpu.memory_space<vmem>>, vector<1x16x128xbf16>
      %41 = vector.shape_cast %40 : vector<1x16x128xbf16> to vector<16x128xbf16>
      %cst_36 = arith.constant dense<0.000000e+00> : vector<904x128xf32>
      %42 = tpu.matmul %39, %41, %cst_36 {dimension_numbers = #tpu.dot_dimension_numbers<[1], [0], [0], [1], [0, 0, 1, 1], [], []>} : vector<904x16xbf16>, vector<16x128xbf16>, vector<904x128xf32> -> vector<904x128xf32>
      %c0_37 = arith.constant 0 : index
      %c0_38 = arith.constant 0 : index
      %43 = vector.load %arg9[%c0_37, %c0_38] : memref<904x128xf32, #tpu.memory_space<vmem>>, vector<904x128xf32>
      %44 = arith.addf %43, %42 : vector<904x128xf32>
      %c0_39 = arith.constant 0 : index
      %c0_40 = arith.constant 0 : index
      %45 = vector.load %arg9[%c0_39, %c0_40] : memref<904x128xf32, #tpu.memory_space<vmem>>, vector<904x128xf32>
      tpu.vector_store %arg9[%c0_39, %c0_40], %44 {strides = array<i32>} : memref<904x128xf32, #tpu.memory_space<vmem>>, vector<904x128xf32>,
      %c0_41 = arith.constant 0 : index
      %c0_42 = arith.constant 0 : index
      %46 = vector.load %arg9[%c0_41, %c0_42] : memref<904x128xf32, #tpu.memory_space<vmem>>, vector<864x128xf32>
      %c1_43 = arith.constant 1 : index
      %c0_44 = arith.constant 0 : index
      %47 = vector.load %arg9[%c1_43, %c0_44] : memref<904x128xf32, #tpu.memory_space<vmem>>, vector<864x128xf32>
      %48 = arith.maximumf %46, %47 : vector<864x128xf32>
      %c32_45 = arith.constant 32 : index
      %c0_46 = arith.constant 0 : index
      %49 = vector.load %arg9[%c32_45, %c0_46] : memref<904x128xf32, #tpu.memory_space<vmem>>, vector<864x128xf32>
      %c33 = arith.constant 33 : index
      %c0_47 = arith.constant 0 : index
      %50 = vector.load %arg9[%c33, %c0_47] : memref<904x128xf32, #tpu.memory_space<vmem>>, vector<864x128xf32>
      %51 = arith.maximumf %49, %50 : vector<864x128xf32>
      %52 = arith.maximumf %48, %51 : vector<864x128xf32>
      %c0_48 = arith.constant 0 : index
      %c0_49 = arith.constant 0 : index
      %53 = vector.load %arg4[%c0_48, %c0_49] : memref<240x864xbf16, #tpu.memory_space<vmem>>, vector<240x864xbf16>
      %54 = arith.truncf %52 : vector<864x128xf32> to vector<864x128xbf16>
      %cst_50 = arith.constant dense<0.000000e+00> : vector<240x128xf32>
      %55 = tpu.matmul %53, %54, %cst_50 {dimension_numbers = #tpu.dot_dimension_numbers<[1], [0], [0], [1], [0, 0, 1, 1], [], []>} : vector<240x864xbf16>, vector<864x128xbf16>, vector<240x128xf32> -> vector<240x128xf32>
      %c0_51 = arith.constant 0 : index
      %c0_52 = arith.constant 0 : index
      %56 = vector.load %arg3[%c0_51, %c0_52] : memref<1x128xf32, #tpu.memory_space<vmem>>, vector<1x128xf32>
      %57 = vector.broadcast %56 : vector<1x128xf32> to vector<240x128xf32>
      %58 = arith.addf %55, %57 : vector<240x128xf32>
      %cst_53 = arith.constant 0.000000e+00 : f32
      %59 = vector.broadcast %cst_53 : f32 to vector<240x128xf32>
      %60 = arith.maximumf %58, %59 : vector<240x128xf32>
      %61 = arith.truncf %60 : vector<240x128xf32> to vector<240x128xbf16>
      %c0_54 = arith.constant 0 : index
      %c0_55 = arith.constant 0 : index
      %62 = vector.load %arg10[%c0_54, %c0_55] : memref<240x128xbf16, #tpu.memory_space<vmem>>, vector<240x128xbf16>
      tpu.vector_store %arg10[%c0_54, %c0_55], %61 {strides = array<i32>} : memref<240x128xbf16, #tpu.memory_space<vmem>>, vector<240x128xbf16>,
      %c0_56 = arith.constant 0 : index
      %c0_57 = arith.constant 0 : index
      %63 = vector.load %arg10[%c0_56, %c0_57] : memref<240x128xbf16, #tpu.memory_space<vmem>>, vector<168x128xbf16>
      %c0_58 = arith.constant 0 : index
      %c0_59 = arith.constant 0 : index
      %c0_60 = arith.constant 0 : index
      %64 = vector.load %arg5[%c0_58, %c0_59, %c0_60] : memref<25x128x128xbf16, #tpu.memory_space<vmem>>, vector<1x128x128xbf16>
      %65 = vector.shape_cast %64 : vector<1x128x128xbf16> to vector<128x128xbf16>
      %cst_61 = arith.constant dense<0.000000e+00> : vector<168x128xf32>
      %66 = tpu.matmul %63, %65, %cst_61 {dimension_numbers = #tpu.dot_dimension_numbers<[1], [0], [0], [1], [0, 0, 1, 1], [], []>} : vector<168x128xbf16>, vector<128x128xbf16>, vector<168x128xf32> -> vector<168x128xf32>
      %c0_62 = arith.constant 0 : index
      %c0_63 = arith.constant 0 : index
      %67 = vector.load %arg11[%c0_62, %c0_63] : memref<168x128xf32, #tpu.memory_space<vmem>>, vector<168x128xf32>
      tpu.vector_store %arg11[%c0_62, %c0_63], %66 {strides = array<i32>} : memref<168x128xf32, #tpu.memory_space<vmem>>, vector<168x128xf32>,
      %c1_64 = arith.constant 1 : index
      %c0_65 = arith.constant 0 : index
      %68 = vector.load %arg10[%c1_64, %c0_65] : memref<240x128xbf16, #tpu.memory_space<vmem>>, vector<168x128xbf16>
      %c1_66 = arith.constant 1 : index
      %c0_67 = arith.constant 0 : index
      %c0_68 = arith.constant 0 : index
      %69 = vector.load %arg5[%c1_66, %c0_67, %c0_68] : memref<25x128x128xbf16, #tpu.memory_space<vmem>>, vector<1x128x128xbf16>
      %70 = vector.shape_cast %69 : vector<1x128x128xbf16> to vector<128x128xbf16>
      %cst_69 = arith.constant dense<0.000000e+00> : vector<168x128xf32>
      %71 = tpu.matmul %68, %70, %cst_69 {dimension_numbers = #tpu.dot_dimension_numbers<[1], [0], [0], [1], [0, 0, 1, 1], [], []>} : vector<168x128xbf16>, vector<128x128xbf16>, vector<168x128xf32> -> vector<168x128xf32>
      %c0_70 = arith.constant 0 : index
      %c0_71 = arith.constant 0 : index
      %72 = vector.load %arg11[%c0_70, %c0_71] : memref<168x128xf32, #tpu.memory_space<vmem>>, vector<168x128xf32>
      %73 = arith.addf %72, %71 : vector<168x128xf32>
      %c0_72 = arith.constant 0 : index
      %c0_73 = arith.constant 0 : index
      %74 = vector.load %arg11[%c0_72, %c0_73] : memref<168x128xf32, #tpu.memory_space<vmem>>, vector<168x128xf32>
      tpu.vector_store %arg11[%c0_72, %c0_73], %73 {strides = array<i32>} : memref<168x128xf32, #tpu.memory_space<vmem>>, vector<168x128xf32>,
      %c2_74 = arith.constant 2 : index
      %c0_75 = arith.constant 0 : index
      %75 = vector.load %arg10[%c2_74, %c0_75] : memref<240x128xbf16, #tpu.memory_space<vmem>>, vector<168x128xbf16>
      %c2_76 = arith.constant 2 : index
      %c0_77 = arith.constant 0 : index
      %c0_78 = arith.constant 0 : index
      %76 = vector.load %arg5[%c2_76, %c0_77, %c0_78] : memref<25x128x128xbf16, #tpu.memory_space<vmem>>, vector<1x128x128xbf16>
      %77 = vector.shape_cast %76 : vector<1x128x128xbf16> to vector<128x128xbf16>
      %cst_79 = arith.constant dense<0.000000e+00> : vector<168x128xf32>
      %78 = tpu.matmul %75, %77, %cst_79 {dimension_numbers = #tpu.dot_dimension_numbers<[1], [0], [0], [1], [0, 0, 1, 1], [], []>} : vector<168x128xbf16>, vector<128x128xbf16>, vector<168x128xf32> -> vector<168x128xf32>
      %c0_80 = arith.constant 0 : index
      %c0_81 = arith.constant 0 : index
      %79 = vector.load %arg11[%c0_80, %c0_81] : memref<168x128xf32, #tpu.memory_space<vmem>>, vector<168x128xf32>
      %80 = arith.addf %79, %78 : vector<168x128xf32>
      %c0_82 = arith.constant 0 : index
      %c0_83 = arith.constant 0 : index
      %81 = vector.load %arg11[%c0_82, %c0_83] : memref<168x128xf32, #tpu.memory_space<vmem>>, vector<168x128xf32>
      tpu.vector_store %arg11[%c0_82, %c0_83], %80 {strides = array<i32>} : memref<168x128xf32, #tpu.memory_space<vmem>>, vector<168x128xf32>,
      %c3_84 = arith.constant 3 : index
      %c0_85 = arith.constant 0 : index
      %82 = vector.load %arg10[%c3_84, %c0_85] : memref<240x128xbf16, #tpu.memory_space<vmem>>, vector<168x128xbf16>
      %c3_86 = arith.constant 3 : index
      %c0_87 = arith.constant 0 : index
      %c0_88 = arith.constant 0 : index
      %83 = vector.load %arg5[%c3_86, %c0_87, %c0_88] : memref<25x128x128xbf16, #tpu.memory_space<vmem>>, vector<1x128x128xbf16>
      %84 = vector.shape_cast %83 : vector<1x128x128xbf16> to vector<128x128xbf16>
      %cst_89 = arith.constant dense<0.000000e+00> : vector<168x128xf32>
      %85 = tpu.matmul %82, %84, %cst_89 {dimension_numbers = #tpu.dot_dimension_numbers<[1], [0], [0], [1], [0, 0, 1, 1], [], []>} : vector<168x128xbf16>, vector<128x128xbf16>, vector<168x128xf32> -> vector<168x128xf32>
      %c0_90 = arith.constant 0 : index
      %c0_91 = arith.constant 0 : index
      %86 = vector.load %arg11[%c0_90, %c0_91] : memref<168x128xf32, #tpu.memory_space<vmem>>, vector<168x128xf32>
      %87 = arith.addf %86, %85 : vector<168x128xf32>
      %c0_92 = arith.constant 0 : index
      %c0_93 = arith.constant 0 : index
      %88 = vector.load %arg11[%c0_92, %c0_93] : memref<168x128xf32, #tpu.memory_space<vmem>>, vector<168x128xf32>
      tpu.vector_store %arg11[%c0_92, %c0_93], %87 {strides = array<i32>} : memref<168x128xf32, #tpu.memory_space<vmem>>, vector<168x128xf32>,
      %c4_94 = arith.constant 4 : index
      %c0_95 = arith.constant 0 : index
      %89 = vector.load %arg10[%c4_94, %c0_95] : memref<240x128xbf16, #tpu.memory_space<vmem>>, vector<168x128xbf16>
      %c4_96 = arith.constant 4 : index
      %c0_97 = arith.constant 0 : index
      %c0_98 = arith.constant 0 : index
      %90 = vector.load %arg5[%c4_96, %c0_97, %c0_98] : memref<25x128x128xbf16, #tpu.memory_space<vmem>>, vector<1x128x128xbf16>
      %91 = vector.shape_cast %90 : vector<1x128x128xbf16> to vector<128x128xbf16>
      %cst_99 = arith.constant dense<0.000000e+00> : vector<168x128xf32>
      %92 = tpu.matmul %89, %91, %cst_99 {dimension_numbers = #tpu.dot_dimension_numbers<[1], [0], [0], [1], [0, 0, 1, 1], [], []>} : vector<168x128xbf16>, vector<128x128xbf16>, vector<168x128xf32> -> vector<168x128xf32>
      %c0_100 = arith.constant 0 : index
      %c0_101 = arith.constant 0 : index
      %93 = vector.load %arg11[%c0_100, %c0_101] : memref<168x128xf32, #tpu.memory_space<vmem>>, vector<168x128xf32>
      %94 = arith.addf %93, %92 : vector<168x128xf32>
      %c0_102 = arith.constant 0 : index
      %c0_103 = arith.constant 0 : index
      %95 = vector.load %arg11[%c0_102, %c0_103] : memref<168x128xf32, #tpu.memory_space<vmem>>, vector<168x128xf32>
      tpu.vector_store %arg11[%c0_102, %c0_103], %94 {strides = array<i32>} : memref<168x128xf32, #tpu.memory_space<vmem>>, vector<168x128xf32>,
      %c16 = arith.constant 16 : index
      %c0_104 = arith.constant 0 : index
      %96 = vector.load %arg10[%c16, %c0_104] : memref<240x128xbf16, #tpu.memory_space<vmem>>, vector<168x128xbf16>
      %c5 = arith.constant 5 : index
      %c0_105 = arith.constant 0 : index
      %c0_106 = arith.constant 0 : index
      %97 = vector.load %arg5[%c5, %c0_105, %c0_106] : memref<25x128x128xbf16, #tpu.memory_space<vmem>>, vector<1x128x128xbf16>
      %98 = vector.shape_cast %97 : vector<1x128x128xbf16> to vector<128x128xbf16>
      %cst_107 = arith.constant dense<0.000000e+00> : vector<168x128xf32>
      %99 = tpu.matmul %96, %98, %cst_107 {dimension_numbers = #tpu.dot_dimension_numbers<[1], [0], [0], [1], [0, 0, 1, 1], [], []>} : vector<168x128xbf16>, vector<128x128xbf16>, vector<168x128xf32> -> vector<168x128xf32>
      %c0_108 = arith.constant 0 : index
      %c0_109 = arith.constant 0 : index
      %100 = vector.load %arg11[%c0_108, %c0_109] : memref<168x128xf32, #tpu.memory_space<vmem>>, vector<168x128xf32>
      %101 = arith.addf %100, %99 : vector<168x128xf32>
      %c0_110 = arith.constant 0 : index
      %c0_111 = arith.constant 0 : index
      %102 = vector.load %arg11[%c0_110, %c0_111] : memref<168x128xf32, #tpu.memory_space<vmem>>, vector<168x128xf32>
      tpu.vector_store %arg11[%c0_110, %c0_111], %101 {strides = array<i32>} : memref<168x128xf32, #tpu.memory_space<vmem>>, vector<168x128xf32>,
      %c17 = arith.constant 17 : index
      %c0_112 = arith.constant 0 : index
      %103 = vector.load %arg10[%c17, %c0_112] : memref<240x128xbf16, #tpu.memory_space<vmem>>, vector<168x128xbf16>
      %c6 = arith.constant 6 : index
      %c0_113 = arith.constant 0 : index
      %c0_114 = arith.constant 0 : index
      %104 = vector.load %arg5[%c6, %c0_113, %c0_114] : memref<25x128x128xbf16, #tpu.memory_space<vmem>>, vector<1x128x128xbf16>
      %105 = vector.shape_cast %104 : vector<1x128x128xbf16> to vector<128x128xbf16>
      %cst_115 = arith.constant dense<0.000000e+00> : vector<168x128xf32>
      %106 = tpu.matmul %103, %105, %cst_115 {dimension_numbers = #tpu.dot_dimension_numbers<[1], [0], [0], [1], [0, 0, 1, 1], [], []>} : vector<168x128xbf16>, vector<128x128xbf16>, vector<168x128xf32> -> vector<168x128xf32>
      %c0_116 = arith.constant 0 : index
      %c0_117 = arith.constant 0 : index
      %107 = vector.load %arg11[%c0_116, %c0_117] : memref<168x128xf32, #tpu.memory_space<vmem>>, vector<168x128xf32>
      %108 = arith.addf %107, %106 : vector<168x128xf32>
      %c0_118 = arith.constant 0 : index
      %c0_119 = arith.constant 0 : index
      %109 = vector.load %arg11[%c0_118, %c0_119] : memref<168x128xf32, #tpu.memory_space<vmem>>, vector<168x128xf32>
      tpu.vector_store %arg11[%c0_118, %c0_119], %108 {strides = array<i32>} : memref<168x128xf32, #tpu.memory_space<vmem>>, vector<168x128xf32>,
      %c18 = arith.constant 18 : index
      %c0_120 = arith.constant 0 : index
      %110 = vector.load %arg10[%c18, %c0_120] : memref<240x128xbf16, #tpu.memory_space<vmem>>, vector<168x128xbf16>
      %c7 = arith.constant 7 : index
      %c0_121 = arith.constant 0 : index
      %c0_122 = arith.constant 0 : index
      %111 = vector.load %arg5[%c7, %c0_121, %c0_122] : memref<25x128x128xbf16, #tpu.memory_space<vmem>>, vector<1x128x128xbf16>
      %112 = vector.shape_cast %111 : vector<1x128x128xbf16> to vector<128x128xbf16>
      %cst_123 = arith.constant dense<0.000000e+00> : vector<168x128xf32>
      %113 = tpu.matmul %110, %112, %cst_123 {dimension_numbers = #tpu.dot_dimension_numbers<[1], [0], [0], [1], [0, 0, 1, 1], [], []>} : vector<168x128xbf16>, vector<128x128xbf16>, vector<168x128xf32> -> vector<168x128xf32>
      %c0_124 = arith.constant 0 : index
      %c0_125 = arith.constant 0 : index
      %114 = vector.load %arg11[%c0_124, %c0_125] : memref<168x128xf32, #tpu.memory_space<vmem>>, vector<168x128xf32>
      %115 = arith.addf %114, %113 : vector<168x128xf32>
      %c0_126 = arith.constant 0 : index
      %c0_127 = arith.constant 0 : index
      %116 = vector.load %arg11[%c0_126, %c0_127] : memref<168x128xf32, #tpu.memory_space<vmem>>, vector<168x128xf32>
      tpu.vector_store %arg11[%c0_126, %c0_127], %115 {strides = array<i32>} : memref<168x128xf32, #tpu.memory_space<vmem>>, vector<168x128xf32>,
      %c19 = arith.constant 19 : index
      %c0_128 = arith.constant 0 : index
      %117 = vector.load %arg10[%c19, %c0_128] : memref<240x128xbf16, #tpu.memory_space<vmem>>, vector<168x128xbf16>
      %c8 = arith.constant 8 : index
      %c0_129 = arith.constant 0 : index
      %c0_130 = arith.constant 0 : index
      %118 = vector.load %arg5[%c8, %c0_129, %c0_130] : memref<25x128x128xbf16, #tpu.memory_space<vmem>>, vector<1x128x128xbf16>
      %119 = vector.shape_cast %118 : vector<1x128x128xbf16> to vector<128x128xbf16>
      %cst_131 = arith.constant dense<0.000000e+00> : vector<168x128xf32>
      %120 = tpu.matmul %117, %119, %cst_131 {dimension_numbers = #tpu.dot_dimension_numbers<[1], [0], [0], [1], [0, 0, 1, 1], [], []>} : vector<168x128xbf16>, vector<128x128xbf16>, vector<168x128xf32> -> vector<168x128xf32>
      %c0_132 = arith.constant 0 : index
      %c0_133 = arith.constant 0 : index
      %121 = vector.load %arg11[%c0_132, %c0_133] : memref<168x128xf32, #tpu.memory_space<vmem>>, vector<168x128xf32>
      %122 = arith.addf %121, %120 : vector<168x128xf32>
      %c0_134 = arith.constant 0 : index
      %c0_135 = arith.constant 0 : index
      %123 = vector.load %arg11[%c0_134, %c0_135] : memref<168x128xf32, #tpu.memory_space<vmem>>, vector<168x128xf32>
      tpu.vector_store %arg11[%c0_134, %c0_135], %122 {strides = array<i32>} : memref<168x128xf32, #tpu.memory_space<vmem>>, vector<168x128xf32>,
      %c20 = arith.constant 20 : index
      %c0_136 = arith.constant 0 : index
      %124 = vector.load %arg10[%c20, %c0_136] : memref<240x128xbf16, #tpu.memory_space<vmem>>, vector<168x128xbf16>
      %c9 = arith.constant 9 : index
      %c0_137 = arith.constant 0 : index
      %c0_138 = arith.constant 0 : index
      %125 = vector.load %arg5[%c9, %c0_137, %c0_138] : memref<25x128x128xbf16, #tpu.memory_space<vmem>>, vector<1x128x128xbf16>
      %126 = vector.shape_cast %125 : vector<1x128x128xbf16> to vector<128x128xbf16>
      %cst_139 = arith.constant dense<0.000000e+00> : vector<168x128xf32>
      %127 = tpu.matmul %124, %126, %cst_139 {dimension_numbers = #tpu.dot_dimension_numbers<[1], [0], [0], [1], [0, 0, 1, 1], [], []>} : vector<168x128xbf16>, vector<128x128xbf16>, vector<168x128xf32> -> vector<168x128xf32>
      %c0_140 = arith.constant 0 : index
      %c0_141 = arith.constant 0 : index
      %128 = vector.load %arg11[%c0_140, %c0_141] : memref<168x128xf32, #tpu.memory_space<vmem>>, vector<168x128xf32>
      %129 = arith.addf %128, %127 : vector<168x128xf32>
      %c0_142 = arith.constant 0 : index
      %c0_143 = arith.constant 0 : index
      %130 = vector.load %arg11[%c0_142, %c0_143] : memref<168x128xf32, #tpu.memory_space<vmem>>, vector<168x128xf32>
      tpu.vector_store %arg11[%c0_142, %c0_143], %129 {strides = array<i32>} : memref<168x128xf32, #tpu.memory_space<vmem>>, vector<168x128xf32>,
      %c32_144 = arith.constant 32 : index
      %c0_145 = arith.constant 0 : index
      %131 = vector.load %arg10[%c32_144, %c0_145] : memref<240x128xbf16, #tpu.memory_space<vmem>>, vector<168x128xbf16>
      %c10 = arith.constant 10 : index
      %c0_146 = arith.constant 0 : index
      %c0_147 = arith.constant 0 : index
      %132 = vector.load %arg5[%c10, %c0_146, %c0_147] : memref<25x128x128xbf16, #tpu.memory_space<vmem>>, vector<1x128x128xbf16>
      %133 = vector.shape_cast %132 : vector<1x128x128xbf16> to vector<128x128xbf16>
      %cst_148 = arith.constant dense<0.000000e+00> : vector<168x128xf32>
      %134 = tpu.matmul %131, %133, %cst_148 {dimension_numbers = #tpu.dot_dimension_numbers<[1], [0], [0], [1], [0, 0, 1, 1], [], []>} : vector<168x128xbf16>, vector<128x128xbf16>, vector<168x128xf32> -> vector<168x128xf32>
      %c0_149 = arith.constant 0 : index
      %c0_150 = arith.constant 0 : index
      %135 = vector.load %arg11[%c0_149, %c0_150] : memref<168x128xf32, #tpu.memory_space<vmem>>, vector<168x128xf32>
      %136 = arith.addf %135, %134 : vector<168x128xf32>
      %c0_151 = arith.constant 0 : index
      %c0_152 = arith.constant 0 : index
      %137 = vector.load %arg11[%c0_151, %c0_152] : memref<168x128xf32, #tpu.memory_space<vmem>>, vector<168x128xf32>
      tpu.vector_store %arg11[%c0_151, %c0_152], %136 {strides = array<i32>} : memref<168x128xf32, #tpu.memory_space<vmem>>, vector<168x128xf32>,
      %c33_153 = arith.constant 33 : index
      %c0_154 = arith.constant 0 : index
      %138 = vector.load %arg10[%c33_153, %c0_154] : memref<240x128xbf16, #tpu.memory_space<vmem>>, vector<168x128xbf16>
      %c11 = arith.constant 11 : index
      %c0_155 = arith.constant 0 : index
      %c0_156 = arith.constant 0 : index
      %139 = vector.load %arg5[%c11, %c0_155, %c0_156] : memref<25x128x128xbf16, #tpu.memory_space<vmem>>, vector<1x128x128xbf16>
      %140 = vector.shape_cast %139 : vector<1x128x128xbf16> to vector<128x128xbf16>
      %cst_157 = arith.constant dense<0.000000e+00> : vector<168x128xf32>
      %141 = tpu.matmul %138, %140, %cst_157 {dimension_numbers = #tpu.dot_dimension_numbers<[1], [0], [0], [1], [0, 0, 1, 1], [], []>} : vector<168x128xbf16>, vector<128x128xbf16>, vector<168x128xf32> -> vector<168x128xf32>
      %c0_158 = arith.constant 0 : index
      %c0_159 = arith.constant 0 : index
      %142 = vector.load %arg11[%c0_158, %c0_159] : memref<168x128xf32, #tpu.memory_space<vmem>>, vector<168x128xf32>
      %143 = arith.addf %142, %141 : vector<168x128xf32>
      %c0_160 = arith.constant 0 : index
      %c0_161 = arith.constant 0 : index
      %144 = vector.load %arg11[%c0_160, %c0_161] : memref<168x128xf32, #tpu.memory_space<vmem>>, vector<168x128xf32>
      tpu.vector_store %arg11[%c0_160, %c0_161], %143 {strides = array<i32>} : memref<168x128xf32, #tpu.memory_space<vmem>>, vector<168x128xf32>,
      %c34 = arith.constant 34 : index
      %c0_162 = arith.constant 0 : index
      %145 = vector.load %arg10[%c34, %c0_162] : memref<240x128xbf16, #tpu.memory_space<vmem>>, vector<168x128xbf16>
      %c12 = arith.constant 12 : index
      %c0_163 = arith.constant 0 : index
      %c0_164 = arith.constant 0 : index
      %146 = vector.load %arg5[%c12, %c0_163, %c0_164] : memref<25x128x128xbf16, #tpu.memory_space<vmem>>, vector<1x128x128xbf16>
      %147 = vector.shape_cast %146 : vector<1x128x128xbf16> to vector<128x128xbf16>
      %cst_165 = arith.constant dense<0.000000e+00> : vector<168x128xf32>
      %148 = tpu.matmul %145, %147, %cst_165 {dimension_numbers = #tpu.dot_dimension_numbers<[1], [0], [0], [1], [0, 0, 1, 1], [], []>} : vector<168x128xbf16>, vector<128x128xbf16>, vector<168x128xf32> -> vector<168x128xf32>
      %c0_166 = arith.constant 0 : index
      %c0_167 = arith.constant 0 : index
      %149 = vector.load %arg11[%c0_166, %c0_167] : memref<168x128xf32, #tpu.memory_space<vmem>>, vector<168x128xf32>
      %150 = arith.addf %149, %148 : vector<168x128xf32>
      %c0_168 = arith.constant 0 : index
      %c0_169 = arith.constant 0 : index
      %151 = vector.load %arg11[%c0_168, %c0_169] : memref<168x128xf32, #tpu.memory_space<vmem>>, vector<168x128xf32>
      tpu.vector_store %arg11[%c0_168, %c0_169], %150 {strides = array<i32>} : memref<168x128xf32, #tpu.memory_space<vmem>>, vector<168x128xf32>,
      %c35 = arith.constant 35 : index
      %c0_170 = arith.constant 0 : index
      %152 = vector.load %arg10[%c35, %c0_170] : memref<240x128xbf16, #tpu.memory_space<vmem>>, vector<168x128xbf16>
      %c13 = arith.constant 13 : index
      %c0_171 = arith.constant 0 : index
      %c0_172 = arith.constant 0 : index
      %153 = vector.load %arg5[%c13, %c0_171, %c0_172] : memref<25x128x128xbf16, #tpu.memory_space<vmem>>, vector<1x128x128xbf16>
      %154 = vector.shape_cast %153 : vector<1x128x128xbf16> to vector<128x128xbf16>
      %cst_173 = arith.constant dense<0.000000e+00> : vector<168x128xf32>
      %155 = tpu.matmul %152, %154, %cst_173 {dimension_numbers = #tpu.dot_dimension_numbers<[1], [0], [0], [1], [0, 0, 1, 1], [], []>} : vector<168x128xbf16>, vector<128x128xbf16>, vector<168x128xf32> -> vector<168x128xf32>
      %c0_174 = arith.constant 0 : index
      %c0_175 = arith.constant 0 : index
      %156 = vector.load %arg11[%c0_174, %c0_175] : memref<168x128xf32, #tpu.memory_space<vmem>>, vector<168x128xf32>
      %157 = arith.addf %156, %155 : vector<168x128xf32>
      %c0_176 = arith.constant 0 : index
      %c0_177 = arith.constant 0 : index
      %158 = vector.load %arg11[%c0_176, %c0_177] : memref<168x128xf32, #tpu.memory_space<vmem>>, vector<168x128xf32>
      tpu.vector_store %arg11[%c0_176, %c0_177], %157 {strides = array<i32>} : memref<168x128xf32, #tpu.memory_space<vmem>>, vector<168x128xf32>,
      %c36 = arith.constant 36 : index
      %c0_178 = arith.constant 0 : index
      %159 = vector.load %arg10[%c36, %c0_178] : memref<240x128xbf16, #tpu.memory_space<vmem>>, vector<168x128xbf16>
      %c14 = arith.constant 14 : index
      %c0_179 = arith.constant 0 : index
      %c0_180 = arith.constant 0 : index
      %160 = vector.load %arg5[%c14, %c0_179, %c0_180] : memref<25x128x128xbf16, #tpu.memory_space<vmem>>, vector<1x128x128xbf16>
      %161 = vector.shape_cast %160 : vector<1x128x128xbf16> to vector<128x128xbf16>
      %cst_181 = arith.constant dense<0.000000e+00> : vector<168x128xf32>
      %162 = tpu.matmul %159, %161, %cst_181 {dimension_numbers = #tpu.dot_dimension_numbers<[1], [0], [0], [1], [0, 0, 1, 1], [], []>} : vector<168x128xbf16>, vector<128x128xbf16>, vector<168x128xf32> -> vector<168x128xf32>
      %c0_182 = arith.constant 0 : index
      %c0_183 = arith.constant 0 : index
      %163 = vector.load %arg11[%c0_182, %c0_183] : memref<168x128xf32, #tpu.memory_space<vmem>>, vector<168x128xf32>
      %164 = arith.addf %163, %162 : vector<168x128xf32>
      %c0_184 = arith.constant 0 : index
      %c0_185 = arith.constant 0 : index
      %165 = vector.load %arg11[%c0_184, %c0_185] : memref<168x128xf32, #tpu.memory_space<vmem>>, vector<168x128xf32>
      tpu.vector_store %arg11[%c0_184, %c0_185], %164 {strides = array<i32>} : memref<168x128xf32, #tpu.memory_space<vmem>>, vector<168x128xf32>,
      %c48 = arith.constant 48 : index
      %c0_186 = arith.constant 0 : index
      %166 = vector.load %arg10[%c48, %c0_186] : memref<240x128xbf16, #tpu.memory_space<vmem>>, vector<168x128xbf16>
      %c15 = arith.constant 15 : index
      %c0_187 = arith.constant 0 : index
      %c0_188 = arith.constant 0 : index
      %167 = vector.load %arg5[%c15, %c0_187, %c0_188] : memref<25x128x128xbf16, #tpu.memory_space<vmem>>, vector<1x128x128xbf16>
      %168 = vector.shape_cast %167 : vector<1x128x128xbf16> to vector<128x128xbf16>
      %cst_189 = arith.constant dense<0.000000e+00> : vector<168x128xf32>
      %169 = tpu.matmul %166, %168, %cst_189 {dimension_numbers = #tpu.dot_dimension_numbers<[1], [0], [0], [1], [0, 0, 1, 1], [], []>} : vector<168x128xbf16>, vector<128x128xbf16>, vector<168x128xf32> -> vector<168x128xf32>
      %c0_190 = arith.constant 0 : index
      %c0_191 = arith.constant 0 : index
      %170 = vector.load %arg11[%c0_190, %c0_191] : memref<168x128xf32, #tpu.memory_space<vmem>>, vector<168x128xf32>
      %171 = arith.addf %170, %169 : vector<168x128xf32>
      %c0_192 = arith.constant 0 : index
      %c0_193 = arith.constant 0 : index
      %172 = vector.load %arg11[%c0_192, %c0_193] : memref<168x128xf32, #tpu.memory_space<vmem>>, vector<168x128xf32>
      tpu.vector_store %arg11[%c0_192, %c0_193], %171 {strides = array<i32>} : memref<168x128xf32, #tpu.memory_space<vmem>>, vector<168x128xf32>,
      %c49 = arith.constant 49 : index
      %c0_194 = arith.constant 0 : index
      %173 = vector.load %arg10[%c49, %c0_194] : memref<240x128xbf16, #tpu.memory_space<vmem>>, vector<168x128xbf16>
      %c16_195 = arith.constant 16 : index
      %c0_196 = arith.constant 0 : index
      %c0_197 = arith.constant 0 : index
      %174 = vector.load %arg5[%c16_195, %c0_196, %c0_197] : memref<25x128x128xbf16, #tpu.memory_space<vmem>>, vector<1x128x128xbf16>
      %175 = vector.shape_cast %174 : vector<1x128x128xbf16> to vector<128x128xbf16>
      %cst_198 = arith.constant dense<0.000000e+00> : vector<168x128xf32>
      %176 = tpu.matmul %173, %175, %cst_198 {dimension_numbers = #tpu.dot_dimension_numbers<[1], [0], [0], [1], [0, 0, 1, 1], [], []>} : vector<168x128xbf16>, vector<128x128xbf16>, vector<168x128xf32> -> vector<168x128xf32>
      %c0_199 = arith.constant 0 : index
      %c0_200 = arith.constant 0 : index
      %177 = vector.load %arg11[%c0_199, %c0_200] : memref<168x128xf32, #tpu.memory_space<vmem>>, vector<168x128xf32>
      %178 = arith.addf %177, %176 : vector<168x128xf32>
      %c0_201 = arith.constant 0 : index
      %c0_202 = arith.constant 0 : index
      %179 = vector.load %arg11[%c0_201, %c0_202] : memref<168x128xf32, #tpu.memory_space<vmem>>, vector<168x128xf32>
      tpu.vector_store %arg11[%c0_201, %c0_202], %178 {strides = array<i32>} : memref<168x128xf32, #tpu.memory_space<vmem>>, vector<168x128xf32>,
      %c50 = arith.constant 50 : index
      %c0_203 = arith.constant 0 : index
      %180 = vector.load %arg10[%c50, %c0_203] : memref<240x128xbf16, #tpu.memory_space<vmem>>, vector<168x128xbf16>
      %c17_204 = arith.constant 17 : index
      %c0_205 = arith.constant 0 : index
      %c0_206 = arith.constant 0 : index
      %181 = vector.load %arg5[%c17_204, %c0_205, %c0_206] : memref<25x128x128xbf16, #tpu.memory_space<vmem>>, vector<1x128x128xbf16>
      %182 = vector.shape_cast %181 : vector<1x128x128xbf16> to vector<128x128xbf16>
      %cst_207 = arith.constant dense<0.000000e+00> : vector<168x128xf32>
      %183 = tpu.matmul %180, %182, %cst_207 {dimension_numbers = #tpu.dot_dimension_numbers<[1], [0], [0], [1], [0, 0, 1, 1], [], []>} : vector<168x128xbf16>, vector<128x128xbf16>, vector<168x128xf32> -> vector<168x128xf32>
      %c0_208 = arith.constant 0 : index
      %c0_209 = arith.constant 0 : index
      %184 = vector.load %arg11[%c0_208, %c0_209] : memref<168x128xf32, #tpu.memory_space<vmem>>, vector<168x128xf32>
      %185 = arith.addf %184, %183 : vector<168x128xf32>
      %c0_210 = arith.constant 0 : index
      %c0_211 = arith.constant 0 : index
      %186 = vector.load %arg11[%c0_210, %c0_211] : memref<168x128xf32, #tpu.memory_space<vmem>>, vector<168x128xf32>
      tpu.vector_store %arg11[%c0_210, %c0_211], %185 {strides = array<i32>} : memref<168x128xf32, #tpu.memory_space<vmem>>, vector<168x128xf32>,
      %c51 = arith.constant 51 : index
      %c0_212 = arith.constant 0 : index
      %187 = vector.load %arg10[%c51, %c0_212] : memref<240x128xbf16, #tpu.memory_space<vmem>>, vector<168x128xbf16>
      %c18_213 = arith.constant 18 : index
      %c0_214 = arith.constant 0 : index
      %c0_215 = arith.constant 0 : index
      %188 = vector.load %arg5[%c18_213, %c0_214, %c0_215] : memref<25x128x128xbf16, #tpu.memory_space<vmem>>, vector<1x128x128xbf16>
      %189 = vector.shape_cast %188 : vector<1x128x128xbf16> to vector<128x128xbf16>
      %cst_216 = arith.constant dense<0.000000e+00> : vector<168x128xf32>
      %190 = tpu.matmul %187, %189, %cst_216 {dimension_numbers = #tpu.dot_dimension_numbers<[1], [0], [0], [1], [0, 0, 1, 1], [], []>} : vector<168x128xbf16>, vector<128x128xbf16>, vector<168x128xf32> -> vector<168x128xf32>
      %c0_217 = arith.constant 0 : index
      %c0_218 = arith.constant 0 : index
      %191 = vector.load %arg11[%c0_217, %c0_218] : memref<168x128xf32, #tpu.memory_space<vmem>>, vector<168x128xf32>
      %192 = arith.addf %191, %190 : vector<168x128xf32>
      %c0_219 = arith.constant 0 : index
      %c0_220 = arith.constant 0 : index
      %193 = vector.load %arg11[%c0_219, %c0_220] : memref<168x128xf32, #tpu.memory_space<vmem>>, vector<168x128xf32>
      tpu.vector_store %arg11[%c0_219, %c0_220], %192 {strides = array<i32>} : memref<168x128xf32, #tpu.memory_space<vmem>>, vector<168x128xf32>,
      %c52 = arith.constant 52 : index
      %c0_221 = arith.constant 0 : index
      %194 = vector.load %arg10[%c52, %c0_221] : memref<240x128xbf16, #tpu.memory_space<vmem>>, vector<168x128xbf16>
      %c19_222 = arith.constant 19 : index
      %c0_223 = arith.constant 0 : index
      %c0_224 = arith.constant 0 : index
      %195 = vector.load %arg5[%c19_222, %c0_223, %c0_224] : memref<25x128x128xbf16, #tpu.memory_space<vmem>>, vector<1x128x128xbf16>
      %196 = vector.shape_cast %195 : vector<1x128x128xbf16> to vector<128x128xbf16>
      %cst_225 = arith.constant dense<0.000000e+00> : vector<168x128xf32>
      %197 = tpu.matmul %194, %196, %cst_225 {dimension_numbers = #tpu.dot_dimension_numbers<[1], [0], [0], [1], [0, 0, 1, 1], [], []>} : vector<168x128xbf16>, vector<128x128xbf16>, vector<168x128xf32> -> vector<168x128xf32>
      %c0_226 = arith.constant 0 : index
      %c0_227 = arith.constant 0 : index
      %198 = vector.load %arg11[%c0_226, %c0_227] : memref<168x128xf32, #tpu.memory_space<vmem>>, vector<168x128xf32>
      %199 = arith.addf %198, %197 : vector<168x128xf32>
      %c0_228 = arith.constant 0 : index
      %c0_229 = arith.constant 0 : index
      %200 = vector.load %arg11[%c0_228, %c0_229] : memref<168x128xf32, #tpu.memory_space<vmem>>, vector<168x128xf32>
      tpu.vector_store %arg11[%c0_228, %c0_229], %199 {strides = array<i32>} : memref<168x128xf32, #tpu.memory_space<vmem>>, vector<168x128xf32>,
      %c64_230 = arith.constant 64 : index
      %c0_231 = arith.constant 0 : index
      %201 = vector.load %arg10[%c64_230, %c0_231] : memref<240x128xbf16, #tpu.memory_space<vmem>>, vector<168x128xbf16>
      %c20_232 = arith.constant 20 : index
      %c0_233 = arith.constant 0 : index
      %c0_234 = arith.constant 0 : index
      %202 = vector.load %arg5[%c20_232, %c0_233, %c0_234] : memref<25x128x128xbf16, #tpu.memory_space<vmem>>, vector<1x128x128xbf16>
      %203 = vector.shape_cast %202 : vector<1x128x128xbf16> to vector<128x128xbf16>
      %cst_235 = arith.constant dense<0.000000e+00> : vector<168x128xf32>
      %204 = tpu.matmul %201, %203, %cst_235 {dimension_numbers = #tpu.dot_dimension_numbers<[1], [0], [0], [1], [0, 0, 1, 1], [], []>} : vector<168x128xbf16>, vector<128x128xbf16>, vector<168x128xf32> -> vector<168x128xf32>
      %c0_236 = arith.constant 0 : index
      %c0_237 = arith.constant 0 : index
      %205 = vector.load %arg11[%c0_236, %c0_237] : memref<168x128xf32, #tpu.memory_space<vmem>>, vector<168x128xf32>
      %206 = arith.addf %205, %204 : vector<168x128xf32>
      %c0_238 = arith.constant 0 : index
      %c0_239 = arith.constant 0 : index
      %207 = vector.load %arg11[%c0_238, %c0_239] : memref<168x128xf32, #tpu.memory_space<vmem>>, vector<168x128xf32>
      tpu.vector_store %arg11[%c0_238, %c0_239], %206 {strides = array<i32>} : memref<168x128xf32, #tpu.memory_space<vmem>>, vector<168x128xf32>,
      %c65 = arith.constant 65 : index
      %c0_240 = arith.constant 0 : index
      %208 = vector.load %arg10[%c65, %c0_240] : memref<240x128xbf16, #tpu.memory_space<vmem>>, vector<168x128xbf16>
      %c21 = arith.constant 21 : index
      %c0_241 = arith.constant 0 : index
      %c0_242 = arith.constant 0 : index
      %209 = vector.load %arg5[%c21, %c0_241, %c0_242] : memref<25x128x128xbf16, #tpu.memory_space<vmem>>, vector<1x128x128xbf16>
      %210 = vector.shape_cast %209 : vector<1x128x128xbf16> to vector<128x128xbf16>
      %cst_243 = arith.constant dense<0.000000e+00> : vector<168x128xf32>
      %211 = tpu.matmul %208, %210, %cst_243 {dimension_numbers = #tpu.dot_dimension_numbers<[1], [0], [0], [1], [0, 0, 1, 1], [], []>} : vector<168x128xbf16>, vector<128x128xbf16>, vector<168x128xf32> -> vector<168x128xf32>
      %c0_244 = arith.constant 0 : index
      %c0_245 = arith.constant 0 : index
      %212 = vector.load %arg11[%c0_244, %c0_245] : memref<168x128xf32, #tpu.memory_space<vmem>>, vector<168x128xf32>
      %213 = arith.addf %212, %211 : vector<168x128xf32>
      %c0_246 = arith.constant 0 : index
      %c0_247 = arith.constant 0 : index
      %214 = vector.load %arg11[%c0_246, %c0_247] : memref<168x128xf32, #tpu.memory_space<vmem>>, vector<168x128xf32>
      tpu.vector_store %arg11[%c0_246, %c0_247], %213 {strides = array<i32>} : memref<168x128xf32, #tpu.memory_space<vmem>>, vector<168x128xf32>,
      %c66 = arith.constant 66 : index
      %c0_248 = arith.constant 0 : index
      %215 = vector.load %arg10[%c66, %c0_248] : memref<240x128xbf16, #tpu.memory_space<vmem>>, vector<168x128xbf16>
      %c22 = arith.constant 22 : index
      %c0_249 = arith.constant 0 : index
      %c0_250 = arith.constant 0 : index
      %216 = vector.load %arg5[%c22, %c0_249, %c0_250] : memref<25x128x128xbf16, #tpu.memory_space<vmem>>, vector<1x128x128xbf16>
      %217 = vector.shape_cast %216 : vector<1x128x128xbf16> to vector<128x128xbf16>
      %cst_251 = arith.constant dense<0.000000e+00> : vector<168x128xf32>
      %218 = tpu.matmul %215, %217, %cst_251 {dimension_numbers = #tpu.dot_dimension_numbers<[1], [0], [0], [1], [0, 0, 1, 1], [], []>} : vector<168x128xbf16>, vector<128x128xbf16>, vector<168x128xf32> -> vector<168x128xf32>
      %c0_252 = arith.constant 0 : index
      %c0_253 = arith.constant 0 : index
      %219 = vector.load %arg11[%c0_252, %c0_253] : memref<168x128xf32, #tpu.memory_space<vmem>>, vector<168x128xf32>
      %220 = arith.addf %219, %218 : vector<168x128xf32>
      %c0_254 = arith.constant 0 : index
      %c0_255 = arith.constant 0 : index
      %221 = vector.load %arg11[%c0_254, %c0_255] : memref<168x128xf32, #tpu.memory_space<vmem>>, vector<168x128xf32>
      tpu.vector_store %arg11[%c0_254, %c0_255], %220 {strides = array<i32>} : memref<168x128xf32, #tpu.memory_space<vmem>>, vector<168x128xf32>,
      %c67 = arith.constant 67 : index
      %c0_256 = arith.constant 0 : index
      %222 = vector.load %arg10[%c67, %c0_256] : memref<240x128xbf16, #tpu.memory_space<vmem>>, vector<168x128xbf16>
      %c23 = arith.constant 23 : index
      %c0_257 = arith.constant 0 : index
      %c0_258 = arith.constant 0 : index
      %223 = vector.load %arg5[%c23, %c0_257, %c0_258] : memref<25x128x128xbf16, #tpu.memory_space<vmem>>, vector<1x128x128xbf16>
      %224 = vector.shape_cast %223 : vector<1x128x128xbf16> to vector<128x128xbf16>
      %cst_259 = arith.constant dense<0.000000e+00> : vector<168x128xf32>
      %225 = tpu.matmul %222, %224, %cst_259 {dimension_numbers = #tpu.dot_dimension_numbers<[1], [0], [0], [1], [0, 0, 1, 1], [], []>} : vector<168x128xbf16>, vector<128x128xbf16>, vector<168x128xf32> -> vector<168x128xf32>
      %c0_260 = arith.constant 0 : index
      %c0_261 = arith.constant 0 : index
      %226 = vector.load %arg11[%c0_260, %c0_261] : memref<168x128xf32, #tpu.memory_space<vmem>>, vector<168x128xf32>
      %227 = arith.addf %226, %225 : vector<168x128xf32>
      %c0_262 = arith.constant 0 : index
      %c0_263 = arith.constant 0 : index
      %228 = vector.load %arg11[%c0_262, %c0_263] : memref<168x128xf32, #tpu.memory_space<vmem>>, vector<168x128xf32>
      tpu.vector_store %arg11[%c0_262, %c0_263], %227 {strides = array<i32>} : memref<168x128xf32, #tpu.memory_space<vmem>>, vector<168x128xf32>,
      %c68 = arith.constant 68 : index
      %c0_264 = arith.constant 0 : index
      %229 = vector.load %arg10[%c68, %c0_264] : memref<240x128xbf16, #tpu.memory_space<vmem>>, vector<168x128xbf16>
      %c24 = arith.constant 24 : index
      %c0_265 = arith.constant 0 : index
      %c0_266 = arith.constant 0 : index
      %230 = vector.load %arg5[%c24, %c0_265, %c0_266] : memref<25x128x128xbf16, #tpu.memory_space<vmem>>, vector<1x128x128xbf16>
      %231 = vector.shape_cast %230 : vector<1x128x128xbf16> to vector<128x128xbf16>
      %cst_267 = arith.constant dense<0.000000e+00> : vector<168x128xf32>
      %232 = tpu.matmul %229, %231, %cst_267 {dimension_numbers = #tpu.dot_dimension_numbers<[1], [0], [0], [1], [0, 0, 1, 1], [], []>} : vector<168x128xbf16>, vector<128x128xbf16>, vector<168x128xf32> -> vector<168x128xf32>
      %c0_268 = arith.constant 0 : index
      %c0_269 = arith.constant 0 : index
      %233 = vector.load %arg11[%c0_268, %c0_269] : memref<168x128xf32, #tpu.memory_space<vmem>>, vector<168x128xf32>
      %234 = arith.addf %233, %232 : vector<168x128xf32>
      %c0_270 = arith.constant 0 : index
      %c0_271 = arith.constant 0 : index
      %235 = vector.load %arg11[%c0_270, %c0_271] : memref<168x128xf32, #tpu.memory_space<vmem>>, vector<168x128xf32>
      tpu.vector_store %arg11[%c0_270, %c0_271], %234 {strides = array<i32>} : memref<168x128xf32, #tpu.memory_space<vmem>>, vector<168x128xf32>,
      %c0_272 = arith.constant 0 : index
      %c0_273 = arith.constant 0 : index
      %236 = vector.load %arg11[%c0_272, %c0_273] : memref<168x128xf32, #tpu.memory_space<vmem>>, vector<144x128xf32>
      %c1_274 = arith.constant 1 : index
      %c0_275 = arith.constant 0 : index
      %237 = vector.load %arg11[%c1_274, %c0_275] : memref<168x128xf32, #tpu.memory_space<vmem>>, vector<144x128xf32>
      %238 = arith.maximumf %236, %237 : vector<144x128xf32>
      %c16_276 = arith.constant 16 : index
      %c0_277 = arith.constant 0 : index
      %239 = vector.load %arg11[%c16_276, %c0_277] : memref<168x128xf32, #tpu.memory_space<vmem>>, vector<144x128xf32>
      %c17_278 = arith.constant 17 : index
      %c0_279 = arith.constant 0 : index
      %240 = vector.load %arg11[%c17_278, %c0_279] : memref<168x128xf32, #tpu.memory_space<vmem>>, vector<144x128xf32>
      %241 = arith.maximumf %239, %240 : vector<144x128xf32>
      %242 = arith.maximumf %238, %241 : vector<144x128xf32>
      %c0_280 = arith.constant 0 : index
      %c0_281 = arith.constant 0 : index
      %243 = vector.load %arg7[%c0_280, %c0_281] : memref<32x144xbf16, #tpu.memory_space<vmem>>, vector<32x144xbf16>
      %244 = arith.truncf %242 : vector<144x128xf32> to vector<144x128xbf16>
      %cst_282 = arith.constant dense<0.000000e+00> : vector<32x128xf32>
      %245 = tpu.matmul %243, %244, %cst_282 {dimension_numbers = #tpu.dot_dimension_numbers<[1], [0], [0], [1], [0, 0, 1, 1], [], []>} : vector<32x144xbf16>, vector<144x128xbf16>, vector<32x128xf32> -> vector<32x128xf32>
      %c0_283 = arith.constant 0 : index
      %c0_284 = arith.constant 0 : index
      %246 = vector.load %arg6[%c0_283, %c0_284] : memref<1x128xf32, #tpu.memory_space<vmem>>, vector<1x128xf32>
      %247 = vector.broadcast %246 : vector<1x128xf32> to vector<32x128xf32>
      %248 = arith.addf %245, %247 : vector<32x128xf32>
      %cst_285 = arith.constant 0.000000e+00 : f32
      %249 = vector.broadcast %cst_285 : f32 to vector<32x128xf32>
      %250 = arith.maximumf %248, %249 : vector<32x128xf32>
      %251 = tpu.iota {dimensions = array<i32: 0>} : vector<32x128xi32>
      %c25_i32 = arith.constant 25 : i32
      %252 = vector.broadcast %c25_i32 : i32 to vector<32x128xi32>
      %253 = arith.cmpi slt, %251, %252 : vector<32x128xi32>
      %cst_286 = arith.constant 0.000000e+00 : f32
      %254 = vector.broadcast %cst_286 : f32 to vector<32x128xf32>
      %255 = arith.select %253, %250, %254 : vector<32x128xi1>, vector<32x128xf32>
      %256 = vector.extract_strided_slice %255 {offsets = [0, 0], sizes = [32, 16], strides = [1, 1]} : vector<32x128xf32> to vector<32x16xf32>
      %257 = arith.truncf %256 : vector<32x16xf32> to vector<32x16xbf16>
      %258 = arith.index_cast %2 : i32 to index
      %c0_287 = arith.constant 0 : index
      %c0_288 = arith.constant 0 : index
      %259 = vector.load %arg8[%258, %c0_287, %c0_288] : memref<2x32x16xbf16, #tpu.memory_space<vmem>>, vector<1x32x16xbf16>
      %260 = vector.shape_cast %259 : vector<1x32x16xbf16> to vector<32x16xbf16>
      %261 = vector.shape_cast %257 : vector<32x16xbf16> to vector<1x32x16xbf16>
      tpu.vector_store %arg8[%258, %c0_287, %c0_288], %261 {strides = array<i32>} : memref<2x32x16xbf16, #tpu.memory_space<vmem>>, vector<1x32x16xbf16>,
    }
    %c2_i32_0 = arith.constant 2 : i32
    return
  }
  func.func @transform_0(%arg0: i32) -> (i32, i32, i32) {
    %c0_i32 = arith.constant 0 : i32
    %c0_i32_0 = arith.constant 0 : i32
    %c0_i32_1 = arith.constant 0 : i32
    return %arg0, %c0_i32, %c0_i32_0 : i32, i32, i32
  }
  func.func @transform_1(%arg0: i32) -> (i32, i32, i32) {
    %c0_i32 = arith.constant 0 : i32
    %c0_i32_0 = arith.constant 0 : i32
    %c0_i32_1 = arith.constant 0 : i32
    %c0_i32_2 = arith.constant 0 : i32
    return %c0_i32, %c0_i32_0, %c0_i32_1 : i32, i32, i32
  }
  func.func @transform_2(%arg0: i32) -> (i32, i32) {
    %c0_i32 = arith.constant 0 : i32
    %c0_i32_0 = arith.constant 0 : i32
    %c0_i32_1 = arith.constant 0 : i32
    return %c0_i32, %c0_i32_0 : i32, i32
  }
  func.func @transform_3(%arg0: i32) -> (i32, i32) {
    %c0_i32 = arith.constant 0 : i32
    %c0_i32_0 = arith.constant 0 : i32
    %c0_i32_1 = arith.constant 0 : i32
    return %c0_i32, %c0_i32_0 : i32, i32
  }
  func.func @transform_4(%arg0: i32) -> (i32, i32, i32) {
    %c0_i32 = arith.constant 0 : i32
    %c0_i32_0 = arith.constant 0 : i32
    %c0_i32_1 = arith.constant 0 : i32
    %c0_i32_2 = arith.constant 0 : i32
    return %c0_i32, %c0_i32_0, %c0_i32_1 : i32, i32, i32
  }
  func.func @transform_5(%arg0: i32) -> (i32, i32) {
    %c0_i32 = arith.constant 0 : i32
    %c0_i32_0 = arith.constant 0 : i32
    %c0_i32_1 = arith.constant 0 : i32
    return %c0_i32, %c0_i32_0 : i32, i32
  }
  func.func @transform_6(%arg0: i32) -> (i32, i32) {
    %c0_i32 = arith.constant 0 : i32
    %c0_i32_0 = arith.constant 0 : i32
    %c0_i32_1 = arith.constant 0 : i32
    return %c0_i32, %c0_i32_0 : i32, i32
  }
  func.func @transform_7(%arg0: i32) -> (i32, i32, i32) {
    %c0_i32 = arith.constant 0 : i32
    %c0_i32_0 = arith.constant 0 : i32
    %c0_i32_1 = arith.constant 0 : i32
    return %arg0, %c0_i32, %c0_i32_0 : i32, i32, i32
  }
}

module attributes {stable_mosaic.version = 11 : i64} {
  func.func @_fc_kernel(%arg0: i32, %arg1: memref<8x512xbf16, #tpu.memory_space<vmem>>, %arg2: memref<512x128xbf16, #tpu.memory_space<vmem>>, %arg3: memref<1x128xf32, #tpu.memory_space<vmem>>, %arg4: memref<128x128xbf16, #tpu.memory_space<vmem>>, %arg5: memref<1x128xf32, #tpu.memory_space<vmem>>, %arg6: memref<128x128xbf16, #tpu.memory_space<vmem>>, %arg7: memref<1x128xf32, #tpu.memory_space<vmem>>, %arg8: memref<8x128xf32, #tpu.memory_space<vmem>>) attributes {dimension_semantics = [#tpu.dimension_semantics<parallel>], iteration_bounds = array<i64: 1>, scalar_prefetch = 0 : i64, scratch_operands = 0 : i64, tpu.core_type = #tpu.core_type<tc>, window_params = [{transform_indices = @transform_0, window_bounds = array<i64: 8, 512>}, {pipeline_mode = #tpu.pipeline_mode<synchronous>, transform_indices = @transform_1, window_bounds = array<i64: 512, 128>}, {pipeline_mode = #tpu.pipeline_mode<synchronous>, transform_indices = @transform_2, window_bounds = array<i64: 1, 128>}, {pipeline_mode = #tpu.pipeline_mode<synchronous>, transform_indices = @transform_3, window_bounds = array<i64: 128, 128>}, {pipeline_mode = #tpu.pipeline_mode<synchronous>, transform_indices = @transform_4, window_bounds = array<i64: 1, 128>}, {pipeline_mode = #tpu.pipeline_mode<synchronous>, transform_indices = @transform_5, window_bounds = array<i64: 128, 128>}, {pipeline_mode = #tpu.pipeline_mode<synchronous>, transform_indices = @transform_6, window_bounds = array<i64: 1, 128>}, {transform_indices = @transform_7, window_bounds = array<i64: 8, 128>}]} {
    %c0 = arith.constant 0 : index
    %c0_0 = arith.constant 0 : index
    %0 = vector.load %arg1[%c0, %c0_0] : memref<8x512xbf16, #tpu.memory_space<vmem>>, vector<8x512xbf16>
    %c0_1 = arith.constant 0 : index
    %c0_2 = arith.constant 0 : index
    %1 = vector.load %arg2[%c0_1, %c0_2] : memref<512x128xbf16, #tpu.memory_space<vmem>>, vector<512x128xbf16>
    %cst = arith.constant dense<0.000000e+00> : vector<8x128xf32>
    %2 = tpu.matmul %0, %1, %cst {dimension_numbers = #tpu.dot_dimension_numbers<[1], [0], [0], [1], [0, 0, 1, 1], [], []>} : vector<8x512xbf16>, vector<512x128xbf16>, vector<8x128xf32> -> vector<8x128xf32>
    %c0_3 = arith.constant 0 : index
    %c0_4 = arith.constant 0 : index
    %3 = vector.load %arg3[%c0_3, %c0_4] : memref<1x128xf32, #tpu.memory_space<vmem>>, vector<1x128xf32>
    %4 = vector.broadcast %3 : vector<1x128xf32> to vector<8x128xf32>
    %5 = arith.addf %2, %4 : vector<8x128xf32>
    %cst_5 = arith.constant 0.000000e+00 : f32
    %6 = vector.broadcast %cst_5 : f32 to vector<8x128xf32>
    %7 = arith.maximumf %5, %6 : vector<8x128xf32>
    %8 = arith.truncf %7 : vector<8x128xf32> to vector<8x128xbf16>
    %c0_6 = arith.constant 0 : index
    %c0_7 = arith.constant 0 : index
    %9 = vector.load %arg4[%c0_6, %c0_7] : memref<128x128xbf16, #tpu.memory_space<vmem>>, vector<128x128xbf16>
    %cst_8 = arith.constant dense<0.000000e+00> : vector<8x128xf32>
    %10 = tpu.matmul %8, %9, %cst_8 {dimension_numbers = #tpu.dot_dimension_numbers<[1], [0], [0], [1], [0, 0, 1, 1], [], []>} : vector<8x128xbf16>, vector<128x128xbf16>, vector<8x128xf32> -> vector<8x128xf32>
    %c0_9 = arith.constant 0 : index
    %c0_10 = arith.constant 0 : index
    %11 = vector.load %arg5[%c0_9, %c0_10] : memref<1x128xf32, #tpu.memory_space<vmem>>, vector<1x128xf32>
    %12 = vector.broadcast %11 : vector<1x128xf32> to vector<8x128xf32>
    %13 = arith.addf %10, %12 : vector<8x128xf32>
    %cst_11 = arith.constant 0.000000e+00 : f32
    %14 = vector.broadcast %cst_11 : f32 to vector<8x128xf32>
    %15 = arith.maximumf %13, %14 : vector<8x128xf32>
    %16 = arith.truncf %15 : vector<8x128xf32> to vector<8x128xbf16>
    %c0_12 = arith.constant 0 : index
    %c0_13 = arith.constant 0 : index
    %17 = vector.load %arg6[%c0_12, %c0_13] : memref<128x128xbf16, #tpu.memory_space<vmem>>, vector<128x128xbf16>
    %cst_14 = arith.constant dense<0.000000e+00> : vector<8x128xf32>
    %18 = tpu.matmul %16, %17, %cst_14 {dimension_numbers = #tpu.dot_dimension_numbers<[1], [0], [0], [1], [0, 0, 1, 1], [], []>} : vector<8x128xbf16>, vector<128x128xbf16>, vector<8x128xf32> -> vector<8x128xf32>
    %c0_15 = arith.constant 0 : index
    %c0_16 = arith.constant 0 : index
    %19 = vector.load %arg7[%c0_15, %c0_16] : memref<1x128xf32, #tpu.memory_space<vmem>>, vector<1x128xf32>
    %20 = vector.broadcast %19 : vector<1x128xf32> to vector<8x128xf32>
    %21 = arith.addf %18, %20 : vector<8x128xf32>
    %c0_17 = arith.constant 0 : index
    %c0_18 = arith.constant 0 : index
    %22 = vector.load %arg8[%c0_17, %c0_18] : memref<8x128xf32, #tpu.memory_space<vmem>>, vector<8x128xf32>
    tpu.vector_store %arg8[%c0_17, %c0_18], %21 {strides = array<i32>} : memref<8x128xf32, #tpu.memory_space<vmem>>, vector<8x128xf32>,
    return
  }
  func.func @transform_0(%arg0: i32) -> (i32, i32) {
    %c0_i32 = arith.constant 0 : i32
    %c0_i32_0 = arith.constant 0 : i32
    return %arg0, %c0_i32 : i32, i32
  }
  func.func @transform_1(%arg0: i32) -> (i32, i32) {
    %c0_i32 = arith.constant 0 : i32
    %c0_i32_0 = arith.constant 0 : i32
    %c0_i32_1 = arith.constant 0 : i32
    return %c0_i32, %c0_i32_0 : i32, i32
  }
  func.func @transform_2(%arg0: i32) -> (i32, i32) {
    %c0_i32 = arith.constant 0 : i32
    %c0_i32_0 = arith.constant 0 : i32
    %c0_i32_1 = arith.constant 0 : i32
    return %c0_i32, %c0_i32_0 : i32, i32
  }
  func.func @transform_3(%arg0: i32) -> (i32, i32) {
    %c0_i32 = arith.constant 0 : i32
    %c0_i32_0 = arith.constant 0 : i32
    %c0_i32_1 = arith.constant 0 : i32
    return %c0_i32, %c0_i32_0 : i32, i32
  }
  func.func @transform_4(%arg0: i32) -> (i32, i32) {
    %c0_i32 = arith.constant 0 : i32
    %c0_i32_0 = arith.constant 0 : i32
    %c0_i32_1 = arith.constant 0 : i32
    return %c0_i32, %c0_i32_0 : i32, i32
  }
  func.func @transform_5(%arg0: i32) -> (i32, i32) {
    %c0_i32 = arith.constant 0 : i32
    %c0_i32_0 = arith.constant 0 : i32
    %c0_i32_1 = arith.constant 0 : i32
    return %c0_i32, %c0_i32_0 : i32, i32
  }
  func.func @transform_6(%arg0: i32) -> (i32, i32) {
    %c0_i32 = arith.constant 0 : i32
    %c0_i32_0 = arith.constant 0 : i32
    %c0_i32_1 = arith.constant 0 : i32
    return %c0_i32, %c0_i32_0 : i32, i32
  }
  func.func @transform_7(%arg0: i32) -> (i32, i32) {
    %c0_i32 = arith.constant 0 : i32
    %c0_i32_0 = arith.constant 0 : i32
    return %arg0, %c0_i32 : i32, i32
  }
}

</mosaic_0001>

<bundles_post_ra>
// kernel: net_forward.3
= control target key start
LH: loop header
LB: loop body
LE: loop exit
PB: predicated region body
PF: predicated region fallthrough
CT: control target
= control target key end

     0   :  { %v828_v39 = vmov 0.0   ;;  %vm829_vm0 = vmmov 0   ;;  %s1050_s1 = inlined_call_operand.vmem [shape: bf16[512,128], index: 1, kind: input, shape index: {}]   ;;  %s1051_s0 = inlined_call_operand.vmem [shape: bf16[8,512], index: 0, kind: input, shape index: {}]   ;;  %s1052_s3 = inlined_call_operand.vmem [shape: bf16[128,128], index: 3, kind: input, shape index: {}]   ;;  %s1053_s5 = inlined_call_operand.vmem [shape: bf16[128,128], index: 5, kind: input, shape index: {}]   ;;  %s1054_s2 = inlined_call_operand.vmem [shape: f32[1,128], index: 2, kind: input, shape index: {}]   ;;  %s1055_s4 = inlined_call_operand.vmem [shape: f32[1,128], index: 4, kind: input, shape index: {}]   ;;  %s1056_s6 = inlined_call_operand.vmem [shape: f32[1,128], index: 6, kind: input, shape index: {}]   ;;  %s1057_s7 = inlined_call_operand.vmem [shape: f32[8,128], index: 7, kind: output, shape index: {}]  }
   0x1   :  { %v776_v0 = vld [vmem:[%s1050_s1 + $0x40] sm:$0xff]   ;;  %v780_v4 = vld [vmem:[%s1050_s1 + $0x48] sm:$0xff]   ;;  %v784_v8 = vld [vmem:[%s1050_s1 + $0x50] sm:$0xff]  }
   0x2   :  { %v777_v1 = vld [vmem:[%s1050_s1 + $0xc0] sm:$0xff]   ;;  %672 = vmatprep.subr.bf16.mxu0 %v776_v0  ;;  %v781_v5 = vld [vmem:[%s1050_s1 + $0xc8] sm:$0xff]   ;;  %v785_v9 = vld [vmem:[%s1050_s1 + $0xd0] sm:$0xff]  }
   0x3   :  { %v778_v2 = vld [vmem:[%s1050_s1] sm:$0xff]   ;;  %694 = vmatprep.subr.bf16.mxu1 %v777_v1  ;;  %v782_v6 = vld [vmem:[%s1050_s1 + $0x8] sm:$0xff]   ;;  %v786_v10 = vld [vmem:[%s1050_s1 + $0x10] sm:$0xff]  }
   0x4   :  { %v779_v3 = vld [vmem:[%s1050_s1 + $0x80] sm:$0xff]   ;;  %673 = vmatpush3.bf16.msra.mxu0 %v778_v2  ;;  %v783_v7 = vld [vmem:[%s1050_s1 + $0x88] sm:$0xff]   ;;  %v787_v11 = vld [vmem:[%s1050_s1 + $0x90] sm:$0xff]  }
   0x5   :  { %695 = vmatpush3.bf16.msra.mxu1 %v779_v3  ;;  %674 = vmatprep.subr.bf16.mxu0 %v780_v4  ;;  %v788_v12 = vld [vmem:[%s1050_s1 + $0x58] sm:$0xff]   ;;  %v792_v16 = vld [vmem:[%s1050_s1 + $0x60] sm:$0xff]   ;;  %v796_v20 = vld [vmem:[%s1050_s1 + $0x68] sm:$0xff]  }
   0x6   :  { %696 = vmatprep.subr.bf16.mxu1 %v781_v5  ;;  %v789_v13 = vld [vmem:[%s1050_s1 + $0xd8] sm:$0xff]   ;;  %v793_v17 = vld [vmem:[%s1050_s1 + $0xe0] sm:$0xff]   ;;  %v797_v21 = vld [vmem:[%s1050_s1 + $0xe8] sm:$0xff]  }
   0x7   :  { %v790_v14 = vld [vmem:[%s1050_s1 + $0x18] sm:$0xff]   ;;  %v794_v18 = vld [vmem:[%s1050_s1 + $0x20] sm:$0xff]   ;;  %v798_v22 = vld [vmem:[%s1050_s1 + $0x28] sm:$0xff]  }
   0x8   :  { %675 = vmatpush3.bf16.msra.mxu0 %v782_v6  ;;  %v791_v15 = vld [vmem:[%s1050_s1 + $0x98] sm:$0xff]   ;;  %v795_v19 = vld [vmem:[%s1050_s1 + $0xa0] sm:$0xff]   ;;  %v799_v23 = vld [vmem:[%s1050_s1 + $0xa8] sm:$0xff]  }
   0x9   :  { %697 = vmatpush3.bf16.msra.mxu1 %v783_v7  ;;  %676 = vmatprep.subr.bf16.mxu0 %v784_v8  ;;  %v800_v24 = vld [vmem:[%s1050_s1 + $0x70] sm:$0xff]   ;;  %v804_v28 = vld [vmem:[%s1050_s1 + $0x78] sm:$0xff]   ;;  %v27_v32 = vld [vmem:[%s1051_s0] sm:$0xff] }
   0xa   :  { %698 = vmatprep.subr.bf16.mxu1 %v785_v9  ;;  %v801_v25 = vld [vmem:[%s1050_s1 + $0xf0] sm:$0xff]   ;;  %v805_v29 = vld [vmem:[%s1050_s1 + $0xf8] sm:$0xff]   ;;  %v28_v33 = vld [vmem:[%s1051_s0 + $0x8] sm:$0xff]  ;;  %v618_v34 = vcombine.low %v27_v32, %v27_v32  ;;  %v619_v35 = vcombine.high %v27_v32, %v27_v32 }
   0xb   :  { %v802_v26 = vld [vmem:[%s1050_s1 + $0x30] sm:$0xff]   ;;  %v806_v30 = vld [vmem:[%s1050_s1 + $0x38] sm:$0xff]   ;;  %v620_v36 = vcombine.low %v28_v33, %v28_v33  ;;  %v621_v37 = vcombine.high %v28_v33, %v28_v33  ;;  %v812_v38 = vld [vmem:[%s1052_s3] sm:$0xff]  }
   0xc   :  { %677 = vmatpush3.bf16.msra.mxu0 %v786_v10  ;;  %v803_v27 = vld [vmem:[%s1050_s1 + $0xb0] sm:$0xff]   ;;  %v807_v31 = vld [vmem:[%s1050_s1 + $0xb8] sm:$0xff]   ;;  %338 = vmatprep.mubr.bf16.mxu0 %v619_v35  ;;  %v813_v40 = vld [vmem:[%s1052_s3 + $0x8] sm:$0xff]  }
   0xd   :  { %699 = vmatpush3.bf16.msra.mxu1 %v787_v11  ;;  %678 = vmatprep.subr.bf16.mxu0 %v788_v12  ;;  %v814_v41 = vld [vmem:[%s1052_s3 + $0x10] sm:$0xff]   ;;  %v815_v42 = vld [vmem:[%s1052_s3 + $0x18] sm:$0xff]   ;;  %v816_v43 = vld [vmem:[%s1052_s3 + $0x20] sm:$0xff]  }
   0xe   :  { %700 = vmatprep.subr.bf16.mxu1 %v789_v13  ;;  %378 = vmatprep.mubr.bf16.mxu1 %v621_v37  ;;  %v817_v44 = vld [vmem:[%s1052_s3 + $0x28] sm:$0xff]   ;;  %v818_v45 = vld [vmem:[%s1052_s3 + $0x30] sm:$0xff]   ;;  %v819_v46 = vld [vmem:[%s1052_s3 + $0x38] sm:$0xff]  }
   0xf   :  { %v820_v47 = vld [vmem:[%s1053_s5] sm:$0xff]   ;;  %v821_v48 = vld [vmem:[%s1053_s5 + $0x8] sm:$0xff]   ;;  %v822_v49 = vld [vmem:[%s1053_s5 + $0x10] sm:$0xff]  }
  0x10   :  { %679 = vmatpush3.bf16.msra.mxu0 %v790_v14  ;;  %v823_v50 = vld [vmem:[%s1053_s5 + $0x18] sm:$0xff]   ;;  %v824_v51 = vld [vmem:[%s1053_s5 + $0x20] sm:$0xff]   ;;  %v825_v52 = vld [vmem:[%s1053_s5 + $0x28] sm:$0xff]  }
  0x11   :  { %701 = vmatpush3.bf16.msra.mxu1 %v791_v15  ;;  %680 = vmatprep.subr.bf16.mxu0 %v792_v16  ;;  %v617_v55 = vld [vmem:[%s1054_s2] ss:$0 sm:$0xff]  ;;  %v826_v4 = vld [vmem:[%s1053_s5 + $0x30] sm:$0xff]   ;;  %v827_v5 = vld [vmem:[%s1053_s5 + $0x38] sm:$0xff]  }
  0x12   :  { %702 = vmatprep.subr.bf16.mxu1 %v793_v17  ;;  %v654_v6 = vld [vmem:[%s1055_s4] ss:$0 sm:$0xff] }
  0x13   :  { %v663_v14 = vld [vmem:[%s1056_s6] ss:$0 sm:$0xff] }
  0x14   :  { %681 = vmatpush3.bf16.msra.mxu0 %v794_v18 }
  0x15   :  { %703 = vmatpush3.bf16.msra.mxu1 %v795_v19  ;;  %682 = vmatprep.subr.bf16.mxu0 %v796_v20 }
  0x16   :  { %704 = vmatprep.subr.bf16.mxu1 %v797_v21 }
  0x18   :  { %683 = vmatpush3.bf16.msra.mxu0 %v798_v22 }
  0x19   :  { %705 = vmatpush3.bf16.msra.mxu1 %v799_v23  ;;  %684 = vmatprep.subr.bf16.mxu0 %v800_v24 }
  0x1a   :  { %706 = vmatprep.subr.bf16.mxu1 %v801_v25 }
  0x1c   :  { %685 = vmatpush3.bf16.msra.mxu0 %v802_v26 }
  0x1d   :  { %707 = vmatpush3.bf16.msra.mxu1 %v803_v27  ;;  %686 = vmatprep.subr.bf16.mxu0 %v804_v28 }
  0x1e   :  { %708 = vmatprep.subr.bf16.mxu1 %v805_v29 }
  0x20   :  { %687 = vmatpush3.bf16.msra.mxu0 %v806_v30 }
  0x21   :  { %709 = vmatpush3.bf16.msra.mxu1 %v807_v31  ;;  %734 = vmatprep.subr.bf16.mxu0 %v828_v39 }
  0x22   :  { %754 = vmatprep.subr.bf16.mxu1 %v828_v39 }
  0x23   :  { %339 = vmatmul.mubr.bf16.vlgmr.msra.gmra.mrb[0].mxu0 %v618_v34 }
  0x24   :  { %379 = vmatmul.mubr.bf16.vlgmr.msra.gmra.mrb[0].mxu1 %v620_v36  ;;  %735 = vmatpush3.bf16.msra.mxu0 %v812_v38 }
  0x25   :  { %736 = vmatprep.subr.bf16.mxu0 %v828_v39  ;;  %750 = vmatprep.mubr.msk.bf16.mxu0 %vm829_vm0, %v828_v39 }
  0x26   :  { %770 = vmatprep.mubr.msk.bf16.mxu1 %vm829_vm0, %v828_v39  ;;  %755 = vmatpush3.bf16.msra.mxu1 %v820_v47 }
  0x27   :  { %756 = vmatprep.subr.bf16.mxu1 %v828_v39 }
  0x28   :  { %737 = vmatpush3.bf16.msra.mxu0 %v813_v40 }
  0x29   :  { %738 = vmatprep.subr.bf16.mxu0 %v828_v39 }
  0x2a   :  { %757 = vmatpush3.bf16.msra.mxu1 %v821_v48 }
  0x2b   :  { %758 = vmatprep.subr.bf16.mxu1 %v828_v39 }
  0x2c   :  { %739 = vmatpush3.bf16.msra.mxu0 %v814_v41 }
  0x2d   :  { %740 = vmatprep.subr.bf16.mxu0 %v828_v39 }
  0x2e   :  { %759 = vmatpush3.bf16.msra.mxu1 %v822_v49 }
  0x2f   :  { %760 = vmatprep.subr.bf16.mxu1 %v828_v39 }
  0x30   :  { %741 = vmatpush3.bf16.msra.mxu0 %v815_v42 }
  0x31   :  { %742 = vmatprep.subr.bf16.mxu0 %v828_v39 }
  0x32   :  { %761 = vmatpush3.bf16.msra.mxu1 %v823_v50 }
  0x33   :  { %762 = vmatprep.subr.bf16.mxu1 %v828_v39 }
  0x34   :  { %743 = vmatpush3.bf16.msra.mxu0 %v816_v43 }
  0x35   :  { %744 = vmatprep.subr.bf16.mxu0 %v828_v39 }
  0x36   :  { %763 = vmatpush3.bf16.msra.mxu1 %v824_v51 }
  0x37   :  { %764 = vmatprep.subr.bf16.mxu1 %v828_v39 }
  0x38   :  { %745 = vmatpush3.bf16.msra.mxu0 %v817_v44 }
  0x39   :  { %746 = vmatprep.subr.bf16.mxu0 %v828_v39 }
  0x3a   :  { %765 = vmatpush3.bf16.msra.mxu1 %v825_v52 }
  0x3b   :  { %766 = vmatprep.subr.bf16.mxu1 %v828_v39 }
  0x3c   :  { %747 = vmatpush3.bf16.msra.mxu0 %v818_v45 }
  0x3d   :  { %748 = vmatprep.subr.bf16.mxu0 %v828_v39 }
  0x3e   :  { %767 = vmatpush3.bf16.msra.mxu1 %v826_v4 }
  0x3f   :  { %768 = vmatprep.subr.bf16.mxu1 %v828_v39 }
  0x40   :  { %749 = vmatpush3.bf16.msra.mxu0 %v819_v46 }
  0x42   :  { %769 = vmatpush3.bf16.msra.mxu1 %v827_v5 }
  0xf6   :  { %v688_v53 = vpop.f32.mrb[0].mxu0 }
  0xf7   :  { %v710_v54 = vpop.f32.mrb[0].mxu1  ;;  %v689_v56 = vpop.f32.mrb[1].mxu0 }
  0xf8   :  { %v711_v57 = vpop.f32.mrb[1].mxu1  ;;  %v690_v58 = vadd.f32 %v689_v56, %v688_v53  ;;  %v691_v60 = vpop.f32.mrb[2].mxu0 }
  0xf9   :  { %v712_v59 = vadd.f32 %v711_v57, %v710_v54  ;;  %v713_v61 = vpop.f32.mrb[2].mxu1  ;;  %v692_v62 = vpop.f32.mrb[3].mxu0 }
  0xfa   :  { %v714_v63 = vpop.f32.mrb[3].mxu1  ;;  %v341_v0 = vadd.f32 %v690_v58, %v617_v55 }
  0xfc   :  { %v381_v1 = vadd.f32 %v712_v59, %v341_v0 }
  0xfe   :  { %v386_v2 = vmax.f32 %v381_v1, 0.0 }
 0x100   :  { %v387_v3 = vpack.c.bf16 %v386_v2, %v386_v2 }
 0x102   :  { %751 = vmatmul.mubr.bf16.vlgmr.msra.gmra.mrb[4].mxu0 %v387_v3 }
 0x1d5   :  { %v493_v7 = vpop.f32.mrb[4].mxu0 }
 0x1d6   :  { %v494_v8 = vadd.f32 %v654_v6, %v493_v7  ;;  %v752_v9 = vpop.f32.mrb[5].mxu0 }
 0x1d7   :  { %v496_v10 = vpop.f32.mrb[6].mxu0 }
 0x1d8   :  { %v499_v11 = vmax.f32 %v494_v8, 0.0  ;;  %v753_v12 = vpop.f32.mrb[7].mxu0 }
 0x1da   :  { %v500_v13 = vpack.c.bf16 %v499_v11, %v499_v11 }
 0x1dc   :  { %771 = vmatmul.mubr.bf16.vlgmr.msra.gmra.mrb[4].mxu1 %v500_v13 }
 0x2af   :  { %v606_v15 = vpop.f32.mrb[4].mxu1 }
 0x2b0   :  { %v607_v16 = vadd.f32 %v663_v14, %v606_v15  ;;  %v772_v17 = vpop.f32.mrb[5].mxu1 }
 0x2b1   :  { %v609_v18 = vpop.f32.mrb[6].mxu1 }
 0x2b2   :  { %612 = vst [vmem:[%s1057_s7] sm:$0xff] %v607_v16  ;;  %v773_v19 = vpop.f32.mrb[7].mxu1 }

// kernel: net_forward.2
= control target key start
LH: loop header
LB: loop body
LE: loop exit
PB: predicated region body
PF: predicated region fallthrough
CT: control target
= control target key end

     0   :  { %s24683_s24 = smov 0   ;;  %s29221_s0 = inlined_call_operand.vmem [shape: bf16[2,1032,16], index: 0, kind: input, shape index: {}]   ;;  %s29222_s1 = inlined_call_operand.vmem [shape: bf16[5,16,128], index: 1, kind: input, shape index: {}]   ;;  %s29223_s2 = inlined_call_operand.vmem [shape: f32[1,128], index: 2, kind: input, shape index: {}]   ;;  %s29224_s3 = inlined_call_operand.vmem [shape: bf16[240,864], index: 3, kind: input, shape index: {}]   ;;  %s29225_s4 = inlined_call_operand.vmem [shape: bf16[25,128,128], index: 4, kind: input, shape index: {}]   ;;  %s29226_s5 = inlined_call_operand.vmem [shape: f32[1,128], index: 5, kind: input, shape index: {}]   ;;  %s29227_s6 = inlined_call_operand.vmem [shape: bf16[32,144], index: 6, kind: input, shape index: {}]   ;;  %s29228_s7 = inlined_call_operand.vmem [shape: bf16[2,32,16], index: 7, kind: output, shape index: {}]  }
   0x1 LB: > { %v23948_v0 = vld [vmem:[%s29222_s1] sm:$0xff]   ;;  %v29241_v1 = vmov 0.0   ;;  %vm24641_vm0 = vmmov 0   ;;  %s18121_s27 = smul.u32 516, %s24638_s24  ;;  %vm440_vm1 = vcmask 130048   ;;  %v23968_v5 = vld [vmem:[%s29222_s1 + $0x8] sm:$0xff]   ;;  %s24638_s24 = sphi %s24683_s24, %s32_s24  }
   0x2   : > { %19231 = vmatprep.subr.bf16.mxu0 %v29241_v1  ;;  %19233 = vmatprep.mubr.msk.bf16.mxu0 %vm24641_vm0, %v29241_v1  ;;  %v24026_v63 = vld [vmem:[%s29222_s1 + $0x10] sm:$0xff]   ;;  %vm7975_vm2 = vcmask 785408   ;;  %vm8937_vm3 = vsmask.f32 7424  ;;  %vm9306_vm4 = vcmask 1046528   ;;  %vm9978_vm6 = vcmask 1045504  }
   0x3   : > { %19232 = vmatpush3.bf16.msra.mxu0 %v23948_v0  ;;  %s24699_s30 = scalar_lea.vmem %s29221_s0, %s18121_s27  ;;  %vm9598_vm5 = vsmask.f32 6400  ;;  %s18126_s22 = sshll.u32 %s24638_s24, 4  ;;  %vm16801_vm7 = vcmask 125952  }
   0x4   : > { %19461 = vmatprep.subr.bf16.mxu0 %v29241_v1  ;;  %v23949_v2 = vld [vmem:[%s24699_s30] sm:$0xff]   ;;  %v23950_v3 = vld [vmem:[%s24699_s30 + $0x8] sm:$0xff]   ;;  %v23951_v4 = vld [vmem:[%s24699_s30 + $0x10] sm:$0xff]   ;;  %s16800_s26 = scalar_lea.vmem %s29228_s7, %s18126_s22  ;;  %s32_s24 = sadd.s32 1, %s24638_s24  }
   0x5   : > { %v23952_v6 = vld [vmem:[%s24699_s30 + $0x18] sm:$0xff]   ;;  %v23953_v7 = vld [vmem:[%s24699_s30 + $0x20] sm:$0xff]   ;;  %v23954_v8 = vld [vmem:[%s24699_s30 + $0x28] sm:$0xff]   ;;  %p29_p0 = scmp.ge.s32.totalorder %s32_s24, 2  }
   0x6   : > { %19234 = vmatmul.mubr.msk.bf16.vlgmr.msra.gmra.mrb[0].mxu0 %vm440_vm1, %v23949_v2  ;;  %v23955_v9 = vld [vmem:[%s24699_s30 + $0x30] sm:$0xff]   ;;  %v23956_v10 = vld [vmem:[%s24699_s30 + $0x38] sm:$0xff]   ;;  %v23957_v11 = vld [vmem:[%s24699_s30 + $0x40] sm:$0xff]  }
   0x7   : > { %19237 = vmatprep.mubr.msk.bf16.mxu0 %vm24641_vm0, %v29241_v1  ;;  %19462 = vmatpush3.bf16.msra.mxu0 %v23968_v5  ;;  %v23958_v12 = vld [vmem:[%s24699_s30 + $0x48] sm:$0xff]   ;;  %v23959_v13 = vld [vmem:[%s24699_s30 + $0x50] sm:$0xff]   ;;  %v23960_v14 = vld [vmem:[%s24699_s30 + $0x58] sm:$0xff]  }
   0x8   : > { %19691 = vmatprep.subr.bf16.mxu0 %v29241_v1  ;;  %v23961_v15 = vld [vmem:[%s24699_s30 + $0x60] sm:$0xff]   ;;  %v23962_v16 = vld [vmem:[%s24699_s30 + $0x68] sm:$0xff]   ;;  %v23963_v17 = vld [vmem:[%s24699_s30 + $0x70] sm:$0xff]  }
   0x9   : > { %v23964_v18 = vld [vmem:[%s24699_s30 + $0x78] sm:$0xff]   ;;  %v23965_v19 = vld [vmem:[%s24699_s30 + $0x80] sm:$0xff]   ;;  %v23966_v20 = vld [vmem:[%s24699_s30 + $0x88] sm:$0xff]  }
   0xa   : > { %v23967_v21 = vld [vmem:[%s24699_s30 + $0x90] sm:$0xff]   ;;  %v23969_v22 = vld [vmem:[%s24699_s30 + $0x98] sm:$0xff]   ;;  %v23970_v23 = vld [vmem:[%s24699_s30 + $0xa0] sm:$0xff]  }
   0xb   : > { %v23971_v24 = vld [vmem:[%s24699_s30 + $0xa8] sm:$0xff]   ;;  %v23972_v25 = vld [vmem:[%s24699_s30 + $0xb0] sm:$0xff]   ;;  %v23973_v26 = vld [vmem:[%s24699_s30 + $0xb8] sm:$0xff]  }
   0xc   : > { %v23974_v27 = vld [vmem:[%s24699_s30 + $0xc0] sm:$0xff]   ;;  %v23975_v28 = vld [vmem:[%s24699_s30 + $0xc8] sm:$0xff]   ;;  %v23976_v29 = vld [vmem:[%s24699_s30 + $0xd0] sm:$0xff]  }
   0xd   : > { %v23977_v30 = vld [vmem:[%s24699_s30 + $0xd8] sm:$0xff]   ;;  %v23978_v31 = vld [vmem:[%s24699_s30 + $0xe0] sm:$0xff]   ;;  %v23979_v32 = vld [vmem:[%s24699_s30 + $0xe8] sm:$0xff]  }
   0xe   : > { %19238 = vmatmul.mubr.msk.bf16.gmra.mrb[4].mxu0 %vm440_vm1, %v23950_v3  ;;  %v23980_v33 = vld [vmem:[%s24699_s30 + $0xf0] sm:$0xff]   ;;  %v23981_v34 = vld [vmem:[%s24699_s30 + $0xf8] sm:$0xff]   ;;  %v23982_v35 = vld [vmem:[%s24699_s30 + $0x100] sm:$0xff]  }
   0xf   : > { %19241 = vmatprep.mubr.msk.bf16.mxu0 %vm24641_vm0, %v29241_v1  ;;  %v23983_v36 = vld [vmem:[%s24699_s30 + $0x108] sm:$0xff]   ;;  %v23984_v37 = vld [vmem:[%s24699_s30 + $0x110] sm:$0xff]   ;;  %v23985_v38 = vld [vmem:[%s24699_s30 + $0x118] sm:$0xff]  }
  0x10   : > { %v23986_v39 = vld [vmem:[%s24699_s30 + $0x120] sm:$0xff]   ;;  %v23987_v40 = vld [vmem:[%s24699_s30 + $0x128] sm:$0xff]   ;;  %v23988_v41 = vld [vmem:[%s24699_s30 + $0x130] sm:$0xff]  }
  0x11   : > { %v23989_v42 = vld [vmem:[%s24699_s30 + $0x138] sm:$0xff]   ;;  %v23990_v43 = vld [vmem:[%s24699_s30 + $0x140] sm:$0xff]   ;;  %v23991_v44 = vld [vmem:[%s24699_s30 + $0x148] sm:$0xff]  }
  0x12   : > { %v23992_v45 = vld [vmem:[%s24699_s30 + $0x150] sm:$0xff]   ;;  %v23993_v46 = vld [vmem:[%s24699_s30 + $0x158] sm:$0xff]   ;;  %v23994_v47 = vld [vmem:[%s24699_s30 + $0x160] sm:$0xff]  }
  0x13   : > { %v23995_v48 = vld [vmem:[%s24699_s30 + $0x168] sm:$0xff]   ;;  %v23996_v49 = vld [vmem:[%s24699_s30 + $0x170] sm:$0xff]   ;;  %v23997_v50 = vld [vmem:[%s24699_s30 + $0x178] sm:$0xff]  }
  0x14   : > { %v23998_v51 = vld [vmem:[%s24699_s30 + $0x180] sm:$0xff]   ;;  %v23999_v52 = vld [vmem:[%s24699_s30 + $0x188] sm:$0xff]   ;;  %v24000_v53 = vld [vmem:[%s24699_s30 + $0x190] sm:$0xff]  }
  0x15   : > { %v24001_v54 = vld [vmem:[%s24699_s30 + $0x198] sm:$0xff]   ;;  %v24002_v55 = vld [vmem:[%s24699_s30 + $0x1a0] sm:$0xff]   ;;  %v24003_v56 = vld [vmem:[%s24699_s30 + $0x1a8] sm:$0xff]  }
  0x16   : > { %19242 = vmatmul.mubr.msk.bf16.gmra.mrb[8].mxu0 %vm440_vm1, %v23951_v4  ;;  %v24004_v57 = vld [vmem:[%s24699_s30 + $0x1b0] sm:$0xff]   ;;  %v24005_v58 = vld [vmem:[%s24699_s30 + $0x1b8] sm:$0xff]   ;;  %v24006_v59 = vld [vmem:[%s24699_s30 + $0x1c0] ss:$0 sps:$4 sm:$0xff]  }
  0x17   : > { %19245 = vmatprep.mubr.msk.bf16.mxu0 %vm24641_vm0, %v29241_v1  ;;  %v24007_v60 = vld [vmem:[%s24699_s30 + $0x10] sm:$0xff]   ;;  %v24008_v61 = vld [vmem:[%s24699_s30 + $0x18] sm:$0xff]   ;;  %v24009_v62 = vld [vmem:[%s24699_s30 + $0x20] sm:$0xff]  }
  0x18   : > { %v24010_v0 = vld [vmem:[%s24699_s30 + $0x28] sm:$0xff]   ;;  %v24011_v2 = vld [vmem:[%s24699_s30 + $0x30] sm:$0xff]   ;;  %v24012_v3 = vld [vmem:[%s24699_s30 + $0x38] sm:$0xff]  }
  0x19   : > { %v24013_v4 = vld [vmem:[%s24699_s30 + $0x40] sm:$0xff]   ;;  %v24014_v5 = vld [vmem:[%s24699_s30 + $0x48] sm:$0xff]  }
  0x1e   : > { %19246 = vmatmul.mubr.msk.bf16.gmra.mrb[12].mxu0 %vm440_vm1, %v23952_v6  ;;  %v24015_v6 = vld [vmem:[%s24699_s30 + $0x50] sm:$0xff]  }
  0x1f   : > { %19249 = vmatprep.mubr.msk.bf16.mxu0 %vm24641_vm0, %v29241_v1 }
  0x26   : > { %19250 = vmatmul.mubr.msk.bf16.gmra.mrb[16].mxu0 %vm440_vm1, %v23953_v7  ;;  %v24016_v7 = vld [vmem:[%s24699_s30 + $0x58] sm:$0xff]  }
  0x27   : > { %19253 = vmatprep.mubr.msk.bf16.mxu0 %vm24641_vm0, %v29241_v1 }
  0x2e   : > { %19254 = vmatmul.mubr.msk.bf16.gmra.mrb[20].mxu0 %vm440_vm1, %v23954_v8  ;;  %v24017_v8 = vld [vmem:[%s24699_s30 + $0x60] sm:$0xff]  }
  0x2f   : > { %19257 = vmatprep.mubr.msk.bf16.mxu0 %vm24641_vm0, %v29241_v1 }
  0x36   : > { %19258 = vmatmul.mubr.msk.bf16.gmra.mrb[24].mxu0 %vm440_vm1, %v23955_v9  ;;  %v24018_v9 = vld [vmem:[%s24699_s30 + $0x68] sm:$0xff]  }
  0x37   : > { %19261 = vmatprep.mubr.msk.bf16.mxu0 %vm24641_vm0, %v29241_v1 }
  0x3e   : > { %19262 = vmatmul.mubr.msk.bf16.gmra.mrb[28].mxu0 %vm440_vm1, %v23956_v10  ;;  %v24019_v10 = vld [vmem:[%s24699_s30 + $0x70] sm:$0xff]  }
  0x3f   : > { %19265 = vmatprep.mubr.msk.bf16.mxu0 %vm24641_vm0, %v29241_v1 }
  0x46   : > { %19266 = vmatmul.mubr.msk.bf16.gmra.mrb[32].mxu0 %vm440_vm1, %v23957_v11  ;;  %v24020_v11 = vld [vmem:[%s24699_s30 + $0x78] sm:$0xff]  }
  0x47   : > { %19269 = vmatprep.mubr.msk.bf16.mxu0 %vm24641_vm0, %v29241_v1 }
  0x4e   : > { %19270 = vmatmul.mubr.msk.bf16.gmra.mrb[36].mxu0 %vm440_vm1, %v23958_v12  ;;  %v24021_v12 = vld [vmem:[%s24699_s30 + $0x80] sm:$0xff]  }
  0x4f   : > { %19273 = vmatprep.mubr.msk.bf16.mxu0 %vm24641_vm0, %v29241_v1 }
  0x56   : > { %19274 = vmatmul.mubr.msk.bf16.gmra.mrb[40].mxu0 %vm440_vm1, %v23959_v13  ;;  %v24022_v13 = vld [vmem:[%s24699_s30 + $0x88] sm:$0xff]  }
  0x57   : > { %19277 = vmatprep.mubr.msk.bf16.mxu0 %vm24641_vm0, %v29241_v1 }
  0x5e   : > { %19278 = vmatmul.mubr.msk.bf16.gmra.mrb[44].mxu0 %vm440_vm1, %v23960_v14  ;;  %v24023_v14 = vld [vmem:[%s24699_s30 + $0x90] sm:$0xff]  }
  0x5f   : > { %19281 = vmatprep.mubr.msk.bf16.mxu0 %vm24641_vm0, %v29241_v1 }
  0x66   : > { %19282 = vmatmul.mubr.msk.bf16.gmra.mrb[48].mxu0 %vm440_vm1, %v23961_v15  ;;  %v24024_v15 = vld [vmem:[%s24699_s30 + $0x98] sm:$0xff]  }
  0x67   : > { %19285 = vmatprep.mubr.msk.bf16.mxu0 %vm24641_vm0, %v29241_v1 }
  0x6e   : > { %19286 = vmatmul.mubr.msk.bf16.gmra.mrb[52].mxu0 %vm440_vm1, %v23962_v16  ;;  %v24025_v16 = vld [vmem:[%s24699_s30 + $0xa0] sm:$0xff]  }
  0x6f   : > { %19289 = vmatprep.mubr.msk.bf16.mxu0 %vm24641_vm0, %v29241_v1 }
  0x76   : > { %19290 = vmatmul.mubr.msk.bf16.gmra.mrb[56].mxu0 %vm440_vm1, %v23963_v17  ;;  %v24027_v17 = vld [vmem:[%s24699_s30 + $0xa8] sm:$0xff]  }
  0x77   : > { %19293 = vmatprep.mubr.msk.bf16.mxu0 %vm24641_vm0, %v29241_v1 }
  0x7e   : > { %19294 = vmatmul.mubr.msk.bf16.gmra.mrb[60].mxu0 %vm440_vm1, %v23964_v18  ;;  %v24028_v18 = vld [vmem:[%s24699_s30 + $0xb0] sm:$0xff]  }
  0x7f   : > { %19297 = vmatprep.mubr.msk.bf16.mxu0 %vm24641_vm0, %v29241_v1 }
  0x86   : > { %19298 = vmatmul.mubr.msk.bf16.gmra.mrb[64].mxu0 %vm440_vm1, %v23965_v19  ;;  %v24029_v19 = vld [vmem:[%s24699_s30 + $0xb8] sm:$0xff]  }
  0x87   : > { %19301 = vmatprep.mubr.msk.bf16.mxu0 %vm24641_vm0, %v29241_v1 }
  0x8e   : > { %19302 = vmatmul.mubr.msk.bf16.gmra.mrb[68].mxu0 %vm440_vm1, %v23966_v20  ;;  %v24030_v20 = vld [vmem:[%s24699_s30 + $0xc0] sm:$0xff]  }
  0x8f   : > { %19305 = vmatprep.mubr.msk.bf16.mxu0 %vm24641_vm0, %v29241_v1 }
  0x96   : > { %19306 = vmatmul.mubr.msk.bf16.gmra.mrb[72].mxu0 %vm440_vm1, %v23967_v21  ;;  %v24031_v21 = vld [vmem:[%s24699_s30 + $0xc8] sm:$0xff]  }
  0x97   : > { %19309 = vmatprep.mubr.msk.bf16.mxu0 %vm24641_vm0, %v29241_v1 }
  0x9e   : > { %19310 = vmatmul.mubr.msk.bf16.gmra.mrb[76].mxu0 %vm440_vm1, %v23969_v22  ;;  %v24032_v22 = vld [vmem:[%s24699_s30 + $0xd0] sm:$0xff]  }
  0x9f   : > { %19313 = vmatprep.mubr.msk.bf16.mxu0 %vm24641_vm0, %v29241_v1 }
  0xa6   : > { %19314 = vmatmul.mubr.msk.bf16.gmra.mrb[80].mxu0 %vm440_vm1, %v23970_v23  ;;  %v24033_v23 = vld [vmem:[%s24699_s30 + $0xd8] sm:$0xff]  }
  0xa7   : > { %19317 = vmatprep.mubr.msk.bf16.mxu0 %vm24641_vm0, %v29241_v1 }
  0xae   : > { %19318 = vmatmul.mubr.msk.bf16.gmra.mrb[84].mxu0 %vm440_vm1, %v23971_v24  ;;  %v24034_v24 = vld [vmem:[%s24699_s30 + $0xe0] sm:$0xff]  }
  0xaf   : > { %19321 = vmatprep.mubr.msk.bf16.mxu0 %vm24641_vm0, %v29241_v1 }
  0xb6   : > { %19322 = vmatmul.mubr.msk.bf16.gmra.mrb[88].mxu0 %vm440_vm1, %v23972_v25  ;;  %v24035_v25 = vld [vmem:[%s24699_s30 + $0xe8] sm:$0xff]  }
  0xb7   : > { %19325 = vmatprep.mubr.msk.bf16.mxu0 %vm24641_vm0, %v29241_v1 }
  0xbe   : > { %19326 = vmatmul.mubr.msk.bf16.gmra.mrb[92].mxu0 %vm440_vm1, %v23973_v26  ;;  %v24036_v26 = vld [vmem:[%s24699_s30 + $0xf0] sm:$0xff]  }
  0xbf   : > { %19329 = vmatprep.mubr.msk.bf16.mxu0 %vm24641_vm0, %v29241_v1 }
  0xc6   : > { %19330 = vmatmul.mubr.msk.bf16.gmra.mrb[96].mxu0 %vm440_vm1, %v23974_v27  ;;  %v24037_v27 = vld [vmem:[%s24699_s30 + $0xf8] sm:$0xff]  }
  0xc7   : > { %19333 = vmatprep.mubr.msk.bf16.mxu0 %vm24641_vm0, %v29241_v1 }
  0xce   : > { %19334 = vmatmul.mubr.msk.bf16.gmra.mrb[100].mxu0 %vm440_vm1, %v23975_v28  ;;  %v24038_v28 = vld [vmem:[%s24699_s30 + $0x100] sm:$0xff]  }
  0xcf   : > { %19337 = vmatprep.mubr.msk.bf16.mxu0 %vm24641_vm0, %v29241_v1 }
  0xd6   : > { %19338 = vmatmul.mubr.msk.bf16.gmra.mrb[104].mxu0 %vm440_vm1, %v23976_v29  ;;  %v24039_v29 = vld [vmem:[%s24699_s30 + $0x108] sm:$0xff]  }
  0xd7   : > { %19341 = vmatprep.mubr.msk.bf16.mxu0 %vm24641_vm0, %v29241_v1 }
  0xde   : > { %19342 = vmatmul.mubr.msk.bf16.gmra.mrb[108].mxu0 %vm440_vm1, %v23977_v30  ;;  %v24040_v30 = vld [vmem:[%s24699_s30 + $0x110] sm:$0xff]  }
  0xdf   : > { %19345 = vmatprep.mubr.msk.bf16.mxu0 %vm24641_vm0, %v29241_v1 }
  0xe6   : > { %19346 = vmatmul.mubr.msk.bf16.gmra.mrb[112].mxu0 %vm440_vm1, %v23978_v31  ;;  %v24041_v31 = vld [vmem:[%s24699_s30 + $0x118] sm:$0xff]  }
  0xe7   : > { %19349 = vmatprep.mubr.msk.bf16.mxu0 %vm24641_vm0, %v29241_v1 }
  0xee   : > { %19350 = vmatmul.mubr.msk.bf16.gmra.mrb[116].mxu0 %vm440_vm1, %v23979_v32  ;;  %v24042_v32 = vld [vmem:[%s24699_s30 + $0x120] sm:$0xff]  }
  0xef   : > { %19353 = vmatprep.mubr.msk.bf16.mxu0 %vm24641_vm0, %v29241_v1 }
  0xf6   : > { %19354 = vmatmul.mubr.msk.bf16.gmra.mrb[120].mxu0 %vm440_vm1, %v23980_v33  ;;  %v24043_v33 = vld [vmem:[%s24699_s30 + $0x128] sm:$0xff]  }
  0xf7   : > { %19357 = vmatprep.mubr.msk.bf16.mxu0 %vm24641_vm0, %v29241_v1 }
  0xfe   : > { %19358 = vmatmul.mubr.msk.bf16.gmra.mrb[124].mxu0 %vm440_vm1, %v23981_v34  ;;  %v24044_v34 = vld [vmem:[%s24699_s30 + $0x130] sm:$0xff]  }
  0xff   : > { %19361 = vmatprep.mubr.msk.bf16.mxu0 %vm24641_vm0, %v29241_v1 }
 0x106   : > { %19362 = vmatmul.mubr.msk.bf16.gmra.mrb[128].mxu0 %vm440_vm1, %v23982_v35  ;;  %v24045_v35 = vld [vmem:[%s24699_s30 + $0x138] sm:$0xff]  }
 0x107   : > { %19365 = vmatprep.mubr.msk.bf16.mxu0 %vm24641_vm0, %v29241_v1 }
 0x10e   : > { %19366 = vmatmul.mubr.msk.bf16.gmra.mrb[132].mxu0 %vm440_vm1, %v23983_v36  ;;  %v24046_v36 = vld [vmem:[%s24699_s30 + $0x140] sm:$0xff]  }
 0x10f   : > { %19369 = vmatprep.mubr.msk.bf16.mxu0 %vm24641_vm0, %v29241_v1 }
 0x116   : > { %19370 = vmatmul.mubr.msk.bf16.gmra.mrb[136].mxu0 %vm440_vm1, %v23984_v37  ;;  %v24047_v37 = vld [vmem:[%s24699_s30 + $0x148] sm:$0xff]  }
 0x117   : > { %19373 = vmatprep.mubr.msk.bf16.mxu0 %vm24641_vm0, %v29241_v1 }
 0x11e   : > { %19374 = vmatmul.mubr.msk.bf16.gmra.mrb[140].mxu0 %vm440_vm1, %v23985_v38  ;;  %v24048_v38 = vld [vmem:[%s24699_s30 + $0x150] sm:$0xff]  }
 0x11f   : > { %19377 = vmatprep.mubr.msk.bf16.mxu0 %vm24641_vm0, %v29241_v1 }
 0x126   : > { %19378 = vmatmul.mubr.msk.bf16.gmra.mrb[144].mxu0 %vm440_vm1, %v23986_v39  ;;  %v24049_v39 = vld [vmem:[%s24699_s30 + $0x158] sm:$0xff]  }
 0x127   : > { %19381 = vmatprep.mubr.msk.bf16.mxu0 %vm24641_vm0, %v29241_v1 }
 0x12e   : > { %19382 = vmatmul.mubr.msk.bf16.gmra.mrb[148].mxu0 %vm440_vm1, %v23987_v40  ;;  %v24050_v40 = vld [vmem:[%s24699_s30 + $0x160] sm:$0xff]  }
 0x12f   : > { %19385 = vmatprep.mubr.msk.bf16.mxu0 %vm24641_vm0, %v29241_v1 }
 0x136   : > { %19386 = vmatmul.mubr.msk.bf16.gmra.mrb[152].mxu0 %vm440_vm1, %v23988_v41  ;;  %v24051_v41 = vld [vmem:[%s24699_s30 + $0x168] sm:$0xff]  }
 0x137   : > { %19389 = vmatprep.mubr.msk.bf16.mxu0 %vm24641_vm0, %v29241_v1 }
 0x13e   : > { %19390 = vmatmul.mubr.msk.bf16.gmra.mrb[156].mxu0 %vm440_vm1, %v23989_v42  ;;  %v24052_v42 = vld [vmem:[%s24699_s30 + $0x170] sm:$0xff]  }
 0x13f   : > { %19393 = vmatprep.mubr.msk.bf16.mxu0 %vm24641_vm0, %v29241_v1 }
 0x146   : > { %19394 = vmatmul.mubr.msk.bf16.gmra.mrb[160].mxu0 %vm440_vm1, %v23990_v43  ;;  %v24053_v43 = vld [vmem:[%s24699_s30 + $0x178] sm:$0xff]  }
 0x147   : > { %19397 = vmatprep.mubr.msk.bf16.mxu0 %vm24641_vm0, %v29241_v1 }
 0x14e   : > { %19398 = vmatmul.mubr.msk.bf16.gmra.mrb[164].mxu0 %vm440_vm1, %v23991_v44  ;;  %v24054_v44 = vld [vmem:[%s24699_s30 + $0x180] sm:$0xff]  }
 0x14f   : > { %19401 = vmatprep.mubr.msk.bf16.mxu0 %vm24641_vm0, %v29241_v1 }
 0x156   : > { %19402 = vmatmul.mubr.msk.bf16.gmra.mrb[168].mxu0 %vm440_vm1, %v23992_v45  ;;  %v24055_v45 = vld [vmem:[%s24699_s30 + $0x188] sm:$0xff]  }
 0x157   : > { %19405 = vmatprep.mubr.msk.bf16.mxu0 %vm24641_vm0, %v29241_v1 }
 0x15e   : > { %19406 = vmatmul.mubr.msk.bf16.gmra.mrb[172].mxu0 %vm440_vm1, %v23993_v46  ;;  %v24056_v46 = vld [vmem:[%s24699_s30 + $0x190] sm:$0xff]  }
 0x15f   : > { %19409 = vmatprep.mubr.msk.bf16.mxu0 %vm24641_vm0, %v29241_v1 }
 0x166   : > { %19410 = vmatmul.mubr.msk.bf16.gmra.mrb[176].mxu0 %vm440_vm1, %v23994_v47  ;;  %v24057_v47 = vld [vmem:[%s24699_s30 + $0x198] sm:$0xff]  }
 0x167   : > { %19413 = vmatprep.mubr.msk.bf16.mxu0 %vm24641_vm0, %v29241_v1 }
 0x16e   : > { %19414 = vmatmul.mubr.msk.bf16.gmra.mrb[180].mxu0 %vm440_vm1, %v23995_v48  ;;  %v24058_v48 = vld [vmem:[%s24699_s30 + $0x1a0] sm:$0xff]  }
 0x16f   : > { %19417 = vmatprep.mubr.msk.bf16.mxu0 %vm24641_vm0, %v29241_v1 }
 0x176   : > { %19418 = vmatmul.mubr.msk.bf16.gmra.mrb[184].mxu0 %vm440_vm1, %v23996_v49  ;;  %v24059_v49 = vld [vmem:[%s24699_s30 + $0x1a8] sm:$0xff]  }
 0x177   : > { %19421 = vmatprep.mubr.msk.bf16.mxu0 %vm24641_vm0, %v29241_v1 }
 0x17e   : > { %19422 = vmatmul.mubr.msk.bf16.gmra.mrb[188].mxu0 %vm440_vm1, %v23997_v50  ;;  %v24060_v50 = vld [vmem:[%s24699_s30 + $0x1b0] sm:$0xff]  }
 0x17f   : > { %19425 = vmatprep.mubr.msk.bf16.mxu0 %vm24641_vm0, %v29241_v1 }
 0x186   : > { %19426 = vmatmul.mubr.msk.bf16.gmra.mrb[192].mxu0 %vm440_vm1, %v23998_v51  ;;  %v24061_v51 = vld [vmem:[%s24699_s30 + $0x1b8] sm:$0xff]  }
 0x187   : > { %19429 = vmatprep.mubr.msk.bf16.mxu0 %vm24641_vm0, %v29241_v1 }
 0x18e   : > { %19430 = vmatmul.mubr.msk.bf16.gmra.mrb[196].mxu0 %vm440_vm1, %v23999_v52  ;;  %v24062_v52 = vld [vmem:[%s24699_s30 + $0x1c0] sm:$0xff]  }
 0x18f   : > { %19433 = vmatprep.mubr.msk.bf16.mxu0 %vm24641_vm0, %v29241_v1 }
 0x196   : > { %19434 = vmatmul.mubr.msk.bf16.gmra.mrb[200].mxu0 %vm440_vm1, %v24000_v53  ;;  %v24063_v53 = vld [vmem:[%s24699_s30 + $0x1c8] sm:$0xff]  }
 0x197   : > { %19437 = vmatprep.mubr.msk.bf16.mxu0 %vm24641_vm0, %v29241_v1 }
 0x19e   : > { %19438 = vmatmul.mubr.msk.bf16.gmra.mrb[204].mxu0 %vm440_vm1, %v24001_v54  ;;  %v24064_v54 = vld [vmem:[%s24699_s30 + $0x1d0] ss:$0 sps:$4 sm:$0xff]  }
 0x19f   : > { %19441 = vmatprep.mubr.msk.bf16.mxu0 %vm24641_vm0, %v29241_v1 }
 0x1a6   : > { %19442 = vmatmul.mubr.msk.bf16.gmra.mrb[208].mxu0 %vm440_vm1, %v24002_v55  ;;  %v24065_v55 = vld [vmem:[%s24699_s30 + $0x20] sm:$0xff]  }
 0x1a7   : > { %19445 = vmatprep.mubr.msk.bf16.mxu0 %vm24641_vm0, %v29241_v1 }
 0x1ae   : > { %19446 = vmatmul.mubr.msk.bf16.gmra.mrb[212].mxu0 %vm440_vm1, %v24003_v56  ;;  %v24066_v56 = vld [vmem:[%s24699_s30 + $0x28] sm:$0xff]  }
 0x1af   : > { %19449 = vmatprep.mubr.msk.bf16.mxu0 %vm24641_vm0, %v29241_v1 }
 0x1b6   : > { %19450 = vmatmul.mubr.msk.bf16.gmra.mrb[216].mxu0 %vm440_vm1, %v24004_v57  ;;  %v24067_v57 = vld [vmem:[%s24699_s30 + $0x30] sm:$0xff]  }
 0x1b7   : > { %19453 = vmatprep.mubr.msk.bf16.mxu0 %vm24641_vm0, %v29241_v1 }
 0x1be   : > { %19454 = vmatmul.mubr.msk.bf16.gmra.mrb[220].mxu0 %vm440_vm1, %v24005_v58  ;;  %v24084_v58 = vld [vmem:[%s29222_s1 + $0x18] sm:$0xff]  }
 0x1bf   : > { %19457 = vmatprep.mubr.msk.bf16.mxu0 %vm24641_vm0, %v29241_v1 }
 0x1c6   : > { %19458 = vmatmul.mubr.msk.bf16.gmra.mrb[224].mxu0 %vm440_vm1, %v24006_v59  ;;  %v24068_v59 = vld [vmem:[%s24699_s30 + $0x38] sm:$0xff]  }
 0x1c7   : > { %19463 = vmatprep.mubr.msk.bf16.mxu0 %vm24641_vm0, %v29241_v1 }
 0x1ce   : > { %19464 = vmatmul.mubr.msk.bf16.vlgmr.msra.gmra.mrb[0].mxu0 %vm440_vm1, %v24007_v60  ;;  %v24069_v60 = vld [vmem:[%s24699_s30 + $0x40] sm:$0xff]  }
 0x1cf   : > { %19467 = vmatprep.mubr.msk.bf16.mxu0 %vm24641_vm0, %v29241_v1  ;;  %19692 = vmatpush3.bf16.msra.mxu0 %v24026_v63  ;;  %v24072_v63 = vld [vmem:[%s24699_s30 + $0x58] sm:$0xff]  }
 0x1d0   : > { %19921 = vmatprep.subr.bf16.mxu0 %v29241_v1 }
 0x1d6   : > { %19468 = vmatmul.mubr.msk.bf16.gmra.mrb[4].mxu0 %vm440_vm1, %v24008_v61  ;;  %v24070_v61 = vld [vmem:[%s24699_s30 + $0x48] sm:$0xff]  }
 0x1d7   : > { %19471 = vmatprep.mubr.msk.bf16.mxu0 %vm24641_vm0, %v29241_v1 }
 0x1de   : > { %19472 = vmatmul.mubr.msk.bf16.gmra.mrb[8].mxu0 %vm440_vm1, %v24009_v62  ;;  %v24071_v62 = vld [vmem:[%s24699_s30 + $0x50] sm:$0xff]  }
 0x1df   : > { %19475 = vmatprep.mubr.msk.bf16.mxu0 %vm24641_vm0, %v29241_v1 }
 0x1e6   : > { %19476 = vmatmul.mubr.msk.bf16.gmra.mrb[12].mxu0 %vm440_vm1, %v24010_v0  ;;  %v24073_v0 = vld [vmem:[%s24699_s30 + $0x60] sm:$0xff]  }
 0x1e7   : > { %19479 = vmatprep.mubr.msk.bf16.mxu0 %vm24641_vm0, %v29241_v1 }
 0x1ee   : > { %19480 = vmatmul.mubr.msk.bf16.gmra.mrb[16].mxu0 %vm440_vm1, %v24011_v2  ;;  %v24074_v2 = vld [vmem:[%s24699_s30 + $0x68] sm:$0xff]  }
 0x1ef   : > { %19483 = vmatprep.mubr.msk.bf16.mxu0 %vm24641_vm0, %v29241_v1 }
 0x1f6   : > { %19484 = vmatmul.mubr.msk.bf16.gmra.mrb[20].mxu0 %vm440_vm1, %v24012_v3  ;;  %v24075_v3 = vld [vmem:[%s24699_s30 + $0x70] sm:$0xff]  }
 0x1f7   : > { %19487 = vmatprep.mubr.msk.bf16.mxu0 %vm24641_vm0, %v29241_v1 }
 0x1fe   : > { %19488 = vmatmul.mubr.msk.bf16.gmra.mrb[24].mxu0 %vm440_vm1, %v24013_v4  ;;  %v24076_v4 = vld [vmem:[%s24699_s30 + $0x78] sm:$0xff]  }
 0x1ff   : > { %19491 = vmatprep.mubr.msk.bf16.mxu0 %vm24641_vm0, %v29241_v1 }
 0x206   : > { %19492 = vmatmul.mubr.msk.bf16.gmra.mrb[28].mxu0 %vm440_vm1, %v24014_v5  ;;  %v24077_v5 = vld [vmem:[%s24699_s30 + $0x80] sm:$0xff]  }
 0x207   : > { %19495 = vmatprep.mubr.msk.bf16.mxu0 %vm24641_vm0, %v29241_v1 }
 0x20e   : > { %19496 = vmatmul.mubr.msk.bf16.gmra.mrb[32].mxu0 %vm440_vm1, %v24015_v6  ;;  %v24078_v6 = vld [vmem:[%s24699_s30 + $0x88] sm:$0xff]  }
 0x20f   : > { %19499 = vmatprep.mubr.msk.bf16.mxu0 %vm24641_vm0, %v29241_v1 }
 0x216   : > { %19500 = vmatmul.mubr.msk.bf16.gmra.mrb[36].mxu0 %vm440_vm1, %v24016_v7  ;;  %v24079_v7 = vld [vmem:[%s24699_s30 + $0x90] sm:$0xff]  }
 0x217   : > { %19503 = vmatprep.mubr.msk.bf16.mxu0 %vm24641_vm0, %v29241_v1 }
 0x21e   : > { %19504 = vmatmul.mubr.msk.bf16.gmra.mrb[40].mxu0 %vm440_vm1, %v24017_v8  ;;  %v24080_v8 = vld [vmem:[%s24699_s30 + $0x98] sm:$0xff]  }
 0x21f   : > { %19507 = vmatprep.mubr.msk.bf16.mxu0 %vm24641_vm0, %v29241_v1 }
 0x226   : > { %19508 = vmatmul.mubr.msk.bf16.gmra.mrb[44].mxu0 %vm440_vm1, %v24018_v9  ;;  %v24081_v9 = vld [vmem:[%s24699_s30 + $0xa0] sm:$0xff]  }
 0x227   : > { %19511 = vmatprep.mubr.msk.bf16.mxu0 %vm24641_vm0, %v29241_v1 }
 0x22e   : > { %19512 = vmatmul.mubr.msk.bf16.gmra.mrb[48].mxu0 %vm440_vm1, %v24019_v10  ;;  %v24082_v10 = vld [vmem:[%s24699_s30 + $0xa8] sm:$0xff]  }
 0x22f   : > { %19515 = vmatprep.mubr.msk.bf16.mxu0 %vm24641_vm0, %v29241_v1 }
 0x236   : > { %19516 = vmatmul.mubr.msk.bf16.gmra.mrb[52].mxu0 %vm440_vm1, %v24020_v11  ;;  %v24083_v11 = vld [vmem:[%s24699_s30 + $0xb0] sm:$0xff]  }
 0x237   : > { %19519 = vmatprep.mubr.msk.bf16.mxu0 %vm24641_vm0, %v29241_v1 }
 0x23e   : > { %19520 = vmatmul.mubr.msk.bf16.gmra.mrb[56].mxu0 %vm440_vm1, %v24021_v12  ;;  %v24085_v12 = vld [vmem:[%s24699_s30 + $0xb8] sm:$0xff]  }
 0x23f   : > { %19523 = vmatprep.mubr.msk.bf16.mxu0 %vm24641_vm0, %v29241_v1 }
 0x246   : > { %19524 = vmatmul.mubr.msk.bf16.gmra.mrb[60].mxu0 %vm440_vm1, %v24022_v13  ;;  %v24086_v13 = vld [vmem:[%s24699_s30 + $0xc0] sm:$0xff]  }
 0x247   : > { %19527 = vmatprep.mubr.msk.bf16.mxu0 %vm24641_vm0, %v29241_v1 }
 0x24e   : > { %19528 = vmatmul.mubr.msk.bf16.gmra.mrb[64].mxu0 %vm440_vm1, %v24023_v14  ;;  %v24087_v14 = vld [vmem:[%s24699_s30 + $0xc8] sm:$0xff]  }
 0x24f   : > { %19531 = vmatprep.mubr.msk.bf16.mxu0 %vm24641_vm0, %v29241_v1 }
 0x256   : > { %19532 = vmatmul.mubr.msk.bf16.gmra.mrb[68].mxu0 %vm440_vm1, %v24024_v15  ;;  %v24088_v15 = vld [vmem:[%s24699_s30 + $0xd0] sm:$0xff]  }
 0x257   : > { %19535 = vmatprep.mubr.msk.bf16.mxu0 %vm24641_vm0, %v29241_v1 }
 0x25e   : > { %19536 = vmatmul.mubr.msk.bf16.gmra.mrb[72].mxu0 %vm440_vm1, %v24025_v16  ;;  %v24089_v16 = vld [vmem:[%s24699_s30 + $0xd8] sm:$0xff]  }
 0x25f   : > { %19539 = vmatprep.mubr.msk.bf16.mxu0 %vm24641_vm0, %v29241_v1 }
 0x266   : > { %19540 = vmatmul.mubr.msk.bf16.gmra.mrb[76].mxu0 %vm440_vm1, %v24027_v17  ;;  %v24090_v17 = vld [vmem:[%s24699_s30 + $0xe0] sm:$0xff]  }
 0x267   : > { %19543 = vmatprep.mubr.msk.bf16.mxu0 %vm24641_vm0, %v29241_v1 }
 0x26e   : > { %19544 = vmatmul.mubr.msk.bf16.gmra.mrb[80].mxu0 %vm440_vm1, %v24028_v18  ;;  %v24091_v18 = vld [vmem:[%s24699_s30 + $0xe8] sm:$0xff]  }
 0x26f   : > { %19547 = vmatprep.mubr.msk.bf16.mxu0 %vm24641_vm0, %v29241_v1 }
 0x276   : > { %19548 = vmatmul.mubr.msk.bf16.gmra.mrb[84].mxu0 %vm440_vm1, %v24029_v19  ;;  %v24092_v19 = vld [vmem:[%s24699_s30 + $0xf0] sm:$0xff]  }
 0x277   : > { %19551 = vmatprep.mubr.msk.bf16.mxu0 %vm24641_vm0, %v29241_v1 }
 0x27e   : > { %19552 = vmatmul.mubr.msk.bf16.gmra.mrb[88].mxu0 %vm440_vm1, %v24030_v20  ;;  %v24093_v20 = vld [vmem:[%s24699_s30 + $0xf8] sm:$0xff]  }
 0x27f   : > { %19555 = vmatprep.mubr.msk.bf16.mxu0 %vm24641_vm0, %v29241_v1 }
 0x286   : > { %19556 = vmatmul.mubr.msk.bf16.gmra.mrb[92].mxu0 %vm440_vm1, %v24031_v21  ;;  %v24094_v21 = vld [vmem:[%s24699_s30 + $0x100] sm:$0xff]  }
 0x287   : > { %19559 = vmatprep.mubr.msk.bf16.mxu0 %vm24641_vm0, %v29241_v1 }
 0x28e   : > { %19560 = vmatmul.mubr.msk.bf16.gmra.mrb[96].mxu0 %vm440_vm1, %v24032_v22  ;;  %v24095_v22 = vld [vmem:[%s24699_s30 + $0x108] sm:$0xff]  }
 0x28f   : > { %19563 = vmatprep.mubr.msk.bf16.mxu0 %vm24641_vm0, %v29241_v1 }
 0x296   : > { %19564 = vmatmul.mubr.msk.bf16.gmra.mrb[100].mxu0 %vm440_vm1, %v24033_v23  ;;  %v24096_v23 = vld [vmem:[%s24699_s30 + $0x110] sm:$0xff]  }
 0x297   : > { %19567 = vmatprep.mubr.msk.bf16.mxu0 %vm24641_vm0, %v29241_v1 }
 0x29e   : > { %19568 = vmatmul.mubr.msk.bf16.gmra.mrb[104].mxu0 %vm440_vm1, %v24034_v24  ;;  %v24097_v24 = vld [vmem:[%s24699_s30 + $0x118] sm:$0xff]  }
 0x29f   : > { %19571 = vmatprep.mubr.msk.bf16.mxu0 %vm24641_vm0, %v29241_v1 }
 0x2a6   : > { %19572 = vmatmul.mubr.msk.bf16.gmra.mrb[108].mxu0 %vm440_vm1, %v24035_v25  ;;  %v24098_v25 = vld [vmem:[%s24699_s30 + $0x120] sm:$0xff]  }
 0x2a7   : > { %19575 = vmatprep.mubr.msk.bf16.mxu0 %vm24641_vm0, %v29241_v1 }
 0x2ae   : > { %19576 = vmatmul.mubr.msk.bf16.gmra.mrb[112].mxu0 %vm440_vm1, %v24036_v26  ;;  %v24099_v26 = vld [vmem:[%s24699_s30 + $0x128] sm:$0xff]  }
 0x2af   : > { %19579 = vmatprep.mubr.msk.bf16.mxu0 %vm24641_vm0, %v29241_v1 }
 0x2b6   : > { %19580 = vmatmul.mubr.msk.bf16.gmra.mrb[116].mxu0 %vm440_vm1, %v24037_v27  ;;  %v24100_v27 = vld [vmem:[%s24699_s30 + $0x130] sm:$0xff]  }
 0x2b7   : > { %19583 = vmatprep.mubr.msk.bf16.mxu0 %vm24641_vm0, %v29241_v1 }
 0x2be   : > { %19584 = vmatmul.mubr.msk.bf16.gmra.mrb[120].mxu0 %vm440_vm1, %v24038_v28  ;;  %v24101_v28 = vld [vmem:[%s24699_s30 + $0x138] sm:$0xff]  }
 0x2bf   : > { %19587 = vmatprep.mubr.msk.bf16.mxu0 %vm24641_vm0, %v29241_v1 }
 0x2c6   : > { %19588 = vmatmul.mubr.msk.bf16.gmra.mrb[124].mxu0 %vm440_vm1, %v24039_v29  ;;  %v24102_v29 = vld [vmem:[%s24699_s30 + $0x140] sm:$0xff]  }
 0x2c7   : > { %19591 = vmatprep.mubr.msk.bf16.mxu0 %vm24641_vm0, %v29241_v1 }
 0x2ce   : > { %19592 = vmatmul.mubr.msk.bf16.gmra.mrb[128].mxu0 %vm440_vm1, %v24040_v30  ;;  %v24103_v30 = vld [vmem:[%s24699_s30 + $0x148] sm:$0xff]  }
 0x2cf   : > { %19595 = vmatprep.mubr.msk.bf16.mxu0 %vm24641_vm0, %v29241_v1 }
 0x2d6   : > { %19596 = vmatmul.mubr.msk.bf16.gmra.mrb[132].mxu0 %vm440_vm1, %v24041_v31  ;;  %v24104_v31 = vld [vmem:[%s24699_s30 + $0x150] sm:$0xff]  }
 0x2d7   : > { %19599 = vmatprep.mubr.msk.bf16.mxu0 %vm24641_vm0, %v29241_v1 }
 0x2de   : > { %19600 = vmatmul.mubr.msk.bf16.gmra.mrb[136].mxu0 %vm440_vm1, %v24042_v32  ;;  %v24105_v32 = vld [vmem:[%s24699_s30 + $0x158] sm:$0xff]  }
 0x2df   : > { %19603 = vmatprep.mubr.msk.bf16.mxu0 %vm24641_vm0, %v29241_v1 }
 0x2e6   : > { %19604 = vmatmul.mubr.msk.bf16.gmra.mrb[140].mxu0 %vm440_vm1, %v24043_v33  ;;  %v24106_v33 = vld [vmem:[%s24699_s30 + $0x160] sm:$0xff]  }
 0x2e7   : > { %19607 = vmatprep.mubr.msk.bf16.mxu0 %vm24641_vm0, %v29241_v1 }
 0x2ee   : > { %19608 = vmatmul.mubr.msk.bf16.gmra.mrb[144].mxu0 %vm440_vm1, %v24044_v34  ;;  %v24107_v34 = vld [vmem:[%s24699_s30 + $0x168] sm:$0xff]  }
 0x2ef   : > { %19611 = vmatprep.mubr.msk.bf16.mxu0 %vm24641_vm0, %v29241_v1 }
 0x2f6   : > { %19612 = vmatmul.mubr.msk.bf16.gmra.mrb[148].mxu0 %vm440_vm1, %v24045_v35  ;;  %v24108_v35 = vld [vmem:[%s24699_s30 + $0x170] sm:$0xff]  }
 0x2f7   : > { %19615 = vmatprep.mubr.msk.bf16.mxu0 %vm24641_vm0, %v29241_v1 }
 0x2fe   : > { %19616 = vmatmul.mubr.msk.bf16.gmra.mrb[152].mxu0 %vm440_vm1, %v24046_v36  ;;  %v24109_v36 = vld [vmem:[%s24699_s30 + $0x178] sm:$0xff]  }
 0x2ff   : > { %19619 = vmatprep.mubr.msk.bf16.mxu0 %vm24641_vm0, %v29241_v1 }
 0x306   : > { %19620 = vmatmul.mubr.msk.bf16.gmra.mrb[156].mxu0 %vm440_vm1, %v24047_v37  ;;  %v24110_v37 = vld [vmem:[%s24699_s30 + $0x180] sm:$0xff]  }
 0x307   : > { %19623 = vmatprep.mubr.msk.bf16.mxu0 %vm24641_vm0, %v29241_v1 }
 0x30e   : > { %19624 = vmatmul.mubr.msk.bf16.gmra.mrb[160].mxu0 %vm440_vm1, %v24048_v38  ;;  %v24111_v38 = vld [vmem:[%s24699_s30 + $0x188] sm:$0xff]  }
 0x30f   : > { %19627 = vmatprep.mubr.msk.bf16.mxu0 %vm24641_vm0, %v29241_v1 }
 0x316   : > { %19628 = vmatmul.mubr.msk.bf16.gmra.mrb[164].mxu0 %vm440_vm1, %v24049_v39  ;;  %v24112_v39 = vld [vmem:[%s24699_s30 + $0x190] sm:$0xff]  }
 0x317   : > { %19631 = vmatprep.mubr.msk.bf16.mxu0 %vm24641_vm0, %v29241_v1 }
 0x31e   : > { %19632 = vmatmul.mubr.msk.bf16.gmra.mrb[168].mxu0 %vm440_vm1, %v24050_v40  ;;  %v24113_v40 = vld [vmem:[%s24699_s30 + $0x198] sm:$0xff]  }
 0x31f   : > { %19635 = vmatprep.mubr.msk.bf16.mxu0 %vm24641_vm0, %v29241_v1 }
 0x326   : > { %19636 = vmatmul.mubr.msk.bf16.gmra.mrb[172].mxu0 %vm440_vm1, %v24051_v41  ;;  %v24114_v41 = vld [vmem:[%s24699_s30 + $0x1a0] sm:$0xff]  }
 0x327   : > { %19639 = vmatprep.mubr.msk.bf16.mxu0 %vm24641_vm0, %v29241_v1 }
 0x32e   : > { %19640 = vmatmul.mubr.msk.bf16.gmra.mrb[176].mxu0 %vm440_vm1, %v24052_v42  ;;  %v24115_v42 = vld [vmem:[%s24699_s30 + $0x1a8] sm:$0xff]  }
 0x32f   : > { %19643 = vmatprep.mubr.msk.bf16.mxu0 %vm24641_vm0, %v29241_v1 }
 0x336   : > { %19644 = vmatmul.mubr.msk.bf16.gmra.mrb[180].mxu0 %vm440_vm1, %v24053_v43  ;;  %v24116_v43 = vld [vmem:[%s24699_s30 + $0x1b0] sm:$0xff]  }
 0x337   : > { %19647 = vmatprep.mubr.msk.bf16.mxu0 %vm24641_vm0, %v29241_v1 }
 0x33e   : > { %19648 = vmatmul.mubr.msk.bf16.gmra.mrb[184].mxu0 %vm440_vm1, %v24054_v44  ;;  %v24117_v44 = vld [vmem:[%s24699_s30 + $0x1b8] sm:$0xff]  }
 0x33f   : > { %19651 = vmatprep.mubr.msk.bf16.mxu0 %vm24641_vm0, %v29241_v1 }
 0x346   : > { %19652 = vmatmul.mubr.msk.bf16.gmra.mrb[188].mxu0 %vm440_vm1, %v24055_v45  ;;  %v24118_v45 = vld [vmem:[%s24699_s30 + $0x1c0] sm:$0xff]  }
 0x347   : > { %19655 = vmatprep.mubr.msk.bf16.mxu0 %vm24641_vm0, %v29241_v1 }
 0x34e   : > { %19656 = vmatmul.mubr.msk.bf16.gmra.mrb[192].mxu0 %vm440_vm1, %v24056_v46  ;;  %v24119_v46 = vld [vmem:[%s24699_s30 + $0x1c8] sm:$0xff]  }
 0x34f   : > { %19659 = vmatprep.mubr.msk.bf16.mxu0 %vm24641_vm0, %v29241_v1 }
 0x356   : > { %19660 = vmatmul.mubr.msk.bf16.gmra.mrb[196].mxu0 %vm440_vm1, %v24057_v47  ;;  %v24120_v47 = vld [vmem:[%s24699_s30 + $0x1d0] sm:$0xff]  }
 0x357   : > { %19663 = vmatprep.mubr.msk.bf16.mxu0 %vm24641_vm0, %v29241_v1 }
 0x35e   : > { %19664 = vmatmul.mubr.msk.bf16.gmra.mrb[200].mxu0 %vm440_vm1, %v24058_v48  ;;  %v24121_v48 = vld [vmem:[%s24699_s30 + $0x1d8] sm:$0xff]  }
 0x35f   : > { %19667 = vmatprep.mubr.msk.bf16.mxu0 %vm24641_vm0, %v29241_v1 }
 0x366   : > { %19668 = vmatmul.mubr.msk.bf16.gmra.mrb[204].mxu0 %vm440_vm1, %v24059_v49  ;;  %v24122_v49 = vld [vmem:[%s24699_s30 + $0x1e0] ss:$0 sps:$4 sm:$0xff]  }
 0x367   : > { %19671 = vmatprep.mubr.msk.bf16.mxu0 %vm24641_vm0, %v29241_v1 }
 0x36e   : > { %19672 = vmatmul.mubr.msk.bf16.gmra.mrb[208].mxu0 %vm440_vm1, %v24060_v50  ;;  %v24123_v50 = vld [vmem:[%s24699_s30 + $0x30] sm:$0xff]  }
 0x36f   : > { %19675 = vmatprep.mubr.msk.bf16.mxu0 %vm24641_vm0, %v29241_v1 }
 0x376   : > { %19676 = vmatmul.mubr.msk.bf16.gmra.mrb[212].mxu0 %vm440_vm1, %v24061_v51  ;;  %v24124_v51 = vld [vmem:[%s24699_s30 + $0x38] sm:$0xff]  }
 0x377   : > { %19679 = vmatprep.mubr.msk.bf16.mxu0 %vm24641_vm0, %v29241_v1 }
 0x37e   : > { %19680 = vmatmul.mubr.msk.bf16.gmra.mrb[216].mxu0 %vm440_vm1, %v24062_v52  ;;  %v24125_v52 = vld [vmem:[%s24699_s30 + $0x40] sm:$0xff]  }
 0x37f   : > { %19683 = vmatprep.mubr.msk.bf16.mxu0 %vm24641_vm0, %v29241_v1 }
 0x386   : > { %19684 = vmatmul.mubr.msk.bf16.gmra.mrb[220].mxu0 %vm440_vm1, %v24063_v53  ;;  %v24142_v53 = vld [vmem:[%s29222_s1 + $0x20] sm:$0xff]  }
 0x387   : > { %19687 = vmatprep.mubr.msk.bf16.mxu0 %vm24641_vm0, %v29241_v1 }
 0x38e   : > { %19688 = vmatmul.mubr.msk.bf16.gmra.mrb[224].mxu0 %vm440_vm1, %v24064_v54  ;;  %v24126_v54 = vld [vmem:[%s24699_s30 + $0x48] sm:$0xff]  }
 0x38f   : > { %19693 = vmatprep.mubr.msk.bf16.mxu0 %vm24641_vm0, %v29241_v1 }
 0x396   : > { %19694 = vmatmul.mubr.msk.bf16.vlgmr.msra.gmra.mrb[0].mxu0 %vm440_vm1, %v24065_v55  ;;  %v24127_v55 = vld [vmem:[%s24699_s30 + $0x50] sm:$0xff]  }
 0x397   : > { %19697 = vmatprep.mubr.msk.bf16.mxu0 %vm24641_vm0, %v29241_v1  ;;  %19922 = vmatpush3.bf16.msra.mxu0 %v24084_v58  ;;  %v24130_v58 = vld [vmem:[%s24699_s30 + $0x68] sm:$0xff]  }
 0x398   : > { %20151 = vmatprep.subr.bf16.mxu0 %v29241_v1 }
 0x39e   : > { %19698 = vmatmul.mubr.msk.bf16.gmra.mrb[4].mxu0 %vm440_vm1, %v24066_v56  ;;  %v24128_v56 = vld [vmem:[%s24699_s30 + $0x58] sm:$0xff]  }
 0x39f   : > { %19701 = vmatprep.mubr.msk.bf16.mxu0 %vm24641_vm0, %v29241_v1 }
 0x3a6   : > { %19702 = vmatmul.mubr.msk.bf16.gmra.mrb[8].mxu0 %vm440_vm1, %v24067_v57  ;;  %v24129_v57 = vld [vmem:[%s24699_s30 + $0x60] sm:$0xff]  }
 0x3a7   : > { %19705 = vmatprep.mubr.msk.bf16.mxu0 %vm24641_vm0, %v29241_v1 }
 0x3ae   : > { %19706 = vmatmul.mubr.msk.bf16.gmra.mrb[12].mxu0 %vm440_vm1, %v24068_v59  ;;  %v24131_v59 = vld [vmem:[%s24699_s30 + $0x70] sm:$0xff]  }
 0x3af   : > { %19709 = vmatprep.mubr.msk.bf16.mxu0 %vm24641_vm0, %v29241_v1 }
 0x3b6   : > { %19710 = vmatmul.mubr.msk.bf16.gmra.mrb[16].mxu0 %vm440_vm1, %v24069_v60  ;;  %v24132_v60 = vld [vmem:[%s24699_s30 + $0x78] sm:$0xff]  }
 0x3b7   : > { %19713 = vmatprep.mubr.msk.bf16.mxu0 %vm24641_vm0, %v29241_v1 }
 0x3be   : > { %19714 = vmatmul.mubr.msk.bf16.gmra.mrb[20].mxu0 %vm440_vm1, %v24070_v61  ;;  %v24133_v61 = vld [vmem:[%s24699_s30 + $0x80] sm:$0xff]  }
 0x3bf   : > { %19717 = vmatprep.mubr.msk.bf16.mxu0 %vm24641_vm0, %v29241_v1 }
 0x3c6   : > { %19718 = vmatmul.mubr.msk.bf16.gmra.mrb[24].mxu0 %vm440_vm1, %v24071_v62  ;;  %v24134_v62 = vld [vmem:[%s24699_s30 + $0x88] sm:$0xff]  }
 0x3c7   : > { %19721 = vmatprep.mubr.msk.bf16.mxu0 %vm24641_vm0, %v29241_v1 }
 0x3ce   : > { %19722 = vmatmul.mubr.msk.bf16.gmra.mrb[28].mxu0 %vm440_vm1, %v24072_v63  ;;  %v24135_v63 = vld [vmem:[%s24699_s30 + $0x90] sm:$0xff]  }
 0x3cf   : > { %19725 = vmatprep.mubr.msk.bf16.mxu0 %vm24641_vm0, %v29241_v1 }
 0x3d6   : > { %19726 = vmatmul.mubr.msk.bf16.gmra.mrb[32].mxu0 %vm440_vm1, %v24073_v0  ;;  %v24136_v0 = vld [vmem:[%s24699_s30 + $0x98] sm:$0xff]  }
 0x3d7   : > { %19729 = vmatprep.mubr.msk.bf16.mxu0 %vm24641_vm0, %v29241_v1 }
 0x3de   : > { %19730 = vmatmul.mubr.msk.bf16.gmra.mrb[36].mxu0 %vm440_vm1, %v24074_v2  ;;  %v24137_v2 = vld [vmem:[%s24699_s30 + $0xa0] sm:$0xff]  }
 0x3df   : > { %19733 = vmatprep.mubr.msk.bf16.mxu0 %vm24641_vm0, %v29241_v1 }
 0x3e6   : > { %19734 = vmatmul.mubr.msk.bf16.gmra.mrb[40].mxu0 %vm440_vm1, %v24075_v3  ;;  %v24138_v3 = vld [vmem:[%s24699_s30 + $0xa8] sm:$0xff]  }
 0x3e7   : > { %19737 = vmatprep.mubr.msk.bf16.mxu0 %vm24641_vm0, %v29241_v1 }
 0x3ee   : > { %19738 = vmatmul.mubr.msk.bf16.gmra.mrb[44].mxu0 %vm440_vm1, %v24076_v4  ;;  %v24139_v4 = vld [vmem:[%s24699_s30 + $0xb0] sm:$0xff]  }
 0x3ef   : > { %19741 = vmatprep.mubr.msk.bf16.mxu0 %vm24641_vm0, %v29241_v1 }
 0x3f6   : > { %19742 = vmatmul.mubr.msk.bf16.gmra.mrb[48].mxu0 %vm440_vm1, %v24077_v5  ;;  %v24140_v5 = vld [vmem:[%s24699_s30 + $0xb8] sm:$0xff]  }
 0x3f7   : > { %19745 = vmatprep.mubr.msk.bf16.mxu0 %vm24641_vm0, %v29241_v1 }
 0x3fe   : > { %19746 = vmatmul.mubr.msk.bf16.gmra.mrb[52].mxu0 %vm440_vm1, %v24078_v6  ;;  %v24141_v6 = vld [vmem:[%s24699_s30 + $0xc0] sm:$0xff]  }
 0x3ff   : > { %19749 = vmatprep.mubr.msk.bf16.mxu0 %vm24641_vm0, %v29241_v1 }
 0x406   : > { %19750 = vmatmul.mubr.msk.bf16.gmra.mrb[56].mxu0 %vm440_vm1, %v24079_v7  ;;  %v24143_v7 = vld [vmem:[%s24699_s30 + $0xc8] sm:$0xff]  }
 0x407   : > { %19753 = vmatprep.mubr.msk.bf16.mxu0 %vm24641_vm0, %v29241_v1 }
 0x40e   : > { %19754 = vmatmul.mubr.msk.bf16.gmra.mrb[60].mxu0 %vm440_vm1, %v24080_v8  ;;  %v24144_v8 = vld [vmem:[%s24699_s30 + $0xd0] sm:$0xff]  }
 0x40f   : > { %19757 = vmatprep.mubr.msk.bf16.mxu0 %vm24641_vm0, %v29241_v1 }
 0x416   : > { %19758 = vmatmul.mubr.msk.bf16.gmra.mrb[64].mxu0 %vm440_vm1, %v24081_v9  ;;  %v24145_v9 = vld [vmem:[%s24699_s30 + $0xd8] sm:$0xff]  }
 0x417   : > { %19761 = vmatprep.mubr.msk.bf16.mxu0 %vm24641_vm0, %v29241_v1 }
 0x41e   : > { %19762 = vmatmul.mubr.msk.bf16.gmra.mrb[68].mxu0 %vm440_vm1, %v24082_v10  ;;  %v24146_v10 = vld [vmem:[%s24699_s30 + $0xe0] sm:$0xff]  }
 0x41f   : > { %19765 = vmatprep.mubr.msk.bf16.mxu0 %vm24641_vm0, %v29241_v1 }
 0x426   : > { %19766 = vmatmul.mubr.msk.bf16.gmra.mrb[72].mxu0 %vm440_vm1, %v24083_v11  ;;  %v24147_v11 = vld [vmem:[%s24699_s30 + $0xe8] sm:$0xff]  }
 0x427   : > { %19769 = vmatprep.mubr.msk.bf16.mxu0 %vm24641_vm0, %v29241_v1 }
 0x42e   : > { %19770 = vmatmul.mubr.msk.bf16.gmra.mrb[76].mxu0 %vm440_vm1, %v24085_v12  ;;  %v24148_v12 = vld [vmem:[%s24699_s30 + $0xf0] sm:$0xff]  }
 0x42f   : > { %19773 = vmatprep.mubr.msk.bf16.mxu0 %vm24641_vm0, %v29241_v1 }
 0x436   : > { %19774 = vmatmul.mubr.msk.bf16.gmra.mrb[80].mxu0 %vm440_vm1, %v24086_v13  ;;  %v24149_v13 = vld [vmem:[%s24699_s30 + $0xf8] sm:$0xff]  }
 0x437   : > { %19777 = vmatprep.mubr.msk.bf16.mxu0 %vm24641_vm0, %v29241_v1 }
 0x43e   : > { %19778 = vmatmul.mubr.msk.bf16.gmra.mrb[84].mxu0 %vm440_vm1, %v24087_v14  ;;  %v24150_v14 = vld [vmem:[%s24699_s30 + $0x100] sm:$0xff]  }
 0x43f   : > { %19781 = vmatprep.mubr.msk.bf16.mxu0 %vm24641_vm0, %v29241_v1 }
 0x446   : > { %19782 = vmatmul.mubr.msk.bf16.gmra.mrb[88].mxu0 %vm440_vm1, %v24088_v15  ;;  %v24151_v15 = vld [vmem:[%s24699_s30 + $0x108] sm:$0xff]  }
 0x447   : > { %19785 = vmatprep.mubr.msk.bf16.mxu0 %vm24641_vm0, %v29241_v1 }
 0x44e   : > { %19786 = vmatmul.mubr.msk.bf16.gmra.mrb[92].mxu0 %vm440_vm1, %v24089_v16  ;;  %v24152_v16 = vld [vmem:[%s24699_s30 + $0x110] sm:$0xff]  }
 0x44f   : > { %19789 = vmatprep.mubr.msk.bf16.mxu0 %vm24641_vm0, %v29241_v1 }
 0x456   : > { %19790 = vmatmul.mubr.msk.bf16.gmra.mrb[96].mxu0 %vm440_vm1, %v24090_v17  ;;  %v24153_v17 = vld [vmem:[%s24699_s30 + $0x118] sm:$0xff]  }
 0x457   : > { %19793 = vmatprep.mubr.msk.bf16.mxu0 %vm24641_vm0, %v29241_v1 }
 0x45e   : > { %19794 = vmatmul.mubr.msk.bf16.gmra.mrb[100].mxu0 %vm440_vm1, %v24091_v18  ;;  %v24154_v18 = vld [vmem:[%s24699_s30 + $0x120] sm:$0xff]  }
 0x45f   : > { %19797 = vmatprep.mubr.msk.bf16.mxu0 %vm24641_vm0, %v29241_v1 }
 0x466   : > { %19798 = vmatmul.mubr.msk.bf16.gmra.mrb[104].mxu0 %vm440_vm1, %v24092_v19  ;;  %v24155_v19 = vld [vmem:[%s24699_s30 + $0x128] sm:$0xff]  }
 0x467   : > { %19801 = vmatprep.mubr.msk.bf16.mxu0 %vm24641_vm0, %v29241_v1 }
 0x46e   : > { %19802 = vmatmul.mubr.msk.bf16.gmra.mrb[108].mxu0 %vm440_vm1, %v24093_v20  ;;  %v24156_v20 = vld [vmem:[%s24699_s30 + $0x130] sm:$0xff]  }
 0x46f   : > { %19805 = vmatprep.mubr.msk.bf16.mxu0 %vm24641_vm0, %v29241_v1 }
 0x476   : > { %19806 = vmatmul.mubr.msk.bf16.gmra.mrb[112].mxu0 %vm440_vm1, %v24094_v21  ;;  %v24157_v21 = vld [vmem:[%s24699_s30 + $0x138] sm:$0xff]  }
 0x477   : > { %19809 = vmatprep.mubr.msk.bf16.mxu0 %vm24641_vm0, %v29241_v1 }
 0x47e   : > { %19810 = vmatmul.mubr.msk.bf16.gmra.mrb[116].mxu0 %vm440_vm1, %v24095_v22  ;;  %v24158_v22 = vld [vmem:[%s24699_s30 + $0x140] sm:$0xff]  }
 0x47f   : > { %19813 = vmatprep.mubr.msk.bf16.mxu0 %vm24641_vm0, %v29241_v1 }
 0x486   : > { %19814 = vmatmul.mubr.msk.bf16.gmra.mrb[120].mxu0 %vm440_vm1, %v24096_v23  ;;  %v24159_v23 = vld [vmem:[%s24699_s30 + $0x148] sm:$0xff]  }
 0x487   : > { %19817 = vmatprep.mubr.msk.bf16.mxu0 %vm24641_vm0, %v29241_v1 }
 0x48e   : > { %19818 = vmatmul.mubr.msk.bf16.gmra.mrb[124].mxu0 %vm440_vm1, %v24097_v24  ;;  %v24160_v24 = vld [vmem:[%s24699_s30 + $0x150] sm:$0xff]  }
 0x48f   : > { %19821 = vmatprep.mubr.msk.bf16.mxu0 %vm24641_vm0, %v29241_v1 }
 0x496   : > { %19822 = vmatmul.mubr.msk.bf16.gmra.mrb[128].mxu0 %vm440_vm1, %v24098_v25  ;;  %v24161_v25 = vld [vmem:[%s24699_s30 + $0x158] sm:$0xff]  }
 0x497   : > { %19825 = vmatprep.mubr.msk.bf16.mxu0 %vm24641_vm0, %v29241_v1 }
 0x49e   : > { %19826 = vmatmul.mubr.msk.bf16.gmra.mrb[132].mxu0 %vm440_vm1, %v24099_v26  ;;  %v24162_v26 = vld [vmem:[%s24699_s30 + $0x160] sm:$0xff]  }
 0x49f   : > { %19829 = vmatprep.mubr.msk.bf16.mxu0 %vm24641_vm0, %v29241_v1 }
 0x4a6   : > { %19830 = vmatmul.mubr.msk.bf16.gmra.mrb[136].mxu0 %vm440_vm1, %v24100_v27  ;;  %v24163_v27 = vld [vmem:[%s24699_s30 + $0x168] sm:$0xff]  }
 0x4a7   : > { %19833 = vmatprep.mubr.msk.bf16.mxu0 %vm24641_vm0, %v29241_v1 }
 0x4ae   : > { %19834 = vmatmul.mubr.msk.bf16.gmra.mrb[140].mxu0 %vm440_vm1, %v24101_v28  ;;  %v24164_v28 = vld [vmem:[%s24699_s30 + $0x170] sm:$0xff]  }
 0x4af   : > { %19837 = vmatprep.mubr.msk.bf16.mxu0 %vm24641_vm0, %v29241_v1 }
 0x4b6   : > { %19838 = vmatmul.mubr.msk.bf16.gmra.mrb[144].mxu0 %vm440_vm1, %v24102_v29  ;;  %v24165_v29 = vld [vmem:[%s24699_s30 + $0x178] sm:$0xff]  }
 0x4b7   : > { %19841 = vmatprep.mubr.msk.bf16.mxu0 %vm24641_vm0, %v29241_v1 }
 0x4be   : > { %19842 = vmatmul.mubr.msk.bf16.gmra.mrb[148].mxu0 %vm440_vm1, %v24103_v30  ;;  %v24166_v30 = vld [vmem:[%s24699_s30 + $0x180] sm:$0xff]  }
 0x4bf   : > { %19845 = vmatprep.mubr.msk.bf16.mxu0 %vm24641_vm0, %v29241_v1 }
 0x4c6   : > { %19846 = vmatmul.mubr.msk.bf16.gmra.mrb[152].mxu0 %vm440_vm1, %v24104_v31  ;;  %v24167_v31 = vld [vmem:[%s24699_s30 + $0x188] sm:$0xff]  }
 0x4c7   : > { %19849 = vmatprep.mubr.msk.bf16.mxu0 %vm24641_vm0, %v29241_v1 }
 0x4ce   : > { %19850 = vmatmul.mubr.msk.bf16.gmra.mrb[156].mxu0 %vm440_vm1, %v24105_v32  ;;  %v24168_v32 = vld [vmem:[%s24699_s30 + $0x190] sm:$0xff]  }
 0x4cf   : > { %19853 = vmatprep.mubr.msk.bf16.mxu0 %vm24641_vm0, %v29241_v1 }
 0x4d6   : > { %19854 = vmatmul.mubr.msk.bf16.gmra.mrb[160].mxu0 %vm440_vm1, %v24106_v33  ;;  %v24169_v33 = vld [vmem:[%s24699_s30 + $0x198] sm:$0xff]  }
 0x4d7   : > { %19857 = vmatprep.mubr.msk.bf16.mxu0 %vm24641_vm0, %v29241_v1 }
 0x4de   : > { %19858 = vmatmul.mubr.msk.bf16.gmra.mrb[164].mxu0 %vm440_vm1, %v24107_v34  ;;  %v24170_v34 = vld [vmem:[%s24699_s30 + $0x1a0] sm:$0xff]  }
 0x4df   : > { %19861 = vmatprep.mubr.msk.bf16.mxu0 %vm24641_vm0, %v29241_v1 }
 0x4e6   : > { %19862 = vmatmul.mubr.msk.bf16.gmra.mrb[168].mxu0 %vm440_vm1, %v24108_v35  ;;  %v24171_v35 = vld [vmem:[%s24699_s30 + $0x1a8] sm:$0xff]  }
 0x4e7   : > { %19865 = vmatprep.mubr.msk.bf16.mxu0 %vm24641_vm0, %v29241_v1 }
 0x4ee   : > { %19866 = vmatmul.mubr.msk.bf16.gmra.mrb[172].mxu0 %vm440_vm1, %v24109_v36  ;;  %v24172_v36 = vld [vmem:[%s24699_s30 + $0x1b0] sm:$0xff]  }
 0x4ef   : > { %19869 = vmatprep.mubr.msk.bf16.mxu0 %vm24641_vm0, %v29241_v1 }
 0x4f6   : > { %19870 = vmatmul.mubr.msk.bf16.gmra.mrb[176].mxu0 %vm440_vm1, %v24110_v37  ;;  %v24173_v37 = vld [vmem:[%s24699_s30 + $0x1b8] sm:$0xff]  }
 0x4f7   : > { %19873 = vmatprep.mubr.msk.bf16.mxu0 %vm24641_vm0, %v29241_v1 }
 0x4fe   : > { %19874 = vmatmul.mubr.msk.bf16.gmra.mrb[180].mxu0 %vm440_vm1, %v24111_v38  ;;  %v24174_v38 = vld [vmem:[%s24699_s30 + $0x1c0] sm:$0xff]  }
 0x4ff   : > { %19877 = vmatprep.mubr.msk.bf16.mxu0 %vm24641_vm0, %v29241_v1 }
 0x506   : > { %19878 = vmatmul.mubr.msk.bf16.gmra.mrb[184].mxu0 %vm440_vm1, %v24112_v39  ;;  %v24175_v39 = vld [vmem:[%s24699_s30 + $0x1c8] sm:$0xff]  }
 0x507   : > { %19881 = vmatprep.mubr.msk.bf16.mxu0 %vm24641_vm0, %v29241_v1 }
 0x50e   : > { %19882 = vmatmul.mubr.msk.bf16.gmra.mrb[188].mxu0 %vm440_vm1, %v24113_v40  ;;  %v24176_v40 = vld [vmem:[%s24699_s30 + $0x1d0] sm:$0xff]  }
 0x50f   : > { %19885 = vmatprep.mubr.msk.bf16.mxu0 %vm24641_vm0, %v29241_v1 }
 0x516   : > { %19886 = vmatmul.mubr.msk.bf16.gmra.mrb[192].mxu0 %vm440_vm1, %v24114_v41  ;;  %v24177_v41 = vld [vmem:[%s24699_s30 + $0x1d8] sm:$0xff]  }
 0x517   : > { %19889 = vmatprep.mubr.msk.bf16.mxu0 %vm24641_vm0, %v29241_v1 }
 0x51e   : > { %19890 = vmatmul.mubr.msk.bf16.gmra.mrb[196].mxu0 %vm440_vm1, %v24115_v42  ;;  %v24178_v42 = vld [vmem:[%s24699_s30 + $0x1e0] sm:$0xff]  }
 0x51f   : > { %19893 = vmatprep.mubr.msk.bf16.mxu0 %vm24641_vm0, %v29241_v1 }
 0x526   : > { %19894 = vmatmul.mubr.msk.bf16.gmra.mrb[200].mxu0 %vm440_vm1, %v24116_v43  ;;  %v24179_v43 = vld [vmem:[%s24699_s30 + $0x1e8] sm:$0xff]  }
 0x527   : > { %19897 = vmatprep.mubr.msk.bf16.mxu0 %vm24641_vm0, %v29241_v1 }
 0x52e   : > { %19898 = vmatmul.mubr.msk.bf16.gmra.mrb[204].mxu0 %vm440_vm1, %v24117_v44  ;;  %v24180_v44 = vld [vmem:[%s24699_s30 + $0x1f0] ss:$0 sps:$4 sm:$0xff]  }
 0x52f   : > { %19901 = vmatprep.mubr.msk.bf16.mxu0 %vm24641_vm0, %v29241_v1 }
 0x536   : > { %19902 = vmatmul.mubr.msk.bf16.gmra.mrb[208].mxu0 %vm440_vm1, %v24118_v45  ;;  %v24181_v45 = vld [vmem:[%s24699_s30 + $0x40] sm:$0xff]  }
 0x537   : > { %19905 = vmatprep.mubr.msk.bf16.mxu0 %vm24641_vm0, %v29241_v1 }
 0x53e   : > { %19906 = vmatmul.mubr.msk.bf16.gmra.mrb[212].mxu0 %vm440_vm1, %v24119_v46  ;;  %v24182_v46 = vld [vmem:[%s24699_s30 + $0x48] sm:$0xff]  }
 0x53f   : > { %19909 = vmatprep.mubr.msk.bf16.mxu0 %vm24641_vm0, %v29241_v1 }
 0x546   : > { %19910 = vmatmul.mubr.msk.bf16.gmra.mrb[216].mxu0 %vm440_vm1, %v24120_v47  ;;  %v24183_v47 = vld [vmem:[%s24699_s30 + $0x50] sm:$0xff]  }
 0x547   : > { %19913 = vmatprep.mubr.msk.bf16.mxu0 %vm24641_vm0, %v29241_v1 }
 0x54e   : > { %19914 = vmatmul.mubr.msk.bf16.gmra.mrb[220].mxu0 %vm440_vm1, %v24121_v48  ;;  %v24184_v48 = vld [vmem:[%s24699_s30 + $0x58] sm:$0xff]  }
 0x54f   : > { %19917 = vmatprep.mubr.msk.bf16.mxu0 %vm24641_vm0, %v29241_v1 }
 0x556   : > { %19918 = vmatmul.mubr.msk.bf16.gmra.mrb[224].mxu0 %vm440_vm1, %v24122_v49  ;;  %v24185_v49 = vld [vmem:[%s24699_s30 + $0x60] sm:$0xff]  }
 0x557   : > { %19923 = vmatprep.mubr.msk.bf16.mxu0 %vm24641_vm0, %v29241_v1 }
 0x55e   : > { %19924 = vmatmul.mubr.msk.bf16.vlgmr.msra.gmra.mrb[0].mxu0 %vm440_vm1, %v24123_v50  ;;  %v24186_v50 = vld [vmem:[%s24699_s30 + $0x68] sm:$0xff]  }
 0x55f   : > { %19927 = vmatprep.mubr.msk.bf16.mxu0 %vm24641_vm0, %v29241_v1  ;;  %20152 = vmatpush3.bf16.msra.mxu0 %v24142_v53  ;;  %v24189_v53 = vld [vmem:[%s24699_s30 + $0x80] sm:$0xff]  }
 0x566   : > { %19928 = vmatmul.mubr.msk.bf16.gmra.mrb[4].mxu0 %vm440_vm1, %v24124_v51  ;;  %v24187_v51 = vld [vmem:[%s24699_s30 + $0x70] sm:$0xff]  }
 0x567   : > { %19931 = vmatprep.mubr.msk.bf16.mxu0 %vm24641_vm0, %v29241_v1 }
 0x56e   : > { %19932 = vmatmul.mubr.msk.bf16.gmra.mrb[8].mxu0 %vm440_vm1, %v24125_v52  ;;  %v24188_v52 = vld [vmem:[%s24699_s30 + $0x78] sm:$0xff]  }
 0x56f   : > { %19935 = vmatprep.mubr.msk.bf16.mxu0 %vm24641_vm0, %v29241_v1 }
 0x576   : > { %19936 = vmatmul.mubr.msk.bf16.gmra.mrb[12].mxu0 %vm440_vm1, %v24126_v54  ;;  %v24190_v54 = vld [vmem:[%s24699_s30 + $0x88] sm:$0xff]  }
 0x577   : > { %19939 = vmatprep.mubr.msk.bf16.mxu0 %vm24641_vm0, %v29241_v1 }
 0x57e   : > { %19940 = vmatmul.mubr.msk.bf16.gmra.mrb[16].mxu0 %vm440_vm1, %v24127_v55  ;;  %v24191_v55 = vld [vmem:[%s24699_s30 + $0x90] sm:$0xff]  }
 0x57f   : > { %19943 = vmatprep.mubr.msk.bf16.mxu0 %vm24641_vm0, %v29241_v1 }
 0x586   : > { %19944 = vmatmul.mubr.msk.bf16.gmra.mrb[20].mxu0 %vm440_vm1, %v24128_v56  ;;  %v24192_v56 = vld [vmem:[%s24699_s30 + $0x98] sm:$0xff]  }
 0x587   : > { %19947 = vmatprep.mubr.msk.bf16.mxu0 %vm24641_vm0, %v29241_v1 }
 0x58e   : > { %19948 = vmatmul.mubr.msk.bf16.gmra.mrb[24].mxu0 %vm440_vm1, %v24129_v57  ;;  %v24193_v57 = vld [vmem:[%s24699_s30 + $0xa0] sm:$0xff]  }
 0x58f   : > { %19951 = vmatprep.mubr.msk.bf16.mxu0 %vm24641_vm0, %v29241_v1 }
 0x596   : > { %19952 = vmatmul.mubr.msk.bf16.gmra.mrb[28].mxu0 %vm440_vm1, %v24130_v58  ;;  %v24194_v58 = vld [vmem:[%s24699_s30 + $0xa8] sm:$0xff]  }
 0x597   : > { %19955 = vmatprep.mubr.msk.bf16.mxu0 %vm24641_vm0, %v29241_v1 }
 0x59e   : > { %19956 = vmatmul.mubr.msk.bf16.gmra.mrb[32].mxu0 %vm440_vm1, %v24131_v59  ;;  %v24195_v59 = vld [vmem:[%s24699_s30 + $0xb0] sm:$0xff]  }
 0x59f   : > { %19959 = vmatprep.mubr.msk.bf16.mxu0 %vm24641_vm0, %v29241_v1 }
 0x5a6   : > { %19960 = vmatmul.mubr.msk.bf16.gmra.mrb[36].mxu0 %vm440_vm1, %v24132_v60  ;;  %v24196_v60 = vld [vmem:[%s24699_s30 + $0xb8] sm:$0xff]  }
 0x5a7   : > { %19963 = vmatprep.mubr.msk.bf16.mxu0 %vm24641_vm0, %v29241_v1 }
 0x5ae   : > { %19964 = vmatmul.mubr.msk.bf16.gmra.mrb[40].mxu0 %vm440_vm1, %v24133_v61  ;;  %v24197_v61 = vld [vmem:[%s24699_s30 + $0xc0] sm:$0xff]  }
 0x5af   : > { %19967 = vmatprep.mubr.msk.bf16.mxu0 %vm24641_vm0, %v29241_v1 }
 0x5b6   : > { %19968 = vmatmul.mubr.msk.bf16.gmra.mrb[44].mxu0 %vm440_vm1, %v24134_v62  ;;  %v24198_v62 = vld [vmem:[%s24699_s30 + $0xc8] sm:$0xff]  }
 0x5b7   : > { %19971 = vmatprep.mubr.msk.bf16.mxu0 %vm24641_vm0, %v29241_v1 }
 0x5be   : > { %19972 = vmatmul.mubr.msk.bf16.gmra.mrb[48].mxu0 %vm440_vm1, %v24135_v63  ;;  %v24199_v63 = vld [vmem:[%s24699_s30 + $0xd0] sm:$0xff]  }
 0x5bf   : > { %19975 = vmatprep.mubr.msk.bf16.mxu0 %vm24641_vm0, %v29241_v1 }
 0x5c6   : > { %19976 = vmatmul.mubr.msk.bf16.gmra.mrb[52].mxu0 %vm440_vm1, %v24136_v0  ;;  %v24200_v0 = vld [vmem:[%s24699_s30 + $0xd8] sm:$0xff]  }
 0x5c7   : > { %19979 = vmatprep.mubr.msk.bf16.mxu0 %vm24641_vm0, %v29241_v1 }
 0x5ce   : > { %19980 = vmatmul.mubr.msk.bf16.gmra.mrb[56].mxu0 %vm440_vm1, %v24137_v2  ;;  %v24201_v2 = vld [vmem:[%s24699_s30 + $0xe0] sm:$0xff]  }
 0x5cf   : > { %19983 = vmatprep.mubr.msk.bf16.mxu0 %vm24641_vm0, %v29241_v1 }
 0x5d6   : > { %19984 = vmatmul.mubr.msk.bf16.gmra.mrb[60].mxu0 %vm440_vm1, %v24138_v3  ;;  %v24202_v3 = vld [vmem:[%s24699_s30 + $0xe8] sm:$0xff]  }
 0x5d7   : > { %19987 = vmatprep.mubr.msk.bf16.mxu0 %vm24641_vm0, %v29241_v1 }
 0x5de   : > { %19988 = vmatmul.mubr.msk.bf16.gmra.mrb[64].mxu0 %vm440_vm1, %v24139_v4  ;;  %v24203_v4 = vld [vmem:[%s24699_s30 + $0xf0] sm:$0xff]  }
 0x5df   : > { %19991 = vmatprep.mubr.msk.bf16.mxu0 %vm24641_vm0, %v29241_v1 }
 0x5e6   : > { %19992 = vmatmul.mubr.msk.bf16.gmra.mrb[68].mxu0 %vm440_vm1, %v24140_v5  ;;  %v24204_v5 = vld [vmem:[%s24699_s30 + $0xf8] sm:$0xff]  }
 0x5e7   : > { %19995 = vmatprep.mubr.msk.bf16.mxu0 %vm24641_vm0, %v29241_v1 }
 0x5ee   : > { %19996 = vmatmul.mubr.msk.bf16.gmra.mrb[72].mxu0 %vm440_vm1, %v24141_v6  ;;  %v24205_v6 = vld [vmem:[%s24699_s30 + $0x100] sm:$0xff]  }
 0x5ef   : > { %19999 = vmatprep.mubr.msk.bf16.mxu0 %vm24641_vm0, %v29241_v1 }
 0x5f6   : > { %20000 = vmatmul.mubr.msk.bf16.gmra.mrb[76].mxu0 %vm440_vm1, %v24143_v7  ;;  %v24206_v7 = vld [vmem:[%s24699_s30 + $0x108] sm:$0xff]  }
 0x5f7   : > { %20003 = vmatprep.mubr.msk.bf16.mxu0 %vm24641_vm0, %v29241_v1 }
 0x5fe   : > { %20004 = vmatmul.mubr.msk.bf16.gmra.mrb[80].mxu0 %vm440_vm1, %v24144_v8  ;;  %v24207_v8 = vld [vmem:[%s24699_s30 + $0x110] sm:$0xff]  }
 0x5ff   : > { %20007 = vmatprep.mubr.msk.bf16.mxu0 %vm24641_vm0, %v29241_v1 }
 0x606   : > { %20008 = vmatmul.mubr.msk.bf16.gmra.mrb[84].mxu0 %vm440_vm1, %v24145_v9 }
 0x607   : > { %20011 = vmatprep.mubr.msk.bf16.mxu0 %vm24641_vm0, %v29241_v1 }
 0x60e   : > { %20012 = vmatmul.mubr.msk.bf16.gmra.mrb[88].mxu0 %vm440_vm1, %v24146_v10 }
 0x60f   : > { %20015 = vmatprep.mubr.msk.bf16.mxu0 %vm24641_vm0, %v29241_v1 }
 0x616   : > { %20016 = vmatmul.mubr.msk.bf16.gmra.mrb[92].mxu0 %vm440_vm1, %v24147_v11  ;;  %v24208_v11 = vld [vmem:[%s24699_s30 + $0x118] sm:$0xff]  }
 0x617   : > { %20019 = vmatprep.mubr.msk.bf16.mxu0 %vm24641_vm0, %v29241_v1 }
 0x61e   : > { %20020 = vmatmul.mubr.msk.bf16.gmra.mrb[96].mxu0 %vm440_vm1, %v24148_v12 }
 0x61f   : > { %20023 = vmatprep.mubr.msk.bf16.mxu0 %vm24641_vm0, %v29241_v1 }
 0x626   : > { %20024 = vmatmul.mubr.msk.bf16.gmra.mrb[100].mxu0 %vm440_vm1, %v24149_v13 }
 0x627   : > { %20027 = vmatprep.mubr.msk.bf16.mxu0 %vm24641_vm0, %v29241_v1 }
 0x62e   : > { %20028 = vmatmul.mubr.msk.bf16.gmra.mrb[104].mxu0 %vm440_vm1, %v24150_v14 }
 0x62f   : > { %20031 = vmatprep.mubr.msk.bf16.mxu0 %vm24641_vm0, %v29241_v1 }
 0x636   : > { %20032 = vmatmul.mubr.msk.bf16.gmra.mrb[108].mxu0 %vm440_vm1, %v24151_v15 }
 0x637   : > { %20035 = vmatprep.mubr.msk.bf16.mxu0 %vm24641_vm0, %v29241_v1 }
 0x63e   : > { %20036 = vmatmul.mubr.msk.bf16.gmra.mrb[112].mxu0 %vm440_vm1, %v24152_v16  ;;  %v24209_v16 = vld [vmem:[%s24699_s30 + $0x120] sm:$0xff]  }
 0x63f   : > { %20039 = vmatprep.mubr.msk.bf16.mxu0 %vm24641_vm0, %v29241_v1 }
 0x646   : > { %20040 = vmatmul.mubr.msk.bf16.gmra.mrb[116].mxu0 %vm440_vm1, %v24153_v17 }
 0x647   : > { %20043 = vmatprep.mubr.msk.bf16.mxu0 %vm24641_vm0, %v29241_v1 }
 0x64e   : > { %20044 = vmatmul.mubr.msk.bf16.gmra.mrb[120].mxu0 %vm440_vm1, %v24154_v18 }
 0x64f   : > { %20047 = vmatprep.mubr.msk.bf16.mxu0 %vm24641_vm0, %v29241_v1 }
 0x656   : > { %20048 = vmatmul.mubr.msk.bf16.gmra.mrb[124].mxu0 %vm440_vm1, %v24155_v19 }
 0x657   : > { %20051 = vmatprep.mubr.msk.bf16.mxu0 %vm24641_vm0, %v29241_v1 }
 0x65e   : > { %20052 = vmatmul.mubr.msk.bf16.gmra.mrb[128].mxu0 %vm440_vm1, %v24156_v20 }
 0x65f   : > { %20055 = vmatprep.mubr.msk.bf16.mxu0 %vm24641_vm0, %v29241_v1 }
 0x666   : > { %20056 = vmatmul.mubr.msk.bf16.gmra.mrb[132].mxu0 %vm440_vm1, %v24157_v21  ;;  %v24210_v21 = vld [vmem:[%s24699_s30 + $0x128] sm:$0xff]  }
 0x667   : > { %20059 = vmatprep.mubr.msk.bf16.mxu0 %vm24641_vm0, %v29241_v1 }
 0x66e   : > { %20060 = vmatmul.mubr.msk.bf16.gmra.mrb[136].mxu0 %vm440_vm1, %v24158_v22 }
 0x66f   : > { %20063 = vmatprep.mubr.msk.bf16.mxu0 %vm24641_vm0, %v29241_v1 }
 0x676   : > { %20064 = vmatmul.mubr.msk.bf16.gmra.mrb[140].mxu0 %vm440_vm1, %v24159_v23 }
 0x677   : > { %20067 = vmatprep.mubr.msk.bf16.mxu0 %vm24641_vm0, %v29241_v1 }
 0x67e   : > { %20068 = vmatmul.mubr.msk.bf16.gmra.mrb[144].mxu0 %vm440_vm1, %v24160_v24 }
 0x67f   : > { %20071 = vmatprep.mubr.msk.bf16.mxu0 %vm24641_vm0, %v29241_v1 }
 0x686   : > { %20072 = vmatmul.mubr.msk.bf16.gmra.mrb[148].mxu0 %vm440_vm1, %v24161_v25 }
 0x687   : > { %20075 = vmatprep.mubr.msk.bf16.mxu0 %vm24641_vm0, %v29241_v1 }
 0x68e   : > { %20076 = vmatmul.mubr.msk.bf16.gmra.mrb[152].mxu0 %vm440_vm1, %v24162_v26 }
 0x68f   : > { %20079 = vmatprep.mubr.msk.bf16.mxu0 %vm24641_vm0, %v29241_v1 }
 0x696   : > { %20080 = vmatmul.mubr.msk.bf16.gmra.mrb[156].mxu0 %vm440_vm1, %v24163_v27  ;;  %v24211_v27 = vld [vmem:[%s24699_s30 + $0x130] sm:$0xff]  }
 0x697   : > { %20083 = vmatprep.mubr.msk.bf16.mxu0 %vm24641_vm0, %v29241_v1 }
 0x69e   : > { %20084 = vmatmul.mubr.msk.bf16.gmra.mrb[160].mxu0 %vm440_vm1, %v24164_v28 }
 0x69f   : > { %20087 = vmatprep.mubr.msk.bf16.mxu0 %vm24641_vm0, %v29241_v1 }
 0x6a6   : > { %20088 = vmatmul.mubr.msk.bf16.gmra.mrb[164].mxu0 %vm440_vm1, %v24165_v29 }
 0x6a7   : > { %20091 = vmatprep.mubr.msk.bf16.mxu0 %vm24641_vm0, %v29241_v1 }
 0x6ae   : > { %20092 = vmatmul.mubr.msk.bf16.gmra.mrb[168].mxu0 %vm440_vm1, %v24166_v30 }
 0x6af   : > { %20095 = vmatprep.mubr.msk.bf16.mxu0 %vm24641_vm0, %v29241_v1 }
 0x6b6   : > { %20096 = vmatmul.mubr.msk.bf16.gmra.mrb[172].mxu0 %vm440_vm1, %v24167_v31 }
 0x6b7   : > { %20099 = vmatprep.mubr.msk.bf16.mxu0 %vm24641_vm0, %v29241_v1 }
 0x6be   : > { %20100 = vmatmul.mubr.msk.bf16.gmra.mrb[176].mxu0 %vm440_vm1, %v24168_v32 }
 0x6bf   : > { %20103 = vmatprep.mubr.msk.bf16.mxu0 %vm24641_vm0, %v29241_v1 }
 0x6c6   : > { %20104 = vmatmul.mubr.msk.bf16.gmra.mrb[180].mxu0 %vm440_vm1, %v24169_v33 }
 0x6c7   : > { %20107 = vmatprep.mubr.msk.bf16.mxu0 %vm24641_vm0, %v29241_v1 }
 0x6ce   : > { %20108 = vmatmul.mubr.msk.bf16.gmra.mrb[184].mxu0 %vm440_vm1, %v24170_v34 }
 0x6cf   : > { %20111 = vmatprep.mubr.msk.bf16.mxu0 %vm24641_vm0, %v29241_v1 }
 0x6d6   : > { %20112 = vmatmul.mubr.msk.bf16.gmra.mrb[188].mxu0 %vm440_vm1, %v24171_v35 }
 0x6d7   : > { %20115 = vmatprep.mubr.msk.bf16.mxu0 %vm24641_vm0, %v29241_v1 }
 0x6de   : > { %20116 = vmatmul.mubr.msk.bf16.gmra.mrb[192].mxu0 %vm440_vm1, %v24172_v36 }
 0x6df   : > { %20119 = vmatprep.mubr.msk.bf16.mxu0 %vm24641_vm0, %v29241_v1 }
 0x6e6   : > { %20120 = vmatmul.mubr.msk.bf16.gmra.mrb[196].mxu0 %vm440_vm1, %v24173_v37 }
 0x6e7   : > { %20123 = vmatprep.mubr.msk.bf16.mxu0 %vm24641_vm0, %v29241_v1 }
 0x6ee   : > { %20124 = vmatmul.mubr.msk.bf16.gmra.mrb[200].mxu0 %vm440_vm1, %v24174_v38 }
 0x6ef   : > { %20127 = vmatprep.mubr.msk.bf16.mxu0 %vm24641_vm0, %v29241_v1 }
 0x6f6   : > { %20128 = vmatmul.mubr.msk.bf16.gmra.mrb[204].mxu0 %vm440_vm1, %v24175_v39  ;;  %v24212_v39 = vld [vmem:[%s24699_s30 + $0x138] sm:$0xff]  }
 0x6f7   : > { %20131 = vmatprep.mubr.msk.bf16.mxu0 %vm24641_vm0, %v29241_v1 }
 0x6fe   : > { %20132 = vmatmul.mubr.msk.bf16.gmra.mrb[208].mxu0 %vm440_vm1, %v24176_v40 }
 0x6ff   : > { %20135 = vmatprep.mubr.msk.bf16.mxu0 %vm24641_vm0, %v29241_v1 }
 0x706   : > { %20136 = vmatmul.mubr.msk.bf16.gmra.mrb[212].mxu0 %vm440_vm1, %v24177_v41 }
 0x707   : > { %20139 = vmatprep.mubr.msk.bf16.mxu0 %vm24641_vm0, %v29241_v1 }
 0x70e   : > { %20140 = vmatmul.mubr.msk.bf16.gmra.mrb[216].mxu0 %vm440_vm1, %v24178_v42 }
 0x70f   : > { %20143 = vmatprep.mubr.msk.bf16.mxu0 %vm24641_vm0, %v29241_v1 }
 0x716   : > { %20144 = vmatmul.mubr.msk.bf16.gmra.mrb[220].mxu0 %vm440_vm1, %v24179_v43 }
 0x717   : > { %20147 = vmatprep.mubr.msk.bf16.mxu0 %vm24641_vm0, %v29241_v1 }
 0x71e   : > { %20148 = vmatmul.mubr.msk.bf16.gmra.mrb[224].mxu0 %vm440_vm1, %v24180_v44 }
 0x71f   : > { %20153 = vmatprep.mubr.msk.bf16.mxu0 %vm24641_vm0, %v29241_v1 }
 0x726   : > { %20154 = vmatmul.mubr.msk.bf16.vlgmr.msra.gmra.mrb[0].mxu0 %vm440_vm1, %v24181_v45 }
 0x727   : > { %20157 = vmatprep.mubr.msk.bf16.mxu0 %vm24641_vm0, %v29241_v1 }
 0x72e   : > { %20158 = vmatmul.mubr.msk.bf16.gmra.mrb[4].mxu0 %vm440_vm1, %v24182_v46 }
 0x72f   : > { %20161 = vmatprep.mubr.msk.bf16.mxu0 %vm24641_vm0, %v29241_v1 }
 0x736   : > { %20162 = vmatmul.mubr.msk.bf16.gmra.mrb[8].mxu0 %vm440_vm1, %v24183_v47 }
 0x737   : > { %20165 = vmatprep.mubr.msk.bf16.mxu0 %vm24641_vm0, %v29241_v1 }
 0x73e   : > { %20166 = vmatmul.mubr.msk.bf16.gmra.mrb[12].mxu0 %vm440_vm1, %v24184_v48 }
 0x73f   : > { %20169 = vmatprep.mubr.msk.bf16.mxu0 %vm24641_vm0, %v29241_v1 }
 0x746   : > { %20170 = vmatmul.mubr.msk.bf16.gmra.mrb[16].mxu0 %vm440_vm1, %v24185_v49 }
 0x747   : > { %20173 = vmatprep.mubr.msk.bf16.mxu0 %vm24641_vm0, %v29241_v1 }
 0x74e   : > { %20174 = vmatmul.mubr.msk.bf16.gmra.mrb[20].mxu0 %vm440_vm1, %v24186_v50 }
 0x74f   : > { %20177 = vmatprep.mubr.msk.bf16.mxu0 %vm24641_vm0, %v29241_v1 }
 0x756   : > { %20178 = vmatmul.mubr.msk.bf16.gmra.mrb[24].mxu0 %vm440_vm1, %v24187_v51 }
 0x757   : > { %20181 = vmatprep.mubr.msk.bf16.mxu0 %vm24641_vm0, %v29241_v1 }
 0x75e   : > { %20182 = vmatmul.mubr.msk.bf16.gmra.mrb[28].mxu0 %vm440_vm1, %v24188_v52 }
 0x75f   : > { %20185 = vmatprep.mubr.msk.bf16.mxu0 %vm24641_vm0, %v29241_v1 }
 0x766   : > { %20186 = vmatmul.mubr.msk.bf16.gmra.mrb[32].mxu0 %vm440_vm1, %v24189_v53 }
 0x767   : > { %20189 = vmatprep.mubr.msk.bf16.mxu0 %vm24641_vm0, %v29241_v1 }
 0x76e   : > { %20190 = vmatmul.mubr.msk.bf16.gmra.mrb[36].mxu0 %vm440_vm1, %v24190_v54  ;;  %v24213_v54 = vld [vmem:[%s24699_s30 + $0x140] sm:$0xff]  }
 0x76f   : > { %20193 = vmatprep.mubr.msk.bf16.mxu0 %vm24641_vm0, %v29241_v1 }
 0x776   : > { %20194 = vmatmul.mubr.msk.bf16.gmra.mrb[40].mxu0 %vm440_vm1, %v24191_v55 }
 0x777   : > { %20197 = vmatprep.mubr.msk.bf16.mxu0 %vm24641_vm0, %v29241_v1 }
 0x77e   : > { %20198 = vmatmul.mubr.msk.bf16.gmra.mrb[44].mxu0 %vm440_vm1, %v24192_v56 }
 0x77f   : > { %20201 = vmatprep.mubr.msk.bf16.mxu0 %vm24641_vm0, %v29241_v1 }
 0x786   : > { %20202 = vmatmul.mubr.msk.bf16.gmra.mrb[48].mxu0 %vm440_vm1, %v24193_v57 }
 0x787   : > { %20205 = vmatprep.mubr.msk.bf16.mxu0 %vm24641_vm0, %v29241_v1 }
 0x78e   : > { %20206 = vmatmul.mubr.msk.bf16.gmra.mrb[52].mxu0 %vm440_vm1, %v24194_v58 }
 0x78f   : > { %20209 = vmatprep.mubr.msk.bf16.mxu0 %vm24641_vm0, %v29241_v1 }
 0x796   : > { %20210 = vmatmul.mubr.msk.bf16.gmra.mrb[56].mxu0 %vm440_vm1, %v24195_v59 }
 0x797   : > { %20213 = vmatprep.mubr.msk.bf16.mxu0 %vm24641_vm0, %v29241_v1 }
 0x79e   : > { %20214 = vmatmul.mubr.msk.bf16.gmra.mrb[60].mxu0 %vm440_vm1, %v24196_v60 }
 0x79f   : > { %20217 = vmatprep.mubr.msk.bf16.mxu0 %vm24641_vm0, %v29241_v1 }
 0x7a6   : > { %20218 = vmatmul.mubr.msk.bf16.gmra.mrb[64].mxu0 %vm440_vm1, %v24197_v61 }
 0x7a7   : > { %20221 = vmatprep.mubr.msk.bf16.mxu0 %vm24641_vm0, %v29241_v1 }
 0x7ae   : > { %20222 = vmatmul.mubr.msk.bf16.gmra.mrb[68].mxu0 %vm440_vm1, %v24198_v62 }
 0x7af   : > { %20225 = vmatprep.mubr.msk.bf16.mxu0 %vm24641_vm0, %v29241_v1 }
 0x7b6   : > { %20226 = vmatmul.mubr.msk.bf16.gmra.mrb[72].mxu0 %vm440_vm1, %v24199_v63 }
 0x7b7   : > { %20229 = vmatprep.mubr.msk.bf16.mxu0 %vm24641_vm0, %v29241_v1 }
 0x7be   : > { %20230 = vmatmul.mubr.msk.bf16.gmra.mrb[76].mxu0 %vm440_vm1, %v24200_v0 }
 0x7bf   : > { %20233 = vmatprep.mubr.msk.bf16.mxu0 %vm24641_vm0, %v29241_v1 }
 0x7c6   : > { %20234 = vmatmul.mubr.msk.bf16.gmra.mrb[80].mxu0 %vm440_vm1, %v24201_v2 }
 0x7c7   : > { %20237 = vmatprep.mubr.msk.bf16.mxu0 %vm24641_vm0, %v29241_v1 }
 0x7ce   : > { %20238 = vmatmul.mubr.msk.bf16.gmra.mrb[84].mxu0 %vm440_vm1, %v24202_v3 }
 0x7cf   : > { %20241 = vmatprep.mubr.msk.bf16.mxu0 %vm24641_vm0, %v29241_v1 }
 0x7d6   : > { %20242 = vmatmul.mubr.msk.bf16.gmra.mrb[88].mxu0 %vm440_vm1, %v24203_v4  ;;  %v24214_v4 = vld [vmem:[%s24699_s30 + $0x148] sm:$0xff]  }
 0x7d7   : > { %20245 = vmatprep.mubr.msk.bf16.mxu0 %vm24641_vm0, %v29241_v1 }
 0x7de   : > { %20246 = vmatmul.mubr.msk.bf16.gmra.mrb[92].mxu0 %vm440_vm1, %v24204_v5 }
 0x7df   : > { %20249 = vmatprep.mubr.msk.bf16.mxu0 %vm24641_vm0, %v29241_v1 }
 0x7e6   : > { %20250 = vmatmul.mubr.msk.bf16.gmra.mrb[96].mxu0 %vm440_vm1, %v24205_v6 }
 0x7e7   : > { %20253 = vmatprep.mubr.msk.bf16.mxu0 %vm24641_vm0, %v29241_v1 }
 0x7ee   : > { %20254 = vmatmul.mubr.msk.bf16.gmra.mrb[100].mxu0 %vm440_vm1, %v24206_v7 }
 0x7ef   : > { %20257 = vmatprep.mubr.msk.bf16.mxu0 %vm24641_vm0, %v29241_v1 }
 0x7f6   : > { %20258 = vmatmul.mubr.msk.bf16.gmra.mrb[104].mxu0 %vm440_vm1, %v24207_v8 }
 0x7f7   : > { %20261 = vmatprep.mubr.msk.bf16.mxu0 %vm24641_vm0, %v29241_v1 }
 0x7f9   : > { %v6032_v9 = vpop.f32.mrb[0].mxu0 }
 0x7fa   : > { %6712 = vst [vmem:[#allocation2] sm:$0xff] %v6032_v9  ;;  %v20155_v10 = vpop.f32.mrb[1].mxu0 }
 0x7fb   : > { %v6035_v12 = vpop.f32.mrb[2].mxu0 }
 0x7fc   : > { %6713 = vst [vmem:[#allocation2 + $0x8] sm:$0xff] %v6035_v12  ;;  %v20156_v13 = vpop.f32.mrb[3].mxu0 }
 0x7fe   : > { %20262 = vmatmul.mubr.msk.bf16.gmra.mrb[108].mxu0 %vm440_vm1, %v24208_v11 }
 0x7ff   : > { %20265 = vmatprep.mubr.msk.bf16.mxu0 %vm24641_vm0, %v29241_v1 }
 0x801   : > { %v6040_v14 = vpop.f32.mrb[4].mxu0 }
 0x802   : > { %6714 = vst [vmem:[#allocation2 + $0x10] sm:$0xff] %v6040_v14  ;;  %v20159_v15 = vpop.f32.mrb[5].mxu0 }
 0x803   : > { %v6043_v17 = vpop.f32.mrb[6].mxu0  ;;  %v6933_v25 = vld [vmem:[#allocation2 + $0x1] sm:$0xff] }
 0x804   : > { %6715 = vst [vmem:[#allocation2 + $0x18] sm:$0xff] %v6043_v17  ;;  %v20160_v18 = vpop.f32.mrb[7].mxu0  ;;  %v7041_v31 = vmax.f32 %v6032_v9, %v6933_v25 }
 0x806   : > { %20266 = vmatmul.mubr.msk.bf16.gmra.mrb[112].mxu0 %vm440_vm1, %v24209_v16  ;;  %v24215_v16 = vld [vmem:[%s24699_s30 + $0x150] sm:$0xff]  }
 0x807   : > { %20269 = vmatprep.mubr.msk.bf16.mxu0 %vm24641_vm0, %v29241_v1 }
 0x809   : > { %v6048_v19 = vpop.f32.mrb[8].mxu0  ;;  %v6934_v34 = vld [vmem:[#allocation2 + $0x9] sm:$0xff] }
 0x80a   : > { %6716 = vst [vmem:[#allocation2 + $0x20] sm:$0xff] %v6048_v19  ;;  %v20163_v20 = vpop.f32.mrb[9].mxu0  ;;  %v7042_v40 = vmax.f32 %v6035_v12, %v6934_v34 }
 0x80b   : > { %v6051_v22 = vpop.f32.mrb[10].mxu0  ;;  %v6935_v37 = vld [vmem:[#allocation2 + $0x11] sm:$0xff] }
 0x80c   : > { %6717 = vst [vmem:[#allocation2 + $0x28] sm:$0xff] %v6051_v22  ;;  %v20164_v23 = vpop.f32.mrb[11].mxu0  ;;  %v7043_v46 = vmax.f32 %v6040_v14, %v6935_v37 }
 0x80e   : > { %20270 = vmatmul.mubr.msk.bf16.gmra.mrb[116].mxu0 %vm440_vm1, %v24210_v21 }
 0x80f   : > { %20273 = vmatprep.mubr.msk.bf16.mxu0 %vm24641_vm0, %v29241_v1 }
 0x811   : > { %v6056_v24 = vpop.f32.mrb[12].mxu0  ;;  %v6936_v50 = vld [vmem:[#allocation2 + $0x19] sm:$0xff] }
 0x812   : > { %6718 = vst [vmem:[#allocation2 + $0x30] sm:$0xff] %v6056_v24  ;;  %v20167_v26 = vpop.f32.mrb[13].mxu0  ;;  %v7044_v55 = vmax.f32 %v6043_v17, %v6936_v50 }
 0x813   : > { %v6059_v28 = vpop.f32.mrb[14].mxu0  ;;  %v6937_v29 = vld [vmem:[#allocation2 + $0x21] sm:$0xff] }
 0x814   : > { %6719 = vst [vmem:[#allocation2 + $0x38] sm:$0xff] %v6059_v28  ;;  %v20168_v30 = vpop.f32.mrb[15].mxu0  ;;  %v7045_v32 = vmax.f32 %v6048_v19, %v6937_v29 }
 0x816   : > { %20274 = vmatmul.mubr.msk.bf16.gmra.mrb[120].mxu0 %vm440_vm1, %v24211_v27  ;;  %v25750_v33 = vmax.f32 %v7041_v31, %v7045_v32 }
 0x817   : > { %20277 = vmatprep.mubr.msk.bf16.mxu0 %vm24641_vm0, %v29241_v1 }
 0x819   : > { %v6064_v35 = vpop.f32.mrb[16].mxu0  ;;  %v6938_v36 = vld [vmem:[#allocation2 + $0x29] sm:$0xff] }
 0x81a   : > { %6720 = vst [vmem:[#allocation2 + $0x40] sm:$0xff] %v6064_v35  ;;  %v20171_v38 = vpop.f32.mrb[17].mxu0  ;;  %v7046_v41 = vmax.f32 %v6051_v22, %v6938_v36 }
 0x81b   : > { %v6067_v42 = vpop.f32.mrb[18].mxu0  ;;  %v6939_v43 = vld [vmem:[#allocation2 + $0x31] sm:$0xff] }
 0x81c   : > { %6721 = vst [vmem:[#allocation2 + $0x48] sm:$0xff] %v6067_v42  ;;  %v20172_v44 = vpop.f32.mrb[19].mxu0  ;;  %v25755_v45 = vmax.f32 %v7042_v40, %v7046_v41  ;;  %v7047_v47 = vmax.f32 %v6056_v24, %v6939_v43 }
 0x81e   : > { %20278 = vmatmul.mubr.msk.bf16.gmra.mrb[124].mxu0 %vm440_vm1, %v24212_v39  ;;  %v7389_v48 = vpack.c.bf16 %v25755_v45, %v25750_v33  ;;  %v25760_v49 = vmax.f32 %v7043_v46, %v7047_v47 }
 0x81f   : > { %20281 = vmatprep.mubr.msk.bf16.mxu0 %vm24641_vm0, %v29241_v1 }
 0x821   : > { %v6072_v51 = vpop.f32.mrb[20].mxu0  ;;  %v6940_v52 = vld [vmem:[#allocation2 + $0x39] sm:$0xff] }
 0x822   : > { %6722 = vst [vmem:[#allocation2 + $0x50] sm:$0xff] %v6072_v51  ;;  %v20175_v53 = vpop.f32.mrb[21].mxu0  ;;  %v7048_v56 = vmax.f32 %v6059_v28, %v6940_v52  ;;  %v24216_v28 = vld [vmem:[%s24699_s30 + $0x158] sm:$0xff]  }
 0x823   : > { %v6075_v57 = vpop.f32.mrb[22].mxu0  ;;  %v6941_v58 = vld [vmem:[#allocation2 + $0x41] sm:$0xff] }
 0x824   : > { %6723 = vst [vmem:[#allocation2 + $0x58] sm:$0xff] %v6075_v57  ;;  %v20176_v59 = vpop.f32.mrb[23].mxu0  ;;  %v25765_v60 = vmax.f32 %v7044_v55, %v7048_v56  ;;  %v7049_v61 = vmax.f32 %v6064_v35, %v6941_v58 }
 0x826   : > { %20282 = vmatmul.mubr.msk.bf16.gmra.mrb[128].mxu0 %vm440_vm1, %v24213_v54  ;;  %v7390_v62 = vpack.c.bf16 %v25765_v60, %v25760_v49  ;;  %v7165_v63 = vmax.f32 %v7045_v32, %v7049_v61 }
 0x827   : > { %20285 = vmatprep.mubr.msk.bf16.mxu0 %vm24641_vm0, %v29241_v1 }
 0x829   : > { %v6080_v0 = vpop.f32.mrb[24].mxu0  ;;  %v6942_v2 = vld [vmem:[#allocation2 + $0x49] sm:$0xff] }
 0x82a   : > { %6724 = vst [vmem:[#allocation2 + $0x60] sm:$0xff] %v6080_v0  ;;  %v20179_v3 = vpop.f32.mrb[25].mxu0  ;;  %v7050_v5 = vmax.f32 %v6067_v42, %v6942_v2 }
 0x82b   : > { %v6083_v6 = vpop.f32.mrb[26].mxu0  ;;  %v6943_v7 = vld [vmem:[#allocation2 + $0x51] sm:$0xff] }
 0x82c   : > { %6725 = vst [vmem:[#allocation2 + $0x68] sm:$0xff] %v6083_v6  ;;  %v20180_v8 = vpop.f32.mrb[27].mxu0  ;;  %v7166_v9 = vmax.f32 %v7046_v41, %v7050_v5  ;;  %v7051_v10 = vmax.f32 %v6072_v51, %v6943_v7  ;;  %v24217_v41 = vld [vmem:[%s24699_s30 + $0x160] sm:$0xff]   ;;  %v24219_v7 = vld [vmem:[%s24699_s30 + $0x170] sm:$0xff]  }
 0x82e   : > { %20286 = vmatmul.mubr.msk.bf16.gmra.mrb[132].mxu0 %vm440_vm1, %v24214_v4  ;;  %v25774_v11 = vpack.c.bf16 %v7166_v9, %v7165_v63  ;;  %v7167_v12 = vmax.f32 %v7047_v47, %v7051_v10 }
 0x82f   : > { %20289 = vmatprep.mubr.msk.bf16.mxu0 %vm24641_vm0, %v29241_v1 }
 0x831   : > { %v6088_v13 = vpop.f32.mrb[28].mxu0  ;;  %v6944_v14 = vld [vmem:[#allocation2 + $0x59] sm:$0xff] }
 0x832   : > { %6726 = vst [vmem:[#allocation2 + $0x70] sm:$0xff] %v6088_v13  ;;  %v20183_v15 = vpop.f32.mrb[29].mxu0  ;;  %v7052_v17 = vmax.f32 %v6075_v57, %v6944_v14 }
 0x833   : > { %v6091_v18 = vpop.f32.mrb[30].mxu0  ;;  %v6945_v19 = vld [vmem:[#allocation2 + $0x61] sm:$0xff] }
 0x834   : > { %6727 = vst [vmem:[#allocation2 + $0x78] sm:$0xff] %v6091_v18  ;;  %v20184_v20 = vpop.f32.mrb[31].mxu0  ;;  %v7168_v21 = vmax.f32 %v7048_v56, %v7052_v17  ;;  %v7053_v22 = vmax.f32 %v6080_v0, %v6945_v19  ;;  %v24218_v56 = vld [vmem:[%s24699_s30 + $0x168] sm:$0xff]  }
 0x835   : > { %v24220_v20 = vld [vmem:[%s24699_s30 + $0x178] sm:$0xff]  }
 0x836   : > { %20290 = vmatmul.mubr.msk.bf16.gmra.mrb[136].mxu0 %vm440_vm1, %v24215_v16  ;;  %v25780_v23 = vpack.c.bf16 %v7168_v21, %v7167_v12  ;;  %v7169_v24 = vmax.f32 %v7049_v61, %v7053_v22 }
 0x837   : > { %20293 = vmatprep.mubr.msk.bf16.mxu0 %vm24641_vm0, %v29241_v1 }
 0x839   : > { %v6096_v25 = vpop.f32.mrb[32].mxu0  ;;  %v6946_v26 = vld [vmem:[#allocation2 + $0x69] sm:$0xff] }
 0x83a   : > { %6728 = vst [vmem:[#allocation2 + $0x80] sm:$0xff] %v6096_v25  ;;  %v20187_v27 = vpop.f32.mrb[33].mxu0  ;;  %v7054_v29 = vmax.f32 %v6083_v6, %v6946_v26 }
 0x83b   : > { %v6099_v30 = vpop.f32.mrb[34].mxu0  ;;  %v6947_v31 = vld [vmem:[#allocation2 + $0x71] sm:$0xff] }
 0x83c   : > { %6729 = vst [vmem:[#allocation2 + $0x88] sm:$0xff] %v6099_v30  ;;  %v20188_v32 = vpop.f32.mrb[35].mxu0  ;;  %v7170_v34 = vmax.f32 %v7050_v5, %v7054_v29  ;;  %v7055_v35 = vmax.f32 %v6088_v13, %v6947_v31 }
 0x83e   : > { %20294 = vmatmul.mubr.msk.bf16.gmra.mrb[140].mxu0 %vm440_vm1, %v24216_v28  ;;  %v25786_v36 = vpack.c.bf16 %v7170_v34, %v7169_v24  ;;  %v7171_v37 = vmax.f32 %v7051_v10, %v7055_v35  ;;  %v24221_v34 = vld [vmem:[%s24699_s30 + $0x180] sm:$0xff]  }
 0x83f   : > { %20297 = vmatprep.mubr.msk.bf16.mxu0 %vm24641_vm0, %v29241_v1 }
 0x841   : > { %v6104_v38 = vpop.f32.mrb[36].mxu0  ;;  %v6948_v39 = vld [vmem:[#allocation2 + $0x79] sm:$0xff] }
 0x842   : > { %6730 = vst [vmem:[#allocation2 + $0x90] sm:$0xff] %v6104_v38  ;;  %v20191_v40 = vpop.f32.mrb[37].mxu0  ;;  %v7056_v42 = vmax.f32 %v6091_v18, %v6948_v39 }
 0x843   : > { %v6107_v43 = vpop.f32.mrb[38].mxu0  ;;  %v6949_v44 = vld [vmem:[#allocation2 + $0x81] sm:$0xff] }
 0x844   : > { %6731 = vst [vmem:[#allocation2 + $0x98] sm:$0xff] %v6107_v43  ;;  %v20192_v46 = vpop.f32.mrb[39].mxu0  ;;  %v7057_v47 = vmax.f32 %v6096_v25, %v6949_v44  ;;  %v7172_v50 = vmax.f32 %v7052_v17, %v7056_v42  ;;  %v24222_v44 = vld [vmem:[%s24699_s30 + $0x188] sm:$0xff]  }
 0x846   : > { %20298 = vmatmul.mubr.msk.bf16.gmra.mrb[144].mxu0 %vm440_vm1, %v24217_v41  ;;  %v25792_v51 = vpack.c.bf16 %v7172_v50, %v7171_v37  ;;  %v7173_v52 = vmax.f32 %v7053_v22, %v7057_v47 }
 0x847   : > { %20301 = vmatprep.mubr.msk.bf16.mxu0 %vm24641_vm0, %v29241_v1 }
 0x849   : > { %v6112_v53 = vpop.f32.mrb[40].mxu0  ;;  %v6950_v54 = vld [vmem:[#allocation2 + $0x89] sm:$0xff] }
 0x84a   : > { %6732 = vst [vmem:[#allocation2 + $0xa0] sm:$0xff] %v6112_v53  ;;  %v20195_v55 = vpop.f32.mrb[41].mxu0  ;;  %v7058_v57 = vmax.f32 %v6099_v30, %v6950_v54 }
 0x84b   : > { %v6115_v58 = vpop.f32.mrb[42].mxu0  ;;  %v6951_v59 = vld [vmem:[#allocation2 + $0x91] sm:$0xff] }
 0x84c   : > { %6733 = vst [vmem:[#allocation2 + $0xa8] sm:$0xff] %v6115_v58  ;;  %v20196_v61 = vpop.f32.mrb[43].mxu0  ;;  %v7059_v63 = vmax.f32 %v6104_v38, %v6951_v59  ;;  %v7174_v0 = vmax.f32 %v7054_v29, %v7058_v57 }
 0x84e   : > { %20302 = vmatmul.mubr.msk.bf16.gmra.mrb[148].mxu0 %vm440_vm1, %v24218_v56  ;;  %v25798_v2 = vpack.c.bf16 %v7174_v0, %v7173_v52  ;;  %v7175_v3 = vmax.f32 %v7055_v35, %v7059_v63 }
 0x84f   : > { %20305 = vmatprep.mubr.msk.bf16.mxu0 %vm24641_vm0, %v29241_v1 }
 0x851   : > { %v6120_v4 = vpop.f32.mrb[44].mxu0  ;;  %v6952_v5 = vld [vmem:[#allocation2 + $0x99] sm:$0xff] }
 0x852   : > { %6734 = vst [vmem:[#allocation2 + $0xb0] sm:$0xff] %v6120_v4  ;;  %v20199_v6 = vpop.f32.mrb[45].mxu0  ;;  %v7060_v8 = vmax.f32 %v6107_v43, %v6952_v5 }
 0x853   : > { %v6123_v9 = vpop.f32.mrb[46].mxu0  ;;  %v6953_v10 = vld [vmem:[#allocation2 + $0xa1] sm:$0xff] }
 0x854   : > { %6735 = vst [vmem:[#allocation2 + $0xb8] sm:$0xff] %v6123_v9  ;;  %v20200_v12 = vpop.f32.mrb[47].mxu0  ;;  %v7061_v13 = vmax.f32 %v6112_v53, %v6953_v10  ;;  %v7176_v14 = vmax.f32 %v7056_v42, %v7060_v8 }
 0x856   : > { %20306 = vmatmul.mubr.msk.bf16.gmra.mrb[152].mxu0 %vm440_vm1, %v24219_v7  ;;  %v7177_v15 = vmax.f32 %v7057_v47, %v7061_v13  ;;  %v25804_v16 = vpack.c.bf16 %v7176_v14, %v7175_v3 }
 0x857   : > { %20309 = vmatprep.mubr.msk.bf16.mxu0 %vm24641_vm0, %v29241_v1 }
 0x859   : > { %v6128_v17 = vpop.f32.mrb[48].mxu0  ;;  %v6954_v18 = vld [vmem:[#allocation2 + $0xa9] sm:$0xff] }
 0x85a   : > { %6736 = vst [vmem:[#allocation2 + $0xc0] sm:$0xff] %v6128_v17  ;;  %v20203_v19 = vpop.f32.mrb[49].mxu0  ;;  %v7062_v21 = vmax.f32 %v6115_v58, %v6954_v18 }
 0x85b   : > { %v6131_v22 = vpop.f32.mrb[50].mxu0  ;;  %v6955_v24 = vld [vmem:[#allocation2 + $0xb1] sm:$0xff] }
 0x85c   : > { %6737 = vst [vmem:[#allocation2 + $0xc8] sm:$0xff] %v6131_v22  ;;  %v20204_v25 = vpop.f32.mrb[51].mxu0  ;;  %v7178_v26 = vmax.f32 %v7058_v57, %v7062_v21  ;;  %v7063_v27 = vmax.f32 %v6120_v4, %v6955_v24  ;;  %v24223_v57 = vld [vmem:[%s24699_s30 + $0x190] sm:$0xff]  }
 0x85e   : > { %20310 = vmatmul.mubr.msk.bf16.gmra.mrb[156].mxu0 %vm440_vm1, %v24220_v20  ;;  %v7397_v28 = vpack.c.bf16 %v7178_v26, %v7177_v15  ;;  %v7179_v29 = vmax.f32 %v7059_v63, %v7063_v27 }
 0x85f   : > { %20313 = vmatprep.mubr.msk.bf16.mxu0 %vm24641_vm0, %v29241_v1 }
 0x860   : > { %18417 = vmatprep.subr.bf16.mxu0 %v7397_v28 }
 0x861   : > { %v6136_v30 = vpop.f32.mrb[52].mxu0  ;;  %18418 = vmatpush3.bf16.msra.mxu0 %v7389_v48  ;;  %v6956_v31 = vld [vmem:[#allocation2 + $0xb9] sm:$0xff] }
 0x862   : > { %6738 = vst [vmem:[#allocation2 + $0xd0] sm:$0xff] %v6136_v30  ;;  %v20207_v32 = vpop.f32.mrb[53].mxu0  ;;  %v7064_v35 = vmax.f32 %v6123_v9, %v6956_v31 }
 0x863   : > { %v6139_v37 = vpop.f32.mrb[54].mxu0  ;;  %v6957_v38 = vld [vmem:[#allocation2 + $0xc1] sm:$0xff] }
 0x864   : > { %6739 = vst [vmem:[#allocation2 + $0xd8] sm:$0xff] %v6139_v37  ;;  %v20208_v39 = vpop.f32.mrb[55].mxu0  ;;  %v7180_v40 = vmax.f32 %v7060_v8, %v7064_v35  ;;  %v7065_v41 = vmax.f32 %v6128_v17, %v6957_v38  ;;  %v24224_v8 = vld [vmem:[%s24699_s30 + $0x198] sm:$0xff]  }
 0x866   : > { %20314 = vmatmul.mubr.msk.bf16.gmra.mrb[160].mxu0 %vm440_vm1, %v24221_v34  ;;  %v7398_v42 = vpack.c.bf16 %v7180_v40, %v7179_v29  ;;  %v7181_v43 = vmax.f32 %v7061_v13, %v7065_v41  ;;  %v24226_v34 = vld [vmem:[%s24699_s30 + $0x1a8] sm:$0xff]  }
 0x867   : > { %20317 = vmatprep.mubr.msk.bf16.mxu0 %vm24641_vm0, %v29241_v1 }
 0x868   : > { %18419 = vmatprep.subr.bf16.mxu0 %v7398_v42 }
 0x869   : > { %v6144_v33 = vpop.f32.mrb[56].mxu0  ;;  %18420 = vmatpush3.bf16.msra.mxu0 %v7390_v62  ;;  %v6958_v45 = vld [vmem:[#allocation2 + $0xc9] sm:$0xff] }
 0x86a   : > { %6740 = vst [vmem:[#allocation2 + $0xe0] sm:$0xff] %v6144_v33  ;;  %v20211_v48 = vpop.f32.mrb[57].mxu0  ;;  %v7066_v46 = vmax.f32 %v6131_v22, %v6958_v45 }
 0x86b   : > { %v6147_v47 = vpop.f32.mrb[58].mxu0  ;;  %v6959_v50 = vld [vmem:[#allocation2 + $0xd1] sm:$0xff] }
 0x86c   : > { %6741 = vst [vmem:[#allocation2 + $0xe8] sm:$0xff] %v6147_v47  ;;  %v20212_v52 = vpop.f32.mrb[59].mxu0  ;;  %v7182_v53 = vmax.f32 %v7062_v21, %v7066_v46  ;;  %v7067_v54 = vmax.f32 %v6136_v30, %v6959_v50  ;;  %v24225_v21 = vld [vmem:[%s24699_s30 + $0x1a0] sm:$0xff]   ;;  %v24227_v48 = vld [vmem:[%s24699_s30 + $0x1b0] sm:$0xff]  }
 0x86e   : > { %20318 = vmatmul.mubr.msk.bf16.gmra.mrb[164].mxu0 %vm440_vm1, %v24222_v44  ;;  %v7399_v55 = vpack.c.bf16 %v7182_v53, %v7181_v43  ;;  %v7183_v56 = vmax.f32 %v7063_v27, %v7067_v54 }
 0x86f   : > { %20321 = vmatprep.mubr.msk.bf16.mxu0 %vm24641_vm0, %v29241_v1 }
 0x870   : > { %18421 = vmatprep.subr.bf16.mxu0 %v7399_v55 }
 0x871   : > { %v6152_v49 = vpop.f32.mrb[60].mxu0  ;;  %18422 = vmatpush3.bf16.msra.mxu0 %v25774_v11  ;;  %v6960_v60 = vld [vmem:[#allocation2 + $0xd9] sm:$0xff] }
 0x872   : > { %6742 = vst [vmem:[#allocation2 + $0xf0] sm:$0xff] %v6152_v49  ;;  %v20215_v62 = vpop.f32.mrb[61].mxu0  ;;  %v7068_v58 = vmax.f32 %v6139_v37, %v6960_v60  ;;  %v24228_v60 = vld [vmem:[%s24699_s30 + $0x1b8] sm:$0xff]  }
 0x873   : > { %v6155_v59 = vpop.f32.mrb[62].mxu0  ;;  %v6961_v61 = vld [vmem:[#allocation2 + $0xe1] sm:$0xff] }
 0x874   : > { %6743 = vst [vmem:[#allocation2 + $0xf8] sm:$0xff] %v6155_v59  ;;  %v20216_v63 = vpop.f32.mrb[63].mxu0  ;;  %v7184_v0 = vmax.f32 %v7064_v35, %v7068_v58  ;;  %v7069_v3 = vmax.f32 %v6144_v33, %v6961_v61 }
 0x876   : > { %20322 = vmatmul.mubr.msk.bf16.gmra.mrb[168].mxu0 %vm440_vm1, %v24223_v57  ;;  %v7400_v4 = vpack.c.bf16 %v7184_v0, %v7183_v56  ;;  %v7185_v5 = vmax.f32 %v7065_v41, %v7069_v3 }
 0x877   : > { %20325 = vmatprep.mubr.msk.bf16.mxu0 %vm24641_vm0, %v29241_v1 }
 0x878   : > { %18423 = vmatprep.subr.bf16.mxu0 %v7400_v4 }
 0x879   : > { %v6160_v11 = vpop.f32.mrb[64].mxu0  ;;  %18424 = vmatpush3.bf16.msra.mxu0 %v25780_v23  ;;  %v6962_v6 = vld [vmem:[#allocation2 + $0xe9] sm:$0xff] }
 0x87a   : > { %6744 = vst [vmem:[#allocation2 + $0x100] sm:$0xff] %v6160_v11  ;;  %v20219_v7 = vpop.f32.mrb[65].mxu0  ;;  %v7070_v9 = vmax.f32 %v6147_v47, %v6962_v6 }
 0x87b   : > { %v6163_v10 = vpop.f32.mrb[66].mxu0  ;;  %v6963_v12 = vld [vmem:[#allocation2 + $0xf1] sm:$0xff] }
 0x87c   : > { %6745 = vst [vmem:[#allocation2 + $0x108] sm:$0xff] %v6163_v10  ;;  %v20220_v13 = vpop.f32.mrb[67].mxu0  ;;  %v7186_v14 = vmax.f32 %v7066_v46, %v7070_v9  ;;  %v7071_v15 = vmax.f32 %v6152_v49, %v6963_v12 }
 0x87e   : > { %20326 = vmatmul.mubr.msk.bf16.gmra.mrb[172].mxu0 %vm440_vm1, %v24224_v8  ;;  %v7401_v17 = vpack.c.bf16 %v7186_v14, %v7185_v5  ;;  %v7187_v18 = vmax.f32 %v7067_v54, %v7071_v15 }
 0x87f   : > { %20329 = vmatprep.mubr.msk.bf16.mxu0 %vm24641_vm0, %v29241_v1 }
 0x880   : > { %18425 = vmatprep.subr.bf16.mxu0 %v7401_v17 }
 0x881   : > { %v6168_v23 = vpop.f32.mrb[68].mxu0  ;;  %18426 = vmatpush3.bf16.msra.mxu0 %v25786_v36  ;;  %v6964_v19 = vld [vmem:[#allocation2 + $0xf9] sm:$0xff] }
 0x882   : > { %6746 = vst [vmem:[#allocation2 + $0x110] sm:$0xff] %v6168_v23  ;;  %v20223_v20 = vpop.f32.mrb[69].mxu0  ;;  %v7072_v22 = vmax.f32 %v6155_v59, %v6964_v19 }
 0x883   : > { %v6171_v24 = vpop.f32.mrb[70].mxu0  ;;  %v6965_v25 = vld [vmem:[#allocation2 + $0x101] sm:$0xff] }
 0x884   : > { %6747 = vst [vmem:[#allocation2 + $0x118] sm:$0xff] %v6171_v24  ;;  %v20224_v26 = vpop.f32.mrb[71].mxu0  ;;  %v7188_v27 = vmax.f32 %v7068_v58, %v7072_v22  ;;  %v7073_v28 = vmax.f32 %v6160_v11, %v6965_v25  ;;  %v24229_v11 = vld [vmem:[%s24699_s30 + $0x1c0] sm:$0xff]  }
 0x886   : > { %20330 = vmatmul.mubr.msk.bf16.gmra.mrb[176].mxu0 %vm440_vm1, %v24225_v21  ;;  %v7402_v29 = vpack.c.bf16 %v7188_v27, %v7187_v18  ;;  %v7189_v30 = vmax.f32 %v7069_v3, %v7073_v28 }
 0x887   : > { %20333 = vmatprep.mubr.msk.bf16.mxu0 %vm24641_vm0, %v29241_v1 }
 0x888   : > { %18427 = vmatprep.subr.bf16.mxu0 %v7402_v29 }
 0x889   : > { %v6176_v36 = vpop.f32.mrb[72].mxu0  ;;  %18428 = vmatpush3.bf16.msra.mxu0 %v25792_v51  ;;  %v6966_v31 = vld [vmem:[#allocation2 + $0x109] sm:$0xff] }
 0x88a   : > { %6748 = vst [vmem:[#allocation2 + $0x120] sm:$0xff] %v6176_v36  ;;  %v20227_v32 = vpop.f32.mrb[73].mxu0  ;;  %v7074_v35 = vmax.f32 %v6163_v10, %v6966_v31 }
 0x88b   : > { %v6179_v37 = vpop.f32.mrb[74].mxu0  ;;  %v6967_v38 = vld [vmem:[#allocation2 + $0x111] sm:$0xff] }
 0x88c   : > { %6749 = vst [vmem:[#allocation2 + $0x128] sm:$0xff] %v6179_v37  ;;  %v20228_v39 = vpop.f32.mrb[75].mxu0  ;;  %v7190_v40 = vmax.f32 %v7070_v9, %v7074_v35  ;;  %v7075_v41 = vmax.f32 %v6168_v23, %v6967_v38  ;;  %v24230_v23 = vld [vmem:[%s24699_s30 + $0x1c8] sm:$0xff]  }
 0x88e   : > { %20334 = vmatmul.mubr.msk.bf16.gmra.mrb[180].mxu0 %vm440_vm1, %v24226_v34  ;;  %v7403_v42 = vpack.c.bf16 %v7190_v40, %v7189_v30  ;;  %v7191_v43 = vmax.f32 %v7071_v15, %v7075_v41 }
 0x88f   : > { %20337 = vmatprep.mubr.msk.bf16.mxu0 %vm24641_vm0, %v29241_v1 }
 0x890   : > { %18429 = vmatprep.subr.bf16.mxu0 %v7403_v42 }
 0x891   : > { %v6184_v51 = vpop.f32.mrb[76].mxu0  ;;  %18430 = vmatpush3.bf16.msra.mxu0 %v25798_v2  ;;  %v6968_v33 = vld [vmem:[#allocation2 + $0x119] sm:$0xff] }
 0x892   : > { %6750 = vst [vmem:[#allocation2 + $0x130] sm:$0xff] %v6184_v51  ;;  %v20231_v45 = vpop.f32.mrb[77].mxu0  ;;  %v7076_v44 = vmax.f32 %v6171_v24, %v6968_v33 }
 0x893   : > { %v6187_v46 = vpop.f32.mrb[78].mxu0  ;;  %v6969_v47 = vld [vmem:[#allocation2 + $0x121] sm:$0xff] }
 0x894   : > { %6751 = vst [vmem:[#allocation2 + $0x138] sm:$0xff] %v6187_v46  ;;  %v20232_v50 = vpop.f32.mrb[79].mxu0  ;;  %v7192_v52 = vmax.f32 %v7072_v22, %v7076_v44  ;;  %v7077_v53 = vmax.f32 %v6176_v36, %v6969_v47  ;;  %v24231_v36 = vld [vmem:[%s24699_s30 + $0x1d0] sm:$0xff]  }
 0x896   : > { %20338 = vmatmul.mubr.msk.bf16.gmra.mrb[184].mxu0 %vm440_vm1, %v24227_v48  ;;  %v7404_v54 = vpack.c.bf16 %v7192_v52, %v7191_v43  ;;  %v7193_v55 = vmax.f32 %v7073_v28, %v7077_v53 }
 0x897   : > { %20341 = vmatprep.mubr.msk.bf16.mxu0 %vm24641_vm0, %v29241_v1 }
 0x898   : > { %18431 = vmatprep.subr.bf16.mxu0 %v7404_v54 }
 0x899   : > { %v6192_v2 = vpop.f32.mrb[80].mxu0  ;;  %18432 = vmatpush3.bf16.msra.mxu0 %v25804_v16  ;;  %v6970_v56 = vld [vmem:[#allocation2 + $0x129] sm:$0xff] }
 0x89a   : > { %6752 = vst [vmem:[#allocation2 + $0x140] sm:$0xff] %v6192_v2  ;;  %v20235_v49 = vpop.f32.mrb[81].mxu0  ;;  %v7078_v62 = vmax.f32 %v6179_v37, %v6970_v56 }
 0x89b   : > { %v6195_v57 = vpop.f32.mrb[82].mxu0  ;;  %v6971_v58 = vld [vmem:[#allocation2 + $0x131] sm:$0xff] }
 0x89c   : > { %6753 = vst [vmem:[#allocation2 + $0x148] sm:$0xff] %v6195_v57  ;;  %v20236_v59 = vpop.f32.mrb[83].mxu0  ;;  %v7194_v61 = vmax.f32 %v7074_v35, %v7078_v62  ;;  %v7079_v63 = vmax.f32 %v6184_v51, %v6971_v58  ;;  %v24232_v51 = vld [vmem:[%s24699_s30 + $0x1d8] sm:$0xff]  }
 0x89e   : > { %20342 = vmatmul.mubr.msk.bf16.gmra.mrb[188].mxu0 %vm440_vm1, %v24228_v60  ;;  %v25854_v0 = vpack.c.bf16 %v7194_v61, %v7193_v55  ;;  %v7195_v3 = vmax.f32 %v7075_v41, %v7079_v63 }
 0x89f   : > { %20345 = vmatprep.mubr.msk.bf16.mxu0 %vm24641_vm0, %v29241_v1 }
 0x8a1   : > { %v6200_v16 = vpop.f32.mrb[84].mxu0  ;;  %v6972_v4 = vld [vmem:[#allocation2 + $0x139] sm:$0xff] }
 0x8a2   : > { %6754 = vst [vmem:[#allocation2 + $0x150] sm:$0xff] %v6200_v16  ;;  %v20239_v5 = vpop.f32.mrb[85].mxu0  ;;  %v7080_v6 = vmax.f32 %v6187_v46, %v6972_v4  ;;  %v24234_v4 = vld [vmem:[%s24699_s30 + $0x1e8] sm:$0xff]  }
 0x8a3   : > { %v6203_v7 = vpop.f32.mrb[86].mxu0  ;;  %v6973_v8 = vld [vmem:[#allocation2 + $0x141] sm:$0xff] }
 0x8a4   : > { %6755 = vst [vmem:[#allocation2 + $0x158] sm:$0xff] %v6203_v7  ;;  %v20240_v9 = vpop.f32.mrb[87].mxu0  ;;  %v7196_v10 = vmax.f32 %v7076_v44, %v7080_v6  ;;  %v7081_v12 = vmax.f32 %v6192_v2, %v6973_v8  ;;  %v24233_v2 = vld [vmem:[%s24699_s30 + $0x1e0] sm:$0xff]  }
 0x8a6   : > { %20346 = vmatmul.mubr.msk.bf16.gmra.mrb[192].mxu0 %vm440_vm1, %v24229_v11  ;;  %v25860_v13 = vpack.c.bf16 %v7196_v10, %v7195_v3  ;;  %v7197_v14 = vmax.f32 %v7077_v53, %v7081_v12 }
 0x8a7   : > { %20349 = vmatprep.mubr.msk.bf16.mxu0 %vm24641_vm0, %v29241_v1 }
 0x8a9   : > { %v6208_v15 = vpop.f32.mrb[88].mxu0  ;;  %v6974_v17 = vld [vmem:[#allocation2 + $0x149] sm:$0xff] }
 0x8aa   : > { %6756 = vst [vmem:[#allocation2 + $0x160] sm:$0xff] %v6208_v15  ;;  %v20243_v18 = vpop.f32.mrb[89].mxu0  ;;  %v7082_v19 = vmax.f32 %v6195_v57, %v6974_v17 }
 0x8ab   : > { %v6211_v20 = vpop.f32.mrb[90].mxu0  ;;  %v6975_v21 = vld [vmem:[#allocation2 + $0x151] sm:$0xff] }
 0x8ac   : > { %6757 = vst [vmem:[#allocation2 + $0x168] sm:$0xff] %v6211_v20  ;;  %v20244_v22 = vpop.f32.mrb[91].mxu0  ;;  %v7198_v24 = vmax.f32 %v7078_v62, %v7082_v19  ;;  %v7083_v25 = vmax.f32 %v6200_v16, %v6975_v21  ;;  %v24235_v18 = vld [vmem:[%s24699_s30 + $0x1f0] sm:$0xff]  }
 0x8ae   : > { %20350 = vmatmul.mubr.msk.bf16.gmra.mrb[196].mxu0 %vm440_vm1, %v24230_v23  ;;  %v25866_v26 = vpack.c.bf16 %v7198_v24, %v7197_v14  ;;  %v7199_v27 = vmax.f32 %v7079_v63, %v7083_v25 }
 0x8af   : > { %20353 = vmatprep.mubr.msk.bf16.mxu0 %vm24641_vm0, %v29241_v1 }
 0x8b1   : > { %v6216_v28 = vpop.f32.mrb[92].mxu0  ;;  %v6976_v29 = vld [vmem:[#allocation2 + $0x159] sm:$0xff] }
 0x8b2   : > { %6758 = vst [vmem:[#allocation2 + $0x170] sm:$0xff] %v6216_v28  ;;  %v20247_v30 = vpop.f32.mrb[93].mxu0  ;;  %v7084_v31 = vmax.f32 %v6203_v7, %v6976_v29 }
 0x8b3   : > { %v6219_v32 = vpop.f32.mrb[94].mxu0  ;;  %v6977_v34 = vld [vmem:[#allocation2 + $0x161] sm:$0xff] }
 0x8b4   : > { %6759 = vst [vmem:[#allocation2 + $0x178] sm:$0xff] %v6219_v32  ;;  %v20248_v35 = vpop.f32.mrb[95].mxu0  ;;  %v7200_v37 = vmax.f32 %v7080_v6, %v7084_v31  ;;  %v7085_v38 = vmax.f32 %v6208_v15, %v6977_v34 }
 0x8b6   : > { %20354 = vmatmul.mubr.msk.bf16.gmra.mrb[200].mxu0 %vm440_vm1, %v24231_v36  ;;  %v25872_v39 = vpack.c.bf16 %v7200_v37, %v7199_v27  ;;  %v7201_v40 = vmax.f32 %v7081_v12, %v7085_v38  ;;  %v24236_v36 = vld [vmem:[%s24699_s30 + $0x1f8] sm:$0xff]  }
 0x8b7   : > { %20357 = vmatprep.mubr.msk.bf16.mxu0 %vm24641_vm0, %v29241_v1 }
 0x8b9   : > { %v6224_v41 = vpop.f32.mrb[96].mxu0  ;;  %v6978_v42 = vld [vmem:[#allocation2 + $0x169] sm:$0xff] }
 0x8ba   : > { %6760 = vst [vmem:[#allocation2 + $0x180] sm:$0xff] %v6224_v41  ;;  %v20251_v43 = vpop.f32.mrb[97].mxu0  ;;  %v7086_v33 = vmax.f32 %v6211_v20, %v6978_v42 }
 0x8bb   : > { %v6227_v45 = vpop.f32.mrb[98].mxu0  ;;  %v6979_v48 = vld [vmem:[#allocation2 + $0x171] sm:$0xff] }
 0x8bc   : > { %6761 = vst [vmem:[#allocation2 + $0x188] sm:$0xff] %v6227_v45  ;;  %v20252_v44 = vpop.f32.mrb[99].mxu0  ;;  %v7202_v46 = vmax.f32 %v7082_v19, %v7086_v33  ;;  %v7087_v47 = vmax.f32 %v6216_v28, %v6979_v48 }
 0x8be   : > { %20358 = vmatmul.mubr.msk.bf16.gmra.mrb[204].mxu0 %vm440_vm1, %v24232_v51  ;;  %v25878_v50 = vpack.c.bf16 %v7202_v46, %v7201_v40  ;;  %v7203_v52 = vmax.f32 %v7083_v25, %v7087_v47  ;;  %v24243_v40 = vld [vmem:[%s29224_s3 + $0x274] ss:$28 sps:$4 sm:$0xff]   ;;  %v24240_v46 = vld [vmem:[%s29224_s3 + $0x4] ss:$28 sps:$4 sm:$0xff]  }
 0x8bf   : > { %20361 = vmatprep.mubr.msk.bf16.mxu0 %vm24641_vm0, %v29241_v1  ;;  %8294 = vmatprep.mubr.bf16.mxu1 %v24243_v40  ;;  %v24270_v40 = vld [vmem:[%s29224_s3 + $0xa8] ss:$28 sps:$4 sm:$0xff]  }
 0x8c1   : > { %v6232_v53 = vpop.f32.mrb[100].mxu0  ;;  %v6980_v54 = vld [vmem:[#allocation2 + $0x179] sm:$0xff] }
 0x8c2   : > { %6762 = vst [vmem:[#allocation2 + $0x190] sm:$0xff] %v6232_v53  ;;  %v20255_v55 = vpop.f32.mrb[101].mxu0  ;;  %v7088_v56 = vmax.f32 %v6219_v32, %v6980_v54 }
 0x8c3   : > { %v6235_v49 = vpop.f32.mrb[102].mxu0  ;;  %v6981_v60 = vld [vmem:[#allocation2 + $0x181] sm:$0xff] }
 0x8c4   : > { %6763 = vst [vmem:[#allocation2 + $0x198] sm:$0xff] %v6235_v49  ;;  %v20256_v62 = vpop.f32.mrb[103].mxu0  ;;  %v7089_v57 = vmax.f32 %v6224_v41, %v6981_v60  ;;  %v7204_v58 = vmax.f32 %v7084_v31, %v7088_v56 }
 0x8c5   : > { %v24238_v62 = vld [vmem:[%s29224_s3] ss:$28 sps:$4 sm:$0xff]  }
 0x8c6   : > { %20362 = vmatmul.mubr.msk.bf16.gmra.mrb[208].mxu0 %vm440_vm1, %v24233_v2  ;;  %v25884_v59 = vpack.c.bf16 %v7204_v58, %v7203_v52  ;;  %v7205_v61 = vmax.f32 %v7085_v38, %v7089_v57 }
 0x8c7   : > { %20365 = vmatprep.mubr.msk.bf16.mxu0 %vm24641_vm0, %v29241_v1 }
 0x8c9   : > { %v6240_v63 = vpop.f32.mrb[104].mxu0  ;;  %v6982_v3 = vld [vmem:[#allocation2 + $0x189] sm:$0xff] }
 0x8ca   : > { %6764 = vst [vmem:[#allocation2 + $0x1a0] sm:$0xff] %v6240_v63  ;;  %v20259_v16 = vpop.f32.mrb[105].mxu0  ;;  %v7090_v5 = vmax.f32 %v6227_v45, %v6982_v3  ;;  %v24237_v45 = vld [vmem:[%s24699_s30 + $0x200] ss:$0 sps:$4 sm:$0xff]  }
 0x8cb   : > { %v6243_v11 = vpop.f32.mrb[106].mxu0  ;;  %v6983_v6 = vld [vmem:[#allocation2 + $0x191] sm:$0xff] }
 0x8cc   : > { %6765 = vst [vmem:[#allocation2 + $0x1a8] sm:$0xff] %v6243_v11  ;;  %v20260_v7 = vpop.f32.mrb[107].mxu0  ;;  %v7091_v8 = vmax.f32 %v6232_v53, %v6983_v6  ;;  %v7206_v9 = vmax.f32 %v7086_v33, %v7090_v5 }
 0x8ce   : > { %20366 = vmatmul.mubr.msk.bf16.gmra.mrb[212].mxu0 %vm440_vm1, %v24234_v4  ;;  %v25890_v10 = vpack.c.bf16 %v7206_v9, %v7205_v61  ;;  %v7207_v12 = vmax.f32 %v7087_v47, %v7091_v8 }
 0x8cf   : > { %20369 = vmatprep.mubr.msk.bf16.mxu0 %vm24641_vm0, %v29241_v1 }
 0x8d1   : > { %v6248_v14 = vpop.f32.mrb[108].mxu0  ;;  %v6984_v15 = vld [vmem:[#allocation2 + $0x199] sm:$0xff] }
 0x8d2   : > { %6766 = vst [vmem:[#allocation2 + $0x1b0] sm:$0xff] %v6248_v14  ;;  %v20263_v17 = vpop.f32.mrb[109].mxu0  ;;  %v7092_v23 = vmax.f32 %v6235_v49, %v6984_v15 }
 0x8d3   : > { %v6251_v19 = vpop.f32.mrb[110].mxu0  ;;  %v6985_v20 = vld [vmem:[#allocation2 + $0x1a1] sm:$0xff] }
 0x8d4   : > { %6767 = vst [vmem:[#allocation2 + $0x1b8] sm:$0xff] %v6251_v19  ;;  %v20264_v21 = vpop.f32.mrb[111].mxu0  ;;  %v7093_v22 = vmax.f32 %v6240_v63, %v6985_v20  ;;  %v7208_v24 = vmax.f32 %v7088_v56, %v7092_v23  ;;  %v24256_v63 = vld [vmem:[%s29224_s3 + $0x3c] ss:$28 sps:$4 sm:$0xff]  }
 0x8d6   : > { %20370 = vmatmul.mubr.msk.bf16.gmra.mrb[216].mxu0 %vm440_vm1, %v24235_v18  ;;  %v7209_v25 = vmax.f32 %v7089_v57, %v7093_v22  ;;  %v25896_v27 = vpack.c.bf16 %v7208_v24, %v7207_v12  ;;  %v24258_v12 = vld [vmem:[%s29224_s3 + $0x38] ss:$28 sps:$4 sm:$0xff]  }
 0x8d7   : > { %20373 = vmatprep.mubr.msk.bf16.mxu0 %vm24641_vm0, %v29241_v1 }
 0x8d9   : > { %v6256_v28 = vpop.f32.mrb[112].mxu0  ;;  %v6986_v29 = vld [vmem:[#allocation2 + $0x1a9] sm:$0xff] }
 0x8da   : > { %6768 = vst [vmem:[#allocation2 + $0x1c0] sm:$0xff] %v6256_v28  ;;  %v20267_v30 = vpop.f32.mrb[113].mxu0  ;;  %v7094_v31 = vmax.f32 %v6243_v11, %v6986_v29 }
 0x8db   : > { %v6259_v32 = vpop.f32.mrb[114].mxu0  ;;  %v6987_v34 = vld [vmem:[#allocation2 + $0x1b1] sm:$0xff] }
 0x8dc   : > { %6769 = vst [vmem:[#allocation2 + $0x1c8] sm:$0xff] %v6259_v32  ;;  %v20268_v35 = vpop.f32.mrb[115].mxu0  ;;  %v7210_v37 = vmax.f32 %v7090_v5, %v7094_v31  ;;  %v25901_v38 = vmax.f32 %v6248_v14, %v6987_v34 }
 0x8de   : > { %20374 = vmatmul.mubr.msk.bf16.gmra.mrb[220].mxu0 %vm440_vm1, %v24236_v36  ;;  %v7413_v41 = vpack.c.bf16 %v7210_v37, %v7209_v25  ;;  %v7211_v42 = vmax.f32 %v7091_v8, %v25901_v38  ;;  %v24264_v25 = vld [vmem:[%s29224_s3 + $0x70] ss:$28 sps:$4 sm:$0xff]  }
 0x8df   : > { %20377 = vmatprep.mubr.msk.bf16.mxu0 %vm24641_vm0, %v29241_v1 }
 0x8e0   : > { %18523 = vmatprep.subr.bf16.mxu0 %v7413_v41  ;;  %21953 = vmatprep.subr.bf16.mxu1 %v7413_v41 }
 0x8e1   : > { %v6264_v43 = vpop.f32.mrb[116].mxu0  ;;  %21961 = vmatpush3.bf16.msra.mxu1 %v25854_v0  ;;  %v6988_v51 = vld [vmem:[#allocation2 + $0x1b9] sm:$0xff] }
 0x8e2   : > { %6770 = vst [vmem:[#allocation2 + $0x1d0] sm:$0xff] %v6264_v43  ;;  %v20271_v33 = vpop.f32.mrb[117].mxu0  ;;  %v7096_v48 = vmax.f32 %v6251_v19, %v6988_v51 }
 0x8e3   : > { %v6267_v44 = vpop.f32.mrb[118].mxu0  ;;  %v6989_v47 = vld [vmem:[#allocation2 + $0x1c1] sm:$0xff] }
 0x8e4   : > { %6771 = vst [vmem:[#allocation2 + $0x1d8] sm:$0xff] %v6267_v44  ;;  %v20272_v52 = vpop.f32.mrb[119].mxu0  ;;  %v7212_v53 = vmax.f32 %v7092_v23, %v7096_v48  ;;  %v25915_v54 = vmax.f32 %v6256_v28, %v6989_v47 }
 0x8e6   : > { %20378 = vmatmul.mubr.msk.bf16.gmra.mrb[224].mxu0 %vm440_vm1, %v24237_v45  ;;  %v7414_v55 = vpack.c.bf16 %v7212_v53, %v7211_v42  ;;  %v7213_v2 = vmax.f32 %v7093_v22, %v25915_v54  ;;  %v24276_v53 = vld [vmem:[%s29224_s3 + $0xe0] ss:$28 sps:$4 sm:$0xff]  }
 0x8e7   : > { %8053 = vmatprep.mubr.bf16.mxu0 %v24240_v46 }
 0x8e8   : > { %21954 = vmatprep.subr.bf16.mxu1 %v7414_v55 }
 0x8e9   : > { %v6272_v56 = vpop.f32.mrb[120].mxu0  ;;  %21962 = vmatpush3.bf16.msra.mxu1 %v25860_v13  ;;  %v6990_v49 = vld [vmem:[#allocation2 + $0x1c9] sm:$0xff] }
 0x8ea   : > { %6772 = vst [vmem:[#allocation2 + $0x1e0] sm:$0xff] %v6272_v56  ;;  %v20275_v60 = vpop.f32.mrb[121].mxu0  ;;  %v7098_v57 = vmax.f32 %v6259_v32, %v6990_v49 }
 0x8eb   : > { %v6275_v58 = vpop.f32.mrb[122].mxu0  ;;  %v6991_v61 = vld [vmem:[#allocation2 + $0x1d1] sm:$0xff] }
 0x8ec   : > { %6773 = vst [vmem:[#allocation2 + $0x1e8] sm:$0xff] %v6275_v58  ;;  %v20276_v3 = vpop.f32.mrb[123].mxu0  ;;  %v7214_v16 = vmax.f32 %v7094_v31, %v7098_v57  ;;  %v25926_v4 = vmax.f32 %v6264_v43, %v6991_v61  ;;  %v24273_v43 = vld [vmem:[%s29224_s3 + $0xe4] ss:$28 sps:$4 sm:$0xff]  }
 0x8ed   : > { %v24282_v3 = vld [vmem:[%s29224_s3 + $0x118] ss:$28 sps:$4 sm:$0xff]  }
 0x8ee   : > { %8054 = vmatmul.mubr.bf16.vlgmr.msra.gmra.mrb[228].mxu0 %v24238_v62  ;;  %v7415_v5 = vpack.c.bf16 %v7214_v16, %v7213_v2  ;;  %v7215_v11 = vmax.f32 %v25901_v38, %v25926_v4  ;;  %v24279_v2 = vld [vmem:[%s29224_s3 + $0x11c] ss:$28 sps:$4 sm:$0xff]  }
 0x8ef   : > { %18524 = vmatpush3.bf16.msra.mxu0 %v25854_v0  ;;  %8061 = vmatprep.mubr.bf16.mxu0 %v24256_v63  ;;  %v24261_v0 = vld [vmem:[%s29224_s3 + $0x74] ss:$28 sps:$4 sm:$0xff]  }
 0x8f0   : > { %18525 = vmatprep.subr.bf16.mxu0 %v7414_v55  ;;  %21955 = vmatprep.subr.bf16.mxu1 %v7415_v5 }
 0x8f1   : > { %v6280_v6 = vpop.f32.mrb[124].mxu0  ;;  %21963 = vmatpush3.bf16.msra.mxu1 %v25866_v26  ;;  %v6992_v7 = vld [vmem:[#allocation2 + $0x1d9] sm:$0xff] }
 0x8f2   : > { %6774 = vst [vmem:[#allocation2 + $0x1f0] sm:$0xff] %v6280_v6  ;;  %v20279_v8 = vpop.f32.mrb[125].mxu0  ;;  %v7100_v9 = vmax.f32 %v6267_v44, %v6992_v7 }
 0x8f3   : > { %18526 = vmatpush3.bf16.msra.mxu0 %v25860_v13  ;;  %v6283_v14 = vpop.f32.mrb[126].mxu0  ;;  %v6993_v15 = vld [vmem:[#allocation2 + $0x1e1] sm:$0xff] }
 0x8f4   : > { %6775 = vst [vmem:[#allocation2 + $0x1f8] sm:$0xff] %v6283_v14  ;;  %18527 = vmatprep.subr.bf16.mxu0 %v7415_v5  ;;  %v20280_v17 = vpop.f32.mrb[127].mxu0  ;;  %v7216_v18 = vmax.f32 %v7096_v48, %v7100_v9  ;;  %v25939_v23 = vmax.f32 %v6272_v56, %v6993_v15  ;;  %v24285_v5 = vld [vmem:[%s29224_s3 + $0x154] ss:$28 sps:$4 sm:$0xff]   ;;  %v24244_v15 = vld [vmem:[%s29224_s3 + $0x2ac] ss:$28 sps:$4 sm:$0xff]  }
 0x8f6   : > { %v7416_v19 = vpack.c.bf16 %v7216_v18, %v7215_v11  ;;  %v7217_v20 = vmax.f32 %v25915_v54, %v25939_v23  ;;  %8062 = vmatmul.mubr.bf16.gmra.mrb[232].mxu0 %v24258_v12  ;;  %v24288_v18 = vld [vmem:[%s29224_s3 + $0x150] ss:$28 sps:$4 sm:$0xff]  }
 0x8f7   : > { %18528 = vmatpush3.bf16.msra.mxu0 %v25866_v26  ;;  %8069 = vmatprep.mubr.bf16.mxu0 %v24261_v0  ;;  %v24267_v26 = vld [vmem:[%s29224_s3 + $0xac] ss:$28 sps:$4 sm:$0xff]  }
 0x8f8   : > { %18529 = vmatprep.subr.bf16.mxu0 %v7416_v19  ;;  %21956 = vmatprep.subr.bf16.mxu1 %v7416_v19 }
 0x8f9   : > { %v6288_v13 = vpop.f32.mrb[128].mxu0  ;;  %21964 = vmatpush3.bf16.msra.mxu1 %v25872_v39  ;;  %v6994_v21 = vld [vmem:[#allocation2 + $0x1e9] sm:$0xff] }
 0x8fa   : > { %6776 = vst [vmem:[#allocation2 + $0x200] sm:$0xff] %v6288_v13  ;;  %v20283_v22 = vpop.f32.mrb[129].mxu0  ;;  %v7102_v24 = vmax.f32 %v6275_v58, %v6994_v21 }
 0x8fb   : > { %18530 = vmatpush3.bf16.msra.mxu0 %v25872_v39  ;;  %v6291_v28 = vpop.f32.mrb[130].mxu0  ;;  %v6995_v29 = vld [vmem:[#allocation2 + $0x1f1] sm:$0xff] }
 0x8fc   : > { %6777 = vst [vmem:[#allocation2 + $0x208] sm:$0xff] %v6291_v28  ;;  %v20284_v30 = vpop.f32.mrb[131].mxu0  ;;  %v7218_v36 = vmax.f32 %v7098_v57, %v7102_v24  ;;  %v25952_v31 = vmax.f32 %v6280_v6, %v6995_v29 }
 0x8fe   : > { %v7417_v32 = vpack.c.bf16 %v7218_v36, %v7217_v20  ;;  %v7219_v34 = vmax.f32 %v25926_v4, %v25952_v31  ;;  %8070 = vmatmul.mubr.bf16.gmra.mrb[236].mxu0 %v24264_v25  ;;  %v24293_v20 = vld [vmem:[%s29224_s3 + $0x18c] ss:$28 sps:$4 sm:$0xff]  }
 0x8ff   : > { %8077 = vmatprep.mubr.bf16.mxu0 %v24267_v26  ;;  %v24246_v25 = vld [vmem:[%s29224_s3 + $0x2a8] ss:$28 sps:$4 sm:$0xff]  }
 0x900   : > { %18531 = vmatprep.subr.bf16.mxu0 %v7417_v32  ;;  %21957 = vmatprep.subr.bf16.mxu1 %v7417_v32  ;;  %v24247_v26 = vld [vmem:[%s29224_s3 + $0x2e4] ss:$28 sps:$4 sm:$0xff]  }
 0x901   : > { %v6296_v39 = vpop.f32.mrb[132].mxu0  ;;  %18532 = vmatpush3.bf16.msra.mxu0 %v25878_v50  ;;  %21965 = vmatpush3.bf16.msra.mxu1 %v25878_v50  ;;  %v6996_v35 = vld [vmem:[#allocation2 + $0x1f9] sm:$0xff] }
 0x902   : > { %6778 = vst [vmem:[#allocation2 + $0x210] sm:$0xff] %v6296_v39  ;;  %v20287_v37 = vpop.f32.mrb[133].mxu0  ;;  %v7104_v38 = vmax.f32 %v6283_v14, %v6996_v35 }
 0x903   : > { %v6299_v41 = vpop.f32.mrb[134].mxu0  ;;  %v6997_v42 = vld [vmem:[#allocation2 + $0x201] sm:$0xff] }
 0x904   : > { %6779 = vst [vmem:[#allocation2 + $0x218] sm:$0xff] %v6299_v41  ;;  %v20288_v51 = vpop.f32.mrb[135].mxu0  ;;  %v7220_v33 = vmax.f32 %v7100_v9, %v7104_v38  ;;  %v25964_v45 = vmax.f32 %v6288_v13, %v6997_v42  ;;  %v24241_v9 = vld [vmem:[%s29224_s3 + $0x270] ss:$28 sps:$4 sm:$0xff]   ;;  %v24249_v42 = vld [vmem:[%s29224_s3 + $0x2e0] ss:$28 sps:$4 sm:$0xff]  }
 0x906   : > { %v7418_v50 = vpack.c.bf16 %v7220_v33, %v7219_v34  ;;  %v7221_v48 = vmax.f32 %v25939_v23, %v25964_v45  ;;  %8078 = vmatmul.mubr.bf16.gmra.mrb[240].mxu0 %v24270_v40  ;;  %v24250_v33 = vld [vmem:[%s29224_s3 + $0x31c] ss:$28 sps:$4 sm:$0xff]  }
 0x907   : > { %8085 = vmatprep.mubr.bf16.mxu0 %v24273_v43 }
 0x908   : > { %18533 = vmatprep.subr.bf16.mxu0 %v7418_v50  ;;  %21958 = vmatprep.subr.bf16.mxu1 %v7418_v50 }
 0x909   : > { %v6304_v44 = vpop.f32.mrb[136].mxu0  ;;  %18534 = vmatpush3.bf16.msra.mxu0 %v25884_v59  ;;  %21966 = vmatpush3.bf16.msra.mxu1 %v25884_v59  ;;  %v6998_v46 = vld [vmem:[#allocation2 + $0x209] sm:$0xff] }
 0x90a   : > { %6780 = vst [vmem:[#allocation2 + $0x220] sm:$0xff] %v6304_v44  ;;  %v20291_v47 = vpop.f32.mrb[137].mxu0  ;;  %v7106_v52 = vmax.f32 %v6291_v28, %v6998_v46 }
 0x90b   : > { %v6307_v54 = vpop.f32.mrb[138].mxu0  ;;  %v6999_v55 = vld [vmem:[#allocation2 + $0x211] sm:$0xff] }
 0x90c   : > { %6781 = vst [vmem:[#allocation2 + $0x228] sm:$0xff] %v6307_v54  ;;  %v20292_v56 = vpop.f32.mrb[139].mxu0  ;;  %v7222_v49 = vmax.f32 %v7102_v24, %v7106_v52  ;;  %v25976_v60 = vmax.f32 %v6296_v39, %v6999_v55  ;;  %v24299_v39 = vld [vmem:[%s29224_s3 + $0x1c4] ss:$28 sps:$4 sm:$0xff]   ;;  %v24305_v47 = vld [vmem:[%s29224_s3 + $0x1fc] ss:$28 sps:$4 sm:$0xff]  }
 0x90d   : > { %v24252_v56 = vld [vmem:[%s29224_s3 + $0x318] ss:$28 sps:$4 sm:$0xff]  }
 0x90e   : > { %v7419_v59 = vpack.c.bf16 %v7222_v49, %v7221_v48  ;;  %v7223_v62 = vmax.f32 %v25952_v31, %v25976_v60  ;;  %8086 = vmatmul.mubr.bf16.gmra.mrb[244].mxu0 %v24276_v53  ;;  %v24291_v31 = vld [vmem:[%s29224_s3 + $0x188] ss:$28 sps:$4 sm:$0xff]   ;;  %v24297_v48 = vld [vmem:[%s29224_s3 + $0x1c0] ss:$28 sps:$4 sm:$0xff]  }
 0x90f   : > { %8093 = vmatprep.mubr.bf16.mxu0 %v24279_v2 }
 0x910   : > { %18535 = vmatprep.subr.bf16.mxu0 %v7419_v59  ;;  %21959 = vmatprep.subr.bf16.mxu1 %v7419_v59  ;;  %v24255_v59 = vld [vmem:[%s29224_s3 + $0x14] ss:$28 sps:$4 sm:$0xff]  }
 0x911   : > { %v6312_v57 = vpop.f32.mrb[140].mxu0  ;;  %18536 = vmatpush3.bf16.msra.mxu0 %v25890_v10  ;;  %21967 = vmatpush3.bf16.msra.mxu1 %v25890_v10  ;;  %v7000_v58 = vld [vmem:[#allocation2 + $0x219] sm:$0xff] }
 0x912   : > { %6782 = vst [vmem:[#allocation2 + $0x230] sm:$0xff] %v6312_v57  ;;  %v20295_v61 = vpop.f32.mrb[141].mxu0  ;;  %v7108_v63 = vmax.f32 %v6299_v41, %v7000_v58  ;;  %v24303_v58 = vld [vmem:[%s29224_s3 + $0x1f8] ss:$28 sps:$4 sm:$0xff]  }
 0x913   : > { %v6315_v16 = vpop.f32.mrb[142].mxu0  ;;  %v7001_v4 = vld [vmem:[#allocation2 + $0x221] sm:$0xff] }
 0x914   : > { %6783 = vst [vmem:[#allocation2 + $0x238] sm:$0xff] %v6315_v16  ;;  %v20296_v11 = vpop.f32.mrb[143].mxu0  ;;  %v7224_v6 = vmax.f32 %v7104_v38, %v7108_v63  ;;  %v25988_v7 = vmax.f32 %v6304_v44, %v7001_v4 }
 0x916   : > { %v7420_v10 = vpack.c.bf16 %v7224_v6, %v7223_v62  ;;  %v7225_v8 = vmax.f32 %v25964_v45, %v25988_v7  ;;  %8094 = vmatmul.mubr.bf16.gmra.mrb[248].mxu0 %v24282_v3  ;;  %v24311_v3 = vld [vmem:[%s29224_s3 + $0x234] ss:$28 sps:$4 sm:$0xff]  }
 0x917   : > { %8101 = vmatprep.mubr.bf16.mxu0 %v24285_v5 }
 0x918   : > { %18537 = vmatprep.subr.bf16.mxu0 %v7420_v10  ;;  %21960 = vmatprep.subr.bf16.mxu1 %v7420_v10 }
 0x919   : > { %v6320_v12 = vpop.f32.mrb[144].mxu0  ;;  %18538 = vmatpush3.bf16.msra.mxu0 %v25896_v27  ;;  %21968 = vmatpush3.bf16.msra.mxu1 %v25896_v27  ;;  %v7002_v14 = vld [vmem:[#allocation2 + $0x229] sm:$0xff] }
 0x91a   : > { %6784 = vst [vmem:[#allocation2 + $0x240] sm:$0xff] %v6320_v12  ;;  %v20299_v0 = vpop.f32.mrb[145].mxu0  ;;  %v7110_v17 = vmax.f32 %v6307_v54, %v7002_v14 }
 0x91b   : > { %v6323_v23 = vpop.f32.mrb[146].mxu0  ;;  %v7003_v19 = vld [vmem:[#allocation2 + $0x231] sm:$0xff]  ;;  %v24317_v0 = vld [vmem:[%s29224_s3 + $0x26c] ss:$28 sps:$4 sm:$0xff]  }
 0x91c   : > { %6785 = vst [vmem:[#allocation2 + $0x248] sm:$0xff] %v6323_v23  ;;  %v20300_v27 = vpop.f32.mrb[147].mxu0  ;;  %8295 = vmatmul.mubr.bf16.vlgmr.msra.gmra.mrb[0].mxu1 %v24241_v9  ;;  %v7226_v13 = vmax.f32 %v7106_v52, %v7110_v17  ;;  %v26006_v21 = vmax.f32 %v6312_v57, %v7003_v19 }
 0x91d   : > { %8302 = vmatprep.mubr.bf16.mxu1 %v24244_v15 }
 0x91e   : > { %v26008_v22 = vpack.c.bf16 %v7226_v13, %v7225_v8  ;;  %v7227_v24 = vmax.f32 %v25976_v60, %v26006_v21  ;;  %8102 = vmatmul.mubr.bf16.gmra.mrb[252].mxu0 %v24288_v18 }
 0x91f   : > { %8109 = vmatprep.mubr.bf16.mxu0 %v24293_v20 }
 0x921   : > { %v6328_v28 = vpop.f32.mrb[148].mxu0  ;;  %v7004_v29 = vld [vmem:[#allocation2 + $0x239] sm:$0xff] }
 0x922   : > { %6786 = vst [vmem:[#allocation2 + $0x250] sm:$0xff] %v6328_v28  ;;  %v20303_v30 = vpop.f32.mrb[149].mxu0  ;;  %v7112_v36 = vmax.f32 %v6315_v16, %v7004_v29 }
 0x923   : > { %v6331_v32 = vpop.f32.mrb[150].mxu0  ;;  %v7005_v34 = vld [vmem:[#allocation2 + $0x241] sm:$0xff] }
 0x924   : > { %6787 = vst [vmem:[#allocation2 + $0x258] sm:$0xff] %v6331_v32  ;;  %v20304_v35 = vpop.f32.mrb[151].mxu0  ;;  %v7228_v37 = vmax.f32 %v7108_v63, %v7112_v36  ;;  %v26024_v38 = vmax.f32 %v6320_v12, %v7005_v34  ;;  %8303 = vmatmul.mubr.bf16.gmra.mrb[4].mxu1 %v24246_v25  ;;  %v24309_v12 = vld [vmem:[%s29224_s3 + $0x230] ss:$28 sps:$4 sm:$0xff]   ;;  %v24315_v25 = vld [vmem:[%s29224_s3 + $0x268] ss:$28 sps:$4 sm:$0xff]  }
 0x925   : > { %8310 = vmatprep.mubr.bf16.mxu1 %v24247_v26  ;;  %v24323_v26 = vld [vmem:[%s29224_s3 + $0x2a4] ss:$28 sps:$4 sm:$0xff]  }
 0x926   : > { %v26026_v40 = vpack.c.bf16 %v7228_v37, %v7227_v24  ;;  %v7229_v41 = vmax.f32 %v25988_v7, %v26024_v38  ;;  %8110 = vmatmul.mubr.bf16.gmra.mrb[0].mxu0 %v24291_v31 }
 0x927   : > { %8117 = vmatprep.mubr.bf16.mxu0 %v24299_v39 }
 0x929   : > { %v6336_v43 = vpop.f32.mrb[152].mxu0  ;;  %v7006_v51 = vld [vmem:[#allocation2 + $0x249] sm:$0xff] }
 0x92a   : > { %6788 = vst [vmem:[#allocation2 + $0x260] sm:$0xff] %v6336_v43  ;;  %v20307_v45 = vpop.f32.mrb[153].mxu0  ;;  %v7114_v50 = vmax.f32 %v6323_v23, %v7006_v51  ;;  %v24329_v51 = vld [vmem:[%s29224_s3 + $0x2dc] ss:$28 sps:$4 sm:$0xff]  }
 0x92b   : > { %v6339_v44 = vpop.f32.mrb[154].mxu0  ;;  %v7007_v46 = vld [vmem:[#allocation2 + $0x251] sm:$0xff] }
 0x92c   : > { %6789 = vst [vmem:[#allocation2 + $0x268] sm:$0xff] %v6339_v44  ;;  %v20308_v52 = vpop.f32.mrb[155].mxu0  ;;  %v7230_v53 = vmax.f32 %v7110_v17, %v7114_v50  ;;  %v7115_v54 = vmax.f32 %v6328_v28, %v7007_v46  ;;  %8311 = vmatmul.mubr.bf16.gmra.mrb[8].mxu1 %v24249_v42 }
 0x92d   : > { %8318 = vmatprep.mubr.bf16.mxu1 %v24250_v33 }
 0x92e   : > { %v26042_v55 = vpack.c.bf16 %v7230_v53, %v7229_v41  ;;  %v7231_v2 = vmax.f32 %v26006_v21, %v7115_v54  ;;  %8118 = vmatmul.mubr.bf16.gmra.mrb[4].mxu0 %v24297_v48  ;;  %v24321_v41 = vld [vmem:[%s29224_s3 + $0x2a0] ss:$28 sps:$4 sm:$0xff]  }
 0x92f   : > { %8125 = vmatprep.mubr.bf16.mxu0 %v24305_v47 }
 0x931   : > { %v6344_v49 = vpop.f32.mrb[156].mxu0  ;;  %v7008_v60 = vld [vmem:[#allocation2 + $0x259] sm:$0xff] }
 0x932   : > { %6790 = vst [vmem:[#allocation2 + $0x270] sm:$0xff] %v6344_v49  ;;  %v20311_v62 = vpop.f32.mrb[157].mxu0  ;;  %v7116_v57 = vmax.f32 %v6331_v32, %v7008_v60 }
 0x933   : > { %v6347_v61 = vpop.f32.mrb[158].mxu0  ;;  %v7009_v63 = vld [vmem:[#allocation2 + $0x261] sm:$0xff] }
 0x934   : > { %6791 = vst [vmem:[#allocation2 + $0x278] sm:$0xff] %v6347_v61  ;;  %v20312_v16 = vpop.f32.mrb[159].mxu0  ;;  %v7232_v4 = vmax.f32 %v7112_v36, %v7116_v57  ;;  %v7117_v5 = vmax.f32 %v6336_v43, %v7009_v63  ;;  %8319 = vmatmul.mubr.bf16.gmra.mrb[12].mxu1 %v24252_v56 }
 0x935   : > { %8359 = vmatprep.mubr.bf16.mxu1 %v24255_v59 }
 0x936   : > { %v26057_v11 = vpack.c.bf16 %v7232_v4, %v7231_v2  ;;  %v7233_v6 = vmax.f32 %v26024_v38, %v7117_v5  ;;  %8126 = vmatmul.mubr.bf16.gmra.mrb[8].mxu0 %v24303_v58  ;;  %v24333_v4 = vld [vmem:[%s29224_s3 + $0x310] ss:$28 sps:$4 sm:$0xff]  }
 0x937   : > { %8133 = vmatprep.mubr.bf16.mxu0 %v24311_v3 }
 0x939   : > { %v6352_v7 = vpop.f32.mrb[160].mxu0  ;;  %v7010_v10 = vld [vmem:[#allocation2 + $0x269] sm:$0xff] }
 0x93a   : > { %6792 = vst [vmem:[#allocation2 + $0x280] sm:$0xff] %v6352_v7  ;;  %v20315_v8 = vpop.f32.mrb[161].mxu0  ;;  %v7118_v9 = vmax.f32 %v6339_v44, %v7010_v10 }
 0x93b   : > { %v6355_v14 = vpop.f32.mrb[162].mxu0  ;;  %v7011_v15 = vld [vmem:[#allocation2 + $0x271] sm:$0xff] }
 0x93c   : > { %6793 = vst [vmem:[#allocation2 + $0x288] sm:$0xff] %v6355_v14  ;;  %v20316_v17 = vpop.f32.mrb[163].mxu0  ;;  %v7234_v18 = vmax.f32 %v7114_v50, %v7118_v9  ;;  %v7119_v23 = vmax.f32 %v6344_v49, %v7011_v15  ;;  %v24335_v49 = vld [vmem:[%s29224_s3 + $0x314] ss:$28 sps:$4 sm:$0xff]  }
 0x93e   : > { %v26066_v19 = vpack.c.bf16 %v7234_v18, %v7233_v6  ;;  %v7235_v20 = vmax.f32 %v7115_v54, %v7119_v23  ;;  %8134 = vmatmul.mubr.bf16.gmra.mrb[12].mxu0 %v24309_v12  ;;  %v24327_v54 = vld [vmem:[%s29224_s3 + $0x2d8] ss:$28 sps:$4 sm:$0xff]  }
 0x93f   : > { %8141 = vmatprep.mubr.bf16.mxu0 %v24317_v0 }
 0x941   : > { %v6360_v27 = vpop.f32.mrb[164].mxu0  ;;  %v7012_v13 = vld [vmem:[#allocation2 + $0x279] sm:$0xff] }
 0x942   : > { %6794 = vst [vmem:[#allocation2 + $0x290] sm:$0xff] %v6360_v27  ;;  %v20319_v21 = vpop.f32.mrb[165].mxu0  ;;  %v7120_v24 = vmax.f32 %v6347_v61, %v7012_v13  ;;  %v24345_v13 = vld [vmem:[%s29224_s3 + $0x44] ss:$28 sps:$4 sm:$0xff]  }
 0x943   : > { %v6363_v28 = vpop.f32.mrb[166].mxu0  ;;  %v7013_v29 = vld [vmem:[#allocation2 + $0x281] sm:$0xff] }
 0x944   : > { %6795 = vst [vmem:[#allocation2 + $0x298] sm:$0xff] %v6363_v28  ;;  %v20320_v30 = vpop.f32.mrb[167].mxu0  ;;  %v7121_v36 = vmax.f32 %v6352_v7, %v7013_v29  ;;  %v7236_v31 = vmax.f32 %v7116_v57, %v7120_v24  ;;  %v24341_v7 = vld [vmem:[%s29224_s3 + $0xc] ss:$28 sps:$4 sm:$0xff]  }
 0x946   : > { %v26074_v32 = vpack.c.bf16 %v7236_v31, %v7235_v20  ;;  %v7237_v34 = vmax.f32 %v7117_v5, %v7121_v36  ;;  %8142 = vmatmul.mubr.bf16.gmra.mrb[16].mxu0 %v24315_v25  ;;  %v24343_v31 = vld [vmem:[%s29224_s3 + $0x40] ss:$28 sps:$4 sm:$0xff]  }
 0x947   : > { %8149 = vmatprep.mubr.bf16.mxu0 %v24323_v26 }
 0x949   : > { %v6368_v39 = vpop.f32.mrb[168].mxu0  ;;  %v7014_v35 = vld [vmem:[#allocation2 + $0x289] sm:$0xff] }
 0x94a   : > { %6796 = vst [vmem:[#allocation2 + $0x2a0] sm:$0xff] %v6368_v39  ;;  %v20323_v37 = vpop.f32.mrb[169].mxu0  ;;  %v7122_v38 = vmax.f32 %v6355_v14, %v7014_v35  ;;  %v24349_v35 = vld [vmem:[%s29224_s3 + $0x7c] ss:$28 sps:$4 sm:$0xff]  }
 0x94b   : > { %v6371_v42 = vpop.f32.mrb[170].mxu0  ;;  %v7015_v43 = vld [vmem:[#allocation2 + $0x291] sm:$0xff] }
 0x94c   : > { %6797 = vst [vmem:[#allocation2 + $0x2a8] sm:$0xff] %v6371_v42  ;;  %v20324_v33 = vpop.f32.mrb[171].mxu0  ;;  %v7123_v45 = vmax.f32 %v6360_v27, %v7015_v43  ;;  %v7238_v50 = vmax.f32 %v7118_v9, %v7122_v38 }
 0x94e   : > { %v26082_v48 = vpack.c.bf16 %v7238_v50, %v7237_v34  ;;  %v7239_v44 = vmax.f32 %v7119_v23, %v7123_v45  ;;  %8150 = vmatmul.mubr.bf16.gmra.mrb[20].mxu0 %v24321_v41  ;;  %v24339_v23 = vld [vmem:[%s29224_s3 + $0x8] ss:$28 sps:$4 sm:$0xff]   ;;  %v24347_v50 = vld [vmem:[%s29224_s3 + $0x78] ss:$28 sps:$4 sm:$0xff]  }
 0x94f   : > { %8157 = vmatprep.mubr.bf16.mxu0 %v24329_v51 }
 0x951   : > { %v6376_v46 = vpop.f32.mrb[172].mxu0  ;;  %v7016_v47 = vld [vmem:[#allocation2 + $0x299] sm:$0xff] }
 0x952   : > { %6798 = vst [vmem:[#allocation2 + $0x2b0] sm:$0xff] %v6376_v46  ;;  %v20327_v52 = vpop.f32.mrb[173].mxu0  ;;  %v7124_v53 = vmax.f32 %v6363_v28, %v7016_v47  ;;  %v24353_v47 = vld [vmem:[%s29224_s3 + $0xb4] ss:$28 sps:$4 sm:$0xff]  }
 0x953   : > { %v6379_v2 = vpop.f32.mrb[174].mxu0  ;;  %v7017_v56 = vld [vmem:[#allocation2 + $0x2a1] sm:$0xff] }
 0x954   : > { %6799 = vst [vmem:[#allocation2 + $0x2b8] sm:$0xff] %v6379_v2  ;;  %v20328_v60 = vpop.f32.mrb[175].mxu0  ;;  %v7125_v59 = vmax.f32 %v6368_v39, %v7017_v56  ;;  %v7240_v62 = vmax.f32 %v7120_v24, %v7124_v53 }
 0x956   : > { %v7241_v57 = vmax.f32 %v7121_v36, %v7125_v59  ;;  %v26090_v58 = vpack.c.bf16 %v7240_v62, %v7239_v44  ;;  %8158 = vmatmul.mubr.bf16.gmra.mrb[24].mxu0 %v24327_v54  ;;  %v24351_v62 = vld [vmem:[%s29224_s3 + $0xb0] ss:$28 sps:$4 sm:$0xff]  }
 0x957   : > { %8165 = vmatprep.mubr.bf16.mxu0 %v24335_v49 }
 0x959   : > { %v6384_v61 = vpop.f32.mrb[176].mxu0  ;;  %v7018_v63 = vld [vmem:[#allocation2 + $0x2a9] sm:$0xff] }
 0x95a   : > { %6800 = vst [vmem:[#allocation2 + $0x2c0] sm:$0xff] %v6384_v61  ;;  %v20331_v3 = vpop.f32.mrb[177].mxu0  ;;  %v7126_v16 = vmax.f32 %v6371_v42, %v7018_v63  ;;  %v24357_v63 = vld [vmem:[%s29224_s3 + $0xec] ss:$28 sps:$4 sm:$0xff]  }
 0x95b   : > { %v6387_v5 = vpop.f32.mrb[178].mxu0  ;;  %v7019_v6 = vld [vmem:[#allocation2 + $0x2b1] sm:$0xff] }
 0x95c   : > { %6801 = vst [vmem:[#allocation2 + $0x2c8] sm:$0xff] %v6387_v5  ;;  %v20332_v10 = vpop.f32.mrb[179].mxu0  ;;  %v7242_v8 = vmax.f32 %v7122_v38, %v7126_v16  ;;  %v7127_v9 = vmax.f32 %v6376_v46, %v7019_v6 }
 0x95e   : > { %v7429_v12 = vpack.c.bf16 %v7242_v8, %v7241_v57  ;;  %v7243_v14 = vmax.f32 %v7123_v45, %v7127_v9  ;;  %8166 = vmatmul.mubr.bf16.gmra.mrb[28].mxu0 %v24333_v4 }
 0x95f   : > { %8206 = vmatprep.mubr.bf16.mxu0 %v24341_v7 }
 0x960   : > { %18629 = vmatprep.subr.bf16.mxu1 %v7429_v12 }
 0x961   : > { %v6392_v15 = vpop.f32.mrb[180].mxu0  ;;  %18630 = vmatpush3.bf16.msra.mxu1 %v26008_v22  ;;  %v7020_v0 = vld [vmem:[#allocation2 + $0x2b9] sm:$0xff] }
 0x962   : > { %6802 = vst [vmem:[#allocation2 + $0x2d0] sm:$0xff] %v6392_v15  ;;  %v20335_v17 = vpop.f32.mrb[181].mxu0  ;;  %v7128_v18 = vmax.f32 %v6379_v2, %v7020_v0 }
 0x963   : > { %v6395_v20 = vpop.f32.mrb[182].mxu0  ;;  %v7021_v27 = vld [vmem:[#allocation2 + $0x2c1] sm:$0xff] }
 0x964   : > { %6803 = vst [vmem:[#allocation2 + $0x2d8] sm:$0xff] %v6395_v20  ;;  %v20336_v21 = vpop.f32.mrb[183].mxu0  ;;  %v7244_v24 = vmax.f32 %v7124_v53, %v7128_v18  ;;  %v7129_v25 = vmax.f32 %v6384_v61, %v7021_v27 }
 0x966   : > { %v7430_v28 = vpack.c.bf16 %v7244_v24, %v7243_v14  ;;  %v7245_v22 = vmax.f32 %v7125_v59, %v7129_v25  ;;  %8207 = vmatmul.mubr.bf16.vlgmr.msra.gmra.mrb[32].mxu0 %v24339_v23  ;;  %v24359_v24 = vld [vmem:[%s29224_s3 + $0x120] ss:$28 sps:$4 sm:$0xff]  }
 0x967   : > { %8214 = vmatprep.mubr.bf16.mxu0 %v24345_v13 }
 0x968   : > { %18631 = vmatprep.subr.bf16.mxu1 %v7430_v28 }
 0x969   : > { %v6400_v29 = vpop.f32.mrb[184].mxu0  ;;  %18632 = vmatpush3.bf16.msra.mxu1 %v26026_v40  ;;  %v7022_v26 = vld [vmem:[#allocation2 + $0x2c9] sm:$0xff] }
 0x96a   : > { %6804 = vst [vmem:[#allocation2 + $0x2e0] sm:$0xff] %v6400_v29  ;;  %v20339_v30 = vpop.f32.mrb[185].mxu0  ;;  %v7130_v36 = vmax.f32 %v6387_v5, %v7022_v26 }
 0x96b   : > { %v6403_v34 = vpop.f32.mrb[186].mxu0  ;;  %v7023_v39 = vld [vmem:[#allocation2 + $0x2d1] sm:$0xff] }
 0x96c   : > { %6805 = vst [vmem:[#allocation2 + $0x2e8] sm:$0xff] %v6403_v34  ;;  %v20340_v37 = vpop.f32.mrb[187].mxu0  ;;  %v7246_v38 = vmax.f32 %v7126_v16, %v7130_v36  ;;  %v7131_v41 = vmax.f32 %v6392_v15, %v7023_v39  ;;  %v24361_v15 = vld [vmem:[%s29224_s3 + $0x124] ss:$28 sps:$4 sm:$0xff]  }
 0x96d   : > { %v24363_v37 = vld [vmem:[%s29224_s3 + $0x158] ss:$28 sps:$4 sm:$0xff]  }
 0x96e   : > { %v7431_v42 = vpack.c.bf16 %v7246_v38, %v7245_v22  ;;  %v7247_v40 = vmax.f32 %v7127_v9, %v7131_v41  ;;  %8215 = vmatmul.mubr.bf16.gmra.mrb[36].mxu0 %v24343_v31  ;;  %v24355_v9 = vld [vmem:[%s29224_s3 + $0xe8] ss:$28 sps:$4 sm:$0xff]   ;;  %v24365_v22 = vld [vmem:[%s29224_s3 + $0x15c] ss:$28 sps:$4 sm:$0xff]  }
 0x96f   : > { %8222 = vmatprep.mubr.bf16.mxu0 %v24349_v35 }
 0x970   : > { %18633 = vmatprep.subr.bf16.mxu1 %v7431_v42  ;;  %v24369_v42 = vld [vmem:[%s29224_s3 + $0x194] ss:$28 sps:$4 sm:$0xff]  }
 0x971   : > { %v6408_v43 = vpop.f32.mrb[188].mxu0  ;;  %18634 = vmatpush3.bf16.msra.mxu1 %v26042_v55  ;;  %v7024_v51 = vld [vmem:[#allocation2 + $0x2d9] sm:$0xff] }
 0x972   : > { %6806 = vst [vmem:[#allocation2 + $0x2f0] sm:$0xff] %v6408_v43  ;;  %v20343_v33 = vpop.f32.mrb[189].mxu0  ;;  %v7132_v45 = vmax.f32 %v6395_v20, %v7024_v51 }
 0x973   : > { %v6411_v44 = vpop.f32.mrb[190].mxu0  ;;  %v7025_v46 = vld [vmem:[#allocation2 + $0x2e1] sm:$0xff] }
 0x974   : > { %6807 = vst [vmem:[#allocation2 + $0x2f8] sm:$0xff] %v6411_v44  ;;  %v20344_v52 = vpop.f32.mrb[191].mxu0  ;;  %v7248_v53 = vmax.f32 %v7128_v18, %v7132_v45  ;;  %v7133_v54 = vmax.f32 %v6400_v29, %v7025_v46  ;;  %v24259_v46 = vld [vmem:[%s29224_s3 + $0x4c] ss:$28 sps:$4 sm:$0xff]  }
 0x976   : > { %v7432_v2 = vpack.c.bf16 %v7248_v53, %v7247_v40  ;;  %v7249_v55 = vmax.f32 %v7129_v25, %v7133_v54  ;;  %8223 = vmatmul.mubr.bf16.gmra.mrb[40].mxu0 %v24347_v50  ;;  %v24367_v53 = vld [vmem:[%s29224_s3 + $0x190] ss:$28 sps:$4 sm:$0xff]  }
 0x977   : > { %8230 = vmatprep.mubr.bf16.mxu0 %v24353_v47 }
 0x978   : > { %18635 = vmatprep.subr.bf16.mxu1 %v7432_v2 }
 0x979   : > { %v6416_v56 = vpop.f32.mrb[192].mxu0  ;;  %18636 = vmatpush3.bf16.msra.mxu1 %v26057_v11  ;;  %v7026_v49 = vld [vmem:[#allocation2 + $0x2e9] sm:$0xff] }
 0x97a   : > { %6808 = vst [vmem:[#allocation2 + $0x300] sm:$0xff] %v6416_v56  ;;  %v20347_v60 = vpop.f32.mrb[193].mxu0  ;;  %v7134_v59 = vmax.f32 %v6403_v34, %v7026_v49 }
 0x97b   : > { %v6419_v57 = vpop.f32.mrb[194].mxu0  ;;  %v7027_v61 = vld [vmem:[#allocation2 + $0x2f1] sm:$0xff] }
 0x97c   : > { %6809 = vst [vmem:[#allocation2 + $0x308] sm:$0xff] %v6419_v57  ;;  %v20348_v3 = vpop.f32.mrb[195].mxu0  ;;  %v7250_v16 = vmax.f32 %v7130_v36, %v7134_v59  ;;  %v7135_v4 = vmax.f32 %v6408_v43, %v7027_v61 }
 0x97e   : > { %v7433_v5 = vpack.c.bf16 %v7250_v16, %v7249_v55  ;;  %v7251_v11 = vmax.f32 %v7131_v41, %v7135_v4  ;;  %8231 = vmatmul.mubr.bf16.gmra.mrb[44].mxu0 %v24351_v62  ;;  %v24263_v62 = vld [vmem:[%s29224_s3 + $0x48] ss:$28 sps:$4 sm:$0xff]  }
 0x97f   : > { %8238 = vmatprep.mubr.bf16.mxu0 %v24357_v63  ;;  %v24265_v63 = vld [vmem:[%s29224_s3 + $0x84] ss:$28 sps:$4 sm:$0xff]  }
 0x980   : > { %18637 = vmatprep.subr.bf16.mxu1 %v7433_v5 }
 0x981   : > { %v6424_v6 = vpop.f32.mrb[196].mxu0  ;;  %18638 = vmatpush3.bf16.msra.mxu1 %v26066_v19  ;;  %v7028_v7 = vld [vmem:[#allocation2 + $0x2f9] sm:$0xff] }
 0x982   : > { %6810 = vst [vmem:[#allocation2 + $0x310] sm:$0xff] %v6424_v6  ;;  %v20351_v10 = vpop.f32.mrb[197].mxu0  ;;  %v7136_v8 = vmax.f32 %v6411_v44, %v7028_v7 }
 0x983   : > { %v6427_v12 = vpop.f32.mrb[198].mxu0  ;;  %v7029_v14 = vld [vmem:[#allocation2 + $0x301] sm:$0xff] }
 0x984   : > { %6811 = vst [vmem:[#allocation2 + $0x318] sm:$0xff] %v6427_v12  ;;  %v20352_v0 = vpop.f32.mrb[199].mxu0  ;;  %v7252_v17 = vmax.f32 %v7132_v45, %v7136_v8  ;;  %v26133_v18 = vmax.f32 %v6416_v56, %v7029_v14  ;;  %v24253_v45 = vld [vmem:[%s29224_s3 + $0x10] ss:$28 sps:$4 sm:$0xff]   ;;  %v24269_v14 = vld [vmem:[%s29224_s3 + $0x80] ss:$28 sps:$4 sm:$0xff]  }
 0x986   : > { %v7434_v19 = vpack.c.bf16 %v7252_v17, %v7251_v11  ;;  %v7253_v23 = vmax.f32 %v7133_v54, %v26133_v18  ;;  %8239 = vmatmul.mubr.bf16.gmra.mrb[48].mxu0 %v24355_v9  ;;  %v24271_v17 = vld [vmem:[%s29224_s3 + $0xbc] ss:$28 sps:$4 sm:$0xff]  }
 0x987   : > { %8246 = vmatprep.mubr.bf16.mxu0 %v24361_v15 }
 0x988   : > { %18639 = vmatprep.subr.bf16.mxu1 %v7434_v19 }
 0x989   : > { %v6432_v20 = vpop.f32.mrb[200].mxu0  ;;  %18640 = vmatpush3.bf16.msra.mxu1 %v26074_v32  ;;  %v7030_v27 = vld [vmem:[#allocation2 + $0x309] sm:$0xff] }
 0x98a   : > { %6812 = vst [vmem:[#allocation2 + $0x320] sm:$0xff] %v6432_v20  ;;  %v20355_v13 = vpop.f32.mrb[201].mxu0  ;;  %v7138_v21 = vmax.f32 %v6419_v57, %v7030_v27 }
 0x98b   : > { %v6435_v25 = vpop.f32.mrb[202].mxu0  ;;  %v7031_v28 = vld [vmem:[#allocation2 + $0x311] sm:$0xff] }
 0x98c   : > { %6813 = vst [vmem:[#allocation2 + $0x328] sm:$0xff] %v6435_v25  ;;  %v20356_v29 = vpop.f32.mrb[203].mxu0  ;;  %v7254_v26 = vmax.f32 %v7134_v59, %v7138_v21  ;;  %v26143_v30 = vmax.f32 %v6424_v6, %v7031_v28  ;;  %v24377_v6 = vld [vmem:[%s29224_s3 + $0x204] ss:$28 sps:$4 sm:$0xff]   ;;  %v24381_v13 = vld [vmem:[%s29224_s3 + $0x23c] ss:$28 sps:$4 sm:$0xff]  }
 0x98d   : > { %v24275_v29 = vld [vmem:[%s29224_s3 + $0xb8] ss:$28 sps:$4 sm:$0xff]  }
 0x98e   : > { %v7435_v32 = vpack.c.bf16 %v7254_v26, %v7253_v23  ;;  %v7255_v36 = vmax.f32 %v7135_v4, %v26143_v30  ;;  %8247 = vmatmul.mubr.bf16.gmra.mrb[52].mxu0 %v24359_v24  ;;  %v24371_v4 = vld [vmem:[%s29224_s3 + $0x1c8] ss:$28 sps:$4 sm:$0xff]   ;;  %v24375_v23 = vld [vmem:[%s29224_s3 + $0x200] ss:$28 sps:$4 sm:$0xff]  }
 0x98f   : > { %8254 = vmatprep.mubr.bf16.mxu0 %v24365_v22 }
 0x990   : > { %18641 = vmatprep.subr.bf16.mxu1 %v7435_v32  ;;  %v24277_v32 = vld [vmem:[%s29224_s3 + $0xf4] ss:$28 sps:$4 sm:$0xff]  }
 0x991   : > { %v6440_v31 = vpop.f32.mrb[204].mxu0  ;;  %18642 = vmatpush3.bf16.msra.mxu1 %v26082_v48  ;;  %v7032_v34 = vld [vmem:[#allocation2 + $0x319] sm:$0xff] }
 0x992   : > { %6814 = vst [vmem:[#allocation2 + $0x330] sm:$0xff] %v6440_v31  ;;  %v20359_v39 = vpop.f32.mrb[205].mxu0  ;;  %v7140_v35 = vmax.f32 %v6427_v12, %v7032_v34  ;;  %v24379_v34 = vld [vmem:[%s29224_s3 + $0x238] ss:$28 sps:$4 sm:$0xff]  }
 0x993   : > { %v6443_v38 = vpop.f32.mrb[206].mxu0  ;;  %v7033_v41 = vld [vmem:[#allocation2 + $0x321] sm:$0xff] }
 0x994   : > { %6815 = vst [vmem:[#allocation2 + $0x338] sm:$0xff] %v6443_v38  ;;  %v20360_v40 = vpop.f32.mrb[207].mxu0  ;;  %v7256_v43 = vmax.f32 %v7136_v8, %v7140_v35  ;;  %v26153_v51 = vmax.f32 %v6432_v20, %v7033_v41 }
 0x996   : > { %v7436_v48 = vpack.c.bf16 %v7256_v43, %v7255_v36  ;;  %v7257_v33 = vmax.f32 %v26133_v18, %v26153_v51  ;;  %8255 = vmatmul.mubr.bf16.gmra.mrb[56].mxu0 %v24363_v37  ;;  %v24281_v43 = vld [vmem:[%s29224_s3 + $0xf0] ss:$28 sps:$4 sm:$0xff]  }
 0x997   : > { %8262 = vmatprep.mubr.bf16.mxu0 %v24369_v42 }
 0x998   : > { %18643 = vmatprep.subr.bf16.mxu1 %v7436_v48 }
 0x999   : > { %v6448_v50 = vpop.f32.mrb[208].mxu0  ;;  %18644 = vmatpush3.bf16.msra.mxu1 %v26090_v58  ;;  %v7034_v44 = vld [vmem:[#allocation2 + $0x329] sm:$0xff] }
 0x99a   : > { %6816 = vst [vmem:[#allocation2 + $0x340] sm:$0xff] %v6448_v50  ;;  %v20363_v47 = vpop.f32.mrb[209].mxu0  ;;  %20381 = vmatprep.subr.bf16.mxu1 %v29241_v1  ;;  %v7142_v52 = vmax.f32 %v6435_v25, %v7034_v44  ;;  %v24373_v58 = vld [vmem:[%s29224_s3 + $0x1cc] ss:$28 sps:$4 sm:$0xff]  }
 0x99b   : > { %v6451_v54 = vpop.f32.mrb[210].mxu0  ;;  %v7035_v2 = vld [vmem:[#allocation2 + $0x331] sm:$0xff] }
 0x99c   : > { %6817 = vst [vmem:[#allocation2 + $0x348] sm:$0xff] %v6451_v54  ;;  %v20364_v55 = vpop.f32.mrb[211].mxu0  ;;  %8360 = vmatmul.mubr.bf16.vlgmr.msra.gmra.mrb[16].mxu1 %v24253_v45  ;;  %v7258_v56 = vmax.f32 %v7138_v21, %v7142_v52  ;;  %v26171_v49 = vmax.f32 %v6440_v31, %v7035_v2 }
 0x99d   : > { %8367 = vmatprep.mubr.bf16.mxu1 %v24259_v46 }
 0x99e   : > { %v7437_v60 = vpack.c.bf16 %v7258_v56, %v7257_v33  ;;  %v7259_v59 = vmax.f32 %v26143_v30, %v26171_v49  ;;  %8263 = vmatmul.mubr.bf16.gmra.mrb[60].mxu0 %v24367_v53  ;;  %v24283_v33 = vld [vmem:[%s29224_s3 + $0x12c] ss:$28 sps:$4 sm:$0xff]   ;;  %v24289_v56 = vld [vmem:[%s29224_s3 + $0x164] ss:$28 sps:$4 sm:$0xff]  }
 0x99f   : > { %8270 = vmatprep.mubr.bf16.mxu0 %v24373_v58  ;;  %v24287_v58 = vld [vmem:[%s29224_s3 + $0x128] ss:$28 sps:$4 sm:$0xff]  }
 0x9a0   : > { %20382 = vmatpush3.bf16.msra.mxu1 %v7437_v60 }
 0x9a1   : > { %v6456_v57 = vpop.f32.mrb[212].mxu0  ;;  %20383 = vmatprep.subr.bf16.mxu1 %v29241_v1  ;;  %v7036_v61 = vld [vmem:[#allocation2 + $0x339] sm:$0xff] }
 0x9a2   : > { %6818 = vst [vmem:[#allocation2 + $0x350] sm:$0xff] %v6456_v57  ;;  %v20367_v3 = vpop.f32.mrb[213].mxu0  ;;  %v7144_v16 = vmax.f32 %v6443_v38, %v7036_v61 }
 0x9a3   : > { %v6459_v5 = vpop.f32.mrb[214].mxu0  ;;  %v7037_v11 = vld [vmem:[#allocation2 + $0x341] sm:$0xff] }
 0x9a4   : > { %6819 = vst [vmem:[#allocation2 + $0x358] sm:$0xff] %v6459_v5  ;;  %v20368_v7 = vpop.f32.mrb[215].mxu0  ;;  %8368 = vmatmul.mubr.bf16.gmra.mrb[20].mxu1 %v24263_v62  ;;  %v7260_v10 = vmax.f32 %v7140_v35, %v7144_v16  ;;  %v7145_v8 = vmax.f32 %v6448_v50, %v7037_v11  ;;  %v24294_v3 = vld [vmem:[%s29224_s3 + $0x160] ss:$28 sps:$4 sm:$0xff]  }
 0x9a5   : > { %8375 = vmatprep.mubr.bf16.mxu1 %v24265_v63  ;;  %v24300_v7 = vld [vmem:[%s29224_s3 + $0x198] ss:$28 sps:$4 sm:$0xff]  }
 0x9a6   : > { %v7438_v9 = vpack.c.bf16 %v7260_v10, %v7259_v59  ;;  %v7261_v12 = vmax.f32 %v26153_v51, %v7145_v8  ;;  %8271 = vmatmul.mubr.bf16.gmra.mrb[64].mxu0 %v24371_v4  ;;  %v24301_v10 = vld [vmem:[%s29224_s3 + $0x1d4] ss:$28 sps:$4 sm:$0xff]  }
 0x9a7   : > { %8278 = vmatprep.mubr.bf16.mxu0 %v24377_v6 }
 0x9a8   : > { %20384 = vmatpush3.bf16.msra.mxu1 %v7438_v9 }
 0x9a9   : > { %v6464_v15 = vpop.f32.mrb[216].mxu0  ;;  %20385 = vmatprep.subr.bf16.mxu1 %v29241_v1  ;;  %v7038_v0 = vld [vmem:[#allocation2 + $0x349] sm:$0xff] }
 0x9aa   : > { %6820 = vst [vmem:[#allocation2 + $0x360] sm:$0xff] %v6464_v15  ;;  %v20371_v18 = vpop.f32.mrb[217].mxu0  ;;  %v7146_v19 = vmax.f32 %v6451_v54, %v7038_v0  ;;  %v24307_v0 = vld [vmem:[%s29224_s3 + $0x20c] ss:$28 sps:$4 sm:$0xff]  }
 0x9ab   : > { %v6467_v20 = vpop.f32.mrb[218].mxu0  ;;  %v7039_v27 = vld [vmem:[#allocation2 + $0x351] sm:$0xff] }
 0x9ac   : > { %6821 = vst [vmem:[#allocation2 + $0x368] sm:$0xff] %v6467_v20  ;;  %v20372_v21 = vpop.f32.mrb[219].mxu0  ;;  %8376 = vmatmul.mubr.bf16.gmra.mrb[24].mxu1 %v24269_v14  ;;  %v7262_v24 = vmax.f32 %v7142_v52, %v7146_v19  ;;  %v7147_v25 = vmax.f32 %v6456_v57, %v7039_v27  ;;  %v24313_v27 = vld [vmem:[%s29224_s3 + $0x244] ss:$28 sps:$4 sm:$0xff]  }
 0x9ad   : > { %8383 = vmatprep.mubr.bf16.mxu1 %v24271_v17 }
 0x9ae   : > { %v7439_v28 = vpack.c.bf16 %v7262_v24, %v7261_v12  ;;  %v7263_v22 = vmax.f32 %v26171_v49, %v7147_v25  ;;  %8279 = vmatmul.mubr.bf16.gmra.mrb[68].mxu0 %v24375_v23 }
 0x9af   : > { %8286 = vmatprep.mubr.bf16.mxu0 %v24381_v13 }
 0x9b0   : > { %20386 = vmatpush3.bf16.msra.mxu1 %v7439_v28  ;;  %v24318_v28 = vld [vmem:[%s29224_s3 + $0x240] ss:$28 sps:$4 sm:$0xff]  }
 0x9b1   : > { %v6472_v26 = vpop.f32.mrb[220].mxu0  ;;  %20387 = vmatprep.subr.bf16.mxu1 %v29241_v1  ;;  %v7040_v30 = vld [vmem:[#allocation2 + $0x359] sm:$0xff] }
 0x9b2   : > { %6822 = vst [vmem:[#allocation2 + $0x370] sm:$0xff] %v6472_v26  ;;  %v20375_v36 = vpop.f32.mrb[221].mxu0  ;;  %v7148_v31 = vmax.f32 %v6459_v5, %v7040_v30 }
 0x9b3   : > { %v6475_v39 = vpop.f32.mrb[222].mxu0  ;;  %v7153_v35 = vld [vmem:[#allocation2 + $0x361] sm:$0xff] }
 0x9b4   : > { %6823 = vst [vmem:[#allocation2 + $0x378] sm:$0xff] %v6475_v39  ;;  %v20376_v37 = vpop.f32.mrb[223].mxu0  ;;  %8384 = vmatmul.mubr.bf16.gmra.mrb[28].mxu1 %v24275_v29  ;;  %v7264_v38 = vmax.f32 %v7144_v16, %v7148_v31  ;;  %v7157_v41 = vmax.f32 %v6464_v15, %v7153_v35  ;;  %v24295_v16 = vld [vmem:[%s29224_s3 + $0x19c] ss:$28 sps:$4 sm:$0xff]   ;;  %v24306_v15 = vld [vmem:[%s29224_s3 + $0x1d0] ss:$28 sps:$4 sm:$0xff]  }
 0x9b5   : > { %8391 = vmatprep.mubr.bf16.mxu1 %v24277_v32  ;;  %v24325_v37 = vld [vmem:[%s29224_s3 + $0x2b4] ss:$28 sps:$4 sm:$0xff]  }
 0x9b6   : > { %v7440_v42 = vpack.c.bf16 %v7264_v38, %v7263_v22  ;;  %v7265_v40 = vmax.f32 %v7145_v8, %v7157_v41  ;;  %8287 = vmatmul.mubr.bf16.gmra.mrb[72].mxu0 %v24379_v34  ;;  %v24319_v22 = vld [vmem:[%s29224_s3 + $0x27c] ss:$28 sps:$4 sm:$0xff]  }
 0x9b8   : > { %20388 = vmatpush3.bf16.msra.mxu1 %v7440_v42 }
 0x9b9   : > { %v6480_v51 = vpop.f32.mrb[224].mxu0  ;;  %20389 = vmatprep.subr.bf16.mxu1 %v29241_v1  ;;  %v7154_v48 = vld [vmem:[#allocation2 + $0x369] sm:$0xff] }
 0x9ba   : > { %6824 = vst [vmem:[#allocation2 + $0x380] sm:$0xff] %v6480_v51  ;;  %v20379_v45 = vpop.f32.mrb[225].mxu0  ;;  %v7158_v50 = vmax.f32 %v6467_v20, %v7154_v48  ;;  %v24312_v20 = vld [vmem:[%s29224_s3 + $0x208] ss:$28 sps:$4 sm:$0xff]  }
 0x9bb   : > { %v6483_v44 = vpop.f32.mrb[226].mxu0  ;;  %v7155_v46 = vld [vmem:[#allocation2 + $0x371] sm:$0xff] }
 0x9bc   : > { %v20380_v47 = vpop.f32.mrb[227].mxu0  ;;  %8392 = vmatmul.mubr.bf16.gmra.mrb[32].mxu1 %v24281_v43  ;;  %v7266_v52 = vmax.f32 %v7146_v19, %v7158_v50  ;;  %v7159_v53 = vmax.f32 %v6472_v26, %v7155_v46  ;;  %v24330_v46 = vld [vmem:[%s29224_s3 + $0x2b0] ss:$28 sps:$4 sm:$0xff]  }
 0x9bd   : > { %8399 = vmatprep.mubr.bf16.mxu1 %v24283_v33 }
 0x9be   : > { %v7441_v54 = vpack.c.bf16 %v7266_v52, %v7265_v40  ;;  %v7267_v2 = vmax.f32 %v7147_v25, %v7159_v53  ;;  %v24331_v52 = vld [vmem:[%s29224_s3 + $0x2ec] ss:$28 sps:$4 sm:$0xff]  }
 0x9c0   : > { %20390 = vmatpush3.bf16.msra.mxu1 %v7441_v54 }
 0x9c1   : > { %20391 = vmatprep.subr.bf16.mxu1 %v29241_v1  ;;  %v7156_v55 = vld [vmem:[#allocation2 + $0x379] sm:$0xff]  ;;  %v18433_v49 = vpop.f32.mrb[228].mxu0 }
 0x9c2   : > { %v7160_v60 = vmax.f32 %v6475_v39, %v7156_v55  ;;  %v18434_v59 = vpop.f32.mrb[229].mxu0  ;;  %v24324_v39 = vld [vmem:[%s29224_s3 + $0x278] ss:$28 sps:$4 sm:$0xff]  }
 0x9c3   : > { %v18436_v62 = vpop.f32.mrb[230].mxu0  ;;  %v26274_v26 = vadd.f32 %v18434_v59, %v18433_v49 }
 0x9c4   : > { %8400 = vmatmul.mubr.bf16.gmra.mrb[36].mxu1 %v24287_v58  ;;  %v7268_v57 = vmax.f32 %v7148_v31, %v7160_v60  ;;  %v18437_v61 = vpop.f32.mrb[231].mxu0 }
 0x9c5   : > { %8407 = vmatprep.mubr.bf16.mxu1 %v24289_v56  ;;  %v26276_v30 = vadd.f32 %v18437_v61, %v18436_v62  ;;  %v24336_v61 = vld [vmem:[%s29224_s3 + $0x2e8] ss:$28 sps:$4 sm:$0xff]  }
 0x9c6   : > { %v7442_v63 = vpack.c.bf16 %v7268_v57, %v7267_v2 }
 0x9c8   : > { %20392 = vmatpush3.bf16.msra.mxu1 %v7442_v63 }
 0x9c9   : > { %v18439_v4 = vpop.f32.mrb[232].mxu0  ;;  %20453 = vmatprep.subr.bf16.mxu1 %v29241_v1 }
 0x9ca   : > { %v18440_v5 = vpop.f32.mrb[233].mxu0 }
 0x9cb   : > { %v18442_v11 = vpop.f32.mrb[234].mxu0  ;;  %v26294_v43 = vadd.f32 %v18440_v5, %v18439_v4 }
 0x9cc   : > { %8408 = vmatmul.mubr.bf16.gmra.mrb[40].mxu1 %v24294_v3  ;;  %v18443_v6 = vpop.f32.mrb[235].mxu0  ;;  %v24337_v3 = vld [vmem:[%s29224_s3 + $0x324] ss:$28 sps:$4 sm:$0xff]  }
 0x9cd   : > { %8415 = vmatprep.mubr.bf16.mxu1 %v24295_v16  ;;  %v26296_v51 = vadd.f32 %v18443_v6, %v18442_v11 }
 0x9d1   : > { %v18445_v8 = vpop.f32.mrb[236].mxu0 }
 0x9d2   : > { %v18446_v9 = vpop.f32.mrb[237].mxu0 }
 0x9d3   : > { %v18448_v12 = vpop.f32.mrb[238].mxu0  ;;  %v26314_v55 = vadd.f32 %v18446_v9, %v18445_v8 }
 0x9d4   : > { %8416 = vmatmul.mubr.bf16.gmra.mrb[44].mxu1 %v24300_v7  ;;  %v18449_v14 = vpop.f32.mrb[239].mxu0 }
 0x9d5   : > { %8423 = vmatprep.mubr.bf16.mxu1 %v24301_v10  ;;  %v26316_v56 = vadd.f32 %v18449_v14, %v18448_v12 }
 0x9d9   : > { %v26246_v17 = vpop.f32.mrb[240].mxu0 }
 0x9da   : > { %v26248_v18 = vpop.f32.mrb[241].mxu0 }
 0x9db   : > { %v26250_v19 = vpop.f32.mrb[242].mxu0  ;;  %v26332_v6 = vadd.f32 %v26248_v18, %v26246_v17 }
 0x9dc   : > { %8424 = vmatmul.mubr.bf16.gmra.mrb[48].mxu1 %v24306_v15  ;;  %v18455_v23 = vpop.f32.mrb[243].mxu0 }
 0x9dd   : > { %8431 = vmatprep.mubr.bf16.mxu1 %v24307_v0  ;;  %v26335_v7 = vadd.f32 %v18455_v23, %v26250_v19  ;;  %v24342_v0 = vld [vmem:[%s29224_s3 + $0x320] ss:$28 sps:$4 sm:$0xff]  }
 0x9e1   : > { %v26258_v13 = vpop.f32.mrb[244].mxu0 }
 0x9e2   : > { %v26260_v21 = vpop.f32.mrb[245].mxu0 }
 0x9e3   : > { %v26262_v24 = vpop.f32.mrb[246].mxu0  ;;  %v26341_v15 = vadd.f32 %v26260_v21, %v26258_v13 }
 0x9e4   : > { %8432 = vmatmul.mubr.bf16.gmra.mrb[52].mxu1 %v24312_v20  ;;  %v26264_v25 = vpop.f32.mrb[247].mxu0 }
 0x9e5   : > { %8439 = vmatprep.mubr.bf16.mxu1 %v24313_v27  ;;  %v26350_v23 = vadd.f32 %v26264_v25, %v26262_v24  ;;  %v24346_v24 = vld [vmem:[%s29224_s3 + $0x18] ss:$28 sps:$4 sm:$0xff]  }
 0x9e9   : > { %v26272_v29 = vpop.f32.mrb[248].mxu0 }
 0x9ea   : > { %v26278_v32 = vpop.f32.mrb[249].mxu0 }
 0x9eb   : > { %v26280_v36 = vpop.f32.mrb[250].mxu0  ;;  %v26358_v21 = vadd.f32 %v26278_v32, %v26272_v29  ;;  %v24350_v32 = vld [vmem:[%s29224_s3 + $0x50] ss:$28 sps:$4 sm:$0xff]  }
 0x9ec   : > { %8440 = vmatmul.mubr.bf16.gmra.mrb[56].mxu1 %v24318_v28  ;;  %v26282_v31 = vpop.f32.mrb[251].mxu0 }
 0x9ed   : > { %8447 = vmatprep.mubr.bf16.mxu1 %v24319_v22  ;;  %v26365_v25 = vadd.f32 %v26282_v31, %v26280_v36 }
 0x9ef   : > { %v18605_v34 = vpop.f32.mrb[0].mxu1 }
 0x9f0   : > { %v18606_v35 = vpop.f32.mrb[1].mxu1 }
 0x9f1   : > { %v26290_v38 = vadd.f32 %v18606_v35, %v18605_v34  ;;  %v18608_v41 = vpop.f32.mrb[2].mxu1  ;;  %v26292_v42 = vpop.f32.mrb[252].mxu0 }
 0x9f2   : > { %v18609_v40 = vpop.f32.mrb[3].mxu1  ;;  %v26298_v48 = vpop.f32.mrb[253].mxu0 }
 0x9f3   : > { %v26300_v33 = vadd.f32 %v18609_v40, %v18608_v41  ;;  %v26302_v45 = vpop.f32.mrb[254].mxu0  ;;  %v26380_v29 = vadd.f32 %v26298_v48, %v26292_v42  ;;  %v26391_v40 = vld [vmem:[%s29223_s2] ss:$0 sm:$0xff] }
 0x9f4   : > { %8448 = vmatmul.mubr.bf16.gmra.mrb[60].mxu1 %v24324_v39  ;;  %v18473_v50 = vpop.f32.mrb[255].mxu0 }
 0x9f5   : > { %8455 = vmatprep.mubr.bf16.mxu1 %v24325_v37  ;;  %v26386_v36 = vadd.f32 %v18473_v50, %v26302_v45 }
 0x9f7   : > { %v18611_v44 = vpop.f32.mrb[4].mxu1 }
 0x9f8   : > { %v18612_v47 = vpop.f32.mrb[5].mxu1 }
 0x9f9   : > { %v26310_v53 = vadd.f32 %v18612_v47, %v18611_v44  ;;  %v18614_v54 = vpop.f32.mrb[6].mxu1  ;;  %v26312_v2 = vpop.f32.mrb[0].mxu0 }
 0x9fa   : > { %v18615_v58 = vpop.f32.mrb[7].mxu1  ;;  %v18476_v49 = vpop.f32.mrb[1].mxu0 }
 0x9fb   : > { %v26318_v60 = vadd.f32 %v18615_v58, %v18614_v54  ;;  %v18478_v59 = vpop.f32.mrb[2].mxu0  ;;  %v26398_v45 = vadd.f32 %v18476_v49, %v26312_v2  ;;  %v24354_v58 = vld [vmem:[%s29224_s3 + $0x88] ss:$28 sps:$4 sm:$0xff]  }
 0x9fc   : > { %8456 = vmatmul.mubr.bf16.gmra.mrb[64].mxu1 %v24330_v46  ;;  %v18479_v62 = vpop.f32.mrb[3].mxu0 }
 0x9fd   : > { %8463 = vmatprep.mubr.bf16.mxu1 %v24331_v52 }
 0x9ff   : > { %v18617_v57 = vpop.f32.mrb[8].mxu1 }
 0xa00   : > { %v18618_v63 = vpop.f32.mrb[9].mxu1 }
 0xa01   : > { %v26326_v16 = vadd.f32 %v18618_v63, %v18617_v57  ;;  %v18620_v4 = vpop.f32.mrb[10].mxu1  ;;  %v26328_v5 = vpop.f32.mrb[4].mxu0  ;;  %v26407_v57 = vadd.f32 %v18479_v62, %v18478_v59  ;;  %v24358_v62 = vld [vmem:[%s29224_s3 + $0xc0] ss:$28 sps:$4 sm:$0xff]  }
 0xa02   : > { %v18621_v11 = vpop.f32.mrb[11].mxu1  ;;  %v18482_v10 = vpop.f32.mrb[5].mxu0 }
 0xa03   : > { %v26337_v8 = vadd.f32 %v18621_v11, %v18620_v4  ;;  %v18484_v9 = vpop.f32.mrb[6].mxu0 }
 0xa04   : > { %8464 = vmatmul.mubr.bf16.gmra.mrb[68].mxu1 %v24336_v61  ;;  %v18485_v12 = vpop.f32.mrb[7].mxu0 }
 0xa05   : > { %8471 = vmatprep.mubr.bf16.mxu1 %v24337_v3 }
 0xa07   : > { %v18623_v14 = vpop.f32.mrb[12].mxu1 }
 0xa08   : > { %v18624_v17 = vpop.f32.mrb[13].mxu1 }
 0xa09   : > { %v26346_v18 = vadd.f32 %v18624_v17, %v18623_v14  ;;  %v18626_v19 = vpop.f32.mrb[14].mxu1  ;;  %v18487_v20 = vpop.f32.mrb[8].mxu0  ;;  %v26417_v14 = vadd.f32 %v18482_v10, %v26328_v5 }
 0xa0a   : > { %v18627_v27 = vpop.f32.mrb[15].mxu1  ;;  %v18488_v28 = vpop.f32.mrb[9].mxu0 }
 0xa0b   : > { %v26352_v22 = vadd.f32 %v18627_v27, %v18626_v19  ;;  %v18490_v34 = vpop.f32.mrb[10].mxu0 }
 0xa0c   : > { %8472 = vmatmul.mubr.bf16.gmra.mrb[72].mxu1 %v24342_v0  ;;  %v18491_v13 = vpop.f32.mrb[11].mxu0  ;;  %v26426_v0 = vadd.f32 %v18485_v12, %v18484_v9 }
 0xa0d   : > { %20393 = vmatprep.mubr.msk.bf16.mxu1 %vm24641_vm0, %v29241_v1 }
 0xa11   : > { %v26367_v39 = vpop.f32.mrb[12].mxu0 }
 0xa12   : > { %v26369_v35 = vpop.f32.mrb[13].mxu0 }
 0xa13   : > { %v26371_v37 = vpop.f32.mrb[14].mxu0 }
 0xa14   : > { %20394 = vmatmul.mubr.msk.bf16.vlgmr.msra.gmra.mrb[76].mxu1 %vm7975_vm2, %v24346_v24  ;;  %v26374_v41 = vpop.f32.mrb[15].mxu0 }
 0xa15   : > { %20397 = vmatprep.mubr.msk.bf16.mxu1 %vm24641_vm0, %v29241_v1 }
 0xa19   : > { %v18499_v31 = vpop.f32.mrb[16].mxu0 }
 0xa1a   : > { %v18500_v44 = vpop.f32.mrb[17].mxu0 }
 0xa1b   : > { %v18501_v46 = vadd.f32 %v18500_v44, %v18499_v31  ;;  %v18502_v47 = vpop.f32.mrb[18].mxu0  ;;  %v26435_v31 = vadd.f32 %v18488_v28, %v18487_v20  ;;  %v26444_v44 = vadd.f32 %v18491_v13, %v18490_v34  ;;  %v26455_v34 = vadd.f32 %v26369_v35, %v26367_v39 }
 0xa1c   : > { %20398 = vmatmul.mubr.msk.bf16.gmra.mrb[80].mxu1 %vm7975_vm2, %v24350_v32  ;;  %v18503_v42 = vpop.f32.mrb[19].mxu0 }
 0xa1d   : > { %20401 = vmatprep.mubr.msk.bf16.mxu1 %vm24641_vm0, %v29241_v1  ;;  %v8144_v48 = vadd.f32 %v18501_v46, %v26391_v40  ;;  %v18504_v52 = vadd.f32 %v18503_v42, %v18502_v47 }
 0xa1f   : > { %v8147_v50 = vadd.f32 %v18504_v52, %v26391_v40  ;;  %v26402_v54 = vadd.f32 %v26290_v38, %v8144_v48 }
 0xa21   : > { %v18505_v61 = vpop.f32.mrb[20].mxu0  ;;  %v26410_v63 = vadd.f32 %v26300_v33, %v8147_v50  ;;  %v24366_v50 = vld [vmem:[%s29224_s3 + $0x130] ss:$28 sps:$4 sm:$0xff]  }
 0xa22   : > { %v18506_v3 = vpop.f32.mrb[21].mxu0 }
 0xa23   : > { %v18507_v4 = vadd.f32 %v18506_v3, %v18505_v61  ;;  %v18508_v11 = vpop.f32.mrb[22].mxu0  ;;  %v26468_v61 = vadd.f32 %v26374_v41, %v26371_v37 }
 0xa24   : > { %20402 = vmatmul.mubr.msk.bf16.gmra.mrb[84].mxu1 %vm7975_vm2, %v24354_v58  ;;  %v18509_v2 = vpop.f32.mrb[23].mxu0  ;;  %v8056_v58 = vadd.f32 %v26274_v26, %v26391_v40 }
 0xa25   : > { %20405 = vmatprep.mubr.msk.bf16.mxu1 %vm24641_vm0, %v29241_v1  ;;  %v8152_v38 = vadd.f32 %v18507_v4, %v26391_v40  ;;  %v18510_v49 = vadd.f32 %v18509_v2, %v18508_v11 }
 0xa27   : > { %v8155_v59 = vadd.f32 %v18510_v49, %v26391_v40  ;;  %v26421_v33 = vadd.f32 %v26310_v53, %v8152_v38 }
 0xa29   : > { %v18511_v17 = vpop.f32.mrb[24].mxu0  ;;  %v26429_v19 = vadd.f32 %v26318_v60, %v8155_v59  ;;  %v24362_v60 = vld [vmem:[%s29224_s3 + $0xf8] ss:$28 sps:$4 sm:$0xff]   ;;  %v8067_v59 = vadd.f32 %v26296_v51, %v26391_v40  ;;  %v8072_v51 = vadd.f32 %v26314_v55, %v26391_v40 }
 0xa2a   : > { %v18512_v27 = vpop.f32.mrb[25].mxu0  ;;  %v24378_v55 = vld [vmem:[%s29224_s3 + $0x1d8] ss:$28 sps:$4 sm:$0xff]  }
 0xa2b   : > { %v18513_v24 = vadd.f32 %v18512_v27, %v18511_v17  ;;  %v18514_v32 = vpop.f32.mrb[26].mxu0 }
 0xa2c   : > { %20406 = vmatmul.mubr.msk.bf16.gmra.mrb[88].mxu1 %vm7975_vm2, %v24358_v62  ;;  %v18515_v5 = vpop.f32.mrb[27].mxu0 }
 0xa2d   : > { %20409 = vmatprep.mubr.msk.bf16.mxu1 %vm24641_vm0, %v29241_v1  ;;  %v8160_v53 = vadd.f32 %v18513_v24, %v26391_v40  ;;  %v18516_v10 = vadd.f32 %v18515_v5, %v18514_v32 }
 0xa2f   : > { %v8163_v9 = vadd.f32 %v18516_v10, %v26391_v40  ;;  %v26439_v12 = vadd.f32 %v26326_v16, %v8160_v53 }
 0xa31   : > { %v18517_v46 = vpop.f32.mrb[28].mxu0  ;;  %v26447_v47 = vadd.f32 %v26337_v8, %v8163_v9  ;;  %v8075_v9 = vadd.f32 %v26316_v56, %v26391_v40  ;;  %v24388_v56 = vld [vmem:[%s29225_s4] sm:$0xff]  }
 0xa32   : > { %v18518_v42 = vpop.f32.mrb[29].mxu0  ;;  %20454 = vmatpush3.bf16.msra.mxu1 %v24388_v56  ;;  %v24384_v56 = vld [vmem:[%s29224_s3 + $0x280] ss:$28 sps:$4 sm:$0xff]  }
 0xa33   : > { %v18519_v48 = vadd.f32 %v18518_v42, %v18517_v46  ;;  %v18520_v52 = vpop.f32.mrb[30].mxu0  ;;  %20455 = vmatprep.subr.bf16.mxu1 %v29241_v1 }
 0xa34   : > { %20410 = vmatmul.mubr.msk.bf16.gmra.mrb[92].mxu1 %vm7975_vm2, %v24362_v60  ;;  %v18521_v20 = vpop.f32.mrb[31].mxu0 }
 0xa35   : > { %20413 = vmatprep.mubr.msk.bf16.mxu1 %vm24641_vm0, %v29241_v1  ;;  %v8168_v16 = vadd.f32 %v18519_v48, %v26391_v40  ;;  %v18522_v28 = vadd.f32 %v18521_v20, %v18520_v52 }
 0xa37   : > { %v8171_v13 = vadd.f32 %v18522_v28, %v26391_v40  ;;  %v26459_v8 = vadd.f32 %v26346_v18, %v8168_v16  ;;  %v8059_v18 = vadd.f32 %v26276_v30, %v26391_v40  ;;  %v8064_v30 = vadd.f32 %v26294_v43, %v26391_v40  ;;  %v24374_v43 = vld [vmem:[%s29224_s3 + $0x1a0] ss:$28 sps:$4 sm:$0xff]  }
 0xa38   : > { %v8080_v16 = vadd.f32 %v26332_v6, %v26391_v40 }
 0xa39   : > { %v18539_v3 = vpop.f32.mrb[32].mxu0  ;;  %v26471_v39 = vadd.f32 %v26352_v22, %v8171_v13  ;;  %v24370_v22 = vld [vmem:[%s29224_s3 + $0x168] ss:$28 sps:$4 sm:$0xff]  }
 0xa3a   : > { %v18540_v35 = vpop.f32.mrb[33].mxu0 }
 0xa3b   : > { %v18541_v4 = vadd.f32 %v18540_v35, %v18539_v3  ;;  %v18542_v11 = vpop.f32.mrb[34].mxu0  ;;  %v24389_v35 = vld [vmem:[%s29225_s4 + $0x8] sm:$0xff]  }
 0xa3c   : > { %20414 = vmatmul.mubr.msk.bf16.gmra.mrb[96].mxu1 %vm7975_vm2, %v24366_v50  ;;  %v18543_v2 = vpop.f32.mrb[35].mxu0  ;;  %v8083_v50 = vadd.f32 %v26335_v7, %v26391_v40 }
 0xa3d   : > { %20417 = vmatprep.mubr.msk.bf16.mxu1 %vm24641_vm0, %v29241_v1  ;;  %v26478_v26 = vadd.f32 %v18541_v4, %v8056_v58  ;;  %v18544_v37 = vadd.f32 %v18543_v2, %v18542_v11  ;;  %20456 = vmatpush3.bf16.msra.mxu1 %v24389_v35  ;;  %v24382_v11 = vld [vmem:[%s29224_s3 + $0x210] ss:$28 sps:$4 sm:$0xff]  }
 0xa3e   : > { %20457 = vmatprep.subr.bf16.mxu1 %v29241_v1  ;;  %v24390_v2 = vld [vmem:[%s29225_s4 + $0x10] sm:$0xff]  }
 0xa3f   : > { %v26480_v41 = vadd.f32 %v18544_v37, %v8059_v18  ;;  %v8088_v37 = vadd.f32 %v26341_v15, %v26391_v40 }
 0xa41   : > { %v18545_v38 = vpop.f32.mrb[36].mxu0  ;;  %20458 = vmatpush3.bf16.msra.mxu1 %v24390_v2 }
 0xa42   : > { %v18546_v49 = vpop.f32.mrb[37].mxu0  ;;  %20459 = vmatprep.subr.bf16.mxu1 %v29241_v1 }
 0xa43   : > { %v18547_v62 = vadd.f32 %v18546_v49, %v18545_v38  ;;  %v18548_v17 = vpop.f32.mrb[38].mxu0  ;;  %v8091_v38 = vadd.f32 %v26350_v23, %v26391_v40 }
 0xa44   : > { %20418 = vmatmul.mubr.msk.bf16.gmra.mrb[100].mxu1 %vm7975_vm2, %v24370_v22  ;;  %v18549_v27 = vpop.f32.mrb[39].mxu0 }
 0xa45   : > { %20421 = vmatprep.mubr.msk.bf16.mxu1 %vm24641_vm0, %v29241_v1  ;;  %v26492_v24 = vadd.f32 %v18547_v62, %v8064_v30  ;;  %v18550_v32 = vadd.f32 %v18549_v27, %v18548_v17  ;;  %v24391_v62 = vld [vmem:[%s29225_s4 + $0x18] sm:$0xff]  }
 0xa46   : > { %20460 = vmatpush3.bf16.msra.mxu1 %v24391_v62 }
 0xa47   : > { %v26494_v5 = vadd.f32 %v18550_v32, %v8067_v59  ;;  %20461 = vmatprep.subr.bf16.mxu1 %v29241_v1  ;;  %v24383_v32 = vld [vmem:[%s29224_s3 + $0x248] ss:$28 sps:$4 sm:$0xff]  }
 0xa49   : > { %v18551_v53 = vpop.f32.mrb[40].mxu0 }
 0xa4a   : > { %v18552_v10 = vpop.f32.mrb[41].mxu0 }
 0xa4b   : > { %v18553_v60 = vadd.f32 %v18552_v10, %v18551_v53  ;;  %v18554_v46 = vpop.f32.mrb[42].mxu0 }
 0xa4c   : > { %20422 = vmatmul.mubr.msk.bf16.gmra.mrb[104].mxu1 %vm7975_vm2, %v24374_v43  ;;  %v18555_v42 = vpop.f32.mrb[43].mxu0  ;;  %v24392_v43 = vld [vmem:[%s29225_s4 + $0x20] sm:$0xff]  }
 0xa4d   : > { %20425 = vmatprep.mubr.msk.bf16.mxu1 %vm24641_vm0, %v29241_v1  ;;  %v26506_v48 = vadd.f32 %v18553_v60, %v8072_v51  ;;  %v18556_v52 = vadd.f32 %v18555_v42, %v18554_v46  ;;  %v8096_v51 = vadd.f32 %v26358_v21, %v26391_v40  ;;  %20462 = vmatpush3.bf16.msra.mxu1 %v24392_v43  ;;  %v24393_v42 = vld [vmem:[%s29225_s4 + $0x28] sm:$0xff]  }
 0xa4e   : > { %20463 = vmatprep.subr.bf16.mxu1 %v29241_v1 }
 0xa4f   : > { %v26508_v20 = vadd.f32 %v18556_v52, %v8075_v9  ;;  %v8099_v9 = vadd.f32 %v26365_v25, %v26391_v40 }
 0xa51   : > { %v18557_v28 = vpop.f32.mrb[44].mxu0  ;;  %20464 = vmatpush3.bf16.msra.mxu1 %v24393_v42 }
 0xa52   : > { %v18558_v13 = vpop.f32.mrb[45].mxu0  ;;  %20465 = vmatprep.subr.bf16.mxu1 %v29241_v1 }
 0xa53   : > { %v18559_v58 = vadd.f32 %v18558_v13, %v18557_v28  ;;  %v18560_v3 = vpop.f32.mrb[46].mxu0  ;;  %v8104_v28 = vadd.f32 %v26380_v29, %v26391_v40 }
 0xa54   : > { %20426 = vmatmul.mubr.msk.bf16.gmra.mrb[108].mxu1 %vm7975_vm2, %v24378_v55  ;;  %v18561_v18 = vpop.f32.mrb[47].mxu0 }
 0xa55   : > { %20429 = vmatprep.mubr.msk.bf16.mxu1 %vm24641_vm0, %v29241_v1  ;;  %v26527_v6 = vadd.f32 %v18559_v58, %v8080_v16  ;;  %v18562_v4 = vadd.f32 %v18561_v18, %v18560_v3  ;;  %v24394_v16 = vld [vmem:[%s29225_s4 + $0x30] sm:$0xff]   ;;  %v8107_v58 = vadd.f32 %v26386_v36, %v26391_v40  ;;  %v24395_v18 = vld [vmem:[%s29225_s4 + $0x38] sm:$0xff]  }
 0xa56   : > { %20466 = vmatpush3.bf16.msra.mxu1 %v24394_v16 }
 0xa57   : > { %v26530_v7 = vadd.f32 %v18562_v4, %v8083_v50  ;;  %20467 = vmatprep.subr.bf16.mxu1 %v29241_v1 }
 0xa59   : > { %v18563_v22 = vpop.f32.mrb[48].mxu0 }
 0xa5a   : > { %v18564_v30 = vpop.f32.mrb[49].mxu0  ;;  %20468 = vmatpush3.bf16.msra.mxu1 %v24395_v18 }
 0xa5b   : > { %v18565_v49 = vadd.f32 %v18564_v30, %v18563_v22  ;;  %v18566_v59 = vpop.f32.mrb[50].mxu0  ;;  %20513 = vmatprep.subr.bf16.mxu1 %v29241_v1 }
 0xa5c   : > { %20430 = vmatmul.mubr.msk.bf16.gmra.mrb[112].mxu1 %vm7975_vm2, %v24382_v11  ;;  %v18567_v17 = vpop.f32.mrb[51].mxu0 }
 0xa5d   : > { %20433 = vmatprep.mubr.msk.bf16.mxu1 %vm24641_vm0, %v29241_v1  ;;  %v26549_v15 = vadd.f32 %v18565_v49, %v8088_v37  ;;  %v18568_v27 = vadd.f32 %v18567_v17, %v18566_v59  ;;  %v24385_v37 = vld [vmem:[%s29224_s3 + $0x2b8] ss:$28 sps:$4 sm:$0xff]   ;;  %v8112_v49 = vadd.f32 %v26398_v45, %v26391_v40 }
 0xa5f   : > { %v26552_v23 = vadd.f32 %v18568_v27, %v8091_v38 }
 0xa61   : > { %v18569_v53 = vpop.f32.mrb[52].mxu0 }
 0xa62   : > { %v18570_v10 = vpop.f32.mrb[53].mxu0 }
 0xa63   : > { %v18571_v60 = vadd.f32 %v18570_v10, %v18569_v53  ;;  %v18572_v46 = vpop.f32.mrb[54].mxu0 }
 0xa64   : > { %20434 = vmatmul.mubr.msk.bf16.gmra.mrb[116].mxu1 %vm7975_vm2, %v24383_v32  ;;  %v18573_v52 = vpop.f32.mrb[55].mxu0  ;;  %v8115_v32 = vadd.f32 %v26407_v57, %v26391_v40  ;;  %v24386_v57 = vld [vmem:[%s29224_s3 + $0x2f0] ss:$28 sps:$4 sm:$0xff]  }
 0xa65   : > { %20437 = vmatprep.mubr.msk.bf16.mxu1 %vm24641_vm0, %v29241_v1  ;;  %v26571_v21 = vadd.f32 %v18571_v60, %v8096_v51  ;;  %v18574_v55 = vadd.f32 %v18573_v52, %v18572_v46 }
 0xa67   : > { %v26574_v25 = vadd.f32 %v18574_v55, %v8099_v9 }
 0xa69   : > { %v18575_v13 = vpop.f32.mrb[56].mxu0 }
 0xa6a   : > { %v18576_v50 = vpop.f32.mrb[57].mxu0 }
 0xa6b   : > { %v18577_v3 = vadd.f32 %v18576_v50, %v18575_v13  ;;  %v18578_v35 = vpop.f32.mrb[58].mxu0  ;;  %v8123_v50 = vadd.f32 %v26426_v0, %v26391_v40  ;;  %v24387_v0 = vld [vmem:[%s29224_s3 + $0x328] ss:$28 sps:$4 sm:$0xff]  }
 0xa6c   : > { %20438 = vmatmul.mubr.msk.bf16.gmra.mrb[120].mxu1 %vm7975_vm2, %v24384_v56  ;;  %v18579_v4 = vpop.f32.mrb[59].mxu0  ;;  %v8120_v56 = vadd.f32 %v26417_v14, %v26391_v40 }
 0xa6d   : > { %20441 = vmatprep.mubr.msk.bf16.mxu1 %vm24641_vm0, %v29241_v1  ;;  %v26593_v29 = vadd.f32 %v18577_v3, %v8104_v28  ;;  %v18580_v11 = vadd.f32 %v18579_v4, %v18578_v35 }
 0xa6f   : > { %v18645_v2 = vpop.f32.mrb[16].mxu1  ;;  %v26595_v36 = vadd.f32 %v18580_v11, %v8107_v58 }
 0xa70   : > { %v18646_v22 = vpop.f32.mrb[17].mxu1 }
 0xa71   : > { %v18647_v30 = vadd.f32 %v18646_v22, %v18645_v2  ;;  %v18648_v38 = vpop.f32.mrb[18].mxu1  ;;  %v18581_v59 = vpop.f32.mrb[60].mxu0 }
 0xa72   : > { %v18649_v62 = vpop.f32.mrb[19].mxu1  ;;  %v18582_v17 = vpop.f32.mrb[61].mxu0 }
 0xa73   : > { %v18650_v27 = vadd.f32 %v18649_v62, %v18648_v38  ;;  %v26606_v43 = vadd.f32 %v18647_v30, %v26478_v26  ;;  %v18583_v51 = vadd.f32 %v18582_v17, %v18581_v59  ;;  %v18584_v53 = vpop.f32.mrb[62].mxu0  ;;  %v8128_v38 = vadd.f32 %v26435_v31, %v26391_v40 }
 0xa74   : > { %20442 = vmatmul.mubr.msk.bf16.gmra.mrb[124].mxu1 %vm7975_vm2, %v24385_v37  ;;  %v18585_v10 = vpop.f32.mrb[63].mxu0  ;;  %v8131_v17 = vadd.f32 %v26444_v44, %v26391_v40 }
 0xa75   : > { %20445 = vmatprep.mubr.msk.bf16.mxu1 %vm24641_vm0, %v29241_v1  ;;  %v26612_v45 = vadd.f32 %v18650_v27, %v26480_v41  ;;  %v26614_v9 = vadd.f32 %v18583_v51, %v8112_v49  ;;  %v18586_v60 = vadd.f32 %v18585_v10, %v18584_v53 }
 0xa77   : > { %v18651_v46 = vpop.f32.mrb[20].mxu1  ;;  %v26616_v42 = vadd.f32 %v18586_v60, %v8115_v32 }
 0xa78   : > { %v18652_v26 = vpop.f32.mrb[21].mxu1 }
 0xa79   : > { %v18653_v52 = vadd.f32 %v18652_v26, %v18651_v46  ;;  %v18654_v55 = vpop.f32.mrb[22].mxu1  ;;  %v18587_v16 = vpop.f32.mrb[64].mxu0 }
 0xa7a   : > { %v18655_v28 = vpop.f32.mrb[23].mxu1  ;;  %v18588_v41 = vpop.f32.mrb[65].mxu0 }
 0xa7b   : > { %v18656_v13 = vadd.f32 %v18655_v28, %v18654_v55  ;;  %v26626_v58 = vadd.f32 %v18653_v52, %v26492_v24  ;;  %v18589_v3 = vadd.f32 %v18588_v41, %v18587_v16  ;;  %v18590_v35 = vpop.f32.mrb[66].mxu0  ;;  %v8136_v52 = vadd.f32 %v26455_v34, %v26391_v40 }
 0xa7c   : > { %20446 = vmatmul.mubr.msk.bf16.gmra.mrb[128].mxu1 %vm7975_vm2, %v24386_v57  ;;  %v18591_v18 = vpop.f32.mrb[67].mxu0 }
 0xa7d   : > { %20449 = vmatprep.mubr.msk.bf16.mxu1 %vm24641_vm0, %v29241_v1  ;;  %v26632_v14 = vadd.f32 %v18656_v13, %v26494_v5  ;;  %v26634_v4 = vadd.f32 %v18589_v3, %v8120_v56  ;;  %v18592_v11 = vadd.f32 %v18591_v18, %v18590_v35 }
 0xa7f   : > { %v18657_v2 = vpop.f32.mrb[24].mxu1  ;;  %v26636_v37 = vadd.f32 %v18592_v11, %v8123_v50 }
 0xa80   : > { %v18658_v24 = vpop.f32.mrb[25].mxu1 }
 0xa81   : > { %v18659_v22 = vadd.f32 %v18658_v24, %v18657_v2  ;;  %v18660_v30 = vpop.f32.mrb[26].mxu1  ;;  %v18593_v49 = vpop.f32.mrb[68].mxu0 }
 0xa82   : > { %v18661_v59 = vpop.f32.mrb[27].mxu1  ;;  %v18594_v5 = vpop.f32.mrb[69].mxu0 }
 0xa83   : > { %v18662_v62 = vadd.f32 %v18661_v59, %v18660_v30  ;;  %v26646_v27 = vadd.f32 %v18659_v22, %v26506_v48  ;;  %v18595_v32 = vadd.f32 %v18594_v5, %v18593_v49  ;;  %v18596_v51 = vpop.f32.mrb[70].mxu0 }
 0xa84   : > { %20450 = vmatmul.mubr.msk.bf16.gmra.mrb[132].mxu1 %vm7975_vm2, %v24387_v0  ;;  %v18597_v53 = vpop.f32.mrb[71].mxu0 }
 0xa85   : > { %20469 = vmatprep.mubr.msk.bf16.mxu1 %vm24641_vm0, %v29241_v1  ;;  %v26652_v31 = vadd.f32 %v18662_v62, %v26508_v20  ;;  %v26654_v10 = vadd.f32 %v18595_v32, %v8128_v38  ;;  %v18598_v60 = vadd.f32 %v18597_v53, %v18596_v51  ;;  %v8139_v20 = vadd.f32 %v26468_v61, %v26391_v40 }
 0xa87   : > { %v18663_v46 = vpop.f32.mrb[28].mxu1  ;;  %v26656_v57 = vadd.f32 %v18598_v60, %v8131_v17 }
 0xa88   : > { %v18664_v44 = vpop.f32.mrb[29].mxu1 }
 0xa89   : > { %v18665_v48 = vadd.f32 %v18664_v44, %v18663_v46  ;;  %v18666_v26 = vpop.f32.mrb[30].mxu1  ;;  %v18599_v55 = vpop.f32.mrb[72].mxu0 }
 0xa8a   : > { %v18667_v56 = vpop.f32.mrb[31].mxu1  ;;  %v18600_v16 = vpop.f32.mrb[73].mxu0 }
 0xa8b   : > { %v18668_v28 = vadd.f32 %v18667_v56, %v18666_v26  ;;  %v26663_v41 = vadd.f32 %v18665_v48, %v26527_v6  ;;  %v18601_v13 = vadd.f32 %v18600_v16, %v18599_v55  ;;  %v18602_v50 = vpop.f32.mrb[74].mxu0 }
 0xa8c   : > { %v18603_v3 = vpop.f32.mrb[75].mxu0 }
 0xa8d   : > { %v26666_v35 = vadd.f32 %v18668_v28, %v26530_v7  ;;  %v8289_v18 = vadd.f32 %v18601_v13, %v8136_v52  ;;  %v18604_v11 = vadd.f32 %v18603_v3, %v18602_v50 }
 0xa8f   : > { %v18669_v2 = vpop.f32.mrb[32].mxu1  ;;  %v8292_v34 = vadd.f32 %v18604_v11, %v8139_v20 }
 0xa90   : > { %v18670_v0 = vpop.f32.mrb[33].mxu1 }
 0xa91   : > { %v18671_v24 = vadd.f32 %v18670_v0, %v18669_v2  ;;  %v18672_v22 = vpop.f32.mrb[34].mxu1 }
 0xa92   : > { %v18673_v30 = vpop.f32.mrb[35].mxu1 }
 0xa93   : > { %v18674_v38 = vadd.f32 %v18673_v30, %v18672_v22  ;;  %v26669_v40 = vadd.f32 %v18671_v24, %v26549_v15 }
 0xa95   : > { %v26672_v61 = vadd.f32 %v18674_v38, %v26552_v23 }
 0xa97   : > { %v18675_v6 = vpop.f32.mrb[36].mxu1 }
 0xa98   : > { %v18676_v49 = vpop.f32.mrb[37].mxu1 }
 0xa99   : > { %v18677_v59 = vadd.f32 %v18676_v49, %v18675_v6  ;;  %v18678_v7 = vpop.f32.mrb[38].mxu1 }
 0xa9a   : > { %v18679_v5 = vpop.f32.mrb[39].mxu1 }
 0xa9b   : > { %v18680_v62 = vadd.f32 %v18679_v5, %v18678_v7  ;;  %v26675_v17 = vadd.f32 %v18677_v59, %v26571_v21 }
 0xa9d   : > { %v26678_v32 = vadd.f32 %v18680_v62, %v26574_v25 }
 0xa9f   : > { %v18681_v51 = vpop.f32.mrb[40].mxu1 }
 0xaa0   : > { %v18682_v53 = vpop.f32.mrb[41].mxu1 }
 0xaa1   : > { %v18683_v60 = vadd.f32 %v18682_v53, %v18681_v51  ;;  %v18684_v15 = vpop.f32.mrb[42].mxu1 }
 0xaa2   : > { %v18685_v46 = vpop.f32.mrb[43].mxu1 }
 0xaa3   : > { %v18686_v44 = vadd.f32 %v18685_v46, %v18684_v15  ;;  %v26681_v23 = vadd.f32 %v18683_v60, %v26593_v29 }
 0xaa5   : > { %v26684_v48 = vadd.f32 %v18686_v44, %v26595_v36 }
 0xaa7   : > { %v18687_v26 = vpop.f32.mrb[44].mxu1 }
 0xaa8   : > { %v18688_v52 = vpop.f32.mrb[45].mxu1 }
 0xaa9   : > { %v18689_v55 = vadd.f32 %v18688_v52, %v18687_v26  ;;  %v18690_v21 = vpop.f32.mrb[46].mxu1 }
 0xaaa   : > { %v18691_v56 = vpop.f32.mrb[47].mxu1 }
 0xaab   : > { %v18692_v16 = vadd.f32 %v18691_v56, %v18690_v21  ;;  %v26687_v25 = vadd.f32 %v18689_v55, %v26614_v9 }
 0xaad   : > { %v26690_v28 = vadd.f32 %v18692_v16, %v26616_v42 }
 0xaaf   : > { %v18693_v20 = vpop.f32.mrb[48].mxu1 }
 0xab0   : > { %v18694_v13 = vpop.f32.mrb[49].mxu1 }
 0xab1   : > { %v18695_v50 = vadd.f32 %v18694_v13, %v18693_v20  ;;  %v18696_v29 = vpop.f32.mrb[50].mxu1 }
 0xab2   : > { %v18697_v3 = vpop.f32.mrb[51].mxu1 }
 0xab3   : > { %v18698_v11 = vadd.f32 %v18697_v3, %v18696_v29  ;;  %v26693_v36 = vadd.f32 %v18695_v50, %v26634_v4 }
 0xab5   : > { %v26696_v2 = vadd.f32 %v18698_v11, %v26636_v37 }
 0xab7   : > { %v18699_v0 = vpop.f32.mrb[52].mxu1 }
 0xab8   : > { %v18700_v24 = vpop.f32.mrb[53].mxu1 }
 0xab9   : > { %v18701_v22 = vadd.f32 %v18700_v24, %v18699_v0  ;;  %v18702_v9 = vpop.f32.mrb[54].mxu1 }
 0xaba   : > { %v18703_v30 = vpop.f32.mrb[55].mxu1 }
 0xabb   : > { %v18704_v38 = vadd.f32 %v18703_v30, %v18702_v9  ;;  %v26699_v42 = vadd.f32 %v18701_v22, %v26654_v10 }
 0xabd   : > { %v26702_v6 = vadd.f32 %v18704_v38, %v26656_v57 }
 0xabf   : > { %v18705_v49 = vpop.f32.mrb[56].mxu1 }
 0xac0   : > { %v18706_v59 = vpop.f32.mrb[57].mxu1 }
 0xac1   : > { %v18707_v7 = vadd.f32 %v18706_v59, %v18705_v49  ;;  %v18708_v4 = vpop.f32.mrb[58].mxu1 }
 0xac2   : > { %v18709_v5 = vpop.f32.mrb[59].mxu1 }
 0xac3   : > { %v18710_v62 = vadd.f32 %v18709_v5, %v18708_v4  ;;  %v26704_v37 = vadd.f32 %v18707_v7, %v8289_v18 }
 0xac5   : > { %v26706_v51 = vadd.f32 %v18710_v62, %v8292_v34 }
 0xac7   : > { %v18711_v53 = vpop.f32.mrb[60].mxu1 }
 0xac8   : > { %v18712_v60 = vpop.f32.mrb[61].mxu1 }
 0xac9   : > { %v18713_v15 = vadd.f32 %v18712_v60, %v18711_v53  ;;  %v18714_v46 = vpop.f32.mrb[62].mxu1  ;;  %v24396_v60 = vld [vmem:[%s29225_s4 + $0x40] sm:$0xff]  }
 0xaca   : > { %v18715_v44 = vpop.f32.mrb[63].mxu1 }
 0xacb   : > { %v18716_v10 = vadd.f32 %v18715_v44, %v18714_v46  ;;  %v26709_v26 = vadd.f32 %v18713_v15, %v26402_v54 }
 0xacd   : > { %v26712_v57 = vadd.f32 %v18716_v10, %v26410_v63 }
 0xacf   : > { %v18717_v52 = vpop.f32.mrb[64].mxu1 }
 0xad0   : > { %v18718_v55 = vpop.f32.mrb[65].mxu1 }
 0xad1   : > { %v18719_v21 = vadd.f32 %v18718_v55, %v18717_v52  ;;  %v18720_v56 = vpop.f32.mrb[66].mxu1 }
 0xad2   : > { %v18721_v18 = vpop.f32.mrb[67].mxu1 }
 0xad3   : > { %v18722_v16 = vadd.f32 %v18721_v18, %v18720_v56  ;;  %v26715_v34 = vadd.f32 %v18719_v21, %v26421_v33 }
 0xad5   : > { %v26718_v20 = vadd.f32 %v18722_v16, %v26429_v19 }
 0xad7   : > { %v18723_v13 = vpop.f32.mrb[68].mxu1 }
 0xad8   : > { %v18724_v50 = vpop.f32.mrb[69].mxu1 }
 0xad9   : > { %v18725_v29 = vadd.f32 %v18724_v50, %v18723_v13  ;;  %v18726_v54 = vpop.f32.mrb[70].mxu1 }
 0xada   : > { %v18727_v3 = vpop.f32.mrb[71].mxu1 }
 0xadb   : > { %v18728_v11 = vadd.f32 %v18727_v3, %v18726_v54  ;;  %v26721_v63 = vadd.f32 %v18725_v29, %v26439_v12  ;;  %v24399_v3 = vld [vmem:[%s29225_s4 + $0x58] sm:$0xff]  }
 0xadd   : > { %v26724_v0 = vadd.f32 %v18728_v11, %v26447_v47 }
 0xadf   : > { %v18729_v24 = vpop.f32.mrb[72].mxu1 }
 0xae0   : > { %v18730_v22 = vpop.f32.mrb[73].mxu1 }
 0xae1   : > { %v18731_v9 = vadd.f32 %v18730_v22, %v18729_v24  ;;  %v18732_v33 = vpop.f32.mrb[74].mxu1 }
 0xae2   : > { %v18733_v30 = vpop.f32.mrb[75].mxu1 }
 0xae3   : > { %v18734_v38 = vadd.f32 %v18733_v30, %v18732_v33  ;;  %v26727_v19 = vadd.f32 %v18731_v9, %v26459_v8 }
 0xae5   : > { %v26730_v49 = vadd.f32 %v18734_v38, %v26471_v39  ;;  %v24400_v38 = vld [vmem:[%s29225_s4 + $0x60] sm:$0xff]  }
 0xae7   : > { %v8514_v59 = vpop.f32.mrb[76].mxu1 }
 0xae8   : > { %v8515_v7 = vadd.f32 %v8514_v59, %v26606_v43  ;;  %v20395_v12 = vpop.f32.mrb[77].mxu1  ;;  %v24397_v43 = vld [vmem:[%s29225_s4 + $0x48] sm:$0xff]  }
 0xae9   : > { %v8517_v4 = vpop.f32.mrb[78].mxu1 }
 0xaea   : > { %v8518_v47 = vadd.f32 %v8517_v4, %v26612_v45  ;;  %v20396_v5 = vpop.f32.mrb[79].mxu1  ;;  %v8633_v62 = vmax.f32 %v8515_v7, 0.0 }
 0xaec   : > { %v8634_v53 = vmax.f32 %v8518_v47, 0.0 }
 0xaee   : > { %v8663_v15 = vpack.c.bf16 %v8634_v53, %v8633_v62 }
 0xaef   : > { %v8522_v8 = vpop.f32.mrb[80].mxu1 }
 0xaf0   : > { %8678 = vst [vmem:[#allocation3] sm:$0xff] %v8663_v15  ;;  %v8523_v39 = vadd.f32 %v8522_v8, %v26626_v58  ;;  %v20399_v46 = vpop.f32.mrb[81].mxu1  ;;  %20470 = vmatmul.mubr.bf16.vlgmr.msra.gmra.mrb[136].mxu1 %v8663_v15  ;;  %v8941_v52 = vshll.u32 %v8663_v15, 16  ;;  %v24398_v58 = vld [vmem:[%s29225_s4 + $0x50] sm:$0xff]   ;;  %v8939_v50 = vshrl.u32 %v8663_v15, 16  ;;  %v24401_v15 = vld [vmem:[%s29225_s4 + $0x68] sm:$0xff]  }
 0xaf1   : > { %v8525_v44 = vpop.f32.mrb[82].mxu1  ;;  %20473 = vmatprep.mubr.msk.bf16.mxu1 %vm24641_vm0, %v29241_v1  ;;  %20514 = vmatpush3.bf16.msra.mxu1 %v24396_v60 }
 0xaf2   : > { %v8526_v45 = vadd.f32 %v8525_v44, %v26632_v14  ;;  %v20400_v10 = vpop.f32.mrb[83].mxu1  ;;  %20515 = vmatprep.subr.bf16.mxu1 %v29241_v1  ;;  %v8635_v55 = vmax.f32 %v8523_v39, 0.0  ;;  %v8943_v18 = vrot.slane %v8941_v52, 1 }
 0xaf4   : > { %v8636_v21 = vmax.f32 %v8526_v45, 0.0 }
 0xaf5   : > { %20516 = vmatpush3.bf16.msra.mxu1 %v24397_v43 }
 0xaf6   : > { %v26748_v56 = vpack.c.bf16 %v8636_v21, %v8635_v55  ;;  %20517 = vmatprep.subr.bf16.mxu1 %v29241_v1 }
 0xaf7   : > { %v8530_v16 = vpop.f32.mrb[84].mxu1 }
 0xaf8   : > { %8679 = vst [vmem:[#allocation3 + $0x8] sm:$0xff] %v26748_v56  ;;  %v8531_v14 = vadd.f32 %v8530_v16, %v26646_v27  ;;  %v20403_v13 = vpop.f32.mrb[85].mxu1  ;;  %20474 = vmatmul.mubr.bf16.gmra.mrb[140].mxu1 %v26748_v56  ;;  %v8946_v29 = vshll.u32 %v26748_v56, 16  ;;  %v8944_v27 = vor.u32 %v8943_v18, %v8939_v50  ;;  %v29239_v62 = vrot.slane %v26748_v56, 1 }
 0xaf9   : > { %v8533_v54 = vpop.f32.mrb[86].mxu1  ;;  %20477 = vmatprep.mubr.msk.bf16.mxu1 %vm24641_vm0, %v29241_v1  ;;  %20518 = vmatpush3.bf16.msra.mxu1 %v24398_v58 }
 0xafa   : > { %v8534_v11 = vadd.f32 %v8533_v54, %v26652_v31  ;;  %v20404_v24 = vpop.f32.mrb[87].mxu1  ;;  %20519 = vmatprep.subr.bf16.mxu1 %v29241_v1  ;;  %v8948_v22 = vrot.slane %v8946_v29, 1  ;;  %v8637_v9 = vmax.f32 %v8531_v14, 0.0  ;;  %v8950_v31 = vshrl.u32 %v26748_v56, 16 }
 0xafc   : > { %v8638_v33 = vmax.f32 %v8534_v11, 0.0  ;;  %v26763_v30 = vsel %vm8937_vm3, %v8944_v27, %v8948_v22  ;;  %v8952_v46 = vor.u32 %v8950_v31, %v8948_v22  ;;  %v24403_v27 = vld [vmem:[%s29225_s4 + $0x78] sm:$0xff]  }
 0xafd   : > { %20520 = vmatpush3.bf16.msra.mxu1 %v24399_v3 }
 0xafe   : > { %v8665_v59 = vpack.c.bf16 %v8638_v33, %v8637_v9  ;;  %20521 = vmatprep.subr.bf16.mxu1 %v29241_v1 }
 0xaff   : > { %v8538_v7 = vpop.f32.mrb[88].mxu1  ;;  %v26770_v12 = vld [vmem:[#allocation3 + $0x8] sm:$0xff] }
 0xb00   : > { %8680 = vst [vmem:[#allocation3 + $0x10] sm:$0xff] %v8665_v59  ;;  %v8539_v4 = vadd.f32 %v8538_v7, %v26663_v41  ;;  %v20407_v47 = vpop.f32.mrb[89].mxu1  ;;  %20478 = vmatmul.mubr.bf16.gmra.mrb[144].mxu1 %v8665_v59  ;;  %v8954_v5 = vshll.u32 %v8665_v59, 16  ;;  %v9310_v53 = vrot.slane %v8665_v59, 1  ;;  %v29234_v8 = vshll.u32 %v26770_v12, 16 }
 0xb01   : > { %v8541_v60 = vpop.f32.mrb[90].mxu1  ;;  %20481 = vmatprep.mubr.msk.bf16.mxu1 %vm24641_vm0, %v29241_v1  ;;  %20522 = vmatpush3.bf16.msra.mxu1 %v24400_v38  ;;  %v29238_v45 = vshrl.u32 %v26770_v12, 16  ;;  %v8958_v14 = vshrl.u32 %v8665_v59, 16 }
 0xb02   : > { %v8542_v41 = vadd.f32 %v8541_v60, %v26666_v35  ;;  %v20408_v39 = vpop.f32.mrb[91].mxu1  ;;  %20523 = vmatprep.subr.bf16.mxu1 %v29241_v1  ;;  %v8956_v44 = vrot.slane %v8954_v5, 1  ;;  %v26785_v43 = vsel %vm9306_vm4, %v29239_v62, %v9310_v53  ;;  %v10534_v10 = vrot.slane %v29234_v8, 1  ;;  %v24402_v35 = vld [vmem:[%s29225_s4 + $0x70] sm:$0xff]  }
 0xb03   : > { %v8639_v52 = vmax.f32 %v8539_v4, 0.0 }
 0xb04   : > { %v8640_v55 = vmax.f32 %v8542_v41, 0.0  ;;  %v26791_v21 = vsel %vm8937_vm3, %v8952_v46, %v8956_v44  ;;  %v10535_v58 = vor.u32 %v10534_v10, %v29238_v45 }
 0xb05   : > { %20524 = vmatpush3.bf16.msra.mxu1 %v24401_v15 }
 0xb06   : > { %v8666_v18 = vpack.c.bf16 %v8640_v55, %v8639_v52  ;;  %20525 = vmatprep.subr.bf16.mxu1 %v29241_v1 }
 0xb07   : > { %v8546_v16 = vpop.f32.mrb[92].mxu1  ;;  %v26799_v13 = vld [vmem:[#allocation3 + $0x10] sm:$0xff] }
 0xb08   : > { %8681 = vst [vmem:[#allocation3 + $0x18] sm:$0xff] %v8666_v18  ;;  %v8547_v50 = vadd.f32 %v8546_v16, %v26669_v40  ;;  %v20411_v29 = vpop.f32.mrb[93].mxu1  ;;  %20482 = vmatmul.mubr.bf16.gmra.mrb[148].mxu1 %v8666_v18  ;;  %v8962_v54 = vshll.u32 %v8666_v18, 16  ;;  %v8966_v3 = vshrl.u32 %v8666_v18, 16  ;;  %v9312_v11 = vrot.slane %v8666_v18, 1 }
 0xb09   : > { %v8549_v24 = vpop.f32.mrb[94].mxu1  ;;  %20485 = vmatprep.mubr.msk.bf16.mxu1 %vm24641_vm0, %v29241_v1  ;;  %20526 = vmatpush3.bf16.msra.mxu1 %v24402_v35  ;;  %v29231_v22 = vshll.u32 %v26799_v13, 16  ;;  %v8960_v40 = vor.u32 %v8958_v14, %v8956_v44  ;;  %v29233_v60 = vshrl.u32 %v26799_v13, 16 }
 0xb0a   : > { %v8550_v9 = vadd.f32 %v8549_v24, %v26672_v61  ;;  %v20412_v33 = vpop.f32.mrb[95].mxu1  ;;  %20527 = vmatprep.subr.bf16.mxu1 %v29241_v1  ;;  %v8964_v38 = vrot.slane %v8962_v54, 1  ;;  %v26811_v59 = vsel %vm9306_vm4, %v9310_v53, %v9312_v11  ;;  %v9628_v7 = vrot.slane %v8966_v3, 1 }
 0xb0b   : > { %v9631_v31 = vrot.slane %v8962_v54, 2  ;;  %v8641_v4 = vmax.f32 %v8547_v50, 0.0  ;;  %v10539_v61 = vrot.slane %v29231_v22, 1 }
 0xb0c   : > { %v8642_v47 = vmax.f32 %v8550_v9, 0.0  ;;  %v26814_v5 = vsel %vm8937_vm3, %v8960_v40, %v8964_v38  ;;  %v8968_v14 = vor.u32 %v8966_v3, %v8964_v38 }
 0xb0d   : > { %20528 = vmatpush3.bf16.msra.mxu1 %v24403_v27  ;;  %v26817_v15 = vor.u32 %v9631_v31, %v9628_v7  ;;  %v26823_v39 = vsel %vm8937_vm3, %v10535_v58, %v10539_v61  ;;  %v26827_v46 = vor.u32 %v10539_v61, %v29233_v60 }
 0xb0e   : > { %v8667_v41 = vpack.c.bf16 %v8642_v47, %v8641_v4  ;;  %20573 = vmatprep.subr.bf16.mxu1 %v29241_v1 }
 0xb0f   : > { %v8554_v53 = vpop.f32.mrb[96].mxu1  ;;  %v26836_v54 = vld [vmem:[#allocation3 + $0x18] sm:$0xff] }
 0xb10   : > { %8682 = vst [vmem:[#allocation3 + $0x20] sm:$0xff] %v8667_v41  ;;  %v8555_v44 = vadd.f32 %v8554_v53, %v26675_v17  ;;  %v20415_v10 = vpop.f32.mrb[97].mxu1  ;;  %20486 = vmatmul.mubr.bf16.gmra.mrb[152].mxu1 %v8667_v41  ;;  %v8970_v52 = vshll.u32 %v8667_v41, 16  ;;  %v8974_v55 = vshrl.u32 %v8667_v41, 16  ;;  %v9314_v35 = vrot.slane %v8667_v41, 1 }
 0xb11   : > { %v8557_v18 = vpop.f32.mrb[98].mxu1  ;;  %20489 = vmatprep.mubr.msk.bf16.mxu1 %vm24641_vm0, %v29241_v1  ;;  %v29229_v7 = vshrl.u32 %v26836_v54, 16 }
 0xb12   : > { %v8558_v16 = vadd.f32 %v8557_v18, %v26678_v32  ;;  %v20416_v58 = vpop.f32.mrb[99].mxu1  ;;  %v8972_v50 = vrot.slane %v8970_v52, 1  ;;  %v26834_v29 = vsel %vm9306_vm4, %v9312_v11, %v9314_v35  ;;  %v9637_v17 = vrot.slane %v8974_v55, 1 }
 0xb13   : > { %v9640_v24 = vrot.slane %v8970_v52, 2  ;;  %v8643_v27 = vmax.f32 %v8555_v44, 0.0  ;;  %v29230_v32 = vshll.u32 %v26836_v54, 16  ;;  %v11208_v10 = vrot.slane %v29229_v7, 1 }
 0xb14   : > { %v8644_v9 = vmax.f32 %v8558_v16, 0.0  ;;  %v26839_v33 = vsel %vm8937_vm3, %v8968_v14, %v8972_v50  ;;  %v8976_v44 = vor.u32 %v8974_v55, %v8972_v50  ;;  %v26863_v50 = vld [vmem:[#allocation3 + $0x10] sm:$0xff] }
 0xb15   : > { %v9641_v40 = vor.u32 %v9640_v24, %v9637_v17  ;;  %v11211_v14 = vrot.slane %v29230_v32, 2  ;;  %29299 = vst [vmem:[#allocation5_spill] sm:$0xff] %v26863_v50 }
 0xb16   : > { %v8668_v31 = vpack.c.bf16 %v8644_v9, %v8643_v27 }
 0xb17   : > { %v8562_v3 = vpop.f32.mrb[100].mxu1  ;;  %v26845_v11 = vsel %vm9598_vm5, %v26817_v15, %v9641_v40 }
 0xb18   : > { %8683 = vst [vmem:[#allocation3 + $0x28] sm:$0xff] %v8668_v31  ;;  %v8563_v38 = vadd.f32 %v8562_v3, %v26681_v23  ;;  %v20419_v4 = vpop.f32.mrb[101].mxu1  ;;  %20490 = vmatmul.mubr.bf16.gmra.mrb[156].mxu1 %v8668_v31  ;;  %v8978_v47 = vshll.u32 %v8668_v31, 16  ;;  %v8982_v61 = vshrl.u32 %v8668_v31, 16  ;;  %v9316_v41 = vrot.slane %v8668_v31, 1  ;;  %v26856_v23 = vld [vmem:[#allocation3 + $0x20] sm:$0xff] }
 0xb19   : > { %v8565_v53 = vpop.f32.mrb[102].mxu1  ;;  %20493 = vmatprep.mubr.msk.bf16.mxu1 %vm24641_vm0, %v29241_v1  ;;  %v29232_v31 = vshrl.u32 %v26856_v23, 16  ;;  %v26867_v4 = vor.u32 %v11211_v14, %v11208_v10 }
 0xb1a   : > { %v8566_v52 = vadd.f32 %v8565_v53, %v26684_v48  ;;  %v20420_v18 = vpop.f32.mrb[103].mxu1  ;;  %v8980_v16 = vrot.slane %v8978_v47, 1  ;;  %v26854_v58 = vsel %vm9306_vm4, %v9314_v35, %v9316_v41  ;;  %v9646_v17 = vrot.slane %v8982_v61, 1 }
 0xb1b   : > { %v9649_v24 = vrot.slane %v8978_v47, 2  ;;  %v8645_v27 = vmax.f32 %v8563_v38, 0.0  ;;  %v29235_v35 = vshll.u32 %v26856_v23, 16  ;;  %29300 = vst [vmem:[#allocation6_spill] sm:$0xff] %v26867_v4  ;;  %v29236_v38 = vshll.u32 %v26863_v50, 16 }
 0xb1c   : > { %v8646_v9 = vmax.f32 %v8566_v52, 0.0  ;;  %v26861_v55 = vsel %vm8937_vm3, %v8976_v44, %v8980_v16  ;;  %v8984_v10 = vor.u32 %v8982_v61, %v8980_v16  ;;  %v11217_v14 = vrot.slane %v29232_v31, 1 }
 0xb1d   : > { %v9650_v48 = vor.u32 %v9649_v24, %v9646_v17  ;;  %v12122_v61 = vrot.slane %v29236_v38, 1 }
 0xb1e   : > { %v8669_v3 = vpack.c.bf16 %v8646_v9, %v8645_v27 }
 0xb1f   : > { %v8570_v53 = vpop.f32.mrb[104].mxu1  ;;  %v26870_v18 = vsel %vm9598_vm5, %v9641_v40, %v9650_v48 }
 0xb20   : > { %8684 = vst [vmem:[#allocation3 + $0x30] sm:$0xff] %v8669_v3  ;;  %v8571_v47 = vadd.f32 %v8570_v53, %v26687_v25  ;;  %v20423_v44 = vpop.f32.mrb[105].mxu1  ;;  %20494 = vmatmul.mubr.bf16.gmra.mrb[160].mxu1 %v8669_v3  ;;  %v8986_v52 = vshll.u32 %v8669_v3, 16  ;;  %v8990_v17 = vshrl.u32 %v8669_v3, 16  ;;  %v9318_v24 = vrot.slane %v8669_v3, 1  ;;  %v26882_v25 = vld [vmem:[#allocation3 + $0x28] sm:$0xff] }
 0xb21   : > { %v8573_v7 = vpop.f32.mrb[106].mxu1  ;;  %20497 = vmatprep.mubr.msk.bf16.mxu1 %vm24641_vm0, %v29241_v1  ;;  %29301 = vst [vmem:[#allocation7_spill] sm:$0xff] %v26882_v25  ;;  %v11220_v3 = vrot.slane %v29235_v35, 2  ;;  %v29243_v60 = vshll.u32 %v26882_v25, 16 }
 0xb22   : > { %v8574_v40 = vadd.f32 %v8573_v7, %v26690_v28  ;;  %v20424_v27 = vpop.f32.mrb[107].mxu1  ;;  %v8988_v9 = vrot.slane %v8986_v52, 1  ;;  %v26880_v32 = vsel %vm9306_vm4, %v9316_v41, %v9318_v24  ;;  %v9655_v53 = vrot.slane %v8990_v17, 1 }
 0xb23   : > { %v9658_v44 = vrot.slane %v8986_v52, 2  ;;  %v8647_v16 = vmax.f32 %v8571_v47, 0.0  ;;  %v29240_v7 = vshrl.u32 %v26882_v25, 16  ;;  %v29237_v41 = vshrl.u32 %v26863_v50, 16 }
 0xb24   : > { %v8648_v22 = vmax.f32 %v8574_v40, 0.0  ;;  %v26889_v31 = vsel %vm8937_vm3, %v8984_v10, %v8988_v9  ;;  %v11221_v8 = vor.u32 %v11220_v3, %v11217_v14  ;;  %v8992_v14 = vor.u32 %v8990_v17, %v8988_v9 }
 0xb25   : > { %v9659_v28 = vor.u32 %v9658_v44, %v9655_v53  ;;  %v26899_v47 = vor.u32 %v12122_v61, %v29237_v41 }
 0xb26   : > { %v8670_v27 = vpack.c.bf16 %v8648_v22, %v8647_v16 }
 0xb27   : > { %v8578_v35 = vpop.f32.mrb[108].mxu1  ;;  %v26895_v52 = vsel %vm9598_vm5, %v9650_v48, %v9659_v28  ;;  %29302 = vst [vmem:[#allocation8_spill] sm:$0xff] %v26899_v47  ;;  %v11226_v48 = vrot.slane %v29240_v7, 1 }
 0xb28   : > { %8685 = vst [vmem:[#allocation3 + $0x38] sm:$0xff] %v8670_v27  ;;  %v8579_v10 = vadd.f32 %v8578_v35, %v26693_v36  ;;  %v20427_v40 = vpop.f32.mrb[109].mxu1  ;;  %20498 = vmatmul.mubr.bf16.gmra.mrb[164].mxu1 %v8670_v27  ;;  %v8994_v53 = vshll.u32 %v8670_v27, 16  ;;  %v8998_v44 = vshrl.u32 %v8670_v27, 16  ;;  %v9320_v38 = vrot.slane %v8670_v27, 1  ;;  %v26910_v36 = vld [vmem:[#allocation3 + $0x30] sm:$0xff] }
 0xb29   : > { %v8581_v22 = vpop.f32.mrb[110].mxu1  ;;  %20501 = vmatprep.mubr.msk.bf16.mxu1 %vm24641_vm0, %v29241_v1  ;;  %29303 = vst [vmem:[#allocation9_spill] sm:$0xff] %v26910_v36  ;;  %v11229_v35 = vrot.slane %v29243_v60, 2 }
 0xb2a   : > { %v8582_v3 = vadd.f32 %v8581_v22, %v26696_v2  ;;  %v20428_v61 = vpop.f32.mrb[111].mxu1  ;;  %v8996_v16 = vrot.slane %v8994_v53, 1  ;;  %v26908_v41 = vsel %vm9306_vm4, %v9318_v24, %v9320_v38  ;;  %v9664_v27 = vrot.slane %v8998_v44, 1 }
 0xb2b   : > { %v9667_v40 = vrot.slane %v8994_v53, 2  ;;  %v8649_v45 = vmax.f32 %v8579_v10, 0.0  ;;  %v26920_v22 = vsel %vm9598_vm5, %v26867_v4, %v11221_v8  ;;  %v11230_v7 = vor.u32 %v11229_v35, %v11226_v48 }
 0xb2c   : > { %v8650_v62 = vmax.f32 %v8582_v3, 0.0  ;;  %v26915_v17 = vsel %vm8937_vm3, %v8992_v14, %v8996_v16  ;;  %29304 = vst [vmem:[#allocation10_spill] sm:$0xff] %v26920_v22  ;;  %v29305_v2 = vmov 0.0  }
 0xb2d   : > { %v9668_v9 = vor.u32 %v9667_v40, %v9664_v27 }
 0xb2e   : > { %v8671_v24 = vpack.c.bf16 %v8650_v62, %v8649_v45  ;;  %v9000_v62 = vor.u32 %v8998_v44, %v8996_v16  ;;  %v29306_v45 = vshrl.u32 %v26910_v36, 16 }
 0xb2f   : > { %v8586_v1 = vpop.f32.mrb[112].mxu1  ;;  %v26924_v60 = vsel %vm9598_vm5, %v9659_v28, %v9668_v9 }
 0xb30   : > { %8686 = vst [vmem:[#allocation3 + $0x40] sm:$0xff] %v8671_v24  ;;  %v8587_v10 = vadd.f32 %v8586_v1, %v26699_v42  ;;  %v20431_v53 = vpop.f32.mrb[113].mxu1  ;;  %20502 = vmatmul.mubr.bf16.gmra.mrb[168].mxu1 %v8671_v24  ;;  %v9002_v14 = vshll.u32 %v8671_v24, 16  ;;  %v9006_v3 = vshrl.u32 %v8671_v24, 16  ;;  %v9322_v27 = vrot.slane %v8671_v24, 1  ;;  %v26935_v1 = vld [vmem:[#allocation3 + $0x38] sm:$0xff] }
 0xb31   : > { %v8589_v40 = vpop.f32.mrb[114].mxu1  ;;  %20505 = vmatprep.mubr.msk.bf16.mxu1 %vm24641_vm0, %v29305_v2  ;;  %v11235_v48 = vrot.slane %v29306_v45, 1  ;;  %29307 = vst [vmem:[#allocation11_spill] sm:$0xff] %v26935_v1  ;;  %v29308_v42 = vshll.u32 %v26910_v36, 16 }
 0xb32   : > { %v8590_v35 = vadd.f32 %v8589_v40, %v26702_v6  ;;  %v20432_v28 = vpop.f32.mrb[115].mxu1  ;;  %v9004_v61 = vrot.slane %v9002_v14, 1  ;;  %v26933_v47 = vsel %vm9306_vm4, %v9320_v38, %v9322_v27  ;;  %v9673_v53 = vrot.slane %v9006_v3, 1 }
 0xb33   : > { %v11238_v24 = vrot.slane %v29308_v42, 2  ;;  %v9676_v22 = vrot.slane %v9002_v14, 2  ;;  %v8651_v4 = vmax.f32 %v8587_v10, 0.0  ;;  %v29250_v6 = vshll.u32 %v26935_v1, 16 }
 0xb34   : > { %v8652_v50 = vmax.f32 %v8590_v35, 0.0  ;;  %v26940_v44 = vsel %vm8937_vm3, %v9000_v62, %v9004_v61  ;;  %v29249_v40 = vshrl.u32 %v26935_v1, 16  ;;  %v26945_v38 = vsel %vm9598_vm5, %v11221_v8, %v11230_v7 }
 0xb35   : > { %v9677_v16 = vor.u32 %v9676_v22, %v9673_v53  ;;  %29309 = vst [vmem:[#allocation12_spill] sm:$0xff] %v26945_v38  ;;  %v11239_v28 = vor.u32 %v11238_v24, %v11235_v48 }
 0xb36   : > { %v26947_v45 = vpack.c.bf16 %v8652_v50, %v8651_v4  ;;  %v11244_v35 = vrot.slane %v29249_v40, 1 }
 0xb37   : > { %v8594_v36 = vpop.f32.mrb[116].mxu1  ;;  %v26950_v42 = vsel %vm9598_vm5, %v9668_v9, %v9677_v16  ;;  %v26952_v10 = vld [vmem:[#allocation3 + $0x40] sm:$0xff]  ;;  %v9008_v9 = vor.u32 %v9006_v3, %v9004_v61 }
 0xb38   : > { %8687 = vst [vmem:[#allocation3 + $0x48] sm:$0xff] %v26947_v45  ;;  %v8595_v22 = vadd.f32 %v8594_v36, %v26704_v37  ;;  %v20435_v14 = vpop.f32.mrb[117].mxu1  ;;  %20506 = vmatmul.mubr.bf16.gmra.mrb[172].mxu1 %v26947_v45  ;;  %v9010_v62 = vshll.u32 %v26947_v45, 16  ;;  %v29254_v8 = vshrl.u32 %v26947_v45, 16  ;;  %v29251_v50 = vrot.slane %v26947_v45, 1 }
 0xb39   : > { %v8597_v4 = vpop.f32.mrb[118].mxu1  ;;  %20509 = vmatprep.mubr.msk.bf16.mxu1 %vm24641_vm0, %v29305_v2  ;;  %v11247_v37 = vrot.slane %v29250_v6, 2  ;;  %v29255_v61 = vshrl.u32 %v26952_v10, 16  ;;  %v29311_v1 = vshll.u32 %v26952_v10, 16 }
 0xb3a   : > { %v8598_v36 = vadd.f32 %v8597_v4, %v26706_v51  ;;  %v20436_v24 = vpop.f32.mrb[119].mxu1  ;;  %v26968_v53 = vrot.slane %v9010_v62, 1  ;;  %v26973_v14 = vsel %vm9306_vm4, %v9322_v27, %v29251_v50  ;;  %v9682_v3 = vrot.slane %v29254_v8, 1 }
 0xb3b   : > { %v9685_v48 = vrot.slane %v9010_v62, 2  ;;  %v8653_v40 = vmax.f32 %v8595_v22, 0.0  ;;  %v26985_v4 = vsel %vm9598_vm5, %v11230_v7, %v11239_v28  ;;  %v11248_v27 = vor.u32 %v11247_v37, %v11244_v35 }
 0xb3c   : > { %v8654_v38 = vmax.f32 %v8598_v36, 0.0  ;;  %v26980_v6 = vsel %vm8937_vm3, %v9008_v9, %v26968_v53  ;;  %29310 = vst [vmem:[#allocation13_spill] sm:$0xff] %v26985_v4  ;;  %v11253_v50 = vrot.slane %v29255_v61, 1  ;;  %v11256_v8 = vrot.slane %v29311_v1, 2 }
 0xb3d   : > { %v26982_v51 = vor.u32 %v9685_v48, %v9682_v3  ;;  %v27001_v37 = vsel %vm9598_vm5, %v11239_v28, %v11248_v27 }
 0xb3e   : > { %v8673_v24 = vpack.c.bf16 %v8654_v38, %v8653_v40  ;;  %29312 = vst [vmem:[#allocation14_spill] sm:$0xff] %v27001_v37  ;;  %v11257_v1 = vor.u32 %v11256_v8, %v11253_v50 }
 0xb3f   : > { %v8602_v62 = vpop.f32.mrb[120].mxu1  ;;  %v26993_v22 = vsel %vm9598_vm5, %v9677_v16, %v26982_v51  ;;  %v26995_v9 = vld [vmem:[#allocation3 + $0x48] sm:$0xff] }
 0xb40   : > { %8688 = vst [vmem:[#allocation3 + $0x50] sm:$0xff] %v8673_v24  ;;  %v8603_v48 = vadd.f32 %v8602_v62, %v26709_v26  ;;  %v20439_v7 = vpop.f32.mrb[121].mxu1  ;;  %v29261_v40 = vshll.u32 %v26995_v9, 16  ;;  %v29259_v38 = vshrl.u32 %v26995_v9, 16  ;;  %v27005_v16 = vsel %vm9598_vm5, %v11248_v27, %v11257_v1 }
 0xb41   : > { %v8605_v35 = vpop.f32.mrb[122].mxu1 }
 0xb42   : > { %v8606_v36 = vadd.f32 %v8605_v35, %v26712_v57  ;;  %v20440_v3 = vpop.f32.mrb[123].mxu1  ;;  %v11262_v24 = vrot.slane %v29259_v38, 1  ;;  %v11265_v26 = vrot.slane %v29261_v40, 2  ;;  %v8655_v62 = vmax.f32 %v8603_v48, 0.0 }
 0xb44   : > { %v8656_v7 = vmax.f32 %v8606_v36, 0.0  ;;  %v11266_v61 = vor.u32 %v11265_v26, %v11262_v24 }
 0xb46   : > { %v8674_v4 = vpack.c.bf16 %v8656_v7, %v8655_v62  ;;  %v27014_v57 = vsel %vm9598_vm5, %v11257_v1, %v11266_v61  ;;  %v24404_v1 = vld [vmem:[%s29225_s4 + $0x80] sm:$0xff]  }
 0xb47   : > { %v8610_v25 = vpop.f32.mrb[124].mxu1  ;;  %v8703_v28 = vld [vmem:[#allocation3 + $0x50] sm:$0xf] }
 0xb48   : > { %v27011_v37 = vld [vmem:[#allocation3 + $0x50] sm:$0xff]  ;;  %8689 = vst [vmem:[#allocation3 + $0x58] sm:$0xff] %v8674_v4  ;;  %v8611_v8 = vadd.f32 %v8610_v25, %v26715_v34  ;;  %v20443_v50 = vpop.f32.mrb[125].mxu1  ;;  %20510 = vmatmul.mubr.bf16.gmra.mrb[176].mxu1 %v8703_v28 }
 0xb49   : > { %v8613_v27 = vpop.f32.mrb[126].mxu1  ;;  %20529 = vmatprep.mubr.msk.bf16.mxu1 %vm24641_vm0, %v29305_v2  ;;  %v29260_v36 = vshll.u32 %v27011_v37, 16  ;;  %v29258_v4 = vshrl.u32 %v27011_v37, 16 }
 0xb4a   : > { %v8614_v48 = vadd.f32 %v8613_v27, %v26718_v20  ;;  %v20444_v35 = vpop.f32.mrb[127].mxu1  ;;  %v8657_v3 = vmax.f32 %v8611_v8, 0.0  ;;  %v24405_v8 = vld [vmem:[%s29225_s4 + $0x88] sm:$0xff]  }
 0xb4b   : > { %v11274_v25 = vrot.slane %v29260_v36, 2  ;;  %v11271_v62 = vrot.slane %v29258_v4, 1 }
 0xb4c   : > { %v8658_v24 = vmax.f32 %v8614_v48, 0.0 }
 0xb4d   : > { %v27036_v50 = vor.u32 %v11274_v25, %v11271_v62 }
 0xb4e   : > { %v8675_v34 = vpack.c.bf16 %v8658_v24, %v8657_v3  ;;  %v24406_v3 = vld [vmem:[%s29225_s4 + $0x90] sm:$0xff]  }
 0xb4f   : > { %v8618_v26 = vpop.f32.mrb[128].mxu1  ;;  %29313 = vst [vmem:[#allocation15_spill] sm:$0xff] %v27036_v50 }
 0xb50   : > { %8690 = vst [vmem:[#allocation3 + $0x60] sm:$0xff] %v8675_v34  ;;  %v8619_v20 = vadd.f32 %v8618_v26, %v26721_v63  ;;  %v20447_v7 = vpop.f32.mrb[129].mxu1  ;;  %20530 = vmatmul.mubr.bf16.vlgmr.msra.gmra.mrb[136].mxu1 %v26763_v30  ;;  %v27042_v63 = vsel %vm9598_vm5, %v11266_v61, %v27036_v50  ;;  %v24407_v61 = vld [vmem:[%s29225_s4 + $0x98] sm:$0xff]  }
 0xb51   : > { %v8621_v28 = vpop.f32.mrb[130].mxu1  ;;  %20533 = vmatprep.mubr.msk.bf16.mxu1 %vm24641_vm0, %v29305_v2  ;;  %20574 = vmatpush3.bf16.msra.mxu1 %v24404_v1 }
 0xb52   : > { %v8622_v27 = vadd.f32 %v8621_v28, %v26724_v0  ;;  %v20448_v48 = vpop.f32.mrb[131].mxu1  ;;  %20575 = vmatprep.subr.bf16.mxu1 %v29305_v2  ;;  %v8659_v30 = vmax.f32 %v8619_v20, 0.0  ;;  %v27062_v28 = vld [vmem:[#allocation3 + $0x18] sm:$0xff] }
 0xb53   : > { %29314 = vst [vmem:[#allocation16_spill] sm:$0xff] %v27062_v28  ;;  %v27074_v48 = vld [vmem:[#allocation3 + $0x30] sm:$0xff] }
 0xb54   : > { %v8660_v35 = vmax.f32 %v8622_v27, 0.0  ;;  %v27071_v27 = vld [vmem:[#allocation3 + $0x28] sm:$0xff]  ;;  %v29322_v40 = vshll.u32 %v27074_v48, 16 }
 0xb55   : > { %20576 = vmatpush3.bf16.msra.mxu1 %v24405_v8  ;;  %v27069_v8 = vld [vmem:[#allocation3 + $0x20] sm:$0xff]  ;;  %29316 = vst [vmem:[#allocation18_spill] sm:$0xff] %v27071_v27 }
 0xb56   : > { %v8676_v24 = vpack.c.bf16 %v8660_v35, %v8659_v30  ;;  %20577 = vmatprep.subr.bf16.mxu1 %v29305_v2  ;;  %29315 = vst [vmem:[#allocation17_spill] sm:$0xff] %v27069_v8  ;;  %v27076_v30 = vld [vmem:[#allocation3 + $0x38] sm:$0xff]  ;;  %v27080_v35 = vld [vmem:[#allocation3 + $0x48] sm:$0xff] }
 0xb57   : > { %v8626_v1 = vpop.f32.mrb[132].mxu1  ;;  %29318 = vst [vmem:[#allocation20_spill] sm:$0xff] %v27080_v35 }
 0xb58   : > { %8691 = vst [vmem:[#allocation3 + $0x68] sm:$0xff] %v8676_v24  ;;  %v8627_v0 = vadd.f32 %v8626_v1, %v26727_v19  ;;  %v20451_v34 = vpop.f32.mrb[133].mxu1  ;;  %20534 = vmatmul.mubr.bf16.gmra.mrb[140].mxu1 %v26791_v21  ;;  %v24408_v19 = vld [vmem:[%s29225_s4 + $0xa0] sm:$0xff]   ;;  %v27083_v24 = vld [vmem:[#allocation3 + $0x50] sm:$0xff]  ;;  %v29263_v1 = vshll.u32 %v27062_v28, 16 }
 0xb59   : > { %v8629_v25 = vpop.f32.mrb[134].mxu1  ;;  %20537 = vmatprep.mubr.msk.bf16.mxu1 %vm24641_vm0, %v29305_v2  ;;  %20578 = vmatpush3.bf16.msra.mxu1 %v24406_v3  ;;  %v29262_v3 = vshrl.u32 %v27062_v28, 16  ;;  %29319 = vst [vmem:[#allocation21_spill] sm:$0xff] %v27083_v24  ;;  %v29264_v34 = vshrl.u32 %v27069_v8, 16 }
 0xb5a   : > { %v8630_v26 = vadd.f32 %v8629_v25, %v26730_v49  ;;  %20579 = vmatprep.subr.bf16.mxu1 %v29305_v2  ;;  %v20452_v62 = vpop.f32.mrb[135].mxu1  ;;  %v8661_v20 = vmax.f32 %v8627_v0, 0.0  ;;  %v24409_v49 = vld [vmem:[%s29225_s4 + $0xa8] sm:$0xff]   ;;  %v29265_v0 = vshll.u32 %v27069_v8, 16  ;;  %v29271_v25 = vshll.u32 %v27071_v27, 16 }
 0xb5b   : > { %v29268_v62 = vshrl.u32 %v27071_v27, 16  ;;  %v12796_v4 = vrot.slane %v29264_v34, 1 }
 0xb5c   : > { %v8662_v7 = vmax.f32 %v8630_v26, 0.0  ;;  %v27092_v26 = vld [vmem:[#allocation3 + $0x58] sm:$0xff]  ;;  %v12799_v38 = vrot.slane %v29265_v0, 2  ;;  %v12817_v0 = vrot.slane %v29322_v40, 2 }
 0xb5d   : > { %20580 = vmatpush3.bf16.msra.mxu1 %v24407_v61  ;;  %v24410_v61 = vld [vmem:[%s29225_s4 + $0xb0] sm:$0xff]   ;;  %29320 = vst [vmem:[#allocation22_spill] sm:$0xff] %v27092_v26 }
 0xb5e   : > { %v8677_v21 = vpack.c.bf16 %v8662_v7, %v8661_v20  ;;  %20581 = vmatprep.subr.bf16.mxu1 %v29305_v2  ;;  %v12787_v7 = vrot.slane %v29262_v3, 1  ;;  %v24411_v3 = vld [vmem:[%s29225_s4 + $0xb8] sm:$0xff]   ;;  %v12800_v36 = vor.u32 %v12799_v38, %v12796_v4  ;;  %v29328_v38 = vshrl.u32 %v27080_v35, 16 }
 0xb60   : > { %8692 = vst [vmem:[#allocation3 + $0x70] sm:$0xff] %v8677_v21  ;;  %20538 = vmatmul.mubr.bf16.gmra.mrb[144].mxu1 %v26814_v5  ;;  %v27078_v5 = vld [vmem:[#allocation3 + $0x40] sm:$0xff]  ;;  %v29275_v21 = vshrl.u32 %v27076_v30, 16  ;;  %v12841_v4 = vrot.slane %v29328_v38, 1 }
 0xb61   : > { %20541 = vmatprep.mubr.msk.bf16.mxu1 %vm24641_vm0, %v29305_v2  ;;  %20582 = vmatpush3.bf16.msra.mxu1 %v24408_v19  ;;  %29317 = vst [vmem:[#allocation19_spill] sm:$0xff] %v27078_v5  ;;  %v29321_v19 = vshrl.u32 %v27074_v48, 16 }
 0xb62   : > { %20583 = vmatprep.subr.bf16.mxu1 %v29305_v2  ;;  %v12823_v8 = vrot.slane %v29275_v21, 1  ;;  %v29333_v21 = vshll.u32 %v27083_v24, 16 }
 0xb63   : > { %v12814_v34 = vrot.slane %v29321_v19, 1  ;;  %v29325_v19 = vshrl.u32 %v27078_v5, 16 }
 0xb64   : > { %v12853_v38 = vrot.slane %v29333_v21, 2 }
 0xb65   : > { %20584 = vmatpush3.bf16.msra.mxu1 %v24409_v49  ;;  %v12790_v49 = vrot.slane %v29263_v1, 2  ;;  %v12808_v1 = vrot.slane %v29271_v25, 2  ;;  %v12818_v28 = vor.u32 %v12817_v0, %v12814_v34  ;;  %v29324_v25 = vshll.u32 %v27076_v30, 16 }
 0xb66   : > { %20585 = vmatprep.subr.bf16.mxu1 %v29305_v2  ;;  %v12832_v50 = vrot.slane %v29325_v19, 1  ;;  %v29332_v19 = vshrl.u32 %v27083_v24, 16 }
 0xb67   : > { %v27131_v20 = vor.u32 %v12790_v49, %v12787_v7  ;;  %v12826_v27 = vrot.slane %v29324_v25, 2  ;;  %v29331_v25 = vshll.u32 %v27080_v35, 16 }
 0xb68   : > { %20542 = vmatmul.mubr.bf16.gmra.mrb[148].mxu1 %v26839_v33  ;;  %v12805_v33 = vrot.slane %v29268_v62, 1 }
 0xb69   : > { %20545 = vmatprep.mubr.msk.bf16.mxu1 %vm24641_vm0, %v29305_v2  ;;  %20586 = vmatpush3.bf16.msra.mxu1 %v24410_v61  ;;  %29323 = vst [vmem:[#allocation23_spill] sm:$0xff] %v27131_v20  ;;  %v27141_v40 = vsel %vm9598_vm5, %v27131_v20, %v12800_v36  ;;  %v29327_v61 = vshll.u32 %v27078_v5, 16  ;;  %v12827_v34 = vor.u32 %v12826_v27, %v12823_v8  ;;  %v12844_v49 = vrot.slane %v29331_v25, 2 }
 0xb6a   : > { %20587 = vmatprep.subr.bf16.mxu1 %v29305_v2  ;;  %v12809_v62 = vor.u32 %v12808_v1, %v12805_v33  ;;  %29326 = vst [vmem:[#allocation24_spill] sm:$0xff] %v27141_v40  ;;  %v29336_v8 = vshll.u32 %v27092_v26, 16 }
 0xb6b   : > { %v12835_v7 = vrot.slane %v29327_v61, 2  ;;  %v12850_v61 = vrot.slane %v29332_v19, 1  ;;  %v27199_v19 = vld [vmem:[#allocation3 + $0x38] sm:$0xff] }
 0xb6c   : > { %v27148_v1 = vsel %vm9598_vm5, %v12800_v36, %v12809_v62  ;;  %v27151_v0 = vsel %vm9598_vm5, %v12809_v62, %v12818_v28  ;;  %v12845_v62 = vor.u32 %v12844_v49, %v12841_v4  ;;  %v12862_v27 = vrot.slane %v29336_v8, 2  ;;  %v27195_v49 = vld [vmem:[#allocation3 + $0x28] sm:$0xff]  ;;  %v27213_v8 = vld [vmem:[#allocation3 + $0x60] sm:$0xff] }
 0xb6d   : > { %20588 = vmatpush3.bf16.msra.mxu1 %v24411_v3  ;;  %29329 = vst [vmem:[#allocation25_spill] sm:$0xff] %v27148_v1  ;;  %29330 = vst [vmem:[#allocation26_spill] sm:$0xff] %v27151_v0  ;;  %v12836_v33 = vor.u32 %v12835_v7, %v12832_v50  ;;  %v29334_v3 = vshrl.u32 %v27092_v26, 16  ;;  %v27163_v1 = vsel %vm9598_vm5, %v12818_v28, %v12827_v34  ;;  %v29351_v20 = vshrl.u32 %v27199_v19, 16 }
 0xb6e   : > { %20633 = vmatprep.subr.bf16.mxu1 %v29305_v2  ;;  %29335 = vst [vmem:[#allocation27_spill] sm:$0xff] %v27163_v1  ;;  %v12854_v7 = vor.u32 %v12853_v38, %v12850_v61  ;;  %29343 = vst [vmem:[#allocation34_spill] sm:$0xff] %v27195_v49  ;;  %v27201_v61 = vld [vmem:[#allocation3 + $0x40] sm:$0xff]  ;;  %v27204_v38 = vld [vmem:[#allocation3 + $0x48] sm:$0xff] }
 0xb6f   : > { %v12859_v36 = vrot.slane %v29334_v3, 1  ;;  %v27169_v50 = vsel %vm9598_vm5, %v12827_v34, %v12836_v33  ;;  %v27174_v21 = vsel %vm9598_vm5, %v12836_v33, %v12845_v62  ;;  %v27193_v34 = vld [vmem:[#allocation3 + $0x20] sm:$0xff]  ;;  %v27197_v33 = vld [vmem:[#allocation3 + $0x30] sm:$0xff]  ;;  %v29354_v24 = vshll.u32 %v27201_v61, 16 }
 0xb70   : > { %20546 = vmatmul.mubr.bf16.gmra.mrb[152].mxu1 %v26861_v55  ;;  %29337 = vst [vmem:[#allocation28_spill] sm:$0xff] %v27169_v50  ;;  %29338 = vst [vmem:[#allocation29_spill] sm:$0xff] %v27174_v21  ;;  %v27179_v28 = vsel %vm9598_vm5, %v12845_v62, %v12854_v7  ;;  %v27191_v55 = vld [vmem:[#allocation3 + $0x50] sm:$0x1f]  ;;  %v27211_v62 = vld [vmem:[#allocation3 + $0x58] sm:$0xff]  ;;  %v29347_v21 = vshrl.u32 %v27195_v49, 16 }
 0xb71   : > { %20549 = vmatprep.mubr.msk.bf16.mxu1 %vm24641_vm0, %v29305_v2  ;;  %v27176_v25 = vor.u32 %v12862_v27, %v12859_v36  ;;  %29340 = vst [vmem:[#allocation31_spill] sm:$0xff] %v27179_v28  ;;  %29342 = vst [vmem:[#allocation33_spill] sm:$0xff] %v27193_v34  ;;  %v29345_v36 = vshrl.u32 %v27193_v34, 16  ;;  %v29348_v27 = vshll.u32 %v27195_v49, 16  ;;  %v29350_v50 = vshll.u32 %v27197_v33, 16 }
 0xb72   : > { %29344 = vst [vmem:[#allocation35_spill] sm:$0xff] %v27197_v33  ;;  %v14384_v0 = vrot.slane %v29347_v21, 1  ;;  %v29353_v49 = vshrl.u32 %v27201_v61, 16  ;;  %v29356_v5 = vshll.u32 %v27204_v38, 16 }
 0xb73   : > { %29339 = vst [vmem:[#allocation30_spill] sm:$0xff] %v27176_v25  ;;  %v27183_v4 = vsel %vm9598_vm5, %v12854_v7, %v27176_v25  ;;  %v14375_v1 = vrot.slane %v29345_v36, 1  ;;  %v14387_v7 = vrot.slane %v29348_v27, 2  ;;  %v29349_v25 = vshrl.u32 %v27197_v33, 16 }
 0xb74   : > { %29341 = vst [vmem:[#allocation32_spill] sm:$0xff] %v27183_v4  ;;  %v14396_v3 = vrot.slane %v29350_v50, 2  ;;  %v14402_v36 = vrot.slane %v29351_v20, 1  ;;  %v14411_v27 = vrot.slane %v29353_v49, 1  ;;  %v29355_v33 = vshrl.u32 %v27204_v38, 16 }
 0xb75   : > { %v14393_v40 = vrot.slane %v29349_v25, 1  ;;  %v14388_v21 = vor.u32 %v14387_v7, %v14384_v0  ;;  %v14414_v25 = vrot.slane %v29354_v24, 2  ;;  %v14423_v20 = vrot.slane %v29356_v5, 2 }
 0xb76   : > { %v14420_v50 = vrot.slane %v29355_v33, 1 }
 0xb77   : > { %v14397_v35 = vor.u32 %v14396_v3, %v14393_v40  ;;  %v14415_v0 = vor.u32 %v14414_v25, %v14411_v27  ;;  %v29363_v3 = vshrl.u32 %v27211_v62, 16  ;;  %v29365_v27 = vshrl.u32 %v27213_v8, 16 }
 0xb78   : > { %20550 = vmatmul.mubr.bf16.gmra.mrb[156].mxu1 %v26889_v31  ;;  %v9018_v31 = vshll.u32 %v27191_v55, 16  ;;  %v14424_v5 = vor.u32 %v14423_v20, %v14420_v50  ;;  %v29367_v20 = vshll.u32 %v27213_v8, 16 }
 0xb79   : > { %20553 = vmatprep.mubr.msk.bf16.mxu1 %vm24641_vm0, %v29305_v2  ;;  %v27269_v24 = vsel %vm9598_vm5, %v14388_v21, %v14397_v35  ;;  %v14438_v7 = vrot.slane %v29363_v3, 1 }
 0xb7a   : > { %29359 = vst [vmem:[#allocation37_spill] sm:$0xff] %v27269_v24  ;;  %v9020_v25 = vrot.slane %v9018_v31, 1 }
 0xb80   : > { %20554 = vmatmul.mubr.bf16.gmra.mrb[160].mxu1 %v26915_v17  ;;  %v27206_v17 = vld [vmem:[#allocation3 + $0x50] sm:$0xff] }
 0xb81   : > { %20557 = vmatprep.mubr.msk.bf16.mxu1 %vm24641_vm0, %v29305_v2 }
 0xb88   : > { %20558 = vmatmul.mubr.bf16.gmra.mrb[164].mxu1 %v26940_v44  ;;  %v29346_v44 = vshll.u32 %v27193_v34, 16  ;;  %v29352_v34 = vshll.u32 %v27199_v19, 16 }
 0xb89   : > { %20561 = vmatprep.mubr.msk.bf16.mxu1 %vm24641_vm0, %v29305_v2 }
 0xb8a   : > { %v14378_v28 = vrot.slane %v29346_v44, 2  ;;  %v14405_v44 = vrot.slane %v29352_v34, 2 }
 0xb8c   : > { %v27249_v26 = vor.u32 %v14378_v28, %v14375_v1  ;;  %v14406_v4 = vor.u32 %v14405_v44, %v14402_v36  ;;  %v29358_v28 = vshrl.u32 %v27206_v17, 16  ;;  %v29364_v36 = vshll.u32 %v27211_v62, 16 }
 0xb8e   : > { %v27262_v1 = vsel %vm9598_vm5, %v27249_v26, %v14388_v21  ;;  %v14429_v34 = vrot.slane %v29358_v28, 1  ;;  %v27272_v40 = vsel %vm9598_vm5, %v14397_v35, %v14406_v4  ;;  %v27277_v33 = vsel %vm9598_vm5, %v14406_v4, %v14415_v0 }
 0xb8f   : > { %29357 = vst [vmem:[#allocation36_spill] sm:$0xff] %v27262_v1  ;;  %29360 = vst [vmem:[#allocation38_spill] sm:$0xff] %v27272_v40  ;;  %v14441_v44 = vrot.slane %v29364_v36, 2  ;;  %v14447_v21 = vrot.slane %v29365_v27, 1  ;;  %v27286_v35 = vsel %vm9598_vm5, %v14415_v0, %v14424_v5  ;;  %v14450_v28 = vrot.slane %v29367_v20, 2  ;;  %v27328_v20 = vld [vmem:[#allocation3 + $0x40] sm:$0xff] }
 0xb90   : > { %20562 = vmatmul.mubr.bf16.gmra.mrb[168].mxu1 %v26980_v6  ;;  %v29361_v6 = vshll.u32 %v27206_v17, 16  ;;  %29362 = vst [vmem:[#allocation39_spill] sm:$0xff] %v27277_v33  ;;  %29366 = vst [vmem:[#allocation40_spill] sm:$0xff] %v27286_v35  ;;  %v29368_v4 = vshrl.u32 %v26947_v45, 16 }
 0xb91   : > { %20565 = vmatprep.mubr.msk.bf16.mxu1 %vm24641_vm0, %v29305_v2  ;;  %v27296_v36 = vor.u32 %v14450_v28, %v14447_v21  ;;  %v27317_v21 = vld [vmem:[#allocation3 + $0x28] sm:$0xff]  ;;  %v27333_v28 = vld [vmem:[#allocation3 + $0x50] sm:$0xff] }
 0xb92   : > { %v14432_v49 = vrot.slane %v29361_v6, 2  ;;  %v14442_v6 = vor.u32 %v14441_v44, %v14438_v7  ;;  %v9016_v33 = vor.u32 %v29368_v4, %v26968_v53  ;;  %v9022_v53 = vshrl.u32 %v27191_v55, 16  ;;  %29374 = vst [vmem:[#allocation45_spill] sm:$0xff] %v27317_v21  ;;  %v24413_v55 = vld [vmem:[%s29225_s4 + $0xc8] sm:$0xff]  }
 0xb93   : > { %29370 = vst [vmem:[#allocation42_spill] sm:$0xff] %v27296_v36  ;;  %v29373_v7 = vrot.slane %v26748_v56, 1  ;;  %v27331_v56 = vld [vmem:[#allocation3 + $0x48] sm:$0xff]  ;;  %v27337_v4 = vld [vmem:[#allocation3 + $0x60] sm:$0xff] }
 0xb94   : > { %v14433_v50 = vor.u32 %v14432_v49, %v14429_v34  ;;  %v9021_v31 = vsel %vm8937_vm3, %v9016_v33, %v9020_v25  ;;  %v27304_v0 = vsel %vm9598_vm5, %v14442_v6, %v27296_v36  ;;  %v9024_v34 = vor.u32 %v9022_v53, %v9020_v25  ;;  %v24412_v33 = vld [vmem:[%s29225_s4 + $0xc0] sm:$0xff]   ;;  %v24414_v36 = vld [vmem:[%s29225_s4 + $0xd0] sm:$0xff]  }
 0xb95   : > { %29372 = vst [vmem:[#allocation44_spill] sm:$0xff] %v27304_v0  ;;  %v27326_v25 = vld [vmem:[#allocation3 + $0x38] sm:$0xff]  ;;  %v29377_v53 = vshrl.u32 %v27317_v21, 16  ;;  %v29386_v40 = vshll.u32 %v27331_v56, 16 }
 0xb96   : > { %v27294_v3 = vsel %vm9598_vm5, %v14424_v5, %v14433_v50  ;;  %v27299_v27 = vsel %vm9598_vm5, %v14433_v50, %v14442_v6  ;;  %v9267_v5 = vld [vmem:[#allocation3] sm:$0xfe]  ;;  %v27319_v50 = vld [vmem:[#allocation3 + $0x30] sm:$0xff]  ;;  %29376 = vst [vmem:[#allocation47_spill] sm:$0xff] %v27326_v25  ;;  %v27335_v6 = vld [vmem:[#allocation3 + $0x58] sm:$0xff] }
 0xb97   : > { %29369 = vst [vmem:[#allocation41_spill] sm:$0xff] %v27294_v3  ;;  %29371 = vst [vmem:[#allocation43_spill] sm:$0xff] %v27299_v27  ;;  %v9307_v49 = vrot.slane %v9267_v5, 1  ;;  %v27342_v5 = vld [vmem:[#allocation3 + $0x68] sm:$0xff]  ;;  %v15963_v27 = vrot.slane %v29377_v53, 1  ;;  %v16002_v24 = vrot.slane %v29386_v40, 2 }
 0xb98   : > { %20566 = vmatmul.mubr.bf16.gmra.mrb[172].mxu1 %v9021_v31  ;;  %29375 = vst [vmem:[#allocation46_spill] sm:$0xff] %v27319_v50  ;;  %v29388_v53 = vshll.u32 %v27333_v28, 16  ;;  %v24416_v40 = vld [vmem:[%s29225_s4 + $0xe0] sm:$0xff]  }
 0xb99   : > { %20569 = vmatprep.mubr.msk.bf16.mxu1 %vm24641_vm0, %v29305_v2  ;;  %v9309_v44 = vsel %vm9306_vm4, %v9307_v49, %v29373_v7  ;;  %v29380_v7 = vshll.u32 %v27319_v50, 16  ;;  %v29382_v49 = vshll.u32 %v27326_v25, 16 }
 0xb9b   : > { %v15984_v31 = vrot.slane %v29382_v49, 2 }
 0xba0   : > { %20570 = vmatmul.mubr.bf16.gmra.mrb[176].mxu1 %v9024_v34  ;;  %v29378_v34 = vshll.u32 %v27317_v21, 16 }
 0xba1   : > { %20589 = vmatprep.mubr.msk.bf16.mxu1 %vm24641_vm0, %v29305_v2 }
 0xba2   : > { %v15966_v0 = vrot.slane %v29378_v34, 2 }
 0xba4   : > { %v27381_v34 = vor.u32 %v15966_v0, %v15963_v27  ;;  %v29387_v27 = vshrl.u32 %v27333_v28, 16 }
 0xba6   : > { %v16008_v0 = vrot.slane %v29387_v27, 1  ;;  %v29393_v27 = vshrl.u32 %v27337_v4, 16 }
 0xba8   : > { %20590 = vmatmul.mubr.bf16.vlgmr.msra.gmra.mrb[136].mxu1 %v9309_v44  ;;  %v29381_v44 = vshrl.u32 %v27326_v25, 16 }
 0xba9   : > { %20593 = vmatprep.mubr.msk.bf16.mxu1 %vm24641_vm0, %v29305_v2  ;;  %20634 = vmatpush3.bf16.msra.mxu1 %v24412_v33  ;;  %v29379_v33 = vshrl.u32 %v27319_v50, 16 }
 0xbaa   : > { %20635 = vmatprep.subr.bf16.mxu1 %v29305_v2  ;;  %v15981_v35 = vrot.slane %v29381_v44, 1  ;;  %v29384_v44 = vshll.u32 %v27328_v20, 16 }
 0xbab   : > { %v15972_v3 = vrot.slane %v29379_v33, 1  ;;  %v29383_v33 = vshrl.u32 %v27328_v20, 16 }
 0xbac   : > { %v15993_v50 = vrot.slane %v29384_v44, 2  ;;  %v15985_v25 = vor.u32 %v15984_v31, %v15981_v35  ;;  %v29390_v31 = vshrl.u32 %v27335_v6, 16 }
 0xbad   : > { %20636 = vmatpush3.bf16.msra.mxu1 %v24413_v55  ;;  %v15975_v55 = vrot.slane %v29380_v7, 2  ;;  %v15990_v7 = vrot.slane %v29383_v33, 1  ;;  %v16011_v33 = vrot.slane %v29388_v53, 2 }
 0xbae   : > { %20637 = vmatprep.subr.bf16.mxu1 %v29305_v2 }
 0xbaf   : > { %v15976_v49 = vor.u32 %v15975_v55, %v15972_v3  ;;  %v15994_v1 = vor.u32 %v15993_v50, %v15990_v7  ;;  %v16017_v55 = vrot.slane %v29390_v31, 1  ;;  %v16012_v53 = vor.u32 %v16011_v33, %v16008_v0 }
 0xbb0   : > { %20594 = vmatmul.mubr.bf16.gmra.mrb[140].mxu1 %v26785_v43  ;;  %v24415_v43 = vld [vmem:[%s29225_s4 + $0xd8] sm:$0xff]   ;;  %v29392_v7 = vshll.u32 %v27335_v6, 16  ;;  %v29395_v31 = vshrl.u32 %v27342_v5, 16 }
 0xbb1   : > { %20597 = vmatprep.mubr.msk.bf16.mxu1 %vm24641_vm0, %v29305_v2  ;;  %20638 = vmatpush3.bf16.msra.mxu1 %v24414_v36  ;;  %v29385_v36 = vshrl.u32 %v27331_v56, 16  ;;  %v27398_v44 = vsel %vm9598_vm5, %v27381_v34, %v15976_v49  ;;  %v27401_v3 = vsel %vm9598_vm5, %v15976_v49, %v15985_v25  ;;  %v27409_v50 = vsel %vm9598_vm5, %v15985_v25, %v15994_v1 }
 0xbb2   : > { %20639 = vmatprep.subr.bf16.mxu1 %v29305_v2  ;;  %29389 = vst [vmem:[#allocation48_spill] sm:$0xff] %v27401_v3  ;;  %29391 = vst [vmem:[#allocation49_spill] sm:$0xff] %v27409_v50  ;;  %v16026_v49 = vrot.slane %v29393_v27, 1  ;;  %v16035_v3 = vrot.slane %v29395_v31, 1  ;;  %v29396_v25 = vshll.u32 %v27342_v5, 16 }
 0xbb3   : > { %v15999_v21 = vrot.slane %v29385_v36, 1  ;;  %v16020_v36 = vrot.slane %v29392_v7, 2 }
 0xbb4   : > { %v16038_v0 = vrot.slane %v29396_v25, 2 }
 0xbb5   : > { %v16003_v35 = vor.u32 %v16002_v24, %v15999_v21  ;;  %20640 = vmatpush3.bf16.msra.mxu1 %v24415_v43  ;;  %v29394_v21 = vshll.u32 %v27337_v4, 16  ;;  %v16021_v7 = vor.u32 %v16020_v36, %v16017_v55  ;;  %v24419_v55 = vld [vmem:[%s29225_s4 + $0xf8] sm:$0xff]   ;;  %v29398_v36 = vshrl.u32 %v26770_v12, 16 }
 0xbb6   : > { %20641 = vmatprep.subr.bf16.mxu1 %v29305_v2  ;;  %v27429_v50 = vor.u32 %v16038_v0, %v16035_v3  ;;  %v24418_v3 = vld [vmem:[%s29225_s4 + $0xf0] sm:$0xff]  }
 0xbb7   : > { %v27417_v24 = vsel %vm9598_vm5, %v15994_v1, %v16003_v35  ;;  %v16029_v43 = vrot.slane %v29394_v21, 2  ;;  %v27426_v33 = vsel %vm9598_vm5, %v16003_v35, %v16012_v53  ;;  %v24417_v1 = vld [vmem:[%s29225_s4 + $0xe8] sm:$0xff]   ;;  %v27437_v21 = vsel %vm9598_vm5, %v16012_v53, %v16021_v7 }
 0xbb8   : > { %20598 = vmatmul.mubr.bf16.gmra.mrb[144].mxu1 %v26811_v59 }
 0xbb9   : > { %v16030_v27 = vor.u32 %v16029_v43, %v16026_v49  ;;  %20601 = vmatprep.mubr.msk.bf16.mxu1 %vm24641_vm0, %v29305_v2  ;;  %20642 = vmatpush3.bf16.msra.mxu1 %v24416_v40  ;;  %v9610_v49 = vrot.slane %v29398_v36, 1  ;;  %v24426_v36 = vld [vmem:[%s29225_s4 + $0x130] sm:$0xff]  }
 0xbba   : > { %20643 = vmatprep.subr.bf16.mxu1 %v29305_v2 }
 0xbbb   : > { %v27441_v35 = vsel %vm9598_vm5, %v16021_v7, %v16030_v27  ;;  %v27445_v59 = vsel %vm9598_vm5, %v16030_v27, %v27429_v50  ;;  %v24420_v7 = vld [vmem:[%s29225_s4 + $0x100] sm:$0xff]  }
 0xbbd   : > { %20644 = vmatpush3.bf16.msra.mxu1 %v24417_v1  ;;  %v29400_v1 = vshrl.u32 %v26799_v13, 16 }
 0xbbe   : > { %20645 = vmatprep.subr.bf16.mxu1 %v29305_v2 }
 0xbc0   : > { %20602 = vmatmul.mubr.bf16.gmra.mrb[148].mxu1 %v26834_v29  ;;  %v9277_v29 = vld [vmem:[#allocation3 + $0x50] sm:$0x1f] }
 0xbc1   : > { %20605 = vmatprep.mubr.msk.bf16.mxu1 %vm24641_vm0, %v29305_v2  ;;  %20646 = vmatpush3.bf16.msra.mxu1 %v24418_v3  ;;  %v9619_v3 = vrot.slane %v29400_v1, 1  ;;  %v24430_v1 = vld [vmem:[%s29225_s4 + $0x150] sm:$0xff]  }
 0xbc2   : > { %20647 = vmatprep.subr.bf16.mxu1 %v29305_v2 }
 0xbc5   : > { %20648 = vmatpush3.bf16.msra.mxu1 %v24419_v55 }
 0xbc6   : > { %20693 = vmatprep.subr.bf16.mxu1 %v29305_v2 }
 0xbc8   : > { %20606 = vmatmul.mubr.bf16.gmra.mrb[152].mxu1 %v26854_v58  ;;  %v29397_v58 = vrot.slane %v26947_v45, 1 }
 0xbc9   : > { %20609 = vmatprep.mubr.msk.bf16.mxu1 %vm24641_vm0, %v29305_v2 }
 0xbd0   : > { %20610 = vmatmul.mubr.bf16.gmra.mrb[156].mxu1 %v26880_v32  ;;  %v9326_v32 = vrot.slane %v9277_v29, 1  ;;  %v24421_v29 = vld [vmem:[%s29225_s4 + $0x108] sm:$0xff]  }
 0xbd1   : > { %20613 = vmatprep.mubr.msk.bf16.mxu1 %vm24641_vm0, %v29305_v2 }
 0xbd2   : > { %v9327_v40 = vsel %vm9306_vm4, %v29397_v58, %v9326_v32  ;;  %v24422_v58 = vld [vmem:[%s29225_s4 + $0x110] sm:$0xff]  }
 0xbd8   : > { %20614 = vmatmul.mubr.bf16.gmra.mrb[160].mxu1 %v26908_v41  ;;  %v9570_v41 = vld [vmem:[#allocation3] sm:$0xfe] }
 0xbd9   : > { %20617 = vmatprep.mubr.msk.bf16.mxu1 %vm24641_vm0, %v29305_v2  ;;  %v9603_v53 = vshll.u32 %v9570_v41, 16 }
 0xbdb   : > { %v9605_v31 = vrot.slane %v9603_v53, 2  ;;  %v24425_v53 = vld [vmem:[%s29225_s4 + $0x128] sm:$0xff]  }
 0xbe0   : > { %20618 = vmatmul.mubr.bf16.gmra.mrb[164].mxu1 %v26933_v47  ;;  %v9600_v47 = vshrl.u32 %v9570_v41, 16  ;;  %v24424_v41 = vld [vmem:[%s29225_s4 + $0x120] sm:$0xff]  }
 0xbe1   : > { %20621 = vmatprep.mubr.msk.bf16.mxu1 %vm24641_vm0, %v29305_v2 }
 0xbe2   : > { %v9602_v45 = vrot.slane %v9600_v47, 1 }
 0xbe4   : > { %v9606_v0 = vor.u32 %v9605_v31, %v9602_v45  ;;  %v27555_v45 = vld [vmem:[#allocation3 + $0x8] sm:$0xff] }
 0xbe8   : > { %20622 = vmatmul.mubr.bf16.gmra.mrb[168].mxu1 %v26973_v14  ;;  %v29399_v14 = vshll.u32 %v26770_v12, 16  ;;  %v29401_v12 = vshll.u32 %v26799_v13, 16 }
 0xbe9   : > { %20625 = vmatprep.mubr.msk.bf16.mxu1 %vm24641_vm0, %v29305_v2 }
 0xbea   : > { %v9613_v43 = vrot.slane %v29399_v14, 2  ;;  %v9622_v55 = vrot.slane %v29401_v12, 2  ;;  %v24431_v12 = vld [vmem:[%s29225_s4 + $0x158] sm:$0xff]  }
 0xbec   : > { %v9614_v25 = vor.u32 %v9613_v43, %v9610_v49 }
 0xbee   : > { %v9615_v27 = vsel %vm9598_vm5, %v9606_v0, %v9614_v25  ;;  %v24429_v0 = vld [vmem:[%s29225_s4 + $0x148] sm:$0xff]  }
 0xbf0   : > { %20626 = vmatmul.mubr.bf16.gmra.mrb[172].mxu1 %v9327_v40  ;;  %v24423_v40 = vld [vmem:[%s29225_s4 + $0x118] sm:$0xff]  }
 0xbf1   : > { %20629 = vmatprep.mubr.msk.bf16.mxu1 %vm24641_vm0, %v29305_v2 }
 0xbf8   : > { %20630 = vmatmul.mubr.bf16.gmra.mrb[176].mxu1 %v9326_v32  ;;  %v9623_v32 = vor.u32 %v9622_v55, %v9619_v3  ;;  %v27582_v55 = vld [vmem:[#allocation3 + $0x18] sm:$0xff] }
 0xbf9   : > { %20649 = vmatprep.mubr.msk.bf16.mxu1 %vm24641_vm0, %v29305_v2 }
 0xbfa   : > { %v9624_v13 = vsel %vm9598_vm5, %v9614_v25, %v9623_v32  ;;  %v9633_v47 = vsel %vm9598_vm5, %v9623_v32, %v26817_v15  ;;  %v24427_v15 = vld [vmem:[%s29225_s4 + $0x138] sm:$0xff]   ;;  %v24428_v25 = vld [vmem:[%s29225_s4 + $0x140] sm:$0xff]  }
 0xbfb   : > { %v24432_v32 = vld [vmem:[%s29225_s4 + $0x160] sm:$0xff]  }
 0xc00   : > { %20650 = vmatmul.mubr.bf16.vlgmr.msra.gmra.mrb[136].mxu1 %v9615_v27 }
 0xc01   : > { %20653 = vmatprep.mubr.msk.bf16.mxu1 %vm24641_vm0, %v29305_v2  ;;  %20694 = vmatpush3.bf16.msra.mxu1 %v24420_v7  ;;  %v27568_v7 = vld [vmem:[#allocation3 + $0x10] sm:$0xff] }
 0xc02   : > { %20695 = vmatprep.subr.bf16.mxu1 %v29305_v2  ;;  %v9982_v27 = vrot.slane %v27568_v7, 2 }
 0xc05   : > { %20696 = vmatpush3.bf16.msra.mxu1 %v24421_v29  ;;  %v9984_v29 = vrot.slane %v27582_v55, 2 }
 0xc06   : > { %20697 = vmatprep.subr.bf16.mxu1 %v29305_v2 }
 0xc08   : > { %20654 = vmatmul.mubr.bf16.gmra.mrb[140].mxu1 %v9624_v13  ;;  %v24433_v13 = vld [vmem:[%s29225_s4 + $0x168] sm:$0xff]  }
 0xc09   : > { %20657 = vmatprep.mubr.msk.bf16.mxu1 %vm24641_vm0, %v29305_v2  ;;  %20698 = vmatpush3.bf16.msra.mxu1 %v24422_v58  ;;  %v9985_v58 = vsel %vm9978_vm6, %v9982_v27, %v9984_v29 }
 0xc0a   : > { %20699 = vmatprep.subr.bf16.mxu1 %v29305_v2 }
 0xc0d   : > { %20700 = vmatpush3.bf16.msra.mxu1 %v24423_v40  ;;  %v27596_v40 = vld [vmem:[#allocation3 + $0x20] sm:$0xff] }
 0xc0e   : > { %20701 = vmatprep.subr.bf16.mxu1 %v29305_v2 }
 0xc10   : > { %20658 = vmatmul.mubr.bf16.gmra.mrb[144].mxu1 %v9633_v47  ;;  %v24434_v47 = vld [vmem:[%s29225_s4 + $0x170] sm:$0xff]  }
 0xc11   : > { %20661 = vmatprep.mubr.msk.bf16.mxu1 %vm24641_vm0, %v29305_v2  ;;  %20702 = vmatpush3.bf16.msra.mxu1 %v24424_v41  ;;  %v9986_v41 = vrot.slane %v27596_v40, 2 }
 0xc12   : > { %20703 = vmatprep.subr.bf16.mxu1 %v29305_v2 }
 0xc15   : > { %20704 = vmatpush3.bf16.msra.mxu1 %v24425_v53  ;;  %v9987_v53 = vsel %vm9978_vm6, %v9984_v29, %v9986_v41  ;;  %v24438_v29 = vld [vmem:[%s29225_s4 + $0x190] sm:$0xff]  }
 0xc16   : > { %20705 = vmatprep.subr.bf16.mxu1 %v29305_v2 }
 0xc18   : > { %20662 = vmatmul.mubr.bf16.gmra.mrb[148].mxu1 %v26845_v11  ;;  %v9580_v11 = vld [vmem:[#allocation3 + $0x50] sm:$0x3f] }
 0xc19   : > { %20665 = vmatprep.mubr.msk.bf16.mxu1 %vm24641_vm0, %v29305_v2  ;;  %20706 = vmatpush3.bf16.msra.mxu1 %v24426_v36  ;;  %v9692_v49 = vshll.u32 %v9580_v11, 16  ;;  %v24435_v36 = vld [vmem:[%s29225_s4 + $0x178] sm:$0xff]  }
 0xc1a   : > { %20707 = vmatprep.subr.bf16.mxu1 %v29305_v2 }
 0xc1b   : > { %v9694_v43 = vrot.slane %v9692_v49, 2  ;;  %v27617_v49 = vld [vmem:[#allocation3 + $0x30] sm:$0xff] }
 0xc1d   : > { %20708 = vmatpush3.bf16.msra.mxu1 %v24427_v15  ;;  %v27610_v15 = vld [vmem:[#allocation3 + $0x28] sm:$0xff] }
 0xc1e   : > { %20753 = vmatprep.subr.bf16.mxu1 %v29305_v2 }
 0xc20   : > { %20666 = vmatmul.mubr.bf16.gmra.mrb[152].mxu1 %v26870_v18  ;;  %v9689_v18 = vshrl.u32 %v9580_v11, 16  ;;  %v9988_v11 = vrot.slane %v27610_v15, 2 }
 0xc21   : > { %20669 = vmatprep.mubr.msk.bf16.mxu1 %vm24641_vm0, %v29305_v2 }
 0xc22   : > { %v9691_v14 = vrot.slane %v9689_v18, 1  ;;  %v9989_v18 = vsel %vm9978_vm6, %v9986_v41, %v9988_v11  ;;  %v24443_v41 = vld [vmem:[%s29225_s4 + $0x1b8] sm:$0xff]  }
 0xc28   : > { %20670 = vmatmul.mubr.bf16.gmra.mrb[156].mxu1 %v26895_v52  ;;  %v9695_v52 = vor.u32 %v9694_v43, %v9691_v14  ;;  %v9990_v14 = vrot.slane %v27617_v49, 2 }
 0xc29   : > { %20673 = vmatprep.mubr.msk.bf16.mxu1 %vm24641_vm0, %v29305_v2 }
 0xc2a   : > { %v9991_v43 = vsel %vm9978_vm6, %v9988_v11, %v9990_v14  ;;  %v24444_v11 = vld [vmem:[%s29225_s4 + $0x1c0] sm:$0xff]  }
 0xc30   : > { %20674 = vmatmul.mubr.bf16.gmra.mrb[160].mxu1 %v26924_v60  ;;  %v9696_v60 = vsel %vm9598_vm5, %v26982_v51, %v9695_v52 }
 0xc31   : > { %20677 = vmatprep.mubr.msk.bf16.mxu1 %vm24641_vm0, %v29305_v2 }
 0xc38   : > { %20678 = vmatmul.mubr.bf16.gmra.mrb[164].mxu1 %v26950_v42  ;;  %v9939_v42 = vld [vmem:[#allocation3] sm:$0xfc] }
 0xc39   : > { %20681 = vmatprep.mubr.msk.bf16.mxu1 %vm24641_vm0, %v29305_v2  ;;  %v9979_v31 = vrot.slane %v9939_v42, 2 }
 0xc40   : > { %20682 = vmatmul.mubr.bf16.gmra.mrb[168].mxu1 %v26993_v22  ;;  %v9980_v22 = vrot.slane %v27555_v45, 2 }
 0xc41   : > { %20685 = vmatprep.mubr.msk.bf16.mxu1 %vm24641_vm0, %v29305_v2 }
 0xc42   : > { %v9981_v51 = vsel %vm9978_vm6, %v9979_v31, %v9980_v22  ;;  %v9983_v3 = vsel %vm9978_vm6, %v9980_v22, %v9982_v27  ;;  %v9994_v22 = vrot.slane %v26952_v10, 2 }
 0xc48   : > { %20686 = vmatmul.mubr.bf16.gmra.mrb[172].mxu1 %v9696_v60 }
 0xc49   : > { %20689 = vmatprep.mubr.msk.bf16.mxu1 %vm24641_vm0, %v29305_v2 }
 0xc50   : > { %20690 = vmatmul.mubr.bf16.gmra.mrb[176].mxu1 %v9695_v52  ;;  %v27623_v52 = vld [vmem:[#allocation3 + $0x38] sm:$0xff] }
 0xc51   : > { %20709 = vmatprep.mubr.msk.bf16.mxu1 %vm24641_vm0, %v29305_v2  ;;  %v9992_v60 = vrot.slane %v27623_v52, 2 }
 0xc53   : > { %v9993_v42 = vsel %vm9978_vm6, %v9990_v14, %v9992_v60  ;;  %v9995_v31 = vsel %vm9978_vm6, %v9992_v60, %v9994_v22  ;;  %v29402_v14 = vshll.u32 %v26836_v54, 16  ;;  %v24446_v60 = vld [vmem:[%s29225_s4 + $0x1d0] sm:$0xff]  }
 0xc58   : > { %20710 = vmatmul.mubr.bf16.vlgmr.msra.gmra.mrb[136].mxu1 %v9981_v51 }
 0xc59   : > { %20713 = vmatprep.mubr.msk.bf16.mxu1 %vm24641_vm0, %v29305_v2  ;;  %20754 = vmatpush3.bf16.msra.mxu1 %v24428_v25  ;;  %v27634_v25 = vrot.slane %v26995_v9, 2 }
 0xc5a   : > { %20755 = vmatprep.subr.bf16.mxu1 %v29305_v2 }
 0xc5b   : > { %v9997_v51 = vsel %vm9978_vm6, %v9994_v22, %v27634_v25  ;;  %v29403_v22 = vshll.u32 %v26856_v23, 16 }
 0xc5d   : > { %20756 = vmatpush3.bf16.msra.mxu1 %v24429_v0  ;;  %v9949_v0 = vld [vmem:[#allocation3 + $0x50] sm:$0x3f] }
 0xc5e   : > { %20757 = vmatprep.subr.bf16.mxu1 %v29305_v2  ;;  %v9998_v27 = vrot.slane %v9949_v0, 2 }
 0xc60   : > { %20714 = vmatmul.mubr.bf16.gmra.mrb[140].mxu1 %v9983_v3  ;;  %v24436_v3 = vld [vmem:[%s29225_s4 + $0x180] sm:$0xff]  }
 0xc61   : > { %20717 = vmatprep.mubr.msk.bf16.mxu1 %vm24641_vm0, %v29305_v2  ;;  %20758 = vmatpush3.bf16.msra.mxu1 %v24430_v1  ;;  %v9999_v1 = vsel %vm9978_vm6, %v27634_v25, %v9998_v27 }
 0xc62   : > { %20759 = vmatprep.subr.bf16.mxu1 %v29305_v2 }
 0xc65   : > { %20760 = vmatpush3.bf16.msra.mxu1 %v24431_v12  ;;  %v24437_v12 = vld [vmem:[%s29225_s4 + $0x188] sm:$0xff]  }
 0xc66   : > { %20761 = vmatprep.subr.bf16.mxu1 %v29305_v2 }
 0xc68   : > { %20718 = vmatmul.mubr.bf16.gmra.mrb[144].mxu1 %v9985_v58  ;;  %v24441_v58 = vld [vmem:[%s29225_s4 + $0x1a8] sm:$0xff]  }
 0xc69   : > { %20721 = vmatprep.mubr.msk.bf16.mxu1 %vm24641_vm0, %v29305_v2  ;;  %20762 = vmatpush3.bf16.msra.mxu1 %v24432_v32  ;;  %v24440_v32 = vld [vmem:[%s29225_s4 + $0x1a0] sm:$0xff]  }
 0xc6a   : > { %20763 = vmatprep.subr.bf16.mxu1 %v29305_v2 }
 0xc6d   : > { %20764 = vmatpush3.bf16.msra.mxu1 %v24433_v13  ;;  %v24442_v13 = vld [vmem:[%s29225_s4 + $0x1b0] sm:$0xff]  }
 0xc6e   : > { %20765 = vmatprep.subr.bf16.mxu1 %v29305_v2 }
 0xc70   : > { %20722 = vmatmul.mubr.bf16.gmra.mrb[148].mxu1 %v9987_v53  ;;  %v27704_v53 = vld [vmem:[#allocation3 + $0x48] sm:$0xff] }
 0xc71   : > { %20725 = vmatprep.mubr.msk.bf16.mxu1 %vm24641_vm0, %v29305_v2  ;;  %20766 = vmatpush3.bf16.msra.mxu1 %v24434_v47  ;;  %v27699_v47 = vld [vmem:[#allocation3 + $0x40] sm:$0xff] }
 0xc72   : > { %20767 = vmatprep.subr.bf16.mxu1 %v29305_v2 }
 0xc75   : > { %20768 = vmatpush3.bf16.msra.mxu1 %v24435_v36  ;;  %v10252_v36 = vld [vmem:[#allocation3 + $0x58] sm:$0xf] }
 0xc76   : > { %20813 = vmatprep.subr.bf16.mxu1 %v29305_v2 }
 0xc78   : > { %20726 = vmatmul.mubr.bf16.gmra.mrb[152].mxu1 %v9989_v18  ;;  %v24445_v18 = vld [vmem:[%s29225_s4 + $0x1c8] sm:$0xff]  }
 0xc79   : > { %20729 = vmatprep.mubr.msk.bf16.mxu1 %vm24641_vm0, %v29305_v2 }
 0xc80   : > { %20730 = vmatmul.mubr.bf16.gmra.mrb[156].mxu1 %v9991_v43  ;;  %v10547_v43 = vrot.slane %v29402_v14, 1 }
 0xc81   : > { %20733 = vmatprep.mubr.msk.bf16.mxu1 %vm24641_vm0, %v29305_v2 }
 0xc88   : > { %20734 = vmatmul.mubr.bf16.gmra.mrb[160].mxu1 %v9993_v42  ;;  %v24447_v42 = vld [vmem:[%s29225_s4 + $0x1d8] sm:$0xff]  }
 0xc89   : > { %20737 = vmatprep.mubr.msk.bf16.mxu1 %vm24641_vm0, %v29305_v2 }
 0xc90   : > { %20738 = vmatmul.mubr.bf16.gmra.mrb[164].mxu1 %v9995_v31  ;;  %v10555_v31 = vrot.slane %v29403_v22, 1 }
 0xc91   : > { %20741 = vmatprep.mubr.msk.bf16.mxu1 %vm24641_vm0, %v29305_v2 }
 0xc98   : > { %20742 = vmatmul.mubr.bf16.gmra.mrb[168].mxu1 %v9997_v51  ;;  %v29404_v51 = vshrl.u32 %v26836_v54, 16  ;;  %v29405_v54 = vld [vmem:[#allocation7_spill] sm:$0xff] }
 0xc99   : > { %20745 = vmatprep.mubr.msk.bf16.mxu1 %vm24641_vm0, %v29305_v2 }
 0xc9a   : > { %v10551_v0 = vor.u32 %v29404_v51, %v10547_v43  ;;  %v29414_v51 = vshll.u32 %v26952_v10, 16 }
 0xca0   : > { %20746 = vmatmul.mubr.bf16.gmra.mrb[172].mxu1 %v9999_v1  ;;  %v24449_v1 = vld [vmem:[%s29225_s4 + $0x1e8] sm:$0xff]  }
 0xca1   : > { %20749 = vmatprep.mubr.msk.bf16.mxu1 %vm24641_vm0, %v29305_v2 }
 0xca8   : > { %20750 = vmatmul.mubr.bf16.gmra.mrb[176].mxu1 %v9998_v27  ;;  %v10556_v27 = vsel %vm8937_vm3, %v10551_v0, %v10555_v31  ;;  %v10587_v0 = vrot.slane %v29414_v51, 1  ;;  %v24453_v51 = vld [vmem:[%s29225_s4 + $0x208] sm:$0xff]  }
 0xca9   : > { %20769 = vmatprep.mubr.msk.bf16.mxu1 %vm24641_vm0, %v29305_v2 }
 0xcb0   : > { %20770 = vmatmul.mubr.bf16.vlgmr.msra.gmra.mrb[136].mxu1 %v27555_v45  ;;  %v24439_v45 = vld [vmem:[%s29225_s4 + $0x198] sm:$0xff]  }
 0xcb1   : > { %20773 = vmatprep.mubr.msk.bf16.mxu1 %vm24641_vm0, %v29305_v2  ;;  %20814 = vmatpush3.bf16.msra.mxu1 %v24436_v3  ;;  %v29406_v3 = vshll.u32 %v29405_v54, 16 }
 0xcb2   : > { %20815 = vmatprep.subr.bf16.mxu1 %v29305_v2 }
 0xcb5   : > { %20816 = vmatpush3.bf16.msra.mxu1 %v24437_v12  ;;  %v10563_v12 = vrot.slane %v29406_v3, 1 }
 0xcb6   : > { %20817 = vmatprep.subr.bf16.mxu1 %v29305_v2 }
 0xcb8   : > { %20774 = vmatmul.mubr.bf16.gmra.mrb[140].mxu1 %v27568_v7 }
 0xcb9   : > { %20777 = vmatprep.mubr.msk.bf16.mxu1 %vm24641_vm0, %v29305_v2  ;;  %20818 = vmatpush3.bf16.msra.mxu1 %v24438_v29  ;;  %v29407_v29 = vshrl.u32 %v26856_v23, 16  ;;  %v29408_v23 = vld [vmem:[#allocation9_spill] sm:$0xff] }
 0xcba   : > { %20819 = vmatprep.subr.bf16.mxu1 %v29305_v2 }
 0xcbd   : > { %20820 = vmatpush3.bf16.msra.mxu1 %v24439_v45  ;;  %v10559_v45 = vor.u32 %v29407_v29, %v10555_v31 }
 0xcbe   : > { %20821 = vmatprep.subr.bf16.mxu1 %v29305_v2 }
 0xcc0   : > { %20778 = vmatmul.mubr.bf16.gmra.mrb[144].mxu1 %v27582_v55 }
 0xcc1   : > { %20781 = vmatprep.mubr.msk.bf16.mxu1 %vm24641_vm0, %v29305_v2  ;;  %20822 = vmatpush3.bf16.msra.mxu1 %v24440_v32  ;;  %v24450_v32 = vld [vmem:[%s29225_s4 + $0x1f0] sm:$0xff]  }
 0xcc2   : > { %20823 = vmatprep.subr.bf16.mxu1 %v29305_v2 }
 0xcc5   : > { %20824 = vmatpush3.bf16.msra.mxu1 %v24441_v58  ;;  %v10564_v58 = vsel %vm8937_vm3, %v10559_v45, %v10563_v12 }
 0xcc6   : > { %20825 = vmatprep.subr.bf16.mxu1 %v29305_v2 }
 0xcc8   : > { %20782 = vmatmul.mubr.bf16.gmra.mrb[148].mxu1 %v27596_v40 }
 0xcc9   : > { %20785 = vmatprep.mubr.msk.bf16.mxu1 %vm24641_vm0, %v29305_v2  ;;  %20826 = vmatpush3.bf16.msra.mxu1 %v24442_v13  ;;  %v24451_v13 = vld [vmem:[%s29225_s4 + $0x1f8] sm:$0xff]  }
 0xcca   : > { %20827 = vmatprep.subr.bf16.mxu1 %v29305_v2 }
 0xccd   : > { %20828 = vmatpush3.bf16.msra.mxu1 %v24443_v41  ;;  %v29409_v41 = vshll.u32 %v29408_v23, 16 }
 0xcce   : > { %20873 = vmatprep.subr.bf16.mxu1 %v29305_v2 }
 0xcd0   : > { %20786 = vmatmul.mubr.bf16.gmra.mrb[152].mxu1 %v27610_v15 }
 0xcd1   : > { %20789 = vmatprep.mubr.msk.bf16.mxu1 %vm24641_vm0, %v29305_v2 }
 0xcd8   : > { %20790 = vmatmul.mubr.bf16.gmra.mrb[156].mxu1 %v27617_v49 }
 0xcd9   : > { %20793 = vmatprep.mubr.msk.bf16.mxu1 %vm24641_vm0, %v29305_v2 }
 0xce0   : > { %20794 = vmatmul.mubr.bf16.gmra.mrb[160].mxu1 %v27623_v52 }
 0xce1   : > { %20797 = vmatprep.mubr.msk.bf16.mxu1 %vm24641_vm0, %v29305_v2 }
 0xce8   : > { %20798 = vmatmul.mubr.bf16.gmra.mrb[164].mxu1 %v27699_v47 }
 0xce9   : > { %20801 = vmatprep.mubr.msk.bf16.mxu1 %vm24641_vm0, %v29305_v2 }
 0xcf0   : > { %20802 = vmatmul.mubr.bf16.gmra.mrb[168].mxu1 %v27704_v53 }
 0xcf1   : > { %20805 = vmatprep.mubr.msk.bf16.mxu1 %vm24641_vm0, %v29305_v2 }
 0xcf8   : > { %20806 = vmatmul.mubr.bf16.gmra.mrb[172].mxu1 %v27011_v37 }
 0xcf9   : > { %20809 = vmatprep.mubr.msk.bf16.mxu1 %vm24641_vm0, %v29305_v2 }
 0xd00   : > { %20810 = vmatmul.mubr.bf16.gmra.mrb[176].mxu1 %v10252_v36  ;;  %v10571_v36 = vrot.slane %v29409_v41, 1 }
 0xd01   : > { %20829 = vmatprep.mubr.msk.bf16.mxu1 %vm24641_vm0, %v29305_v2 }
 0xd08   : > { %20830 = vmatmul.mubr.bf16.vlgmr.msra.gmra.mrb[136].mxu1 %v26823_v39  ;;  %v10548_v39 = vsel %vm8937_vm3, %v26827_v46, %v10547_v43  ;;  %v24448_v46 = vld [vmem:[%s29225_s4 + $0x1e0] sm:$0xff]   ;;  %v29411_v43 = vld [vmem:[#allocation11_spill] sm:$0xff] }
 0xd09   : > { %20833 = vmatprep.mubr.msk.bf16.mxu1 %vm24641_vm0, %v29305_v2  ;;  %20874 = vmatpush3.bf16.msra.mxu1 %v24444_v11  ;;  %v29410_v11 = vshrl.u32 %v29405_v54, 16  ;;  %v29416_v54 = vshll.u32 %v26995_v9, 16 }
 0xd0a   : > { %20875 = vmatprep.subr.bf16.mxu1 %v29305_v2 }
 0xd0b   : > { %v10595_v3 = vrot.slane %v29416_v54, 1 }
 0xd0d   : > { %20876 = vmatpush3.bf16.msra.mxu1 %v24445_v18  ;;  %v10567_v18 = vor.u32 %v29410_v11, %v10563_v12  ;;  %v29417_v12 = vshrl.u32 %v26952_v10, 16 }
 0xd0e   : > { %20877 = vmatprep.subr.bf16.mxu1 %v29305_v2 }
 0xd0f   : > { %v10572_v14 = vsel %vm8937_vm3, %v10567_v18, %v10571_v36  ;;  %v10591_v29 = vor.u32 %v29417_v12, %v10587_v0  ;;  %v29420_v18 = vshrl.u32 %v27011_v37, 16  ;;  %v24458_v12 = vld [vmem:[%s29225_s4 + $0x230] sm:$0xff]  }
 0xd10   : > { %20834 = vmatmul.mubr.bf16.gmra.mrb[140].mxu1 %v10548_v39 }
 0xd11   : > { %20837 = vmatprep.mubr.msk.bf16.mxu1 %vm24641_vm0, %v29305_v2  ;;  %20878 = vmatpush3.bf16.msra.mxu1 %v24446_v60  ;;  %v29412_v60 = vshll.u32 %v29411_v43, 16  ;;  %v10596_v45 = vsel %vm8937_vm3, %v10591_v29, %v10595_v3 }
 0xd12   : > { %20879 = vmatprep.subr.bf16.mxu1 %v29305_v2 }
 0xd13   : > { %v10579_v39 = vrot.slane %v29412_v60, 1 }
 0xd15   : > { %20880 = vmatpush3.bf16.msra.mxu1 %v24447_v42  ;;  %v29413_v42 = vshrl.u32 %v29408_v23, 16  ;;  %v29419_v23 = vshrl.u32 %v26995_v9, 16 }
 0xd16   : > { %20881 = vmatprep.subr.bf16.mxu1 %v29305_v2 }
 0xd17   : > { %v10575_v22 = vor.u32 %v29413_v42, %v10571_v36  ;;  %v10599_v41 = vor.u32 %v29419_v23, %v10595_v3  ;;  %v10898_v42 = vrot.slane %v27568_v7, 1  ;;  %v10900_v7 = vrot.slane %v27582_v55, 1  ;;  %v24457_v3 = vld [vmem:[%s29225_s4 + $0x228] sm:$0xff]  }
 0xd18   : > { %20838 = vmatmul.mubr.bf16.gmra.mrb[144].mxu1 %v10556_v27  ;;  %v10902_v55 = vrot.slane %v27596_v40, 1  ;;  %v10904_v40 = vrot.slane %v27610_v15, 1  ;;  %v10906_v15 = vrot.slane %v27617_v49, 1  ;;  %v10910_v23 = vrot.slane %v27699_v47, 1 }
 0xd19   : > { %20841 = vmatprep.mubr.msk.bf16.mxu1 %vm24641_vm0, %v29305_v2  ;;  %20882 = vmatpush3.bf16.msra.mxu1 %v24448_v46  ;;  %v10580_v31 = vsel %vm8937_vm3, %v10575_v22, %v10579_v39  ;;  %v29415_v46 = vshrl.u32 %v29411_v43, 16 }
 0xd1a   : > { %20883 = vmatprep.subr.bf16.mxu1 %v29305_v2  ;;  %v10903_v54 = vsel %vm9306_vm4, %v10900_v7, %v10902_v55  ;;  %v10905_v29 = vsel %vm9306_vm4, %v10902_v55, %v10904_v40  ;;  %v24461_v55 = vld [vmem:[%s29225_s4 + $0x248] sm:$0xff]  }
 0xd1b   : > { %v10583_v27 = vor.u32 %v29415_v46, %v10579_v39  ;;  %v10858_v39 = vld [vmem:[#allocation3 + $0x8] sm:$0xfe]  ;;  %v10901_v46 = vsel %vm9306_vm4, %v10898_v42, %v10900_v7 }
 0xd1c   : > { %v10897_v22 = vrot.slane %v10858_v39, 1 }
 0xd1d   : > { %20884 = vmatpush3.bf16.msra.mxu1 %v24449_v1  ;;  %v10588_v1 = vsel %vm8937_vm3, %v10583_v27, %v10587_v0  ;;  %v24454_v0 = vld [vmem:[%s29225_s4 + $0x210] sm:$0xff]   ;;  %v24455_v27 = vld [vmem:[%s29225_s4 + $0x218] sm:$0xff]  }
 0xd1e   : > { %20885 = vmatprep.subr.bf16.mxu1 %v29305_v2 }
 0xd20   : > { %20842 = vmatmul.mubr.bf16.gmra.mrb[148].mxu1 %v10564_v58 }
 0xd21   : > { %20845 = vmatprep.mubr.msk.bf16.mxu1 %vm24641_vm0, %v29305_v2  ;;  %20886 = vmatpush3.bf16.msra.mxu1 %v24450_v32  ;;  %v29418_v32 = vshll.u32 %v27011_v37, 16  ;;  %v24452_v37 = vld [vmem:[%s29225_s4 + $0x200] sm:$0xff]  }
 0xd22   : > { %20887 = vmatprep.subr.bf16.mxu1 %v29305_v2 }
 0xd23   : > { %v10603_v58 = vrot.slane %v29418_v32, 1  ;;  %v10907_v32 = vsel %vm9306_vm4, %v10904_v40, %v10906_v15  ;;  %v24463_v40 = vld [vmem:[%s29225_s4 + $0x258] sm:$0xff]  }
 0xd25   : > { %20888 = vmatpush3.bf16.msra.mxu1 %v24451_v13  ;;  %v10511_v13 = vld [vmem:[#allocation3 + $0x58] sm:$0x1f]  ;;  %v10604_v36 = vsel %vm8937_vm3, %v10599_v41, %v10603_v58  ;;  %v10912_v41 = vrot.slane %v27704_v53, 1 }
 0xd26   : > { %20933 = vmatprep.subr.bf16.mxu1 %v29305_v2  ;;  %v10609_v11 = vshll.u32 %v10511_v13, 16  ;;  %v10613_v60 = vshrl.u32 %v10511_v13, 16 }
 0xd28   : > { %20846 = vmatmul.mubr.bf16.gmra.mrb[152].mxu1 %v10572_v14  ;;  %v10611_v10 = vrot.slane %v10609_v11, 1  ;;  %v10607_v14 = vor.u32 %v29420_v18, %v10603_v58  ;;  %v10908_v58 = vrot.slane %v27623_v52, 1  ;;  %v27875_v52 = vld [vmem:[#allocation3 + $0x50] sm:$0xff] }
 0xd29   : > { %20849 = vmatprep.mubr.msk.bf16.mxu1 %vm24641_vm0, %v29305_v2  ;;  %v10914_v11 = vrot.slane %v27875_v52, 1 }
 0xd2a   : > { %v10612_v43 = vsel %vm8937_vm3, %v10607_v14, %v10611_v10  ;;  %v10615_v9 = vor.u32 %v10613_v60, %v10611_v10  ;;  %v10909_v13 = vsel %vm9306_vm4, %v10906_v15, %v10908_v58  ;;  %v10911_v49 = vsel %vm9306_vm4, %v10908_v58, %v10910_v23  ;;  %v10868_v10 = vld [vmem:[#allocation3 + $0x58] sm:$0x1f]  ;;  %v11160_v14 = vld [vmem:[#allocation3 + $0x8] sm:$0xfe]  ;;  %v24467_v58 = vld [vmem:[%s29225_s4 + $0x278] sm:$0xff]  }
 0xd2b   : > { %v10915_v47 = vsel %vm9306_vm4, %v10912_v41, %v10914_v11  ;;  %v10916_v18 = vrot.slane %v10868_v10, 1  ;;  %v11192_v60 = vshll.u32 %v11160_v14, 16  ;;  %v24466_v15 = vld [vmem:[%s29225_s4 + $0x270] sm:$0xff]  }
 0xd2d   : > { %v10917_v53 = vsel %vm9306_vm4, %v10914_v11, %v10916_v18 }
 0xd30   : > { %20850 = vmatmul.mubr.bf16.gmra.mrb[156].mxu1 %v10580_v31  ;;  %v10899_v31 = vsel %vm9306_vm4, %v10897_v22, %v10898_v42 }
 0xd31   : > { %20853 = vmatprep.mubr.msk.bf16.mxu1 %vm24641_vm0, %v29305_v2 }
 0xd38   : > { %20854 = vmatmul.mubr.bf16.gmra.mrb[160].mxu1 %v10588_v1  ;;  %v24456_v1 = vld [vmem:[%s29225_s4 + $0x220] sm:$0xff]  }
 0xd39   : > { %20857 = vmatprep.mubr.msk.bf16.mxu1 %vm24641_vm0, %v29305_v2 }
 0xd40   : > { %20858 = vmatmul.mubr.bf16.gmra.mrb[164].mxu1 %v10596_v45  ;;  %v24459_v45 = vld [vmem:[%s29225_s4 + $0x238] sm:$0xff]  }
 0xd41   : > { %20861 = vmatprep.mubr.msk.bf16.mxu1 %vm24641_vm0, %v29305_v2 }
 0xd48   : > { %20862 = vmatmul.mubr.bf16.gmra.mrb[168].mxu1 %v10604_v36  ;;  %v10913_v36 = vsel %vm9306_vm4, %v10910_v23, %v10912_v41  ;;  %v29428_v23 = vld [vmem:[#allocation14_spill] sm:$0xff] }
 0xd49   : > { %20865 = vmatprep.mubr.msk.bf16.mxu1 %vm24641_vm0, %v29305_v2 }
 0xd50   : > { %20866 = vmatmul.mubr.bf16.gmra.mrb[172].mxu1 %v10612_v43  ;;  %v11189_v43 = vshrl.u32 %v11160_v14, 16 }
 0xd51   : > { %20869 = vmatprep.mubr.msk.bf16.mxu1 %vm24641_vm0, %v29305_v2 }
 0xd58   : > { %20870 = vmatmul.mubr.bf16.gmra.mrb[176].mxu1 %v10615_v9  ;;  %v29421_v9 = vld [vmem:[#allocation5_spill] sm:$0xff] }
 0xd59   : > { %20889 = vmatprep.mubr.msk.bf16.mxu1 %vm24641_vm0, %v29305_v2  ;;  %v29422_v39 = vshrl.u32 %v29421_v9, 16  ;;  %v29423_v22 = vshll.u32 %v29421_v9, 16  ;;  %v24469_v9 = vld [vmem:[%s29225_s4 + $0x288] sm:$0xff]  }
 0xd5b   : > { %v11199_v42 = vrot.slane %v29422_v39, 1  ;;  %v27969_v39 = vld [vmem:[#allocation3 + $0x18] sm:$0xff] }
 0xd60   : > { %20890 = vmatmul.mubr.bf16.vlgmr.msra.gmra.mrb[136].mxu1 %v10899_v31  ;;  %v11191_v31 = vrot.slane %v11189_v43, 1  ;;  %v24468_v43 = vld [vmem:[%s29225_s4 + $0x280] sm:$0xff]  }
 0xd61   : > { %20893 = vmatprep.mubr.msk.bf16.mxu1 %vm24641_vm0, %v29305_v2  ;;  %20934 = vmatpush3.bf16.msra.mxu1 %v24452_v37  ;;  %v11202_v37 = vrot.slane %v29423_v22, 2  ;;  %v24470_v22 = vld [vmem:[%s29225_s4 + $0x290] sm:$0xff]  }
 0xd62   : > { %20935 = vmatprep.subr.bf16.mxu1 %v29305_v2 }
 0xd63   : > { %v11203_v7 = vor.u32 %v11202_v37, %v11199_v42  ;;  %v11570_v42 = vrot.slane %v27969_v39, 2 }
 0xd65   : > { %20936 = vmatpush3.bf16.msra.mxu1 %v24453_v51  ;;  %v11194_v51 = vrot.slane %v11192_v60, 2 }
 0xd66   : > { %20937 = vmatprep.subr.bf16.mxu1 %v29305_v2 }
 0xd68   : > { %20894 = vmatmul.mubr.bf16.gmra.mrb[140].mxu1 %v10901_v46  ;;  %v24460_v46 = vld [vmem:[%s29225_s4 + $0x240] sm:$0xff]  }
 0xd69   : > { %20897 = vmatprep.mubr.msk.bf16.mxu1 %vm24641_vm0, %v29305_v2  ;;  %20938 = vmatpush3.bf16.msra.mxu1 %v24454_v0  ;;  %v11195_v0 = vor.u32 %v11194_v51, %v11191_v31  ;;  %v24471_v31 = vld [vmem:[%s29225_s4 + $0x298] sm:$0xff]   ;;  %v27983_v51 = vld [vmem:[#allocation3 + $0x20] sm:$0xff] }
 0xd6a   : > { %20939 = vmatprep.subr.bf16.mxu1 %v29305_v2 }
 0xd6d   : > { %20940 = vmatpush3.bf16.msra.mxu1 %v24455_v27  ;;  %v11204_v27 = vsel %vm9598_vm5, %v11195_v0, %v11203_v7  ;;  %v24472_v0 = vld [vmem:[%s29225_s4 + $0x2a0] sm:$0xff]  }
 0xd6e   : > { %20941 = vmatprep.subr.bf16.mxu1 %v29305_v2 }
 0xd70   : > { %20898 = vmatmul.mubr.bf16.gmra.mrb[144].mxu1 %v10903_v54  ;;  %v29424_v54 = vld [vmem:[#allocation6_spill] sm:$0xff] }
 0xd71   : > { %20901 = vmatprep.mubr.msk.bf16.mxu1 %vm24641_vm0, %v29305_v2  ;;  %20942 = vmatpush3.bf16.msra.mxu1 %v24456_v1  ;;  %v24462_v1 = vld [vmem:[%s29225_s4 + $0x250] sm:$0xff]  }
 0xd72   : > { %20943 = vmatprep.subr.bf16.mxu1 %v29305_v2 }
 0xd75   : > { %20944 = vmatpush3.bf16.msra.mxu1 %v24457_v3  ;;  %v11213_v3 = vsel %vm9598_vm5, %v11203_v7, %v29424_v54  ;;  %v11572_v7 = vrot.slane %v27983_v51, 2  ;;  %v24474_v54 = vld [vmem:[%s29225_s4 + $0x2b0] sm:$0xff]  }
 0xd76   : > { %20945 = vmatprep.subr.bf16.mxu1 %v29305_v2 }
 0xd78   : > { %20902 = vmatmul.mubr.bf16.gmra.mrb[148].mxu1 %v10905_v29  ;;  %v29425_v29 = vld [vmem:[#allocation10_spill] sm:$0xff] }
 0xd79   : > { %20905 = vmatprep.mubr.msk.bf16.mxu1 %vm24641_vm0, %v29305_v2  ;;  %20946 = vmatpush3.bf16.msra.mxu1 %v24458_v12  ;;  %v24464_v12 = vld [vmem:[%s29225_s4 + $0x260] sm:$0xff]  }
 0xd7a   : > { %20947 = vmatprep.subr.bf16.mxu1 %v29305_v2 }
 0xd7d   : > { %20948 = vmatpush3.bf16.msra.mxu1 %v24459_v45  ;;  %v24465_v45 = vld [vmem:[%s29225_s4 + $0x268] sm:$0xff]  }
 0xd7e   : > { %20993 = vmatprep.subr.bf16.mxu1 %v29305_v2 }
 0xd80   : > { %20906 = vmatmul.mubr.bf16.gmra.mrb[152].mxu1 %v10907_v32  ;;  %v29426_v32 = vld [vmem:[#allocation12_spill] sm:$0xff] }
 0xd81   : > { %20909 = vmatprep.mubr.msk.bf16.mxu1 %vm24641_vm0, %v29305_v2 }
 0xd88   : > { %20910 = vmatmul.mubr.bf16.gmra.mrb[156].mxu1 %v10909_v13  ;;  %v29427_v13 = vld [vmem:[#allocation13_spill] sm:$0xff] }
 0xd89   : > { %20913 = vmatprep.mubr.msk.bf16.mxu1 %vm24641_vm0, %v29305_v2 }
 0xd90   : > { %20914 = vmatmul.mubr.bf16.gmra.mrb[160].mxu1 %v10911_v49  ;;  %v11170_v49 = vld [vmem:[#allocation3 + $0x58] sm:$0x3f] }
 0xd91   : > { %20917 = vmatprep.mubr.msk.bf16.mxu1 %vm24641_vm0, %v29305_v2  ;;  %v11278_v41 = vshrl.u32 %v11170_v49, 16 }
 0xd93   : > { %v11280_v11 = vrot.slane %v11278_v41, 1 }
 0xd98   : > { %20918 = vmatmul.mubr.bf16.gmra.mrb[164].mxu1 %v10913_v36  ;;  %v11281_v36 = vshll.u32 %v11170_v49, 16 }
 0xd99   : > { %20921 = vmatprep.mubr.msk.bf16.mxu1 %vm24641_vm0, %v29305_v2 }
 0xda0   : > { %20922 = vmatmul.mubr.bf16.gmra.mrb[168].mxu1 %v10915_v47  ;;  %v11283_v47 = vrot.slane %v11281_v36, 2  ;;  %v11584_v36 = vrot.slane %v27875_v52, 2  ;;  %v24477_v52 = vld [vmem:[%s29225_s4 + $0x2c8] sm:$0xff]  }
 0xda1   : > { %20925 = vmatprep.mubr.msk.bf16.mxu1 %vm24641_vm0, %v29305_v2 }
 0xda2   : > { %v11284_v10 = vor.u32 %v11283_v47, %v11280_v11  ;;  %v11585_v11 = vsel %vm9978_vm6, %v27634_v25, %v11584_v36  ;;  %v11538_v47 = vld [vmem:[#allocation3 + $0x58] sm:$0x3f] }
 0xda8   : > { %20926 = vmatmul.mubr.bf16.gmra.mrb[172].mxu1 %v10917_v53  ;;  %v27956_v53 = vld [vmem:[#allocation3 + $0x10] sm:$0xff] }
 0xda9   : > { %20929 = vmatprep.mubr.msk.bf16.mxu1 %vm24641_vm0, %v29305_v2 }
 0xdb0   : > { %20930 = vmatmul.mubr.bf16.gmra.mrb[176].mxu1 %v10916_v18 }
 0xdb1   : > { %20949 = vmatprep.mubr.msk.bf16.mxu1 %vm24641_vm0, %v29305_v2 }
 0xdb8   : > { %20950 = vmatmul.mubr.bf16.vlgmr.msra.gmra.mrb[136].mxu1 %v11204_v27  ;;  %v24473_v27 = vld [vmem:[%s29225_s4 + $0x2a8] sm:$0xff]  }
 0xdb9   : > { %20953 = vmatprep.mubr.msk.bf16.mxu1 %vm24641_vm0, %v29305_v2  ;;  %20994 = vmatpush3.bf16.msra.mxu1 %v24460_v46  ;;  %v11573_v46 = vsel %vm9978_vm6, %v11570_v42, %v11572_v7 }
 0xdba   : > { %20995 = vmatprep.subr.bf16.mxu1 %v29305_v2 }
 0xdbd   : > { %20996 = vmatpush3.bf16.msra.mxu1 %v24461_v55  ;;  %v27997_v55 = vld [vmem:[#allocation3 + $0x28] sm:$0xff] }
 0xdbe   : > { %20997 = vmatprep.subr.bf16.mxu1 %v29305_v2 }
 0xdc0   : > { %20954 = vmatmul.mubr.bf16.gmra.mrb[140].mxu1 %v11213_v3 }
 0xdc1   : > { %20957 = vmatprep.mubr.msk.bf16.mxu1 %vm24641_vm0, %v29305_v2  ;;  %20998 = vmatpush3.bf16.msra.mxu1 %v24462_v1  ;;  %v11574_v1 = vrot.slane %v27997_v55, 2 }
 0xdc2   : > { %20999 = vmatprep.subr.bf16.mxu1 %v29305_v2 }
 0xdc3   : > { %v11575_v3 = vsel %vm9978_vm6, %v11572_v7, %v11574_v1 }
 0xdc5   : > { %21000 = vmatpush3.bf16.msra.mxu1 %v24463_v40  ;;  %v24475_v40 = vld [vmem:[%s29225_s4 + $0x2b8] sm:$0xff]  }
 0xdc6   : > { %21001 = vmatprep.subr.bf16.mxu1 %v29305_v2 }
 0xdc8   : > { %20958 = vmatmul.mubr.bf16.gmra.mrb[144].mxu1 %v29425_v29 }
 0xdc9   : > { %20961 = vmatprep.mubr.msk.bf16.mxu1 %vm24641_vm0, %v29305_v2  ;;  %21002 = vmatpush3.bf16.msra.mxu1 %v24464_v12  ;;  %v28011_v12 = vld [vmem:[#allocation3 + $0x30] sm:$0xff] }
 0xdca   : > { %21003 = vmatprep.subr.bf16.mxu1 %v29305_v2  ;;  %v11576_v29 = vrot.slane %v28011_v12, 2 }
 0xdcd   : > { %21004 = vmatpush3.bf16.msra.mxu1 %v24465_v45  ;;  %v11577_v45 = vsel %vm9978_vm6, %v11574_v1, %v11576_v29  ;;  %v24485_v1 = vld [vmem:[%s29225_s4 + $0x308] sm:$0xff]  }
 0xdce   : > { %21005 = vmatprep.subr.bf16.mxu1 %v29305_v2 }
 0xdd0   : > { %20962 = vmatmul.mubr.bf16.gmra.mrb[148].mxu1 %v29426_v32 }
 0xdd1   : > { %20965 = vmatprep.mubr.msk.bf16.mxu1 %vm24641_vm0, %v29305_v2  ;;  %21006 = vmatpush3.bf16.msra.mxu1 %v24466_v15  ;;  %v28018_v15 = vld [vmem:[#allocation3 + $0x38] sm:$0xff] }
 0xdd2   : > { %21007 = vmatprep.subr.bf16.mxu1 %v29305_v2  ;;  %v11578_v32 = vrot.slane %v28018_v15, 2 }
 0xdd5   : > { %21008 = vmatpush3.bf16.msra.mxu1 %v24467_v58  ;;  %v11579_v58 = vsel %vm9978_vm6, %v11576_v29, %v11578_v32 }
 0xdd6   : > { %21053 = vmatprep.subr.bf16.mxu1 %v29305_v2 }
 0xdd8   : > { %20966 = vmatmul.mubr.bf16.gmra.mrb[152].mxu1 %v29427_v13  ;;  %v28024_v13 = vld [vmem:[#allocation3 + $0x40] sm:$0xff] }
 0xdd9   : > { %20969 = vmatprep.mubr.msk.bf16.mxu1 %vm24641_vm0, %v29305_v2 }
 0xde0   : > { %20970 = vmatmul.mubr.bf16.gmra.mrb[156].mxu1 %v29428_v23  ;;  %v11580_v23 = vrot.slane %v28024_v13, 2 }
 0xde1   : > { %20973 = vmatprep.mubr.msk.bf16.mxu1 %vm24641_vm0, %v29305_v2 }
 0xde2   : > { %v11581_v49 = vsel %vm9978_vm6, %v11578_v32, %v11580_v23  ;;  %v11583_v41 = vsel %vm9978_vm6, %v11580_v23, %v27634_v25  ;;  %v24476_v25 = vld [vmem:[%s29225_s4 + $0x2c0] sm:$0xff]   ;;  %v24486_v32 = vld [vmem:[%s29225_s4 + $0x310] sm:$0xff]   ;;  %v24487_v23 = vld [vmem:[%s29225_s4 + $0x318] sm:$0xff]  }
 0xde8   : > { %20974 = vmatmul.mubr.bf16.gmra.mrb[160].mxu1 %v27005_v16  ;;  %v29429_v16 = vld [vmem:[#allocation15_spill] sm:$0xff] }
 0xde9   : > { %20977 = vmatprep.mubr.msk.bf16.mxu1 %vm24641_vm0, %v29305_v2  ;;  %v11285_v18 = vsel %vm9598_vm5, %v29429_v16, %v11284_v10 }
 0xdf0   : > { %20978 = vmatmul.mubr.bf16.gmra.mrb[164].mxu1 %v27014_v57  ;;  %v11528_v57 = vld [vmem:[#allocation3 + $0x8] sm:$0xfc] }
 0xdf1   : > { %20981 = vmatprep.mubr.msk.bf16.mxu1 %vm24641_vm0, %v29305_v2  ;;  %v11567_v14 = vrot.slane %v11528_v57, 2  ;;  %v24479_v57 = vld [vmem:[%s29225_s4 + $0x2d8] sm:$0xff]  }
 0xdf8   : > { %20982 = vmatmul.mubr.bf16.gmra.mrb[168].mxu1 %v27042_v63  ;;  %v11568_v63 = vrot.slane %v27956_v53, 2 }
 0xdf9   : > { %20985 = vmatprep.mubr.msk.bf16.mxu1 %vm24641_vm0, %v29305_v2 }
 0xdfa   : > { %v11569_v60 = vsel %vm9978_vm6, %v11567_v14, %v11568_v63  ;;  %v11571_v37 = vsel %vm9978_vm6, %v11568_v63, %v11570_v42  ;;  %v24481_v63 = vld [vmem:[%s29225_s4 + $0x2e8] sm:$0xff]   ;;  %v24482_v14 = vld [vmem:[%s29225_s4 + $0x2f0] sm:$0xff]   ;;  %v28107_v42 = vld [vmem:[#allocation3 + $0x58] sm:$0xff] }
 0xe00   : > { %20986 = vmatmul.mubr.bf16.gmra.mrb[172].mxu1 %v11285_v18  ;;  %v24478_v18 = vld [vmem:[%s29225_s4 + $0x2d0] sm:$0xff]  }
 0xe01   : > { %20989 = vmatprep.mubr.msk.bf16.mxu1 %vm24641_vm0, %v29305_v2 }
 0xe08   : > { %20990 = vmatmul.mubr.bf16.gmra.mrb[176].mxu1 %v11284_v10  ;;  %v11586_v10 = vrot.slane %v11538_v47, 2 }
 0xe09   : > { %21009 = vmatprep.mubr.msk.bf16.mxu1 %vm24641_vm0, %v29305_v2 }
 0xe0a   : > { %v11587_v16 = vsel %vm9978_vm6, %v11584_v36, %v11586_v10 }
 0xe10   : > { %21010 = vmatmul.mubr.bf16.vlgmr.msra.gmra.mrb[136].mxu1 %v11569_v60  ;;  %v28097_v60 = vld [vmem:[#allocation3 + $0x48] sm:$0xff] }
 0xe11   : > { %21013 = vmatprep.mubr.msk.bf16.mxu1 %vm24641_vm0, %v29305_v2  ;;  %21054 = vmatpush3.bf16.msra.mxu1 %v24468_v43  ;;  %v24483_v43 = vld [vmem:[%s29225_s4 + $0x2f8] sm:$0xff]  }
 0xe12   : > { %21055 = vmatprep.subr.bf16.mxu1 %v29305_v2 }
 0xe15   : > { %21056 = vmatpush3.bf16.msra.mxu1 %v24469_v9  ;;  %v28102_v9 = vld [vmem:[#allocation3 + $0x50] sm:$0xff] }
 0xe16   : > { %21057 = vmatprep.subr.bf16.mxu1 %v29305_v2 }
 0xe18   : > { %21014 = vmatmul.mubr.bf16.gmra.mrb[140].mxu1 %v11571_v37  ;;  %v29430_v37 = vld [vmem:[#allocation16_spill] sm:$0xff] }
 0xe19   : > { %21017 = vmatprep.mubr.msk.bf16.mxu1 %vm24641_vm0, %v29305_v2  ;;  %21058 = vmatpush3.bf16.msra.mxu1 %v24470_v22  ;;  %v11840_v22 = vld [vmem:[#allocation3 + $0x60] sm:$0xf]  ;;  %v29435_v29 = vshrl.u32 %v29430_v37, 16 }
 0xe1a   : > { %21059 = vmatprep.subr.bf16.mxu1 %v29305_v2 }
 0xe1d   : > { %21060 = vmatpush3.bf16.msra.mxu1 %v24471_v31  ;;  %v29431_v31 = vshll.u32 %v29430_v37, 16 }
 0xe1e   : > { %21061 = vmatprep.subr.bf16.mxu1 %v29305_v2 }
 0xe1f   : > { %v12127_v7 = vrot.slane %v29431_v31, 1  ;;  %v29442_v31 = vshrl.u32 %v27074_v48, 16 }
 0xe20   : > { %21018 = vmatmul.mubr.bf16.gmra.mrb[144].mxu1 %v11573_v46  ;;  %v29432_v46 = vld [vmem:[#allocation8_spill] sm:$0xff] }
 0xe21   : > { %21021 = vmatprep.mubr.msk.bf16.mxu1 %vm24641_vm0, %v29305_v2  ;;  %21062 = vmatpush3.bf16.msra.mxu1 %v24472_v0  ;;  %v24484_v0 = vld [vmem:[%s29225_s4 + $0x300] sm:$0xff]  }
 0xe22   : > { %21063 = vmatprep.subr.bf16.mxu1 %v29305_v2 }
 0xe25   : > { %21064 = vmatpush3.bf16.msra.mxu1 %v24473_v27  ;;  %v12128_v27 = vsel %vm8937_vm3, %v29432_v46, %v12127_v7  ;;  %v29443_v46 = vld [vmem:[#allocation19_spill] sm:$0xff] }
 0xe26   : > { %21065 = vmatprep.subr.bf16.mxu1 %v29305_v2 }
 0xe28   : > { %21022 = vmatmul.mubr.bf16.gmra.mrb[148].mxu1 %v11575_v3 }
 0xe29   : > { %21025 = vmatprep.mubr.msk.bf16.mxu1 %vm24641_vm0, %v29305_v2  ;;  %21066 = vmatpush3.bf16.msra.mxu1 %v24474_v54  ;;  %v29433_v54 = vld [vmem:[#allocation17_spill] sm:$0xff] }
 0xe2a   : > { %21067 = vmatprep.subr.bf16.mxu1 %v29305_v2  ;;  %v29434_v3 = vshll.u32 %v29433_v54, 16 }
 0xe2d   : > { %21068 = vmatpush3.bf16.msra.mxu1 %v24475_v40  ;;  %v12135_v40 = vrot.slane %v29434_v3, 1 }
 0xe2e   : > { %21113 = vmatprep.subr.bf16.mxu1 %v29305_v2 }
 0xe30   : > { %21026 = vmatmul.mubr.bf16.gmra.mrb[152].mxu1 %v11577_v45  ;;  %v12131_v45 = vor.u32 %v29435_v29, %v12127_v7 }
 0xe31   : > { %21029 = vmatprep.mubr.msk.bf16.mxu1 %vm24641_vm0, %v29305_v2 }
 0xe38   : > { %21030 = vmatmul.mubr.bf16.gmra.mrb[156].mxu1 %v11579_v58  ;;  %v12136_v58 = vsel %vm8937_vm3, %v12131_v45, %v12135_v40 }
 0xe39   : > { %21033 = vmatprep.mubr.msk.bf16.mxu1 %vm24641_vm0, %v29305_v2 }
 0xe40   : > { %21034 = vmatmul.mubr.bf16.gmra.mrb[160].mxu1 %v11581_v49  ;;  %v29436_v49 = vld [vmem:[#allocation18_spill] sm:$0xff] }
 0xe41   : > { %21037 = vmatprep.mubr.msk.bf16.mxu1 %vm24641_vm0, %v29305_v2 }
 0xe48   : > { %21038 = vmatmul.mubr.bf16.gmra.mrb[164].mxu1 %v11583_v41  ;;  %v29437_v41 = vshll.u32 %v29436_v49, 16 }
 0xe49   : > { %21041 = vmatprep.mubr.msk.bf16.mxu1 %vm24641_vm0, %v29305_v2 }
 0xe4a   : > { %v12143_v36 = vrot.slane %v29437_v41, 1 }
 0xe50   : > { %21042 = vmatmul.mubr.bf16.gmra.mrb[168].mxu1 %v11585_v11  ;;  %v29438_v11 = vshrl.u32 %v29433_v54, 16  ;;  %v29445_v54 = vshrl.u32 %v27076_v30, 16 }
 0xe51   : > { %21045 = vmatprep.mubr.msk.bf16.mxu1 %vm24641_vm0, %v29305_v2 }
 0xe52   : > { %v12139_v47 = vor.u32 %v29438_v11, %v12135_v40 }
 0xe58   : > { %21046 = vmatmul.mubr.bf16.gmra.mrb[172].mxu1 %v11587_v16  ;;  %v12144_v16 = vsel %vm8937_vm3, %v12139_v47, %v12143_v36 }
 0xe59   : > { %21049 = vmatprep.mubr.msk.bf16.mxu1 %vm24641_vm0, %v29305_v2 }
 0xe60   : > { %21050 = vmatmul.mubr.bf16.gmra.mrb[176].mxu1 %v11586_v10  ;;  %v24488_v10 = vld [vmem:[%s29225_s4 + $0x320] sm:$0xff]  }
 0xe61   : > { %21069 = vmatprep.mubr.msk.bf16.mxu1 %vm24641_vm0, %v29305_v2 }
 0xe68   : > { %21070 = vmatmul.mubr.bf16.vlgmr.msra.gmra.mrb[136].mxu1 %v27956_v53  ;;  %v24480_v53 = vld [vmem:[%s29225_s4 + $0x2e0] sm:$0xff]  }
 0xe69   : > { %21073 = vmatprep.mubr.msk.bf16.mxu1 %vm24641_vm0, %v29305_v2  ;;  %21114 = vmatpush3.bf16.msra.mxu1 %v24476_v25  ;;  %v24489_v25 = vld [vmem:[%s29225_s4 + $0x328] sm:$0xff]  }
 0xe6a   : > { %21115 = vmatprep.subr.bf16.mxu1 %v29305_v2 }
 0xe6d   : > { %21116 = vmatpush3.bf16.msra.mxu1 %v24477_v52  ;;  %v29439_v52 = vshll.u32 %v27074_v48, 16  ;;  %v29446_v48 = vld [vmem:[#allocation20_spill] sm:$0xff] }
 0xe6e   : > { %21117 = vmatprep.subr.bf16.mxu1 %v29305_v2  ;;  %v29447_v29 = vshll.u32 %v29446_v48, 16 }
 0xe70   : > { %21074 = vmatmul.mubr.bf16.gmra.mrb[140].mxu1 %v27969_v39  ;;  %v12175_v45 = vrot.slane %v29447_v29, 1  ;;  %v24495_v29 = vld [vmem:[%s29225_s4 + $0x358] sm:$0xff]  }
 0xe71   : > { %21077 = vmatprep.mubr.msk.bf16.mxu1 %vm24641_vm0, %v29305_v2  ;;  %21118 = vmatpush3.bf16.msra.mxu1 %v24478_v18  ;;  %v12151_v18 = vrot.slane %v29439_v52, 1  ;;  %v12099_v52 = vld [vmem:[#allocation3 + $0x60] sm:$0x1f] }
 0xe72   : > { %21119 = vmatprep.subr.bf16.mxu1 %v29305_v2 }
 0xe73   : > { %v12155_v7 = vor.u32 %v29442_v31, %v12151_v18  ;;  %v12201_v31 = vshrl.u32 %v12099_v52, 16 }
 0xe75   : > { %21120 = vmatpush3.bf16.msra.mxu1 %v24479_v57  ;;  %v29440_v57 = vshrl.u32 %v29436_v49, 16 }
 0xe76   : > { %21121 = vmatprep.subr.bf16.mxu1 %v29305_v2 }
 0xe78   : > { %21078 = vmatmul.mubr.bf16.gmra.mrb[144].mxu1 %v27983_v51 }
 0xe79   : > { %21081 = vmatprep.mubr.msk.bf16.mxu1 %vm24641_vm0, %v29305_v2  ;;  %21122 = vmatpush3.bf16.msra.mxu1 %v24480_v53  ;;  %v12147_v53 = vor.u32 %v29440_v57, %v12143_v36  ;;  %v29451_v36 = vshrl.u32 %v29446_v48, 16 }
 0xe7a   : > { %21123 = vmatprep.subr.bf16.mxu1 %v29305_v2 }
 0xe7b   : > { %v12179_v11 = vor.u32 %v29451_v36, %v12175_v45  ;;  %v12496_v36 = vrot.slane %v28024_v13, 1 }
 0xe7d   : > { %21124 = vmatpush3.bf16.msra.mxu1 %v24481_v63  ;;  %v24490_v63 = vld [vmem:[%s29225_s4 + $0x330] sm:$0xff]  }
 0xe7e   : > { %21125 = vmatprep.subr.bf16.mxu1 %v29305_v2 }
 0xe80   : > { %21082 = vmatmul.mubr.bf16.gmra.mrb[148].mxu1 %v27997_v55 }
 0xe81   : > { %21085 = vmatprep.mubr.msk.bf16.mxu1 %vm24641_vm0, %v29305_v2  ;;  %21126 = vmatpush3.bf16.msra.mxu1 %v24482_v14  ;;  %v12152_v14 = vsel %vm8937_vm3, %v12147_v53, %v12151_v18 }
 0xe82   : > { %21127 = vmatprep.subr.bf16.mxu1 %v29305_v2 }
 0xe85   : > { %21128 = vmatpush3.bf16.msra.mxu1 %v24483_v43  ;;  %v24491_v43 = vld [vmem:[%s29225_s4 + $0x338] sm:$0xff]  }
 0xe86   : > { %21173 = vmatprep.subr.bf16.mxu1 %v29305_v2 }
 0xe88   : > { %21086 = vmatmul.mubr.bf16.gmra.mrb[152].mxu1 %v28011_v12 }
 0xe89   : > { %21089 = vmatprep.mubr.msk.bf16.mxu1 %vm24641_vm0, %v29305_v2 }
 0xe90   : > { %21090 = vmatmul.mubr.bf16.gmra.mrb[156].mxu1 %v28018_v15 }
 0xe91   : > { %21093 = vmatprep.mubr.msk.bf16.mxu1 %vm24641_vm0, %v29305_v2 }
 0xe98   : > { %21094 = vmatmul.mubr.bf16.gmra.mrb[160].mxu1 %v28024_v13  ;;  %v12502_v13 = vrot.slane %v28107_v42, 1 }
 0xe99   : > { %21097 = vmatprep.mubr.msk.bf16.mxu1 %vm24641_vm0, %v29305_v2 }
 0xea0   : > { %21098 = vmatmul.mubr.bf16.gmra.mrb[164].mxu1 %v28097_v60 }
 0xea1   : > { %21101 = vmatprep.mubr.msk.bf16.mxu1 %vm24641_vm0, %v29305_v2 }
 0xea8   : > { %21102 = vmatmul.mubr.bf16.gmra.mrb[168].mxu1 %v28102_v9 }
 0xea9   : > { %21105 = vmatprep.mubr.msk.bf16.mxu1 %vm24641_vm0, %v29305_v2 }
 0xeb0   : > { %21106 = vmatmul.mubr.bf16.gmra.mrb[172].mxu1 %v28107_v42 }
 0xeb1   : > { %21109 = vmatprep.mubr.msk.bf16.mxu1 %vm24641_vm0, %v29305_v2 }
 0xeb8   : > { %21110 = vmatmul.mubr.bf16.gmra.mrb[176].mxu1 %v11840_v22  ;;  %v29441_v22 = vshll.u32 %v27076_v30, 16  ;;  %v29449_v30 = vld [vmem:[#allocation21_spill] sm:$0xff] }
 0xeb9   : > { %21129 = vmatprep.mubr.msk.bf16.mxu1 %vm24641_vm0, %v29305_v2  ;;  %v29450_v49 = vshll.u32 %v29449_v30, 16  ;;  %v29454_v18 = vshrl.u32 %v29449_v30, 16 }
 0xeba   : > { %v12159_v37 = vrot.slane %v29441_v22, 1 }
 0xebb   : > { %v12183_v41 = vrot.slane %v29450_v49, 1  ;;  %v24499_v49 = vld [vmem:[%s29225_s4 + $0x378] sm:$0xff]  }
 0xebc   : > { %v12163_v3 = vor.u32 %v29445_v54, %v12159_v37 }
 0xebd   : > { %v12184_v47 = vsel %vm8937_vm3, %v12179_v11, %v12183_v41  ;;  %v12187_v57 = vor.u32 %v29454_v18, %v12183_v41 }
 0xec0   : > { %21130 = vmatmul.mubr.bf16.vlgmr.msra.gmra.mrb[136].mxu1 %v12128_v27  ;;  %v29444_v27 = vshll.u32 %v29443_v46, 16 }
 0xec1   : > { %21133 = vmatprep.mubr.msk.bf16.mxu1 %vm24641_vm0, %v29305_v2  ;;  %21174 = vmatpush3.bf16.msra.mxu1 %v24484_v0  ;;  %v12160_v0 = vsel %vm8937_vm3, %v12155_v7, %v12159_v37 }
 0xec2   : > { %21175 = vmatprep.subr.bf16.mxu1 %v29305_v2 }
 0xec5   : > { %21176 = vmatpush3.bf16.msra.mxu1 %v24485_v1  ;;  %v12167_v1 = vrot.slane %v29444_v27, 1 }
 0xec6   : > { %21177 = vmatprep.subr.bf16.mxu1 %v29305_v2 }
 0xec7   : > { %v12168_v40 = vsel %vm8937_vm3, %v12163_v3, %v12167_v1  ;;  %v24493_v3 = vld [vmem:[%s29225_s4 + $0x348] sm:$0xff]  }
 0xec8   : > { %21134 = vmatmul.mubr.bf16.gmra.mrb[140].mxu1 %v12136_v58 }
 0xec9   : > { %21137 = vmatprep.mubr.msk.bf16.mxu1 %vm24641_vm0, %v29305_v2  ;;  %21178 = vmatpush3.bf16.msra.mxu1 %v24486_v32  ;;  %v29448_v32 = vshrl.u32 %v29443_v46, 16  ;;  %v12486_v46 = vrot.slane %v27969_v39, 1  ;;  %v12488_v39 = vrot.slane %v27983_v51, 1  ;;  %v12490_v51 = vrot.slane %v27997_v55, 1 }
 0xeca   : > { %21179 = vmatprep.subr.bf16.mxu1 %v29305_v2  ;;  %v12492_v55 = vrot.slane %v28011_v12, 1  ;;  %v12494_v12 = vrot.slane %v28018_v15, 1 }
 0xecb   : > { %v12171_v58 = vor.u32 %v29448_v32, %v12167_v1  ;;  %v24492_v1 = vld [vmem:[%s29225_s4 + $0x340] sm:$0xff]   ;;  %v12489_v48 = vsel %vm9306_vm4, %v12486_v46, %v12488_v39  ;;  %v12491_v32 = vsel %vm9306_vm4, %v12488_v39, %v12490_v51  ;;  %v29458_v39 = vld [vmem:[#allocation25_spill] sm:$0xff] }
 0xecc   : > { %v12493_v30 = vsel %vm9306_vm4, %v12490_v51, %v12492_v55  ;;  %v12495_v41 = vsel %vm9306_vm4, %v12492_v55, %v12494_v12  ;;  %v12497_v11 = vsel %vm9306_vm4, %v12494_v12, %v12496_v36  ;;  %v24507_v51 = vld [vmem:[%s29225_s4 + $0x3b8] sm:$0xff]  }
 0xecd   : > { %21180 = vmatpush3.bf16.msra.mxu1 %v24487_v23  ;;  %v12176_v23 = vsel %vm8937_vm3, %v12171_v58, %v12175_v45  ;;  %v24496_v45 = vld [vmem:[%s29225_s4 + $0x360] sm:$0xff]   ;;  %v24497_v58 = vld [vmem:[%s29225_s4 + $0x368] sm:$0xff]   ;;  %v29463_v55 = vld [vmem:[#allocation31_spill] sm:$0xff] }
 0xece   : > { %21181 = vmatprep.subr.bf16.mxu1 %v29305_v2 }
 0xed0   : > { %21138 = vmatmul.mubr.bf16.gmra.mrb[144].mxu1 %v12144_v16 }
 0xed1   : > { %21141 = vmatprep.mubr.msk.bf16.mxu1 %vm24641_vm0, %v29305_v2  ;;  %21182 = vmatpush3.bf16.msra.mxu1 %v24488_v10  ;;  %v29452_v10 = vld [vmem:[#allocation22_spill] sm:$0xff] }
 0xed2   : > { %21183 = vmatprep.subr.bf16.mxu1 %v29305_v2  ;;  %v29453_v16 = vshll.u32 %v29452_v10, 16 }
 0xed5   : > { %21184 = vmatpush3.bf16.msra.mxu1 %v24489_v25  ;;  %v12191_v25 = vrot.slane %v29453_v16, 1 }
 0xed6   : > { %21185 = vmatprep.subr.bf16.mxu1 %v29305_v2 }
 0xed7   : > { %v12192_v53 = vsel %vm8937_vm3, %v12187_v57, %v12191_v25 }
 0xed8   : > { %21142 = vmatmul.mubr.bf16.gmra.mrb[148].mxu1 %v12152_v14 }
 0xed9   : > { %21145 = vmatprep.mubr.msk.bf16.mxu1 %vm24641_vm0, %v29305_v2  ;;  %21186 = vmatpush3.bf16.msra.mxu1 %v24490_v63  ;;  %v12197_v63 = vshll.u32 %v12099_v52, 16  ;;  %v12456_v52 = vld [vmem:[#allocation3 + $0x60] sm:$0x1f] }
 0xeda   : > { %21187 = vmatprep.subr.bf16.mxu1 %v29305_v2  ;;  %v12504_v18 = vrot.slane %v12456_v52, 1  ;;  %v24508_v52 = vld [vmem:[%s29225_s4 + $0x3c0] sm:$0xff]  }
 0xedb   : > { %v12199_v14 = vrot.slane %v12197_v63, 1 }
 0xedc   : > { %v12505_v57 = vsel %vm9306_vm4, %v12502_v13, %v12504_v18 }
 0xedd   : > { %21188 = vmatpush3.bf16.msra.mxu1 %v24491_v43  ;;  %v29455_v43 = vshrl.u32 %v29452_v10, 16  ;;  %v12203_v7 = vor.u32 %v12201_v31, %v12199_v14  ;;  %v12500_v10 = vrot.slane %v28102_v9, 1  ;;  %v24500_v31 = vld [vmem:[%s29225_s4 + $0x380] sm:$0xff]  }
 0xede   : > { %21233 = vmatprep.subr.bf16.mxu1 %v29305_v2 }
 0xedf   : > { %v12195_v22 = vor.u32 %v29455_v43, %v12191_v25  ;;  %v12503_v25 = vsel %vm9306_vm4, %v12500_v10, %v12502_v13 }
 0xee0   : > { %21146 = vmatmul.mubr.bf16.gmra.mrb[152].mxu1 %v12160_v0  ;;  %v12446_v0 = vld [vmem:[#allocation3 + $0x10] sm:$0xfe] }
 0xee1   : > { %21149 = vmatprep.mubr.msk.bf16.mxu1 %vm24641_vm0, %v29305_v2  ;;  %v12200_v37 = vsel %vm8937_vm3, %v12195_v22, %v12199_v14  ;;  %v12485_v27 = vrot.slane %v12446_v0, 1 }
 0xee3   : > { %v12487_v54 = vsel %vm9306_vm4, %v12485_v27, %v12486_v46  ;;  %v24501_v46 = vld [vmem:[%s29225_s4 + $0x388] sm:$0xff]   ;;  %v24502_v27 = vld [vmem:[%s29225_s4 + $0x390] sm:$0xff]  }
 0xee8   : > { %21150 = vmatmul.mubr.bf16.gmra.mrb[156].mxu1 %v12168_v40  ;;  %v24494_v40 = vld [vmem:[%s29225_s4 + $0x350] sm:$0xff]  }
 0xee9   : > { %21153 = vmatprep.mubr.msk.bf16.mxu1 %vm24641_vm0, %v29305_v2 }
 0xef0   : > { %21154 = vmatmul.mubr.bf16.gmra.mrb[160].mxu1 %v12176_v23  ;;  %v24498_v23 = vld [vmem:[%s29225_s4 + $0x370] sm:$0xff]  }
 0xef1   : > { %21157 = vmatprep.mubr.msk.bf16.mxu1 %vm24641_vm0, %v29305_v2 }
 0xef8   : > { %21158 = vmatmul.mubr.bf16.gmra.mrb[164].mxu1 %v12184_v47  ;;  %v12498_v47 = vrot.slane %v28097_v60, 1 }
 0xef9   : > { %21161 = vmatprep.mubr.msk.bf16.mxu1 %vm24641_vm0, %v29305_v2 }
 0xefa   : > { %v12499_v15 = vsel %vm9306_vm4, %v12496_v36, %v12498_v47  ;;  %v12501_v16 = vsel %vm9306_vm4, %v12498_v47, %v12500_v10  ;;  %v29464_v36 = vld [vmem:[#allocation32_spill] sm:$0xff]  ;;  %v29465_v47 = vld [vmem:[#allocation30_spill] sm:$0xff] }
 0xefb   : > { %v28352_v10 = vld [vmem:[#allocation3 + $0x18] sm:$0xff] }
 0xefc   : > { %v13156_v13 = vrot.slane %v28352_v10, 2 }
 0xf00   : > { %21162 = vmatmul.mubr.bf16.gmra.mrb[168].mxu1 %v12192_v53  ;;  %v12748_v53 = vld [vmem:[#allocation3 + $0x10] sm:$0xfe] }
 0xf01   : > { %21165 = vmatprep.mubr.msk.bf16.mxu1 %vm24641_vm0, %v29305_v2  ;;  %v12777_v63 = vshrl.u32 %v12748_v53, 16  ;;  %v12780_v14 = vshll.u32 %v12748_v53, 16  ;;  %v28367_v53 = vld [vmem:[#allocation3 + $0x20] sm:$0xff] }
 0xf03   : > { %v12779_v43 = vrot.slane %v12777_v63, 1  ;;  %v12782_v22 = vrot.slane %v12780_v14, 2  ;;  %v13158_v63 = vrot.slane %v28367_v53, 2  ;;  %v24510_v14 = vld [vmem:[%s29225_s4 + $0x3d0] sm:$0xff]  }
 0xf08   : > { %21166 = vmatmul.mubr.bf16.gmra.mrb[172].mxu1 %v12200_v37  ;;  %v12783_v37 = vor.u32 %v12782_v22, %v12779_v43  ;;  %v13159_v43 = vsel %vm9978_vm6, %v13156_v13, %v13158_v63  ;;  %v24511_v22 = vld [vmem:[%s29225_s4 + $0x3d8] sm:$0xff]  }
 0xf09   : > { %21169 = vmatprep.mubr.msk.bf16.mxu1 %vm24641_vm0, %v29305_v2 }
 0xf10   : > { %21170 = vmatmul.mubr.bf16.gmra.mrb[176].mxu1 %v12203_v7  ;;  %v29456_v7 = vld [vmem:[#allocation23_spill] sm:$0xff] }
 0xf11   : > { %21189 = vmatprep.mubr.msk.bf16.mxu1 %vm24641_vm0, %v29305_v2  ;;  %v12792_v0 = vsel %vm9598_vm5, %v12783_v37, %v29456_v7  ;;  %v28381_v37 = vld [vmem:[#allocation3 + $0x28] sm:$0xff]  ;;  %v24512_v7 = vld [vmem:[%s29225_s4 + $0x3e0] sm:$0xff]  }
 0xf18   : > { %21190 = vmatmul.mubr.bf16.vlgmr.msra.gmra.mrb[136].mxu1 %v12487_v54  ;;  %v24503_v54 = vld [vmem:[%s29225_s4 + $0x398] sm:$0xff]  }
 0xf19   : > { %21193 = vmatprep.mubr.msk.bf16.mxu1 %vm24641_vm0, %v29305_v2  ;;  %21234 = vmatpush3.bf16.msra.mxu1 %v24492_v1  ;;  %v29457_v1 = vld [vmem:[#allocation24_spill] sm:$0xff] }
 0xf1a   : > { %21235 = vmatprep.subr.bf16.mxu1 %v29305_v2 }
 0xf1d   : > { %21236 = vmatpush3.bf16.msra.mxu1 %v24493_v3  ;;  %v24504_v3 = vld [vmem:[%s29225_s4 + $0x3a0] sm:$0xff]  }
 0xf1e   : > { %21237 = vmatprep.subr.bf16.mxu1 %v29305_v2 }
 0xf20   : > { %21194 = vmatmul.mubr.bf16.gmra.mrb[140].mxu1 %v12489_v48  ;;  %v24506_v48 = vld [vmem:[%s29225_s4 + $0x3b0] sm:$0xff]  }
 0xf21   : > { %21197 = vmatprep.mubr.msk.bf16.mxu1 %vm24641_vm0, %v29305_v2  ;;  %21238 = vmatpush3.bf16.msra.mxu1 %v24494_v40  ;;  %v24505_v40 = vld [vmem:[%s29225_s4 + $0x3a8] sm:$0xff]  }
 0xf22   : > { %21239 = vmatprep.subr.bf16.mxu1 %v29305_v2 }
 0xf25   : > { %21240 = vmatpush3.bf16.msra.mxu1 %v24495_v29  ;;  %v29459_v29 = vld [vmem:[#allocation26_spill] sm:$0xff] }
 0xf26   : > { %21241 = vmatprep.subr.bf16.mxu1 %v29305_v2 }
 0xf28   : > { %21198 = vmatmul.mubr.bf16.gmra.mrb[144].mxu1 %v12491_v32  ;;  %v29461_v32 = vld [vmem:[#allocation28_spill] sm:$0xff] }
 0xf29   : > { %21201 = vmatprep.mubr.msk.bf16.mxu1 %vm24641_vm0, %v29305_v2  ;;  %21242 = vmatpush3.bf16.msra.mxu1 %v24496_v45  ;;  %v29460_v45 = vld [vmem:[#allocation27_spill] sm:$0xff] }
 0xf2a   : > { %21243 = vmatprep.subr.bf16.mxu1 %v29305_v2 }
 0xf2d   : > { %21244 = vmatpush3.bf16.msra.mxu1 %v24497_v58  ;;  %v29462_v58 = vld [vmem:[#allocation29_spill] sm:$0xff] }
 0xf2e   : > { %21245 = vmatprep.subr.bf16.mxu1 %v29305_v2 }
 0xf30   : > { %21202 = vmatmul.mubr.bf16.gmra.mrb[148].mxu1 %v12493_v30 }
 0xf31   : > { %21205 = vmatprep.mubr.msk.bf16.mxu1 %vm24641_vm0, %v29305_v2  ;;  %21246 = vmatpush3.bf16.msra.mxu1 %v24498_v23  ;;  %v12758_v23 = vld [vmem:[#allocation3 + $0x60] sm:$0x3f] }
 0xf32   : > { %21247 = vmatprep.subr.bf16.mxu1 %v29305_v2  ;;  %v12866_v30 = vshrl.u32 %v12758_v23, 16 }
 0xf34   : > { %v12868_v12 = vrot.slane %v12866_v30, 1 }
 0xf35   : > { %21248 = vmatpush3.bf16.msra.mxu1 %v24499_v49  ;;  %v12869_v49 = vshll.u32 %v12758_v23, 16  ;;  %v13170_v23 = vrot.slane %v28102_v9, 2  ;;  %v24516_v9 = vld [vmem:[%s29225_s4 + $0x400] sm:$0xff]  }
 0xf36   : > { %21293 = vmatprep.subr.bf16.mxu1 %v29305_v2 }
 0xf38   : > { %21206 = vmatmul.mubr.bf16.gmra.mrb[152].mxu1 %v12495_v41  ;;  %v12871_v41 = vrot.slane %v12869_v49, 2  ;;  %v13172_v49 = vrot.slane %v28107_v42, 2  ;;  %v24517_v42 = vld [vmem:[%s29225_s4 + $0x408] sm:$0xff]  }
 0xf39   : > { %21209 = vmatprep.mubr.msk.bf16.mxu1 %vm24641_vm0, %v29305_v2 }
 0xf40   : > { %21210 = vmatmul.mubr.bf16.gmra.mrb[156].mxu1 %v12497_v11  ;;  %v12872_v11 = vor.u32 %v12871_v41, %v12868_v12  ;;  %v13173_v12 = vsel %vm9978_vm6, %v13170_v23, %v13172_v49 }
 0xf41   : > { %21213 = vmatprep.mubr.msk.bf16.mxu1 %vm24641_vm0, %v29305_v2 }
 0xf48   : > { %21214 = vmatmul.mubr.bf16.gmra.mrb[160].mxu1 %v12499_v15  ;;  %v12873_v15 = vsel %vm9598_vm5, %v29465_v47, %v12872_v11  ;;  %v24519_v47 = vld [vmem:[%s29225_s4 + $0x418] sm:$0xff]  }
 0xf49   : > { %21217 = vmatprep.mubr.msk.bf16.mxu1 %vm24641_vm0, %v29305_v2 }
 0xf50   : > { %21218 = vmatmul.mubr.bf16.gmra.mrb[164].mxu1 %v12501_v16  ;;  %v13116_v16 = vld [vmem:[#allocation3 + $0x10] sm:$0xfc] }
 0xf51   : > { %21221 = vmatprep.mubr.msk.bf16.mxu1 %vm24641_vm0, %v29305_v2 }
 0xf58   : > { %21222 = vmatmul.mubr.bf16.gmra.mrb[168].mxu1 %v12503_v25  ;;  %v13155_v25 = vrot.slane %v13116_v16, 2  ;;  %v24521_v16 = vld [vmem:[%s29225_s4 + $0x428] sm:$0xff]  }
 0xf59   : > { %21225 = vmatprep.mubr.msk.bf16.mxu1 %vm24641_vm0, %v29305_v2 }
 0xf60   : > { %21226 = vmatmul.mubr.bf16.gmra.mrb[172].mxu1 %v12505_v57  ;;  %v24509_v57 = vld [vmem:[%s29225_s4 + $0x3c8] sm:$0xff]  }
 0xf61   : > { %21229 = vmatprep.mubr.msk.bf16.mxu1 %vm24641_vm0, %v29305_v2 }
 0xf68   : > { %21230 = vmatmul.mubr.bf16.gmra.mrb[176].mxu1 %v12504_v18  ;;  %v13157_v18 = vsel %vm9978_vm6, %v13155_v25, %v13156_v13  ;;  %v24522_v13 = vld [vmem:[%s29225_s4 + $0x430] sm:$0xff]   ;;  %v24523_v25 = vld [vmem:[%s29225_s4 + $0x438] sm:$0xff]  }
 0xf69   : > { %21249 = vmatprep.mubr.msk.bf16.mxu1 %vm24641_vm0, %v29305_v2 }
 0xf70   : > { %21250 = vmatmul.mubr.bf16.vlgmr.msra.gmra.mrb[136].mxu1 %v12792_v0 }
 0xf71   : > { %21253 = vmatprep.mubr.msk.bf16.mxu1 %vm24641_vm0, %v29305_v2  ;;  %21294 = vmatpush3.bf16.msra.mxu1 %v24500_v31  ;;  %v13160_v31 = vrot.slane %v28381_v37, 2 }
 0xf72   : > { %21295 = vmatprep.subr.bf16.mxu1 %v29305_v2 }
 0xf73   : > { %v13161_v0 = vsel %vm9978_vm6, %v13158_v63, %v13160_v31  ;;  %v28504_v63 = vld [vmem:[#allocation3 + $0x60] sm:$0xff] }
 0xf75   : > { %21296 = vmatpush3.bf16.msra.mxu1 %v24501_v46  ;;  %v24513_v46 = vld [vmem:[%s29225_s4 + $0x3e8] sm:$0xff]  }
 0xf76   : > { %21297 = vmatprep.subr.bf16.mxu1 %v29305_v2 }
 0xf78   : > { %21254 = vmatmul.mubr.bf16.gmra.mrb[140].mxu1 %v29457_v1 }
 0xf79   : > { %21257 = vmatprep.mubr.msk.bf16.mxu1 %vm24641_vm0, %v29305_v2  ;;  %21298 = vmatpush3.bf16.msra.mxu1 %v24502_v27  ;;  %v28395_v27 = vld [vmem:[#allocation3 + $0x30] sm:$0xff] }
 0xf7a   : > { %21299 = vmatprep.subr.bf16.mxu1 %v29305_v2  ;;  %v13162_v1 = vrot.slane %v28395_v27, 2 }
 0xf7d   : > { %21300 = vmatpush3.bf16.msra.mxu1 %v24503_v54  ;;  %v24514_v54 = vld [vmem:[%s29225_s4 + $0x3f0] sm:$0xff]  }
 0xf7e   : > { %21301 = vmatprep.subr.bf16.mxu1 %v29305_v2 }
 0xf80   : > { %21258 = vmatmul.mubr.bf16.gmra.mrb[144].mxu1 %v29458_v39  ;;  %v24515_v39 = vld [vmem:[%s29225_s4 + $0x3f8] sm:$0xff]  }
 0xf81   : > { %21261 = vmatprep.mubr.msk.bf16.mxu1 %vm24641_vm0, %v29305_v2  ;;  %21302 = vmatpush3.bf16.msra.mxu1 %v24504_v3  ;;  %v13163_v3 = vsel %vm9978_vm6, %v13160_v31, %v13162_v1  ;;  %v13706_v31 = vshrl.u32 %v28352_v10, 16 }
 0xf82   : > { %21303 = vmatprep.subr.bf16.mxu1 %v29305_v2 }
 0xf85   : > { %21304 = vmatpush3.bf16.msra.mxu1 %v24505_v40  ;;  %v28409_v40 = vld [vmem:[#allocation3 + $0x38] sm:$0xff] }
 0xf86   : > { %21305 = vmatprep.subr.bf16.mxu1 %v29305_v2 }
 0xf88   : > { %21262 = vmatmul.mubr.bf16.gmra.mrb[148].mxu1 %v29459_v29 }
 0xf89   : > { %21265 = vmatprep.mubr.msk.bf16.mxu1 %vm24641_vm0, %v29305_v2  ;;  %21306 = vmatpush3.bf16.msra.mxu1 %v24506_v48  ;;  %v13164_v48 = vrot.slane %v28409_v40, 2 }
 0xf8a   : > { %21307 = vmatprep.subr.bf16.mxu1 %v29305_v2 }
 0xf8b   : > { %v13165_v29 = vsel %vm9978_vm6, %v13162_v1, %v13164_v48 }
 0xf8d   : > { %21308 = vmatpush3.bf16.msra.mxu1 %v24507_v51  ;;  %v28416_v51 = vld [vmem:[#allocation3 + $0x40] sm:$0xff] }
 0xf8e   : > { %21353 = vmatprep.subr.bf16.mxu1 %v29305_v2 }
 0xf90   : > { %21266 = vmatmul.mubr.bf16.gmra.mrb[152].mxu1 %v29460_v45  ;;  %v13166_v45 = vrot.slane %v28416_v51, 2 }
 0xf91   : > { %21269 = vmatprep.mubr.msk.bf16.mxu1 %vm24641_vm0, %v29305_v2 }
 0xf98   : > { %21270 = vmatmul.mubr.bf16.gmra.mrb[156].mxu1 %v29461_v32  ;;  %v13167_v32 = vsel %vm9978_vm6, %v13164_v48, %v13166_v45 }
 0xf99   : > { %21273 = vmatprep.mubr.msk.bf16.mxu1 %vm24641_vm0, %v29305_v2 }
 0xfa0   : > { %21274 = vmatmul.mubr.bf16.gmra.mrb[160].mxu1 %v29462_v58  ;;  %v13168_v58 = vrot.slane %v28097_v60, 2  ;;  %v13126_v60 = vld [vmem:[#allocation3 + $0x60] sm:$0x3f] }
 0xfa1   : > { %21277 = vmatprep.mubr.msk.bf16.mxu1 %vm24641_vm0, %v29305_v2  ;;  %v13174_v41 = vrot.slane %v13126_v60, 2 }
 0xfa2   : > { %v13171_v30 = vsel %vm9978_vm6, %v13168_v58, %v13170_v23  ;;  %v24527_v23 = vld [vmem:[%s29225_s4 + $0x458] sm:$0xff]  }
 0xfa8   : > { %21278 = vmatmul.mubr.bf16.gmra.mrb[164].mxu1 %v29463_v55  ;;  %v13169_v55 = vsel %vm9978_vm6, %v13166_v45, %v13168_v58  ;;  %v24526_v58 = vld [vmem:[%s29225_s4 + $0x450] sm:$0xff]  }
 0xfa9   : > { %21281 = vmatprep.mubr.msk.bf16.mxu1 %vm24641_vm0, %v29305_v2 }
 0xfb0   : > { %21282 = vmatmul.mubr.bf16.gmra.mrb[168].mxu1 %v29464_v36  ;;  %v13175_v36 = vsel %vm9978_vm6, %v13172_v49, %v13174_v41 }
 0xfb1   : > { %21285 = vmatprep.mubr.msk.bf16.mxu1 %vm24641_vm0, %v29305_v2 }
 0xfb8   : > { %21286 = vmatmul.mubr.bf16.gmra.mrb[172].mxu1 %v12873_v15  ;;  %v24520_v15 = vld [vmem:[%s29225_s4 + $0x420] sm:$0xff]  }
 0xfb9   : > { %21289 = vmatprep.mubr.msk.bf16.mxu1 %vm24641_vm0, %v29305_v2 }
 0xfc0   : > { %21290 = vmatmul.mubr.bf16.gmra.mrb[176].mxu1 %v12872_v11  ;;  %v24518_v11 = vld [vmem:[%s29225_s4 + $0x410] sm:$0xff]  }
 0xfc1   : > { %21309 = vmatprep.mubr.msk.bf16.mxu1 %vm24641_vm0, %v29305_v2 }
 0xfc8   : > { %21310 = vmatmul.mubr.bf16.vlgmr.msra.gmra.mrb[136].mxu1 %v13157_v18  ;;  %v28494_v18 = vld [vmem:[#allocation3 + $0x50] sm:$0xff] }
 0xfc9   : > { %21313 = vmatprep.mubr.msk.bf16.mxu1 %vm24641_vm0, %v29305_v2  ;;  %21354 = vmatpush3.bf16.msra.mxu1 %v24508_v52  ;;  %v28489_v52 = vld [vmem:[#allocation3 + $0x48] sm:$0xff] }
 0xfca   : > { %21355 = vmatprep.subr.bf16.mxu1 %v29305_v2 }
 0xfcd   : > { %21356 = vmatpush3.bf16.msra.mxu1 %v24509_v57  ;;  %v28499_v57 = vld [vmem:[#allocation3 + $0x58] sm:$0xff] }
 0xfce   : > { %21357 = vmatprep.subr.bf16.mxu1 %v29305_v2 }
 0xfd0   : > { %21314 = vmatmul.mubr.bf16.gmra.mrb[140].mxu1 %v13159_v43  ;;  %v13428_v43 = vld [vmem:[#allocation3 + $0x68] sm:$0xf] }
 0xfd1   : > { %21317 = vmatprep.mubr.msk.bf16.mxu1 %vm24641_vm0, %v29305_v2  ;;  %21358 = vmatpush3.bf16.msra.mxu1 %v24510_v14  ;;  %v13708_v14 = vshll.u32 %v28352_v10, 16 }
 0xfd2   : > { %21359 = vmatprep.subr.bf16.mxu1 %v29305_v2 }
 0xfd5   : > { %21360 = vmatpush3.bf16.msra.mxu1 %v24511_v22  ;;  %v13710_v22 = vrot.slane %v13708_v14, 1  ;;  %v24531_v14 = vld [vmem:[%s29225_s4 + $0x478] sm:$0xff]  }
 0xfd6   : > { %21361 = vmatprep.subr.bf16.mxu1 %v29305_v2 }
 0xfd7   : > { %v13711_v1 = vor.u32 %v13710_v22, %v13706_v31  ;;  %v29477_v31 = vshrl.u32 %v27199_v19, 16 }
 0xfd8   : > { %21318 = vmatmul.mubr.bf16.gmra.mrb[144].mxu1 %v13161_v0 }
 0xfd9   : > { %21321 = vmatprep.mubr.msk.bf16.mxu1 %vm24641_vm0, %v29305_v2  ;;  %21362 = vmatpush3.bf16.msra.mxu1 %v24512_v7  ;;  %v29466_v7 = vld [vmem:[#allocation33_spill] sm:$0xff] }
 0xfda   : > { %21363 = vmatprep.subr.bf16.mxu1 %v29305_v2  ;;  %v29467_v0 = vshll.u32 %v29466_v7, 16  ;;  %v29470_v45 = vshrl.u32 %v29466_v7, 16 }
 0xfdd   : > { %21364 = vmatpush3.bf16.msra.mxu1 %v24513_v46  ;;  %v13715_v46 = vrot.slane %v29467_v0, 1 }
 0xfde   : > { %21365 = vmatprep.subr.bf16.mxu1 %v29305_v2 }
 0xfe0   : > { %21322 = vmatmul.mubr.bf16.gmra.mrb[148].mxu1 %v13163_v3  ;;  %v13716_v3 = vsel %vm8937_vm3, %v13711_v1, %v13715_v46 }
 0xfe1   : > { %21325 = vmatprep.mubr.msk.bf16.mxu1 %vm24641_vm0, %v29305_v2  ;;  %21366 = vmatpush3.bf16.msra.mxu1 %v24514_v54  ;;  %v24524_v54 = vld [vmem:[%s29225_s4 + $0x440] sm:$0xff]  }
 0xfe2   : > { %21367 = vmatprep.subr.bf16.mxu1 %v29305_v2 }
 0xfe5   : > { %21368 = vmatpush3.bf16.msra.mxu1 %v24515_v39  ;;  %v24525_v39 = vld [vmem:[%s29225_s4 + $0x448] sm:$0xff]  }
 0xfe6   : > { %21413 = vmatprep.subr.bf16.mxu1 %v29305_v2 }
 0xfe8   : > { %21326 = vmatmul.mubr.bf16.gmra.mrb[152].mxu1 %v13165_v29 }
 0xfe9   : > { %21329 = vmatprep.mubr.msk.bf16.mxu1 %vm24641_vm0, %v29305_v2 }
 0xff0   : > { %21330 = vmatmul.mubr.bf16.gmra.mrb[156].mxu1 %v13167_v32  ;;  %v13719_v32 = vor.u32 %v29470_v45, %v13715_v46  ;;  %v29478_v46 = vshll.u32 %v27204_v38, 16 }
 0xff1   : > { %21333 = vmatprep.mubr.msk.bf16.mxu1 %vm24641_vm0, %v29305_v2 }
 0xff2   : > { %v13755_v1 = vrot.slane %v29478_v46, 1  ;;  %v24537_v46 = vld [vmem:[%s29225_s4 + $0x4a8] sm:$0xff]  }
 0xff8   : > { %21334 = vmatmul.mubr.bf16.gmra.mrb[160].mxu1 %v13169_v55 }
 0xff9   : > { %21337 = vmatprep.mubr.msk.bf16.mxu1 %vm24641_vm0, %v29305_v2 }
0x1000   : > { %21338 = vmatmul.mubr.bf16.gmra.mrb[164].mxu1 %v13171_v30  ;;  %v29471_v30 = vld [vmem:[#allocation35_spill] sm:$0xff] }
0x1001   : > { %21341 = vmatprep.mubr.msk.bf16.mxu1 %vm24641_vm0, %v29305_v2  ;;  %v29472_v49 = vshll.u32 %v29471_v30, 16 }
0x1008   : > { %21342 = vmatmul.mubr.bf16.gmra.mrb[168].mxu1 %v13173_v12  ;;  %v13731_v12 = vrot.slane %v29472_v49, 1  ;;  %v13687_v49 = vld [vmem:[#allocation3 + $0x68] sm:$0x1f] }
0x1009   : > { %21345 = vmatprep.mubr.msk.bf16.mxu1 %vm24641_vm0, %v29305_v2 }
0x1010   : > { %21346 = vmatmul.mubr.bf16.gmra.mrb[172].mxu1 %v13175_v36  ;;  %v24528_v36 = vld [vmem:[%s29225_s4 + $0x460] sm:$0xff]  }
0x1011   : > { %21349 = vmatprep.mubr.msk.bf16.mxu1 %vm24641_vm0, %v29305_v2 }
0x1018   : > { %21350 = vmatmul.mubr.bf16.gmra.mrb[176].mxu1 %v13174_v41 }
0x1019   : > { %21369 = vmatprep.mubr.msk.bf16.mxu1 %vm24641_vm0, %v29305_v2 }
0x1020   : > { %21370 = vmatmul.mubr.bf16.vlgmr.msra.gmra.mrb[136].mxu1 %v28352_v10  ;;  %v29468_v10 = vld [vmem:[#allocation34_spill] sm:$0xff] }
0x1021   : > { %21373 = vmatprep.mubr.msk.bf16.mxu1 %vm24641_vm0, %v29305_v2  ;;  %21414 = vmatpush3.bf16.msra.mxu1 %v24516_v9  ;;  %v29469_v48 = vshll.u32 %v29468_v10, 16  ;;  %v29473_v60 = vshrl.u32 %v29468_v10, 16 }
0x1022   : > { %21415 = vmatprep.subr.bf16.mxu1 %v29305_v2 }
0x1023   : > { %v13723_v29 = vrot.slane %v29469_v48, 1  ;;  %v29481_v48 = vshrl.u32 %v27204_v38, 16  ;;  %v29484_v38 = vshll.u32 %v27213_v8, 16 }
0x1025   : > { %21416 = vmatpush3.bf16.msra.mxu1 %v24517_v42  ;;  %v13724_v55 = vsel %vm8937_vm3, %v13719_v32, %v13723_v29  ;;  %v13727_v41 = vor.u32 %v29473_v60, %v13723_v29  ;;  %v24529_v42 = vld [vmem:[%s29225_s4 + $0x468] sm:$0xff]   ;;  %v13759_v29 = vor.u32 %v29481_v48, %v13755_v1  ;;  %v14086_v48 = vrot.slane %v28494_v18, 1 }
0x1026   : > { %21417 = vmatprep.subr.bf16.mxu1 %v29305_v2 }
0x1027   : > { %v13732_v9 = vsel %vm8937_vm3, %v13727_v41, %v13731_v12 }
0x1028   : > { %21374 = vmatmul.mubr.bf16.gmra.mrb[140].mxu1 %v28367_v53 }
0x1029   : > { %21377 = vmatprep.mubr.msk.bf16.mxu1 %vm24641_vm0, %v29305_v2  ;;  %21418 = vmatpush3.bf16.msra.mxu1 %v24518_v11  ;;  %v29474_v11 = vshll.u32 %v27199_v19, 16  ;;  %v29480_v19 = vshll.u32 %v27206_v17, 16 }
0x102a   : > { %21419 = vmatprep.subr.bf16.mxu1 %v29305_v2 }
0x102b   : > { %v13763_v10 = vrot.slane %v29480_v19, 1  ;;  %v14084_v19 = vrot.slane %v28489_v52, 1 }
0x102d   : > { %21420 = vmatpush3.bf16.msra.mxu1 %v24519_v47  ;;  %v13739_v47 = vrot.slane %v29474_v11, 1  ;;  %v13764_v45 = vsel %vm8937_vm3, %v13759_v29, %v13763_v10  ;;  %v14088_v29 = vrot.slane %v28499_v57, 1 }
0x102e   : > { %21421 = vmatprep.subr.bf16.mxu1 %v29305_v2 }
0x102f   : > { %v13743_v7 = vor.u32 %v29477_v31, %v13739_v47  ;;  %v24535_v31 = vld [vmem:[%s29225_s4 + $0x498] sm:$0xff]  }
0x1030   : > { %21378 = vmatmul.mubr.bf16.gmra.mrb[144].mxu1 %v28381_v37 }
0x1031   : > { %21381 = vmatprep.mubr.msk.bf16.mxu1 %vm24641_vm0, %v29305_v2  ;;  %21422 = vmatpush3.bf16.msra.mxu1 %v24520_v15  ;;  %v29475_v15 = vshrl.u32 %v29471_v30, 16  ;;  %v13779_v30 = vrot.slane %v29484_v38, 1  ;;  %v14336_v38 = vld [vmem:[#allocation3 + $0x18] sm:$0xfe] }
0x1032   : > { %21423 = vmatprep.subr.bf16.mxu1 %v29305_v2 }
0x1035   : > { %21424 = vmatpush3.bf16.msra.mxu1 %v24521_v16  ;;  %v13735_v16 = vor.u32 %v29475_v15, %v13731_v12  ;;  %v29485_v12 = vshrl.u32 %v27211_v62, 16  ;;  %v14034_v15 = vld [vmem:[#allocation3 + $0x18] sm:$0xfe] }
0x1036   : > { %21425 = vmatprep.subr.bf16.mxu1 %v29305_v2 }
0x1038   : > { %21382 = vmatmul.mubr.bf16.gmra.mrb[148].mxu1 %v28395_v27 }
0x1039   : > { %21385 = vmatprep.mubr.msk.bf16.mxu1 %vm24641_vm0, %v29305_v2  ;;  %21426 = vmatpush3.bf16.msra.mxu1 %v24522_v13  ;;  %v24530_v13 = vld [vmem:[%s29225_s4 + $0x470] sm:$0xff]  }
0x103a   : > { %21427 = vmatprep.subr.bf16.mxu1 %v29305_v2 }
0x103d   : > { %21428 = vmatpush3.bf16.msra.mxu1 %v24523_v25  ;;  %v13740_v25 = vsel %vm8937_vm3, %v13735_v16, %v13739_v47  ;;  %v13789_v47 = vshrl.u32 %v13687_v49, 16  ;;  %v14074_v16 = vrot.slane %v28367_v53, 1  ;;  %v14076_v53 = vrot.slane %v28381_v37, 1 }
0x103e   : > { %21473 = vmatprep.subr.bf16.mxu1 %v29305_v2  ;;  %v14078_v37 = vrot.slane %v28395_v27, 1  ;;  %v14080_v27 = vrot.slane %v28409_v40, 1 }
0x1040   : > { %21386 = vmatmul.mubr.bf16.gmra.mrb[152].mxu1 %v28409_v40  ;;  %v14082_v40 = vrot.slane %v28416_v51, 1 }
0x1041   : > { %21389 = vmatprep.mubr.msk.bf16.mxu1 %vm24641_vm0, %v29305_v2 }
0x1048   : > { %21390 = vmatmul.mubr.bf16.gmra.mrb[156].mxu1 %v28416_v51  ;;  %v14087_v51 = vsel %vm9306_vm4, %v14084_v19, %v14086_v48 }
0x1049   : > { %21393 = vmatprep.mubr.msk.bf16.mxu1 %vm24641_vm0, %v29305_v2 }
0x1050   : > { %21394 = vmatmul.mubr.bf16.gmra.mrb[160].mxu1 %v28489_v52 }
0x1051   : > { %21397 = vmatprep.mubr.msk.bf16.mxu1 %vm24641_vm0, %v29305_v2 }
0x1058   : > { %21398 = vmatmul.mubr.bf16.gmra.mrb[164].mxu1 %v28494_v18 }
0x1059   : > { %21401 = vmatprep.mubr.msk.bf16.mxu1 %vm24641_vm0, %v29305_v2 }
0x1060   : > { %21402 = vmatmul.mubr.bf16.gmra.mrb[168].mxu1 %v28499_v57 }
0x1061   : > { %21405 = vmatprep.mubr.msk.bf16.mxu1 %vm24641_vm0, %v29305_v2 }
0x1068   : > { %21406 = vmatmul.mubr.bf16.gmra.mrb[172].mxu1 %v28504_v63 }
0x1069   : > { %21409 = vmatprep.mubr.msk.bf16.mxu1 %vm24641_vm0, %v29305_v2 }
0x1070   : > { %21410 = vmatmul.mubr.bf16.gmra.mrb[176].mxu1 %v13428_v43  ;;  %v29476_v43 = vshll.u32 %v27201_v61, 16 }
0x1071   : > { %21429 = vmatprep.mubr.msk.bf16.mxu1 %vm24641_vm0, %v29305_v2 }
0x1072   : > { %v13747_v22 = vrot.slane %v29476_v43, 1  ;;  %v24534_v43 = vld [vmem:[%s29225_s4 + $0x490] sm:$0xff]  }
0x1074   : > { %v13748_v0 = vsel %vm8937_vm3, %v13743_v7, %v13747_v22  ;;  %v24536_v7 = vld [vmem:[%s29225_s4 + $0x4a0] sm:$0xff]  }
0x1078   : > { %21430 = vmatmul.mubr.bf16.vlgmr.msra.gmra.mrb[136].mxu1 %v13716_v3 }
0x1079   : > { %21433 = vmatprep.mubr.msk.bf16.mxu1 %vm24641_vm0, %v29305_v2  ;;  %21474 = vmatpush3.bf16.msra.mxu1 %v24524_v54  ;;  %v29479_v54 = vshrl.u32 %v27201_v61, 16  ;;  %v29482_v61 = vshll.u32 %v27211_v62, 16 }
0x107a   : > { %21475 = vmatprep.subr.bf16.mxu1 %v29305_v2 }
0x107b   : > { %v13751_v3 = vor.u32 %v29479_v54, %v13747_v22  ;;  %v13771_v32 = vrot.slane %v29482_v61, 1  ;;  %v14077_v22 = vsel %vm9306_vm4, %v14074_v16, %v14076_v53  ;;  %v14081_v54 = vsel %vm9306_vm4, %v14078_v37, %v14080_v27 }
0x107c   : > { %v14090_v61 = vrot.slane %v28504_v63, 1 }
0x107d   : > { %21476 = vmatpush3.bf16.msra.mxu1 %v24525_v39  ;;  %v13756_v39 = vsel %vm8937_vm3, %v13751_v3, %v13755_v1  ;;  %v13775_v60 = vor.u32 %v29485_v12, %v13771_v32  ;;  %v24538_v1 = vld [vmem:[%s29225_s4 + $0x4b0] sm:$0xff]   ;;  %v24539_v3 = vld [vmem:[%s29225_s4 + $0x4b8] sm:$0xff]  }
0x107e   : > { %21477 = vmatprep.subr.bf16.mxu1 %v29305_v2 }
0x107f   : > { %v13780_v41 = vsel %vm8937_vm3, %v13775_v60, %v13779_v30 }
0x1080   : > { %21434 = vmatmul.mubr.bf16.gmra.mrb[140].mxu1 %v13724_v55 }
0x1081   : > { %21437 = vmatprep.mubr.msk.bf16.mxu1 %vm24641_vm0, %v29305_v2  ;;  %21478 = vmatpush3.bf16.msra.mxu1 %v24526_v58  ;;  %v29483_v58 = vshrl.u32 %v27206_v17, 16 }
0x1082   : > { %21479 = vmatprep.subr.bf16.mxu1 %v29305_v2 }
0x1083   : > { %v13767_v55 = vor.u32 %v29483_v58, %v13763_v10  ;;  %v14085_v10 = vsel %vm9306_vm4, %v14082_v40, %v14084_v19  ;;  %v14044_v58 = vld [vmem:[#allocation3 + $0x68] sm:$0x1f] }
0x1085   : > { %21480 = vmatpush3.bf16.msra.mxu1 %v24527_v23  ;;  %v13772_v23 = vsel %vm8937_vm3, %v13767_v55, %v13771_v32  ;;  %v14091_v32 = vsel %vm9306_vm4, %v14088_v29, %v14090_v61  ;;  %v14092_v55 = vrot.slane %v14044_v58, 1  ;;  %v24551_v58 = vld [vmem:[%s29225_s4 + $0x518] sm:$0xff]  }
0x1086   : > { %21481 = vmatprep.subr.bf16.mxu1 %v29305_v2 }
0x1088   : > { %21438 = vmatmul.mubr.bf16.gmra.mrb[144].mxu1 %v13732_v9  ;;  %v29486_v9 = vshrl.u32 %v27213_v8, 16  ;;  %v24532_v8 = vld [vmem:[%s29225_s4 + $0x480] sm:$0xff]  }
0x1089   : > { %21441 = vmatprep.mubr.msk.bf16.mxu1 %vm24641_vm0, %v29305_v2  ;;  %21482 = vmatpush3.bf16.msra.mxu1 %v24528_v36  ;;  %v13785_v36 = vshll.u32 %v13687_v49, 16  ;;  %v14368_v49 = vshll.u32 %v14336_v38, 16 }
0x108a   : > { %21483 = vmatprep.subr.bf16.mxu1 %v29305_v2 }
0x108b   : > { %v13787_v17 = vrot.slane %v13785_v36, 1  ;;  %v14370_v60 = vrot.slane %v14368_v49, 2  ;;  %v24540_v36 = vld [vmem:[%s29225_s4 + $0x4c0] sm:$0xff]   ;;  %v24553_v49 = vld [vmem:[%s29225_s4 + $0x528] sm:$0xff]  }
0x108d   : > { %21484 = vmatpush3.bf16.msra.mxu1 %v24529_v42  ;;  %v13783_v42 = vor.u32 %v29486_v9, %v13779_v30  ;;  %v13791_v62 = vor.u32 %v13789_v47, %v13787_v17  ;;  %v14365_v30 = vshrl.u32 %v14336_v38, 16  ;;  %v24541_v9 = vld [vmem:[%s29225_s4 + $0x4c8] sm:$0xff]   ;;  %v24544_v47 = vld [vmem:[%s29225_s4 + $0x4e0] sm:$0xff]  }
0x108e   : > { %21485 = vmatprep.subr.bf16.mxu1 %v29305_v2  ;;  %v24552_v38 = vld [vmem:[%s29225_s4 + $0x520] sm:$0xff]  }
0x108f   : > { %v13788_v11 = vsel %vm8937_vm3, %v13783_v42, %v13787_v17  ;;  %v14367_v12 = vrot.slane %v14365_v30, 1  ;;  %v24542_v42 = vld [vmem:[%s29225_s4 + $0x4d0] sm:$0xff]  }
0x1090   : > { %21442 = vmatmul.mubr.bf16.gmra.mrb[148].mxu1 %v13740_v25 }
0x1091   : > { %21445 = vmatprep.mubr.msk.bf16.mxu1 %vm24641_vm0, %v29305_v2  ;;  %21486 = vmatpush3.bf16.msra.mxu1 %v24530_v13  ;;  %v14073_v13 = vrot.slane %v14034_v15, 1  ;;  %v24545_v15 = vld [vmem:[%s29225_s4 + $0x4e8] sm:$0xff]  }
0x1092   : > { %21487 = vmatprep.subr.bf16.mxu1 %v29305_v2 }
0x1093   : > { %v14075_v25 = vsel %vm9306_vm4, %v14073_v13, %v14074_v16  ;;  %v24546_v16 = vld [vmem:[%s29225_s4 + $0x4f0] sm:$0xff]  }
0x1094   : > { %v29489_v13 = vld [vmem:[#allocation38_spill] sm:$0xff] }
0x1095   : > { %21488 = vmatpush3.bf16.msra.mxu1 %v24531_v14  ;;  %v24533_v14 = vld [vmem:[%s29225_s4 + $0x488] sm:$0xff]  }
0x1096   : > { %21533 = vmatprep.subr.bf16.mxu1 %v29305_v2 }
0x1098   : > { %21446 = vmatmul.mubr.bf16.gmra.mrb[152].mxu1 %v13748_v0  ;;  %v14079_v0 = vsel %vm9306_vm4, %v14076_v53, %v14078_v37  ;;  %v29492_v53 = vld [vmem:[#allocation41_spill] sm:$0xff] }
0x1099   : > { %21449 = vmatprep.mubr.msk.bf16.mxu1 %vm24641_vm0, %v29305_v2 }
0x10a0   : > { %21450 = vmatmul.mubr.bf16.gmra.mrb[156].mxu1 %v13756_v39  ;;  %v14083_v39 = vsel %vm9306_vm4, %v14080_v27, %v14082_v40  ;;  %v14704_v40 = vld [vmem:[#allocation3 + $0x18] sm:$0xfc] }
0x10a1   : > { %21453 = vmatprep.mubr.msk.bf16.mxu1 %vm24641_vm0, %v29305_v2  ;;  %v14743_v19 = vrot.slane %v14704_v40, 2 }
0x10a8   : > { %21454 = vmatmul.mubr.bf16.gmra.mrb[160].mxu1 %v13764_v45  ;;  %v14089_v45 = vsel %vm9306_vm4, %v14086_v48, %v14088_v29  ;;  %v28765_v29 = vld [vmem:[#allocation3 + $0x28] sm:$0xff] }
0x10a9   : > { %21457 = vmatprep.mubr.msk.bf16.mxu1 %vm24641_vm0, %v29305_v2 }
0x10b0   : > { %21458 = vmatmul.mubr.bf16.gmra.mrb[164].mxu1 %v13772_v23  ;;  %v14093_v23 = vsel %vm9306_vm4, %v14090_v61, %v14092_v55  ;;  %v24550_v61 = vld [vmem:[%s29225_s4 + $0x510] sm:$0xff]  }
0x10b1   : > { %21461 = vmatprep.mubr.msk.bf16.mxu1 %vm24641_vm0, %v29305_v2 }
0x10b8   : > { %21462 = vmatmul.mubr.bf16.gmra.mrb[168].mxu1 %v13780_v41  ;;  %v14371_v41 = vor.u32 %v14370_v60, %v14367_v12  ;;  %v28793_v12 = vld [vmem:[#allocation3 + $0x38] sm:$0xff] }
0x10b9   : > { %21465 = vmatprep.mubr.msk.bf16.mxu1 %vm24641_vm0, %v29305_v2  ;;  %v14750_v60 = vrot.slane %v28793_v12, 2 }
0x10ba   : > { %v14380_v17 = vsel %vm9598_vm5, %v14371_v41, %v27249_v26  ;;  %v24543_v26 = vld [vmem:[%s29225_s4 + $0x4d8] sm:$0xff]   ;;  %v24554_v41 = vld [vmem:[%s29225_s4 + $0x530] sm:$0xff]  }
0x10c0   : > { %21466 = vmatmul.mubr.bf16.gmra.mrb[172].mxu1 %v13788_v11  ;;  %v29487_v11 = vld [vmem:[#allocation36_spill] sm:$0xff] }
0x10c1   : > { %21469 = vmatprep.mubr.msk.bf16.mxu1 %vm24641_vm0, %v29305_v2 }
0x10c8   : > { %21470 = vmatmul.mubr.bf16.gmra.mrb[176].mxu1 %v13791_v62  ;;  %v29488_v62 = vld [vmem:[#allocation37_spill] sm:$0xff] }
0x10c9   : > { %21489 = vmatprep.mubr.msk.bf16.mxu1 %vm24641_vm0, %v29305_v2 }
0x10d0   : > { %21490 = vmatmul.mubr.bf16.vlgmr.msra.gmra.mrb[136].mxu1 %v14075_v25  ;;  %v29490_v25 = vld [vmem:[#allocation39_spill] sm:$0xff] }
0x10d1   : > { %21493 = vmatprep.mubr.msk.bf16.mxu1 %vm24641_vm0, %v29305_v2  ;;  %21534 = vmatpush3.bf16.msra.mxu1 %v24532_v8  ;;  %v24547_v8 = vld [vmem:[%s29225_s4 + $0x4f8] sm:$0xff]  }
0x10d2   : > { %21535 = vmatprep.subr.bf16.mxu1 %v29305_v2 }
0x10d5   : > { %21536 = vmatpush3.bf16.msra.mxu1 %v24533_v14  ;;  %v29491_v14 = vld [vmem:[#allocation40_spill] sm:$0xff] }
0x10d6   : > { %21537 = vmatprep.subr.bf16.mxu1 %v29305_v2 }
0x10d8   : > { %21494 = vmatmul.mubr.bf16.gmra.mrb[140].mxu1 %v14077_v22  ;;  %v14346_v22 = vld [vmem:[#allocation3 + $0x68] sm:$0x3f] }
0x10d9   : > { %21497 = vmatprep.mubr.msk.bf16.mxu1 %vm24641_vm0, %v29305_v2  ;;  %21538 = vmatpush3.bf16.msra.mxu1 %v24534_v43  ;;  %v29493_v43 = vld [vmem:[#allocation43_spill] sm:$0xff]  ;;  %v14457_v37 = vshll.u32 %v14346_v22, 16 }
0x10da   : > { %21539 = vmatprep.subr.bf16.mxu1 %v29305_v2 }
0x10dd   : > { %21540 = vmatpush3.bf16.msra.mxu1 %v24535_v31  ;;  %v14454_v31 = vshrl.u32 %v14346_v22, 16  ;;  %v24560_v22 = vld [vmem:[%s29225_s4 + $0x560] sm:$0xff]  }
0x10de   : > { %21541 = vmatprep.subr.bf16.mxu1 %v29305_v2 }
0x10e0   : > { %21498 = vmatmul.mubr.bf16.gmra.mrb[144].mxu1 %v14079_v0  ;;  %v14459_v0 = vrot.slane %v14457_v37, 2  ;;  %v24562_v37 = vld [vmem:[%s29225_s4 + $0x570] sm:$0xff]  }
0x10e1   : > { %21501 = vmatprep.mubr.msk.bf16.mxu1 %vm24641_vm0, %v29305_v2  ;;  %21542 = vmatpush3.bf16.msra.mxu1 %v24536_v7  ;;  %v14456_v7 = vrot.slane %v14454_v31, 1  ;;  %v24561_v31 = vld [vmem:[%s29225_s4 + $0x568] sm:$0xff]  }
0x10e2   : > { %21543 = vmatprep.subr.bf16.mxu1 %v29305_v2 }
0x10e3   : > { %v14460_v27 = vor.u32 %v14459_v0, %v14456_v7  ;;  %v24563_v7 = vld [vmem:[%s29225_s4 + $0x578] sm:$0xff]   ;;  %v28882_v0 = vld [vmem:[#allocation3 + $0x48] sm:$0xff] }
0x10e5   : > { %21544 = vmatpush3.bf16.msra.mxu1 %v24537_v46  ;;  %v29494_v46 = vld [vmem:[#allocation44_spill] sm:$0xff] }
0x10e6   : > { %21545 = vmatprep.subr.bf16.mxu1 %v29305_v2 }
0x10e8   : > { %21502 = vmatmul.mubr.bf16.gmra.mrb[148].mxu1 %v14081_v54 }
0x10e9   : > { %21505 = vmatprep.mubr.msk.bf16.mxu1 %vm24641_vm0, %v29305_v2  ;;  %21546 = vmatpush3.bf16.msra.mxu1 %v24538_v1  ;;  %v29495_v1 = vld [vmem:[#allocation42_spill] sm:$0xff] }
0x10ea   : > { %21547 = vmatprep.subr.bf16.mxu1 %v29305_v2  ;;  %v14461_v54 = vsel %vm9598_vm5, %v29495_v1, %v14460_v27  ;;  %v28897_v1 = vld [vmem:[#allocation3 + $0x60] sm:$0xff] }
0x10ed   : > { %21548 = vmatpush3.bf16.msra.mxu1 %v24539_v3  ;;  %v28750_v3 = vld [vmem:[#allocation3 + $0x20] sm:$0xff] }
0x10ee   : > { %21593 = vmatprep.subr.bf16.mxu1 %v29305_v2  ;;  %v15296_v40 = vshll.u32 %v28750_v3, 16 }
0x10f0   : > { %21506 = vmatmul.mubr.bf16.gmra.mrb[152].mxu1 %v14083_v39  ;;  %v14744_v39 = vrot.slane %v28750_v3, 2 }
0x10f1   : > { %21509 = vmatprep.mubr.msk.bf16.mxu1 %vm24641_vm0, %v29305_v2 }
0x10f2   : > { %v14745_v48 = vsel %vm9978_vm6, %v14743_v19, %v14744_v39  ;;  %v15298_v19 = vrot.slane %v15296_v40, 1 }
0x10f8   : > { %21510 = vmatmul.mubr.bf16.gmra.mrb[156].mxu1 %v14085_v10  ;;  %v24548_v10 = vld [vmem:[%s29225_s4 + $0x500] sm:$0xff]  }
0x10f9   : > { %21513 = vmatprep.mubr.msk.bf16.mxu1 %vm24641_vm0, %v29305_v2 }
0x1100   : > { %21514 = vmatmul.mubr.bf16.gmra.mrb[160].mxu1 %v14087_v51  ;;  %v24549_v51 = vld [vmem:[%s29225_s4 + $0x508] sm:$0xff]  }
0x1101   : > { %21517 = vmatprep.mubr.msk.bf16.mxu1 %vm24641_vm0, %v29305_v2 }
0x1108   : > { %21518 = vmatmul.mubr.bf16.gmra.mrb[164].mxu1 %v14089_v45  ;;  %v14746_v45 = vrot.slane %v28765_v29, 2 }
0x1109   : > { %21521 = vmatprep.mubr.msk.bf16.mxu1 %vm24641_vm0, %v29305_v2 }
0x1110   : > { %21522 = vmatmul.mubr.bf16.gmra.mrb[168].mxu1 %v14091_v32  ;;  %v14747_v32 = vsel %vm9978_vm6, %v14744_v39, %v14746_v45  ;;  %v15016_v39 = vld [vmem:[#allocation3 + $0x70] sm:$0xf] }
0x1111   : > { %21525 = vmatprep.mubr.msk.bf16.mxu1 %vm24641_vm0, %v29305_v2 }
0x1118   : > { %21526 = vmatmul.mubr.bf16.gmra.mrb[172].mxu1 %v14093_v23 }
0x1119   : > { %21529 = vmatprep.mubr.msk.bf16.mxu1 %vm24641_vm0, %v29305_v2 }
0x1120   : > { %21530 = vmatmul.mubr.bf16.gmra.mrb[176].mxu1 %v14092_v55  ;;  %v28779_v55 = vld [vmem:[#allocation3 + $0x30] sm:$0xff] }
0x1121   : > { %21549 = vmatprep.mubr.msk.bf16.mxu1 %vm24641_vm0, %v29305_v2  ;;  %v14748_v23 = vrot.slane %v28779_v55, 2 }
0x1123   : > { %v14749_v30 = vsel %vm9978_vm6, %v14746_v45, %v14748_v23 }
0x1128   : > { %21550 = vmatmul.mubr.bf16.vlgmr.msra.gmra.mrb[136].mxu1 %v14380_v17  ;;  %v24555_v17 = vld [vmem:[%s29225_s4 + $0x538] sm:$0xff]  }
0x1129   : > { %21553 = vmatprep.mubr.msk.bf16.mxu1 %vm24641_vm0, %v29305_v2  ;;  %21594 = vmatpush3.bf16.msra.mxu1 %v24540_v36  ;;  %v14751_v36 = vsel %vm9978_vm6, %v14748_v23, %v14750_v60  ;;  %v24565_v23 = vld [vmem:[%s29225_s4 + $0x588] sm:$0xff]  }
0x112a   : > { %21595 = vmatprep.subr.bf16.mxu1 %v29305_v2 }
0x112d   : > { %21596 = vmatpush3.bf16.msra.mxu1 %v24541_v9  ;;  %v28807_v9 = vld [vmem:[#allocation3 + $0x40] sm:$0xff] }
0x112e   : > { %21597 = vmatprep.subr.bf16.mxu1 %v29305_v2 }
0x1130   : > { %21554 = vmatmul.mubr.bf16.gmra.mrb[140].mxu1 %v29487_v11 }
0x1131   : > { %21557 = vmatprep.mubr.msk.bf16.mxu1 %vm24641_vm0, %v29305_v2  ;;  %21598 = vmatpush3.bf16.msra.mxu1 %v24542_v42  ;;  %v14752_v42 = vrot.slane %v28807_v9, 2 }
0x1132   : > { %21599 = vmatprep.subr.bf16.mxu1 %v29305_v2 }
0x1133   : > { %v14753_v11 = vsel %vm9978_vm6, %v14750_v60, %v14752_v42 }
0x1135   : > { %21600 = vmatpush3.bf16.msra.mxu1 %v24543_v26  ;;  %v14754_v26 = vrot.slane %v28489_v52, 2  ;;  %v14760_v52 = vrot.slane %v28504_v63, 2  ;;  %v24557_v63 = vld [vmem:[%s29225_s4 + $0x548] sm:$0xff]  }
0x1136   : > { %21601 = vmatprep.subr.bf16.mxu1 %v29305_v2 }
0x1138   : > { %21558 = vmatmul.mubr.bf16.gmra.mrb[144].mxu1 %v29488_v62  ;;  %v14756_v62 = vrot.slane %v28494_v18, 2  ;;  %v14714_v18 = vld [vmem:[#allocation3 + $0x68] sm:$0x3f] }
0x1139   : > { %21561 = vmatprep.mubr.msk.bf16.mxu1 %vm24641_vm0, %v29305_v2  ;;  %21602 = vmatpush3.bf16.msra.mxu1 %v24544_v47  ;;  %v14755_v47 = vsel %vm9978_vm6, %v14752_v42, %v14754_v26  ;;  %v29501_v42 = vld [vmem:[#allocation47_spill] sm:$0xff] }
0x113a   : > { %21603 = vmatprep.subr.bf16.mxu1 %v29305_v2 }
0x113d   : > { %21604 = vmatpush3.bf16.msra.mxu1 %v24545_v15  ;;  %v14757_v15 = vsel %vm9978_vm6, %v14754_v26, %v14756_v62 }
0x113e   : > { %21605 = vmatprep.subr.bf16.mxu1 %v29305_v2 }
0x1140   : > { %21562 = vmatmul.mubr.bf16.gmra.mrb[148].mxu1 %v29489_v13 }
0x1141   : > { %21565 = vmatprep.mubr.msk.bf16.mxu1 %vm24641_vm0, %v29305_v2  ;;  %21606 = vmatpush3.bf16.msra.mxu1 %v24546_v16  ;;  %v14758_v16 = vrot.slane %v28499_v57, 2  ;;  %v24556_v57 = vld [vmem:[%s29225_s4 + $0x540] sm:$0xff]  }
0x1142   : > { %21607 = vmatprep.subr.bf16.mxu1 %v29305_v2 }
0x1143   : > { %v14759_v13 = vsel %vm9978_vm6, %v14756_v62, %v14758_v16 }
0x1145   : > { %21608 = vmatpush3.bf16.msra.mxu1 %v24547_v8  ;;  %v14761_v8 = vsel %vm9978_vm6, %v14758_v16, %v14760_v52 }
0x1146   : > { %21653 = vmatprep.subr.bf16.mxu1 %v29305_v2 }
0x1148   : > { %21566 = vmatmul.mubr.bf16.gmra.mrb[152].mxu1 %v29490_v25  ;;  %v14762_v25 = vrot.slane %v14714_v18, 2  ;;  %v29505_v18 = vshrl.u32 %v29501_v42, 16 }
0x1149   : > { %21569 = vmatprep.mubr.msk.bf16.mxu1 %vm24641_vm0, %v29305_v2 }
0x1150   : > { %21570 = vmatmul.mubr.bf16.gmra.mrb[156].mxu1 %v29491_v14  ;;  %v14763_v14 = vsel %vm9978_vm6, %v14760_v52, %v14762_v25  ;;  %v29504_v52 = vshll.u32 %v27328_v20, 16 }
0x1151   : > { %21573 = vmatprep.mubr.msk.bf16.mxu1 %vm24641_vm0, %v29305_v2 }
0x1158   : > { %21574 = vmatmul.mubr.bf16.gmra.mrb[160].mxu1 %v29492_v53  ;;  %v24558_v53 = vld [vmem:[%s29225_s4 + $0x550] sm:$0xff]  }
0x1159   : > { %21577 = vmatprep.mubr.msk.bf16.mxu1 %vm24641_vm0, %v29305_v2 }
0x1160   : > { %21578 = vmatmul.mubr.bf16.gmra.mrb[164].mxu1 %v29493_v43  ;;  %v24559_v43 = vld [vmem:[%s29225_s4 + $0x558] sm:$0xff]  }
0x1161   : > { %21581 = vmatprep.mubr.msk.bf16.mxu1 %vm24641_vm0, %v29305_v2 }
0x1168   : > { %21582 = vmatmul.mubr.bf16.gmra.mrb[168].mxu1 %v29494_v46  ;;  %v28887_v46 = vld [vmem:[#allocation3 + $0x50] sm:$0xff] }
0x1169   : > { %21585 = vmatprep.mubr.msk.bf16.mxu1 %vm24641_vm0, %v29305_v2 }
0x1170   : > { %21586 = vmatmul.mubr.bf16.gmra.mrb[172].mxu1 %v14461_v54  ;;  %v28902_v54 = vld [vmem:[#allocation3 + $0x68] sm:$0xff] }
0x1171   : > { %21589 = vmatprep.mubr.msk.bf16.mxu1 %vm24641_vm0, %v29305_v2 }
0x1178   : > { %21590 = vmatmul.mubr.bf16.gmra.mrb[176].mxu1 %v14460_v27  ;;  %v28892_v27 = vld [vmem:[#allocation3 + $0x58] sm:$0xff] }
0x1179   : > { %21609 = vmatprep.mubr.msk.bf16.mxu1 %vm24641_vm0, %v29305_v2 }
0x1180   : > { %21610 = vmatmul.mubr.bf16.vlgmr.msra.gmra.mrb[136].mxu1 %v14745_v48  ;;  %v29496_v48 = vld [vmem:[#allocation45_spill] sm:$0xff] }
0x1181   : > { %21613 = vmatprep.mubr.msk.bf16.mxu1 %vm24641_vm0, %v29305_v2  ;;  %21654 = vmatpush3.bf16.msra.mxu1 %v24548_v10  ;;  %v15294_v10 = vshrl.u32 %v28750_v3, 16 }
0x1182   : > { %21655 = vmatprep.subr.bf16.mxu1 %v29305_v2 }
0x1185   : > { %21656 = vmatpush3.bf16.msra.mxu1 %v24549_v51  ;;  %v29497_v51 = vshll.u32 %v29496_v48, 16 }
0x1186   : > { %21657 = vmatprep.subr.bf16.mxu1 %v29305_v2 }
0x1187   : > { %v15303_v45 = vrot.slane %v29497_v51, 1  ;;  %v29511_v51 = vshrl.u32 %v27333_v28, 16 }
0x1188   : > { %21614 = vmatmul.mubr.bf16.gmra.mrb[140].mxu1 %v14747_v32  ;;  %v24564_v32 = vld [vmem:[%s29225_s4 + $0x580] sm:$0xff]  }
0x1189   : > { %21617 = vmatprep.mubr.msk.bf16.mxu1 %vm24641_vm0, %v29305_v2  ;;  %21658 = vmatpush3.bf16.msra.mxu1 %v24550_v61  ;;  %v15299_v61 = vor.u32 %v15298_v19, %v15294_v10 }
0x118a   : > { %21659 = vmatprep.subr.bf16.mxu1 %v29305_v2 }
0x118d   : > { %21660 = vmatpush3.bf16.msra.mxu1 %v24551_v58  ;;  %v15304_v58 = vsel %vm8937_vm3, %v15299_v61, %v15303_v45 }
0x118e   : > { %21661 = vmatprep.subr.bf16.mxu1 %v29305_v2 }
0x1190   : > { %21618 = vmatmul.mubr.bf16.gmra.mrb[144].mxu1 %v14749_v30 }
0x1191   : > { %21621 = vmatprep.mubr.msk.bf16.mxu1 %vm24641_vm0, %v29305_v2  ;;  %21662 = vmatpush3.bf16.msra.mxu1 %v24552_v38 }
0x1192   : > { %21663 = vmatprep.subr.bf16.mxu1 %v29305_v2 }
0x1195   : > { %21664 = vmatpush3.bf16.msra.mxu1 %v24553_v49  ;;  %v29500_v49 = vshrl.u32 %v29496_v48, 16 }
0x1196   : > { %21665 = vmatprep.subr.bf16.mxu1 %v29305_v2 }
0x1197   : > { %v15307_v60 = vor.u32 %v29500_v49, %v15303_v45  ;;  %v29515_v49 = vshrl.u32 %v27337_v4, 16 }
0x1198   : > { %21622 = vmatmul.mubr.bf16.gmra.mrb[148].mxu1 %v14751_v36 }
0x1199   : > { %21625 = vmatprep.mubr.msk.bf16.mxu1 %vm24641_vm0, %v29305_v2  ;;  %21666 = vmatpush3.bf16.msra.mxu1 %v24554_v41  ;;  %v24566_v41 = vld [vmem:[%s29225_s4 + $0x590] sm:$0xff]  }
0x119a   : > { %21667 = vmatprep.subr.bf16.mxu1 %v29305_v2 }
0x119d   : > { %21668 = vmatpush3.bf16.msra.mxu1 %v24555_v17  ;;  %v24567_v17 = vld [vmem:[%s29225_s4 + $0x598] sm:$0xff]  }
0x119e   : > { %21713 = vmatprep.subr.bf16.mxu1 %v29305_v2 }
0x11a0   : > { %21626 = vmatmul.mubr.bf16.gmra.mrb[152].mxu1 %v14753_v11  ;;  %v29502_v11 = vshll.u32 %v29501_v42, 16 }
0x11a1   : > { %21629 = vmatprep.mubr.msk.bf16.mxu1 %vm24641_vm0, %v29305_v2 }
0x11a2   : > { %v15319_v26 = vrot.slane %v29502_v11, 1 }
0x11a8   : > { %21630 = vmatmul.mubr.bf16.gmra.mrb[156].mxu1 %v14755_v47 }
0x11a9   : > { %21633 = vmatprep.mubr.msk.bf16.mxu1 %vm24641_vm0, %v29305_v2 }
0x11b0   : > { %21634 = vmatmul.mubr.bf16.gmra.mrb[160].mxu1 %v14757_v15  ;;  %v24568_v15 = vld [vmem:[%s29225_s4 + $0x5a0] sm:$0xff]  }
0x11b1   : > { %21637 = vmatprep.mubr.msk.bf16.mxu1 %vm24641_vm0, %v29305_v2 }
0x11b8   : > { %21638 = vmatmul.mubr.bf16.gmra.mrb[164].mxu1 %v14759_v13  ;;  %v24569_v13 = vld [vmem:[%s29225_s4 + $0x5a8] sm:$0xff]  }
0x11b9   : > { %21641 = vmatprep.mubr.msk.bf16.mxu1 %vm24641_vm0, %v29305_v2 }
0x11c0   : > { %21642 = vmatmul.mubr.bf16.gmra.mrb[168].mxu1 %v14761_v8  ;;  %v15327_v8 = vrot.slane %v29504_v52, 1  ;;  %v24574_v52 = vld [vmem:[%s29225_s4 + $0x5d0] sm:$0xff]  }
0x11c1   : > { %21645 = vmatprep.mubr.msk.bf16.mxu1 %vm24641_vm0, %v29305_v2 }
0x11c8   : > { %21646 = vmatmul.mubr.bf16.gmra.mrb[172].mxu1 %v14763_v14  ;;  %v24570_v14 = vld [vmem:[%s29225_s4 + $0x5b0] sm:$0xff]  }
0x11c9   : > { %21649 = vmatprep.mubr.msk.bf16.mxu1 %vm24641_vm0, %v29305_v2 }
0x11d0   : > { %21650 = vmatmul.mubr.bf16.gmra.mrb[176].mxu1 %v14762_v25  ;;  %v15323_v25 = vor.u32 %v29505_v18, %v15319_v26  ;;  %v24575_v18 = vld [vmem:[%s29225_s4 + $0x5d8] sm:$0xff]  }
0x11d1   : > { %21669 = vmatprep.mubr.msk.bf16.mxu1 %vm24641_vm0, %v29305_v2 }
0x11d8   : > { %21670 = vmatmul.mubr.bf16.vlgmr.msra.gmra.mrb[136].mxu1 %v28750_v3  ;;  %v29498_v3 = vld [vmem:[#allocation46_spill] sm:$0xff] }
0x11d9   : > { %21673 = vmatprep.mubr.msk.bf16.mxu1 %vm24641_vm0, %v29305_v2  ;;  %21714 = vmatpush3.bf16.msra.mxu1 %v24556_v57  ;;  %v29499_v38 = vshll.u32 %v29498_v3, 16  ;;  %v29503_v47 = vshrl.u32 %v29498_v3, 16  ;;  %v15328_v57 = vsel %vm8937_vm3, %v15323_v25, %v15327_v8  ;;  %v24576_v25 = vld [vmem:[%s29225_s4 + $0x5e0] sm:$0xff]  }
0x11da   : > { %21715 = vmatprep.subr.bf16.mxu1 %v29305_v2 }
0x11db   : > { %v15311_v30 = vrot.slane %v29499_v38, 1 }
0x11dd   : > { %21716 = vmatpush3.bf16.msra.mxu1 %v24557_v63  ;;  %v15312_v36 = vsel %vm8937_vm3, %v15307_v60, %v15311_v30  ;;  %v15315_v62 = vor.u32 %v29503_v47, %v15311_v30  ;;  %v24571_v63 = vld [vmem:[%s29225_s4 + $0x5b8] sm:$0xff]   ;;  %v15622_v47 = vld [vmem:[#allocation3 + $0x20] sm:$0xfe] }
0x11de   : > { %21717 = vmatprep.subr.bf16.mxu1 %v29305_v2  ;;  %v15275_v30 = vld [vmem:[#allocation3 + $0x70] sm:$0x1f] }
0x11df   : > { %v15320_v16 = vsel %vm8937_vm3, %v15315_v62, %v15319_v26  ;;  %v15377_v26 = vshrl.u32 %v15275_v30, 16  ;;  %v15662_v62 = vrot.slane %v28765_v29, 1 }
0x11e0   : > { %21674 = vmatmul.mubr.bf16.gmra.mrb[140].mxu1 %v28765_v29  ;;  %v15664_v29 = vrot.slane %v28779_v55, 1 }
0x11e1   : > { %21677 = vmatprep.mubr.msk.bf16.mxu1 %vm24641_vm0, %v29305_v2  ;;  %21718 = vmatpush3.bf16.msra.mxu1 %v24558_v53  ;;  %v29506_v53 = vshll.u32 %v27331_v56, 16 }
0x11e2   : > { %21719 = vmatprep.subr.bf16.mxu1 %v29305_v2 }
0x11e5   : > { %21720 = vmatpush3.bf16.msra.mxu1 %v24559_v43  ;;  %v15335_v43 = vrot.slane %v29506_v53, 1 }
0x11e6   : > { %21721 = vmatprep.subr.bf16.mxu1 %v29305_v2 }
0x11e8   : > { %21678 = vmatmul.mubr.bf16.gmra.mrb[144].mxu1 %v28779_v55  ;;  %v15666_v55 = vrot.slane %v28793_v12, 1 }
0x11e9   : > { %21681 = vmatprep.mubr.msk.bf16.mxu1 %vm24641_vm0, %v29305_v2  ;;  %21722 = vmatpush3.bf16.msra.mxu1 %v24560_v22  ;;  %v29507_v22 = vshrl.u32 %v27328_v20, 16  ;;  %v29510_v20 = vshll.u32 %v27335_v6, 16 }
0x11ea   : > { %21723 = vmatprep.subr.bf16.mxu1 %v29305_v2 }
0x11eb   : > { %v15351_v48 = vrot.slane %v29510_v20, 1 }
0x11ed   : > { %21724 = vmatpush3.bf16.msra.mxu1 %v24561_v31  ;;  %v15331_v31 = vor.u32 %v29507_v22, %v15327_v8  ;;  %v15665_v8 = vsel %vm9306_vm4, %v15662_v62, %v15664_v29 }
0x11ee   : > { %21725 = vmatprep.subr.bf16.mxu1 %v29305_v2 }
0x11f0   : > { %21682 = vmatmul.mubr.bf16.gmra.mrb[148].mxu1 %v28793_v12  ;;  %v15668_v12 = vrot.slane %v28807_v9, 1 }
0x11f1   : > { %21685 = vmatprep.mubr.msk.bf16.mxu1 %vm24641_vm0, %v29305_v2  ;;  %21726 = vmatpush3.bf16.msra.mxu1 %v24562_v37  ;;  %v15336_v37 = vsel %vm8937_vm3, %v15331_v31, %v15335_v43  ;;  %v15672_v31 = vrot.slane %v28887_v46, 1 }
0x11f2   : > { %21727 = vmatprep.subr.bf16.mxu1 %v29305_v2  ;;  %v15669_v53 = vsel %vm9306_vm4, %v15666_v55, %v15668_v12 }
0x11f5   : > { %21728 = vmatpush3.bf16.msra.mxu1 %v24563_v7  ;;  %v29508_v7 = vshll.u32 %v27333_v28, 16  ;;  %v29514_v28 = vshll.u32 %v27342_v5, 16 }
0x11f6   : > { %21773 = vmatprep.subr.bf16.mxu1 %v29305_v2 }
0x11f7   : > { %v15343_v40 = vrot.slane %v29508_v7, 1  ;;  %v15367_v38 = vrot.slane %v29514_v28, 1  ;;  %v15674_v7 = vrot.slane %v28892_v27, 1  ;;  %v24580_v28 = vld [vmem:[%s29225_s4 + $0x600] sm:$0xff]  }
0x11f8   : > { %21686 = vmatmul.mubr.bf16.gmra.mrb[152].mxu1 %v28807_v9  ;;  %v15670_v9 = vrot.slane %v28882_v0, 1 }
0x11f9   : > { %21689 = vmatprep.mubr.msk.bf16.mxu1 %vm24641_vm0, %v29305_v2  ;;  %v15347_v45 = vor.u32 %v29511_v51, %v15343_v40 }
0x11fa   : > { %v15671_v22 = vsel %vm9306_vm4, %v15668_v12, %v15670_v9 }
0x11fb   : > { %v15352_v61 = vsel %vm8937_vm3, %v15347_v45, %v15351_v48 }
0x1200   : > { %21690 = vmatmul.mubr.bf16.gmra.mrb[156].mxu1 %v28882_v0 }
0x1201   : > { %21693 = vmatprep.mubr.msk.bf16.mxu1 %vm24641_vm0, %v29305_v2 }
0x1208   : > { %21694 = vmatmul.mubr.bf16.gmra.mrb[160].mxu1 %v28887_v46 }
0x1209   : > { %21697 = vmatprep.mubr.msk.bf16.mxu1 %vm24641_vm0, %v29305_v2 }
0x1210   : > { %21698 = vmatmul.mubr.bf16.gmra.mrb[164].mxu1 %v28892_v27 }
0x1211   : > { %21701 = vmatprep.mubr.msk.bf16.mxu1 %vm24641_vm0, %v29305_v2 }
0x1218   : > { %21702 = vmatmul.mubr.bf16.gmra.mrb[168].mxu1 %v28897_v1 }
0x1219   : > { %21705 = vmatprep.mubr.msk.bf16.mxu1 %vm24641_vm0, %v29305_v2 }
0x1220   : > { %21706 = vmatmul.mubr.bf16.gmra.mrb[172].mxu1 %v28902_v54 }
0x1221   : > { %21709 = vmatprep.mubr.msk.bf16.mxu1 %vm24641_vm0, %v29305_v2 }
0x1228   : > { %21710 = vmatmul.mubr.bf16.gmra.mrb[176].mxu1 %v15016_v39  ;;  %v29509_v39 = vshrl.u32 %v27331_v56, 16  ;;  %v29512_v56 = vshll.u32 %v27337_v4, 16 }
0x1229   : > { %21729 = vmatprep.mubr.msk.bf16.mxu1 %vm24641_vm0, %v29305_v2 }
0x122a   : > { %v15339_v19 = vor.u32 %v29509_v39, %v15335_v43  ;;  %v24579_v43 = vld [vmem:[%s29225_s4 + $0x5f8] sm:$0xff]   ;;  %v15676_v39 = vrot.slane %v28897_v1, 1 }
0x122c   : > { %v15344_v10 = vsel %vm8937_vm3, %v15339_v19, %v15343_v40  ;;  %v15675_v40 = vsel %vm9306_vm4, %v15672_v31, %v15674_v7  ;;  %v15677_v19 = vsel %vm9306_vm4, %v15674_v7, %v15676_v39 }
0x1230   : > { %21730 = vmatmul.mubr.bf16.vlgmr.msra.gmra.mrb[136].mxu1 %v15304_v58  ;;  %v29513_v58 = vshrl.u32 %v27335_v6, 16 }
0x1231   : > { %21733 = vmatprep.mubr.msk.bf16.mxu1 %vm24641_vm0, %v29305_v2  ;;  %21774 = vmatpush3.bf16.msra.mxu1 %v24564_v32  ;;  %v15359_v32 = vrot.slane %v29512_v56, 1 }
0x1232   : > { %21775 = vmatprep.subr.bf16.mxu1 %v29305_v2 }
0x1233   : > { %v15363_v60 = vor.u32 %v29515_v49, %v15359_v32  ;;  %v24582_v49 = vld [vmem:[%s29225_s4 + $0x610] sm:$0xff]  }
0x1235   : > { %21776 = vmatpush3.bf16.msra.mxu1 %v24565_v23  ;;  %v15355_v23 = vor.u32 %v29513_v58, %v15351_v48  ;;  %v15632_v48 = vld [vmem:[#allocation3 + $0x70] sm:$0x1f] }
0x1236   : > { %21777 = vmatprep.subr.bf16.mxu1 %v29305_v2  ;;  %v15680_v51 = vrot.slane %v15632_v48, 1 }
0x1237   : > { %v15360_v3 = vsel %vm8937_vm3, %v15355_v23, %v15359_v32 }
0x1238   : > { %21734 = vmatmul.mubr.bf16.gmra.mrb[140].mxu1 %v15312_v36  ;;  %v15373_v36 = vshll.u32 %v15275_v30, 16  ;;  %v24581_v30 = vld [vmem:[%s29225_s4 + $0x608] sm:$0xff]  }
0x1239   : > { %21737 = vmatprep.mubr.msk.bf16.mxu1 %vm24641_vm0, %v29305_v2  ;;  %21778 = vmatpush3.bf16.msra.mxu1 %v24566_v41  ;;  %v15368_v41 = vsel %vm8937_vm3, %v15363_v60, %v15367_v38  ;;  %v24584_v60 = vld [vmem:[%s29225_s4 + $0x620] sm:$0xff]  }
0x123a   : > { %21779 = vmatprep.subr.bf16.mxu1 %v29305_v2  ;;  %v15375_v6 = vrot.slane %v15373_v36, 1  ;;  %v24586_v36 = vld [vmem:[%s29225_s4 + $0x630] sm:$0xff]  }
0x123c   : > { %v15379_v4 = vor.u32 %v15377_v26, %v15375_v6 }
0x123d   : > { %21780 = vmatpush3.bf16.msra.mxu1 %v24567_v17  ;;  %v29516_v17 = vshrl.u32 %v27342_v5, 16  ;;  %v24572_v5 = vld [vmem:[%s29225_s4 + $0x5c0] sm:$0xff]  }
0x123e   : > { %21781 = vmatprep.subr.bf16.mxu1 %v29305_v2 }
0x123f   : > { %v15371_v42 = vor.u32 %v29516_v17, %v15367_v38  ;;  %v24587_v17 = vld [vmem:[%s29225_s4 + $0x638] sm:$0xff]  }
0x1240   : > { %21738 = vmatmul.mubr.bf16.gmra.mrb[144].mxu1 %v15320_v16 }
0x1241   : > { %21741 = vmatprep.mubr.msk.bf16.mxu1 %vm24641_vm0, %v29305_v2  ;;  %21782 = vmatpush3.bf16.msra.mxu1 %v24568_v15  ;;  %v15376_v11 = vsel %vm8937_vm3, %v15371_v42, %v15375_v6  ;;  %v15661_v15 = vrot.slane %v15622_v47, 1  ;;  %v29518_v6 = vld [vmem:[#allocation49_spill] sm:$0xff]  ;;  %v15934_v42 = vld [vmem:[#allocation3 + $0x70] sm:$0x3f] }
0x1242   : > { %21783 = vmatprep.subr.bf16.mxu1 %v29305_v2  ;;  %v16292_v47 = vld [vmem:[#allocation3 + $0x20] sm:$0xfc] }
0x1243   : > { %v15663_v16 = vsel %vm9306_vm4, %v15661_v15, %v15662_v62  ;;  %v16331_v15 = vrot.slane %v16292_v47, 2 }
0x1245   : > { %21784 = vmatpush3.bf16.msra.mxu1 %v24569_v13  ;;  %v24573_v13 = vld [vmem:[%s29225_s4 + $0x5c8] sm:$0xff]  }
0x1246   : > { %21785 = vmatprep.subr.bf16.mxu1 %v29305_v2 }
0x1248   : > { %21742 = vmatmul.mubr.bf16.gmra.mrb[148].mxu1 %v15328_v57  ;;  %v24577_v57 = vld [vmem:[%s29225_s4 + $0x5e8] sm:$0xff]  }
0x1249   : > { %21745 = vmatprep.mubr.msk.bf16.mxu1 %vm24641_vm0, %v29305_v2  ;;  %21786 = vmatpush3.bf16.msra.mxu1 %v24570_v14  ;;  %v15667_v14 = vsel %vm9306_vm4, %v15664_v29, %v15666_v55 }
0x124a   : > { %21787 = vmatprep.subr.bf16.mxu1 %v29305_v2 }
0x124d   : > { %21788 = vmatpush3.bf16.msra.mxu1 %v24571_v63  ;;  %v24578_v63 = vld [vmem:[%s29225_s4 + $0x5f0] sm:$0xff]  }
0x124e   : > { %21833 = vmatprep.subr.bf16.mxu1 %v29305_v2 }
0x1250   : > { %21746 = vmatmul.mubr.bf16.gmra.mrb[152].mxu1 %v15336_v37  ;;  %v15673_v37 = vsel %vm9306_vm4, %v15670_v9, %v15672_v31 }
0x1251   : > { %21749 = vmatprep.mubr.msk.bf16.mxu1 %vm24641_vm0, %v29305_v2 }
0x1258   : > { %21750 = vmatmul.mubr.bf16.gmra.mrb[156].mxu1 %v15344_v10  ;;  %v15678_v10 = vrot.slane %v28902_v54, 1 }
0x1259   : > { %21753 = vmatprep.mubr.msk.bf16.mxu1 %vm24641_vm0, %v29305_v2 }
0x125a   : > { %v15679_v20 = vsel %vm9306_vm4, %v15676_v39, %v15678_v10  ;;  %v15681_v45 = vsel %vm9306_vm4, %v15678_v10, %v15680_v51 }
0x1260   : > { %21754 = vmatmul.mubr.bf16.gmra.mrb[160].mxu1 %v15352_v61  ;;  %v15924_v61 = vld [vmem:[#allocation3 + $0x20] sm:$0xfe] }
0x1261   : > { %21757 = vmatprep.mubr.msk.bf16.mxu1 %vm24641_vm0, %v29305_v2  ;;  %v15953_v56 = vshrl.u32 %v15924_v61, 16  ;;  %v15956_v32 = vshll.u32 %v15924_v61, 16 }
0x1263   : > { %v15955_v58 = vrot.slane %v15953_v56, 1  ;;  %v15958_v23 = vrot.slane %v15956_v32, 2 }
0x1268   : > { %21758 = vmatmul.mubr.bf16.gmra.mrb[164].mxu1 %v15360_v3  ;;  %v15959_v3 = vor.u32 %v15958_v23, %v15955_v58 }
0x1269   : > { %21761 = vmatprep.mubr.msk.bf16.mxu1 %vm24641_vm0, %v29305_v2 }
0x126a   : > { %v15968_v38 = vsel %vm9598_vm5, %v15959_v3, %v27381_v34  ;;  %v24583_v34 = vld [vmem:[%s29225_s4 + $0x618] sm:$0xff]  }
0x1270   : > { %21762 = vmatmul.mubr.bf16.gmra.mrb[168].mxu1 %v15368_v41  ;;  %v29517_v41 = vld [vmem:[#allocation48_spill] sm:$0xff] }
0x1271   : > { %21765 = vmatprep.mubr.msk.bf16.mxu1 %vm24641_vm0, %v29305_v2 }
0x1278   : > { %21766 = vmatmul.mubr.bf16.gmra.mrb[172].mxu1 %v15376_v11  ;;  %v16045_v11 = vshll.u32 %v15934_v42, 16 }
0x1279   : > { %21769 = vmatprep.mubr.msk.bf16.mxu1 %vm24641_vm0, %v29305_v2 }
0x1280   : > { %21770 = vmatmul.mubr.bf16.gmra.mrb[176].mxu1 %v15379_v4  ;;  %v16047_v4 = vrot.slane %v16045_v11, 2 }
0x1281   : > { %21789 = vmatprep.mubr.msk.bf16.mxu1 %vm24641_vm0, %v29305_v2 }
0x1288   : > { %21790 = vmatmul.mubr.bf16.vlgmr.msra.gmra.mrb[136].mxu1 %v15663_v16 }
0x1289   : > { %21793 = vmatprep.mubr.msk.bf16.mxu1 %vm24641_vm0, %v29305_v2  ;;  %21834 = vmatpush3.bf16.msra.mxu1 %v24572_v5  ;;  %v16294_v5 = vld [vmem:[#allocation3 + $0x30] sm:$0xff] }
0x128a   : > { %21835 = vmatprep.subr.bf16.mxu1 %v29305_v2 }
0x128d   : > { %21836 = vmatpush3.bf16.msra.mxu1 %v24573_v13  ;;  %v16295_v13 = vld [vmem:[#allocation3 + $0x38] sm:$0xff] }
0x128e   : > { %21837 = vmatprep.subr.bf16.mxu1 %v29305_v2  ;;  %v16336_v29 = vrot.slane %v16295_v13, 2 }
0x1290   : > { %21794 = vmatmul.mubr.bf16.gmra.mrb[140].mxu1 %v15665_v8  ;;  %v16296_v8 = vld [vmem:[#allocation3 + $0x40] sm:$0xff] }
0x1291   : > { %21797 = vmatprep.mubr.msk.bf16.mxu1 %vm24641_vm0, %v29305_v2  ;;  %21838 = vmatpush3.bf16.msra.mxu1 %v24574_v52 }
0x1292   : > { %21839 = vmatprep.subr.bf16.mxu1 %v29305_v2 }
0x1295   : > { %21840 = vmatpush3.bf16.msra.mxu1 %v24575_v18  ;;  %v16338_v18 = vrot.slane %v16296_v8, 2 }
0x1296   : > { %21841 = vmatprep.subr.bf16.mxu1 %v29305_v2 }
0x1297   : > { %v16339_v55 = vsel %vm9978_vm6, %v16336_v29, %v16338_v18 }
0x1298   : > { %21798 = vmatmul.mubr.bf16.gmra.mrb[144].mxu1 %v15667_v14 }
0x1299   : > { %21801 = vmatprep.mubr.msk.bf16.mxu1 %vm24641_vm0, %v29305_v2  ;;  %21842 = vmatpush3.bf16.msra.mxu1 %v24576_v25  ;;  %v16340_v25 = vrot.slane %v28882_v0, 2  ;;  %v16346_v0 = vrot.slane %v28897_v1, 2  ;;  %v24642_v1 = vmov 0  }
0x129a   : > { %21843 = vmatprep.subr.bf16.mxu1 %v29305_v2  ;;  %16716 = vmatprep.subr.bf16.mxu0 %v24642_v1 }
0x129b   : > { %v16341_v14 = vsel %vm9978_vm6, %v16338_v18, %v16340_v25 }
0x129d   : > { %21844 = vmatpush3.bf16.msra.mxu1 %v24577_v57  ;;  %v16342_v57 = vrot.slane %v28887_v46, 2  ;;  %v16348_v46 = vrot.slane %v28902_v54, 2  ;;  %v24590_v54 = vld [vmem:[%s29227_s6 + $0x4] ss:$8 sps:$4 sm:$0xff]  }
0x129e   : > { %21845 = vmatprep.subr.bf16.mxu1 %v29305_v2  ;;  %18113 = vmatprep.mubr.msk.bf16.mxu0 %vm440_vm1, %v24590_v54 }
0x129f   : > { %v16343_v12 = vsel %vm9978_vm6, %v16340_v25, %v16342_v57  ;;  %v16349_v9 = vsel %vm9978_vm6, %v16346_v0, %v16348_v46 }
0x12a0   : > { %21802 = vmatmul.mubr.bf16.gmra.mrb[148].mxu1 %v15669_v53 }
0x12a1   : > { %21805 = vmatprep.mubr.msk.bf16.mxu1 %vm24641_vm0, %v29305_v2  ;;  %21846 = vmatpush3.bf16.msra.mxu1 %v24578_v63  ;;  %v16344_v63 = vrot.slane %v28892_v27, 2  ;;  %v16302_v27 = vld [vmem:[#allocation3 + $0x70] sm:$0x3f] }
0x12a2   : > { %21847 = vmatprep.subr.bf16.mxu1 %v29305_v2 }
0x12a3   : > { %v16345_v53 = vsel %vm9978_vm6, %v16342_v57, %v16344_v63 }
0x12a5   : > { %21848 = vmatpush3.bf16.msra.mxu1 %v24579_v43  ;;  %v16347_v43 = vsel %vm9978_vm6, %v16344_v63, %v16346_v0 }
0x12a6   : > { %21893 = vmatprep.subr.bf16.mxu1 %v29305_v2 }
0x12a8   : > { %21806 = vmatmul.mubr.bf16.gmra.mrb[152].mxu1 %v15671_v22  ;;  %v16350_v22 = vrot.slane %v16302_v27, 2 }
0x12a9   : > { %21809 = vmatprep.mubr.msk.bf16.mxu1 %vm24641_vm0, %v29305_v2 }
0x12aa   : > { %v16351_v31 = vsel %vm9978_vm6, %v16348_v46, %v16350_v22 }
0x12b0   : > { %21810 = vmatmul.mubr.bf16.gmra.mrb[156].mxu1 %v15673_v37 }
0x12b1   : > { %21813 = vmatprep.mubr.msk.bf16.mxu1 %vm24641_vm0, %v29305_v2 }
0x12b8   : > { %21814 = vmatmul.mubr.bf16.gmra.mrb[160].mxu1 %v15675_v40 }
0x12b9   : > { %21817 = vmatprep.mubr.msk.bf16.mxu1 %vm24641_vm0, %v29305_v2 }
0x12c0   : > { %21818 = vmatmul.mubr.bf16.gmra.mrb[164].mxu1 %v15677_v19 }
0x12c1   : > { %21821 = vmatprep.mubr.msk.bf16.mxu1 %vm24641_vm0, %v29305_v2 }
0x12c8   : > { %21822 = vmatmul.mubr.bf16.gmra.mrb[168].mxu1 %v15679_v20 }
0x12c9   : > { %21825 = vmatprep.mubr.msk.bf16.mxu1 %vm24641_vm0, %v29305_v2 }
0x12d0   : > { %21826 = vmatmul.mubr.bf16.gmra.mrb[172].mxu1 %v15681_v45 }
0x12d1   : > { %21829 = vmatprep.mubr.msk.bf16.mxu1 %vm24641_vm0, %v29305_v2 }
0x12d8   : > { %21830 = vmatmul.mubr.bf16.gmra.mrb[176].mxu1 %v15680_v51 }
0x12d9   : > { %21849 = vmatprep.mubr.msk.bf16.mxu1 %vm24641_vm0, %v29305_v2 }
0x12e0   : > { %21850 = vmatmul.mubr.bf16.vlgmr.msra.gmra.mrb[136].mxu1 %v15968_v38 }
0x12e1   : > { %21853 = vmatprep.mubr.msk.bf16.mxu1 %vm24641_vm0, %v29305_v2  ;;  %21894 = vmatpush3.bf16.msra.mxu1 %v24580_v28 }
0x12e2   : > { %21895 = vmatprep.subr.bf16.mxu1 %v29305_v2 }
0x12e5   : > { %21896 = vmatpush3.bf16.msra.mxu1 %v24581_v30 }
0x12e6   : > { %21897 = vmatprep.subr.bf16.mxu1 %v29305_v2 }
0x12e8   : > { %21854 = vmatmul.mubr.bf16.gmra.mrb[140].mxu1 %v27398_v44  ;;  %v24585_v44 = vld [vmem:[%s29225_s4 + $0x628] sm:$0xff]  }
0x12e9   : > { %21857 = vmatprep.mubr.msk.bf16.mxu1 %vm24641_vm0, %v29305_v2  ;;  %21898 = vmatpush3.bf16.msra.mxu1 %v24582_v49 }
0x12ea   : > { %21899 = vmatprep.subr.bf16.mxu1 %v29305_v2 }
0x12ed   : > { %21900 = vmatpush3.bf16.msra.mxu1 %v24583_v34 }
0x12ee   : > { %21901 = vmatprep.subr.bf16.mxu1 %v29305_v2 }
0x12f0   : > { %21858 = vmatmul.mubr.bf16.gmra.mrb[144].mxu1 %v29517_v41 }
0x12f1   : > { %21861 = vmatprep.mubr.msk.bf16.mxu1 %vm24641_vm0, %v29305_v2  ;;  %21902 = vmatpush3.bf16.msra.mxu1 %v24584_v60 }
0x12f2   : > { %21903 = vmatprep.subr.bf16.mxu1 %v29305_v2 }
0x12f5   : > { %21904 = vmatpush3.bf16.msra.mxu1 %v24585_v44 }
0x12f6   : > { %21905 = vmatprep.subr.bf16.mxu1 %v29305_v2 }
0x12f8   : > { %21862 = vmatmul.mubr.bf16.gmra.mrb[148].mxu1 %v29518_v6 }
0x12f9   : > { %21865 = vmatprep.mubr.msk.bf16.mxu1 %vm24641_vm0, %v29305_v2  ;;  %21906 = vmatpush3.bf16.msra.mxu1 %v24586_v36 }
0x12fa   : > { %21907 = vmatprep.subr.bf16.mxu1 %v29305_v2 }
0x12fd   : > { %21908 = vmatpush3.bf16.msra.mxu1 %v24587_v17 }
0x1300   : > { %21866 = vmatmul.mubr.bf16.gmra.mrb[152].mxu1 %v27417_v24  ;;  %v16042_v24 = vshrl.u32 %v15934_v42, 16 }
0x1301   : > { %21869 = vmatprep.mubr.msk.bf16.mxu1 %vm24641_vm0, %v29305_v2 }
0x1302   : > { %v16044_v26 = vrot.slane %v16042_v24, 1 }
0x1308   : > { %21870 = vmatmul.mubr.bf16.gmra.mrb[156].mxu1 %v27426_v33  ;;  %v16048_v33 = vor.u32 %v16047_v4, %v16044_v26 }
0x1309   : > { %21873 = vmatprep.mubr.msk.bf16.mxu1 %vm24641_vm0, %v29305_v2 }
0x1310   : > { %21874 = vmatmul.mubr.bf16.gmra.mrb[160].mxu1 %v27437_v21  ;;  %v16049_v21 = vsel %vm9598_vm5, %v27429_v50, %v16048_v33  ;;  %v16334_v50 = vrot.slane %v16294_v5, 2 }
0x1311   : > { %21877 = vmatprep.mubr.msk.bf16.mxu1 %vm24641_vm0, %v29305_v2 }
0x1312   : > { %v16337_v52 = vsel %vm9978_vm6, %v16334_v50, %v16336_v29 }
0x1318   : > { %21878 = vmatmul.mubr.bf16.gmra.mrb[164].mxu1 %v27441_v35  ;;  %v16293_v35 = vld [vmem:[#allocation3 + $0x28] sm:$0xff] }
0x1319   : > { %21881 = vmatprep.mubr.msk.bf16.mxu1 %vm24641_vm0, %v29305_v2  ;;  %v16332_v62 = vrot.slane %v16293_v35, 2 }
0x131b   : > { %v16335_v16 = vsel %vm9978_vm6, %v16332_v62, %v16334_v50 }
0x1320   : > { %21882 = vmatmul.mubr.bf16.gmra.mrb[168].mxu1 %v27445_v59  ;;  %v16333_v59 = vsel %vm9978_vm6, %v16331_v15, %v16332_v62 }
0x1321   : > { %21885 = vmatprep.mubr.msk.bf16.mxu1 %vm24641_vm0, %v29305_v2 }
0x1328   : > { %21886 = vmatmul.mubr.bf16.gmra.mrb[172].mxu1 %v16049_v21 }
0x1329   : > { %21889 = vmatprep.mubr.msk.bf16.mxu1 %vm24641_vm0, %v29305_v2 }
0x1330   : > { %21890 = vmatmul.mubr.bf16.gmra.mrb[176].mxu1 %v16048_v33 }
0x1331   : > { %21909 = vmatprep.mubr.msk.bf16.mxu1 %vm24641_vm0, %v29305_v2 }
0x1338   : > { %21910 = vmatmul.mubr.bf16.vlgmr.msra.gmra.mrb[136].mxu1 %v16333_v59 }
0x1339   : > { %21913 = vmatprep.mubr.msk.bf16.mxu1 %vm24641_vm0, %v29305_v2 }
0x1340   : > { %21914 = vmatmul.mubr.bf16.gmra.mrb[140].mxu1 %v16335_v16 }
0x1341   : > { %21917 = vmatprep.mubr.msk.bf16.mxu1 %vm24641_vm0, %v29305_v2 }
0x1348   : > { %21918 = vmatmul.mubr.bf16.gmra.mrb[144].mxu1 %v16337_v52 }
0x1349   : > { %21921 = vmatprep.mubr.msk.bf16.mxu1 %vm24641_vm0, %v29305_v2 }
0x1350   : > { %21922 = vmatmul.mubr.bf16.gmra.mrb[148].mxu1 %v16339_v55 }
0x1351   : > { %21925 = vmatprep.mubr.msk.bf16.mxu1 %vm24641_vm0, %v29305_v2 }
0x1358   : > { %21926 = vmatmul.mubr.bf16.gmra.mrb[152].mxu1 %v16341_v14 }
0x1359   : > { %21929 = vmatprep.mubr.msk.bf16.mxu1 %vm24641_vm0, %v29305_v2 }
0x1360   : > { %21930 = vmatmul.mubr.bf16.gmra.mrb[156].mxu1 %v16343_v12 }
0x1361   : > { %21933 = vmatprep.mubr.msk.bf16.mxu1 %vm24641_vm0, %v29305_v2 }
0x1368   : > { %21934 = vmatmul.mubr.bf16.gmra.mrb[160].mxu1 %v16345_v53 }
0x1369   : > { %21937 = vmatprep.mubr.msk.bf16.mxu1 %vm24641_vm0, %v29305_v2 }
0x1370   : > { %21938 = vmatmul.mubr.bf16.gmra.mrb[164].mxu1 %v16347_v43 }
0x1371   : > { %21941 = vmatprep.mubr.msk.bf16.mxu1 %vm24641_vm0, %v29305_v2 }
0x1378   : > { %21942 = vmatmul.mubr.bf16.gmra.mrb[168].mxu1 %v16349_v9 }
0x1379   : > { %21945 = vmatprep.mubr.msk.bf16.mxu1 %vm24641_vm0, %v29305_v2 }
0x1380   : > { %21946 = vmatmul.mubr.bf16.gmra.mrb[172].mxu1 %v16351_v31 }
0x1381   : > { %21949 = vmatprep.mubr.msk.bf16.mxu1 %vm24641_vm0, %v29305_v2 }
0x1388   : > { %21950 = vmatmul.mubr.bf16.gmra.mrb[176].mxu1 %v16350_v22 }
0x140b   : > { %v16445_v37 = vpop.f32.mrb[136].mxu1 }
0x140c   : > { %16573 = vst [vmem:[#allocation4] sm:$0xff] %v16445_v37  ;;  %v21911_v7 = vpop.f32.mrb[137].mxu1 }
0x140d   : > { %v16448_v40 = vpop.f32.mrb[138].mxu1 }
0x140e   : > { %16574 = vst [vmem:[#allocation4 + $0x8] sm:$0xff] %v16448_v40  ;;  %v21912_v39 = vpop.f32.mrb[139].mxu1 }
0x1413   : > { %v16453_v19 = vpop.f32.mrb[140].mxu1 }
0x1414   : > { %16575 = vst [vmem:[#allocation4 + $0x10] sm:$0xff] %v16453_v19  ;;  %v21915_v10 = vpop.f32.mrb[141].mxu1 }
0x1415   : > { %v16456_v2 = vpop.f32.mrb[142].mxu1  ;;  %v16612_v51 = vld [vmem:[#allocation4 + $0x1] sm:$0xff] }
0x1416   : > { %16576 = vst [vmem:[#allocation4 + $0x18] sm:$0xff] %v16456_v2  ;;  %v21916_v20 = vpop.f32.mrb[143].mxu1  ;;  %v16630_v58 = vmax.f32 %v16445_v37, %v16612_v51 }
0x141b   : > { %v16461_v48 = vpop.f32.mrb[144].mxu1  ;;  %v16613_v28 = vld [vmem:[#allocation4 + $0x9] sm:$0xff] }
0x141c   : > { %16577 = vst [vmem:[#allocation4 + $0x20] sm:$0xff] %v16461_v48  ;;  %v21919_v45 = vpop.f32.mrb[145].mxu1  ;;  %v16631_v34 = vmax.f32 %v16448_v40, %v16613_v28 }
0x141d   : > { %v16464_v61 = vpop.f32.mrb[146].mxu1  ;;  %v16614_v56 = vld [vmem:[#allocation4 + $0x11] sm:$0xff] }
0x141e   : > { %16578 = vst [vmem:[#allocation4 + $0x28] sm:$0xff] %v16464_v61  ;;  %v21920_v32 = vpop.f32.mrb[147].mxu1  ;;  %v16632_v23 = vmax.f32 %v16453_v19, %v16614_v56 }
0x1420   : > { %v16654_v3 = vmax.f32 %v16630_v58, %v16632_v23 }
0x1423   : > { %v16469_v38 = vpop.f32.mrb[148].mxu1  ;;  %v16615_v30 = vld [vmem:[#allocation4 + $0x19] sm:$0xff] }
0x1424   : > { %16579 = vst [vmem:[#allocation4 + $0x30] sm:$0xff] %v16469_v38  ;;  %v21923_v49 = vpop.f32.mrb[149].mxu1  ;;  %v16633_v60 = vmax.f32 %v16456_v2, %v16615_v30 }
0x1425   : > { %v16472_v41 = vpop.f32.mrb[150].mxu1  ;;  %v16616_v44 = vld [vmem:[#allocation4 + $0x21] sm:$0xff] }
0x1426   : > { %16580 = vst [vmem:[#allocation4 + $0x38] sm:$0xff] %v16472_v41  ;;  %v21924_v36 = vpop.f32.mrb[151].mxu1  ;;  %v16655_v6 = vmax.f32 %v16631_v34, %v16633_v60  ;;  %v16634_v17 = vmax.f32 %v16461_v48, %v16616_v44 }
0x1428   : > { %v16676_v42 = vpack.c.bf16 %v16655_v6, %v16654_v3  ;;  %v16656_v24 = vmax.f32 %v16632_v23, %v16634_v17 }
0x142a   : > { %16717 = vmatpush1.bf16.msra.mxu0 %v16676_v42 }
0x142b   : > { %v16477_v11 = vpop.f32.mrb[152].mxu1  ;;  %16718 = vmatprep.subr.bf16.mxu0 %v24642_v1  ;;  %v16617_v26 = vld [vmem:[#allocation4 + $0x29] sm:$0xff] }
0x142c   : > { %16581 = vst [vmem:[#allocation4 + $0x40] sm:$0xff] %v16477_v11  ;;  %v21927_v4 = vpop.f32.mrb[153].mxu1  ;;  %v16635_v33 = vmax.f32 %v16464_v61, %v16617_v26 }
0x142d   : > { %v16480_v21 = vpop.f32.mrb[154].mxu1  ;;  %v16618_v35 = vld [vmem:[#allocation4 + $0x31] sm:$0xff] }
0x142e   : > { %16582 = vst [vmem:[#allocation4 + $0x48] sm:$0xff] %v16480_v21  ;;  %v21928_v47 = vpop.f32.mrb[155].mxu1  ;;  %v16657_v62 = vmax.f32 %v16633_v60, %v16635_v33  ;;  %v16636_v15 = vmax.f32 %v16469_v38, %v16618_v35 }
0x1430   : > { %v16677_v59 = vpack.c.bf16 %v16657_v62, %v16656_v24  ;;  %v16658_v5 = vmax.f32 %v16634_v17, %v16636_v15 }
0x1432   : > { %16719 = vmatpush1.bf16.msra.mxu0 %v16677_v59 }
0x1433   : > { %v16485_v50 = vpop.f32.mrb[156].mxu1  ;;  %16720 = vmatprep.subr.bf16.mxu0 %v24642_v1  ;;  %v16619_v16 = vld [vmem:[#allocation4 + $0x39] sm:$0xff] }
0x1434   : > { %16583 = vst [vmem:[#allocation4 + $0x50] sm:$0xff] %v16485_v50  ;;  %v21931_v13 = vpop.f32.mrb[157].mxu1  ;;  %v16637_v29 = vmax.f32 %v16472_v41, %v16619_v16 }
0x1435   : > { %v16488_v52 = vpop.f32.mrb[158].mxu1  ;;  %v16620_v8 = vld [vmem:[#allocation4 + $0x41] sm:$0xff] }
0x1436   : > { %16584 = vst [vmem:[#allocation4 + $0x58] sm:$0xff] %v16488_v52  ;;  %v21932_v18 = vpop.f32.mrb[159].mxu1  ;;  %v16659_v55 = vmax.f32 %v16635_v33, %v16637_v29  ;;  %v16638_v25 = vmax.f32 %v16477_v11, %v16620_v8 }
0x1438   : > { %v16678_v14 = vpack.c.bf16 %v16659_v55, %v16658_v5  ;;  %v16660_v57 = vmax.f32 %v16636_v15, %v16638_v25  ;;  %v24588_v55 = vld [vmem:[%s29227_s6] ss:$8 sps:$4 sm:$0xff]  }
0x143a   : > { %16721 = vmatpush1.bf16.msra.mxu0 %v16678_v14  ;;  %v18108_v14 = vld [vmem:[%s29226_s5] ss:$0 sm:$0xff] }
0x143b   : > { %v16493_v12 = vpop.f32.mrb[160].mxu1  ;;  %16722 = vmatprep.subr.bf16.mxu0 %v24642_v1  ;;  %v16621_v63 = vld [vmem:[#allocation4 + $0x49] sm:$0xff] }
0x143c   : > { %16585 = vst [vmem:[#allocation4 + $0x60] sm:$0xff] %v16493_v12  ;;  %v21935_v53 = vpop.f32.mrb[161].mxu1  ;;  %v16639_v0 = vmax.f32 %v16480_v21, %v16621_v63 }
0x143d   : > { %v16496_v43 = vpop.f32.mrb[162].mxu1  ;;  %v16622_v46 = vld [vmem:[#allocation4 + $0x51] sm:$0xff] }
0x143e   : > { %16586 = vst [vmem:[#allocation4 + $0x68] sm:$0xff] %v16496_v43  ;;  %v21936_v9 = vpop.f32.mrb[163].mxu1  ;;  %v16661_v27 = vmax.f32 %v16637_v29, %v16639_v0  ;;  %v16640_v22 = vmax.f32 %v16485_v50, %v16622_v46 }
0x1440   : > { %v16679_v31 = vpack.c.bf16 %v16661_v27, %v16660_v57  ;;  %v16662_v54 = vmax.f32 %v16638_v25, %v16640_v22  ;;  %v24593_v25 = vld [vmem:[%s29227_s6 + $0x14] ss:$8 sps:$4 sm:$0xff]  }
0x1442   : > { %16723 = vmatpush1.bf16.msra.mxu0 %v16679_v31 }
0x1443   : > { %v16501_v37 = vpop.f32.mrb[164].mxu1  ;;  %16724 = vmatprep.subr.bf16.mxu0 %v24642_v1  ;;  %v16623_v7 = vld [vmem:[#allocation4 + $0x59] sm:$0xff] }
0x1444   : > { %16587 = vst [vmem:[#allocation4 + $0x70] sm:$0xff] %v16501_v37  ;;  %v21939_v40 = vpop.f32.mrb[165].mxu1  ;;  %v16641_v39 = vmax.f32 %v16488_v52, %v16623_v7 }
0x1445   : > { %v16504_v19 = vpop.f32.mrb[166].mxu1  ;;  %v16624_v10 = vld [vmem:[#allocation4 + $0x61] sm:$0xff] }
0x1446   : > { %16588 = vst [vmem:[#allocation4 + $0x78] sm:$0xff] %v16504_v19  ;;  %v21940_v2 = vpop.f32.mrb[167].mxu1  ;;  %v16663_v20 = vmax.f32 %v16639_v0, %v16641_v39  ;;  %v16642_v48 = vmax.f32 %v16493_v12, %v16624_v10  ;;  %v16769_v12 = vlaneseq }
0x1448   : > { %v16680_v51 = vpack.c.bf16 %v16663_v20, %v16662_v54  ;;  %v16664_v45 = vmax.f32 %v16640_v22, %v16642_v48  ;;  %v16770_v27 = vshrl.u32 %v16769_v12, 7 }
0x144a   : > { %16725 = vmatpush1.bf16.msra.mxu0 %v16680_v51  ;;  %v16773_v7 = vadd.s32 24, %v16770_v27 }
0x144b   : > { %v16509_v61 = vpop.f32.mrb[168].mxu1  ;;  %16726 = vmatprep.subr.bf16.mxu0 %v24642_v1  ;;  %v16625_v56 = vld [vmem:[#allocation4 + $0x69] sm:$0xff] }
0x144c   : > { %16589 = vst [vmem:[#allocation4 + $0x80] sm:$0xff] %v16509_v61  ;;  %v21943_v32 = vpop.f32.mrb[169].mxu1  ;;  %v16643_v58 = vmax.f32 %v16496_v43, %v16625_v56  ;;  %vm16777_vm8 = vcmp.lt.s32.totalorder %v16773_v7, 25 }
0x144d   : > { %v16512_v23 = vpop.f32.mrb[170].mxu1  ;;  %v16626_v3 = vld [vmem:[#allocation4 + $0x71] sm:$0xff] }
0x144e   : > { %16590 = vst [vmem:[#allocation4 + $0x88] sm:$0xff] %v16512_v23  ;;  %v21944_v28 = vpop.f32.mrb[171].mxu1  ;;  %v16665_v38 = vmax.f32 %v16641_v39, %v16643_v58  ;;  %v16644_v30 = vmax.f32 %v16501_v37, %v16626_v3 }
0x1450   : > { %v16681_v49 = vpack.c.bf16 %v16665_v38, %v16664_v45  ;;  %v16666_v34 = vmax.f32 %v16642_v48, %v16644_v30 }
0x1452   : > { %16727 = vmatpush1.bf16.msra.mxu0 %v16681_v49 }
0x1453   : > { %v16517_v60 = vpop.f32.mrb[172].mxu1  ;;  %16728 = vmatprep.subr.bf16.mxu0 %v24642_v1  ;;  %v16627_v41 = vld [vmem:[#allocation4 + $0x79] sm:$0xff] }
0x1454   : > { %16591 = vst [vmem:[#allocation4 + $0x90] sm:$0xff] %v16517_v60  ;;  %v21947_v44 = vpop.f32.mrb[173].mxu1  ;;  %v16645_v36 = vmax.f32 %v16504_v19, %v16627_v41 }
0x1455   : > { %v16520_v6 = vpop.f32.mrb[174].mxu1  ;;  %v16628_v17 = vld [vmem:[#allocation4 + $0x81] sm:$0xff] }
0x1456   : > { %16592 = vst [vmem:[#allocation4 + $0x98] sm:$0xff] %v16520_v6  ;;  %v21948_v42 = vpop.f32.mrb[175].mxu1  ;;  %v16667_v24 = vmax.f32 %v16643_v58, %v16645_v36  ;;  %v16646_v11 = vmax.f32 %v16509_v61, %v16628_v17 }
0x1458   : > { %v16682_v26 = vpack.c.bf16 %v16667_v24, %v16666_v34  ;;  %v16668_v4 = vmax.f32 %v16644_v30, %v16646_v11 }
0x145a   : > { %16729 = vmatpush1.bf16.msra.mxu0 %v16682_v26 }
0x145b   : > { %v16525_v33 = vpop.f32.mrb[176].mxu1  ;;  %16730 = vmatprep.subr.bf16.mxu0 %v24642_v1  ;;  %v16629_v21 = vld [vmem:[#allocation4 + $0x89] sm:$0xff] }
0x145c   : > { %16593 = vst [vmem:[#allocation4 + $0xa0] sm:$0xff] %v16525_v33  ;;  %v21951_v35 = vpop.f32.mrb[177].mxu1  ;;  %v16647_v47 = vmax.f32 %v16512_v23, %v16629_v21 }
0x145d   : > { %v16528_v62 = vpop.f32.mrb[178].mxu1  ;;  %v16650_v15 = vld [vmem:[#allocation4 + $0x91] sm:$0xff] }
0x145e   : > { %v21952_v59 = vpop.f32.mrb[179].mxu1  ;;  %v16669_v5 = vmax.f32 %v16645_v36, %v16647_v47  ;;  %v16652_v50 = vmax.f32 %v16517_v60, %v16650_v15 }
0x1460   : > { %v16683_v16 = vpack.c.bf16 %v16669_v5, %v16668_v4  ;;  %v16670_v13 = vmax.f32 %v16646_v11, %v16652_v50 }
0x1462   : > { %16731 = vmatpush1.bf16.msra.mxu0 %v16683_v16 }
0x1463   : > { %16732 = vmatprep.subr.bf16.mxu0 %v24642_v1  ;;  %v16651_v29 = vld [vmem:[#allocation4 + $0x99] sm:$0xff] }
0x1464   : > { %v16653_v52 = vmax.f32 %v16520_v6, %v16651_v29  ;;  %v24591_v1 = vld [vmem:[%s29227_s6 + $0x10] ss:$8 sps:$4 sm:$0xff]  }
0x1466   : > { %v16671_v8 = vmax.f32 %v16647_v47, %v16653_v52 }
0x1468   : > { %v16684_v18 = vpack.c.bf16 %v16671_v8, %v16670_v13 }
0x146a   : > { %16733 = vmatpush1.bf16.msra.mxu0 %v16684_v18 }
0x146d   : > { %16749 = vmatmul.mubr.bf16.vlgmr.msra.gmra.mrb[76].mxu0 %v24588_v55 }
0x146e   : > { %18114 = vmatprep.mubr.msk.bf16.mxu0 %vm440_vm1, %v24593_v25 }
0x1475   : > { %16757 = vmatmul.mubr.bf16.gmra.mrb[80].mxu0 %v24591_v1 }
0x1540   : > { %v16750_v57 = vpop.f32.mrb[76].mxu0 }
0x1541   : > { %v16751_v63 = vadd.f32 %v18108_v14, %v16750_v57  ;;  %v16752_v53 = vpop.f32.mrb[77].mxu0 }
0x1542   : > { %v16753_v0 = vpop.f32.mrb[78].mxu0 }
0x1543   : > { %v16765_v43 = vmax.f32 %v16751_v63, 0.0  ;;  %v16754_v46 = vadd.f32 %v18108_v14, %v16753_v0  ;;  %v16755_v9 = vpop.f32.mrb[79].mxu0 }
0x1545   : > { %v18122_v22 = vpack.c.bf16 %v16765_v43, %v16765_v43  ;;  %v16766_v31 = vmax.f32 %v16754_v46, 0.0 }
0x1547   : > { %16802 = vst.msk [vmem:[%s16800_s26] sm:$0xf] %vm16801_vm7, %v18122_v22  ;;  %v18123_v54 = vpack.c.bf16 %v16766_v31, %v16766_v31 }
0x1548   : > { %v16758_v37 = vpop.f32.mrb[80].mxu0 }
0x1549   : > { %16803 = vst.msk [vmem:[%s16800_s26 + $0x4] sm:$0xf] %vm16801_vm7, %v18123_v54  ;;  %v16759_v40 = vadd.f32 %v18108_v14, %v16758_v37  ;;  %v16760_v39 = vpop.f32.mrb[81].mxu0 }
0x154a   : > { %v16761_v19 = vpop.f32.mrb[82].mxu0 }
0x154b   : > { %v16767_v10 = vmax.f32 %v16759_v40, 0.0  ;;  %v16762_v2 = vadd.f32 %v18108_v14, %v16761_v19  ;;  %v16763_v20 = vpop.f32.mrb[83].mxu0 }
0x154c   :  { %31 = sbr.rel (!%p29_p0) target bundleno = 1 (0x1), region = 85 }
0x154d   : > { %v18124_v48 = vpack.c.bf16 %v16767_v10, %v16767_v10  ;;  %v16768_v51 = vmax.f32 %v16762_v2, 0.0 }
0x154f   : > { %16804 = vst.msk [vmem:[%s16800_s26 + $0x8] sm:$0xf] %vm16801_vm7, %v18124_v48  ;;  %v16781_v45 = vsel %vm16777_vm8, %v16768_v51, 0.0 }
0x1550   : > { %v18125_v61 = vpack.c.bf16 %v16781_v45, %v16781_v45 }
0x1552   : > { %16805 = vst.msk [vmem:[%s16800_s26 + $0xc] sm:$0xf] %vm16801_vm7, %v18125_v61 }

</bundles_post_ra>
